<compile_context>
chip_gen: v7x
topology: tpu7x:2x2x1
jax: 0.10.0
libtpu: 0.0.40
codegen_flags: <defaults>
</compile_context>

<pallas_src>
import math
from functools import partial

import jax
import jax.numpy as jnp
from jax import lax
from jax.experimental import pallas as pl
from jax.experimental.pallas import tpu as pltpu

SCORE_W = 128  # lane-dense padded score width; column 0 holds the real score


# ------------------------- helpers -------------------------

def _round_up(x, m):
    return (x + m - 1) // m * m


def _pad_to(a, shape):
    return jnp.pad(a, [(0, t - s) for s, t in zip(a.shape, shape)])


def _vmem_caps():
    """Return (vmem_limit_bytes for CompilerParams, planning budget), generation
    aware (v7x: 64 MiB/TC, v5e/v6e: 128 MiB), conservative fallback if unknown."""
    cap = 64 * 1024 * 1024
    try:
        info = pltpu.get_tpu_info()
        cap = int(getattr(info, "vmem_capacity_bytes", cap))
    except Exception:
        pass
    limit = max(cap - 8 * 1024 * 1024, 32 * 1024 * 1024)
    budget = max(cap - 16 * 1024 * 1024, 24 * 1024 * 1024)
    return limit, budget


def _fused_fits(np_, hp, budget):
    need = (6 * np_ * np_              # bf16 adjacency branch (double-buffered + margin)
            + 4 * np_ * hp             # bf16 W1 initial support (x2 buffers)
            + 8 * np_ * SCORE_W        # f32 score output (x2 buffers)
            + np_ * 8192               # f32 intermediates live inside the kernel
            + (2 << 20))               # weights + slack
    return need <= budget


def _choose_row_tile(np_, hp, budget):
    for tm in (2048, 1024, 512, 256, 128):
        if np_ % tm:
            continue
        need = (4 * tm * np_           # bf16 adjacency row band (double-buffered)
                + 4 * np_ * hp         # bf16 support, fully resident (x2 buffers)
                + 4 * tm * hp          # bf16 next-support output
                + 8 * tm * SCORE_W     # f32 score output
                + tm * 4096 + (1 << 20))
        if need <= budget:
            return tm
    return 128


# ------------------------- kernels -------------------------

def _fused_all_layers_kernel(adj_ref, w1_ref, wcomb_ref, gb_ref, l1b_ref,
                             l2w_ref, l2b_ref, l3w_ref, l3b_ref, sout_ref,
                             *, hp, n_layers=4):
    """Whole forward for one adjacency branch: 4 GNN layers + scorer MLP, all
    operands VMEM-resident.  Statically unrolled over layers."""
    adj = adj_ref[...]                      # (Np, Np) bf16
    sup = w1_ref[...]                       # (Np, Hp) bf16  (layer-1 support is W1)
    score = jnp.zeros(sout_ref.shape, jnp.float32)
    for l in range(n_layers):
        h = jnp.dot(adj, sup, preferred_element_type=jnp.float32) + gb_ref[l]
        h = jnp.maximum(h, 0.0)
        if l < n_layers - 1:
            # F.normalize(p=2, dim=1): x * rsqrt(max(||x||^2, eps^2))
            ssq = jnp.sum(h * h, axis=1, keepdims=True)
            h = h * lax.rsqrt(jnp.maximum(ssq, 1e-24))
        hb = h.astype(jnp.bfloat16)
        # One 256-wide matmul: [x_l @ W_{l+1} | x_l @ L1]
        comb = jnp.dot(hb, wcomb_ref[l], preferred_element_type=jnp.float32)
        if l < n_layers - 1:
            sup = comb[:, :hp].astype(jnp.bfloat16)     # next layer's support
        h1 = jnp.maximum(comb[:, hp:] + l1b_ref[...], 0.0)
        h2 = jnp.maximum(
            jnp.dot(h1.astype(jnp.bfloat16), l2w_ref[...],
                    preferred_element_type=jnp.float32) + l2b_ref[...], 0.0)
        score = score + (jnp.dot(h2.astype(jnp.bfloat16), l3w_ref[...],
                                 preferred_element_type=jnp.float32) + l3b_ref[...])
    sout_ref[...] = score


def _layer_kernel(sup_ref, adj_ref, gb_ref, wcomb_ref, l1b_ref, l2w_ref,
                  l2b_ref, l3w_ref, l3b_ref, *out_refs, hp, normalize, has_next):
    """One GNN layer for one (branch, row-band): full-K adj @ support (no K axis),
    epilogue = bias + relu (+ L2 norm), fused next-support + scorer MLP."""
    if has_next:
        nsup_ref, sout_ref = out_refs
    else:
        (sout_ref,) = out_refs

    h = jnp.dot(adj_ref[...], sup_ref[...],
                preferred_element_type=jnp.float32) + gb_ref[...]
    h = jnp.maximum(h, 0.0)
    if normalize:
        ssq = jnp.sum(h * h, axis=1, keepdims=True)
        h = h * lax.rsqrt(jnp.maximum(ssq, 1e-24))
    hb = h.astype(jnp.bfloat16)

    comb = jnp.dot(hb, wcomb_ref[...], preferred_element_type=jnp.float32)
    if has_next:
        nsup_ref[...] = comb[:, :hp].astype(jnp.bfloat16)
        h1 = comb[:, hp:]
    else:
        h1 = comb
    h1 = jnp.maximum(h1 + l1b_ref[...], 0.0)
    h2 = jnp.maximum(
        jnp.dot(h1.astype(jnp.bfloat16), l2w_ref[...],
                preferred_element_type=jnp.float32) + l2b_ref[...], 0.0)
    sout_ref[...] = (jnp.dot(h2.astype(jnp.bfloat16), l3w_ref[...],
                             preferred_element_type=jnp.float32) + l3b_ref[...])


# ------------------------- pallas_call wrappers -------------------------

def _gnn_fused_all(adj, w1, wcomb, gbias, mlp, *, hp, vmem_limit):
    _, np_, _ = adj.shape

    def const(arr):
        return pl.BlockSpec(arr.shape, lambda b: (0,) * arr.ndim)

    in_specs = [
        pl.BlockSpec((None, np_, np_), lambda b: (b, 0, 0)),   # whole-branch adjacency
        const(w1), const(wcomb), const(gbias), const(mlp["l1_b"]),
        const(mlp["l2_w"]), const(mlp["l2_b"]), const(mlp["l3_w"]), const(mlp["l3_b"]),
    ]
    args = [adj, w1, wcomb, gbias, mlp["l1_b"], mlp["l2_w"], mlp["l2_b"],
            mlp["l3_w"], mlp["l3_b"]]

    return pl.pallas_call(
        partial(_fused_all_layers_kernel, hp=hp),
        out_shape=jax.ShapeDtypeStruct((2, np_, SCORE_W), jnp.float32),
        grid=(2,),
        in_specs=in_specs,
        out_specs=pl.BlockSpec((None, np_, SCORE_W), lambda b: (b, 0, 0)),
        compiler_params=pltpu.CompilerParams(
            dimension_semantics=("parallel",),          # v7x: one branch per TC
            vmem_limit_bytes=int(vmem_limit)),
    )(*args)


def _gnn_layer_tiled(adj, sup, gbias, wcomb, mlp, *, normalize, has_next,
                     tm, hp, vmem_limit):
    _, np_, _ = adj.shape
    nm = np_ // tm

    def const(arr):
        return pl.BlockSpec(arr.shape, lambda b, i: (0,) * arr.ndim)

    in_specs = [
        pl.BlockSpec((None, np_, hp), lambda b, i: (b, 0, 0)),   # support: VMEM-resident
        pl.BlockSpec((None, tm, np_), lambda b, i: (b, i, 0)),   # adjacency row band
        const(gbias), const(wcomb), const(mlp["l1_b"]), const(mlp["l2_w"]),
        const(mlp["l2_b"]), const(mlp["l3_w"]), const(mlp["l3_b"]),
    ]
    args = [sup, adj, gbias, wcomb, mlp["l1_b"], mlp["l2_w"], mlp["l2_b"],
            mlp["l3_w"], mlp["l3_b"]]

    score_shape = jax.ShapeDtypeStruct((2, np_, SCORE_W), jnp.float32)
    score_spec = pl.BlockSpec((None, tm, SCORE_W), lambda b, i: (b, i, 0))
    if has_next:
        out_shape = (jax.ShapeDtypeStruct((2, np_, hp), jnp.bfloat16), score_shape)
        out_specs = (pl.BlockSpec((None, tm, hp), lambda b, i: (b, i, 0)), score_spec)
    else:
        out_shape = score_shape
        out_specs = score_spec

    return pl.pallas_call(
        partial(_layer_kernel, hp=hp, normalize=normalize, has_next=has_next),
        out_shape=out_shape,
        grid=(2, nm),
        in_specs=in_specs,
        out_specs=out_specs,
        compiler_params=pltpu.CompilerParams(
            dimension_semantics=("parallel", "parallel"),
            vmem_limit_bytes=int(vmem_limit)),
    )(*args)


# ------------------------- model -------------------------

def init_params(key, node_input, node_hidden):
    H = node_hidden
    ks = jax.random.split(key, 14)

    def u(k, shape, stdv):
        return jax.random.uniform(k, shape, jnp.float32, -stdv, stdv)

    g_stdv = 1.0 / math.sqrt(H)          # GNN layers: 1/sqrt(out_features)
    l1_stdv = 1.0 / math.sqrt(H)         # nn.Linear: 1/sqrt(in_features)
    l2_stdv = 1.0 / math.sqrt(2 * H)
    l3_stdv = 1.0 / math.sqrt(2 * H)

    return {
        "gl1_w": u(ks[0], (node_input, H), g_stdv), "gl1_b": u(ks[1], (1, H), g_stdv),
        "gl2_w": u(ks[2], (H, H), g_stdv),          "gl2_b": u(ks[3], (1, H), g_stdv),
        "gl3_w": u(ks[4], (H, H), g_stdv),          "gl3_b": u(ks[5], (1, H), g_stdv),
        "gl4_w": u(ks[6], (H, H), g_stdv),          "gl4_b": u(ks[7], (1, H), g_stdv),
        "l1_w": u(ks[8], (H, 2 * H), l1_stdv),      "l1_b": u(ks[9], (1, 2 * H), l1_stdv),
        "l2_w": u(ks[10], (2 * H, 2 * H), l2_stdv), "l2_b": u(ks[11], (1, 2 * H), l2_stdv),
        "l3_w": u(ks[12], (2 * H, 1), l3_stdv),     "l3_b": u(ks[13], (1, 1), l3_stdv),
    }


def gnn_bet_forward(params, in_adjacent, out_adjacent, *, force_tiled=False,
                    tile_override=None):
    N = in_adjacent.shape[0]
    H = params["gl1_w"].shape[1]
    Hp = _round_up(H, 128)
    H2p = _round_up(params["l1_w"].shape[1], 128)
    bf16 = jnp.bfloat16
    vmem_limit, budget = _vmem_caps()

    np0 = _round_up(N, 128)
    use_fused = (not force_tiled) and _fused_fits(np0, Hp, budget)

    if use_fused:
        Np = np0
    elif tile_override is not None:
        tm = int(tile_override)
        Np = _round_up(N, tm)
    else:
        tm = _choose_row_tile(np0, Hp, budget)
        Np = np0

    # Both adjacency branches stacked on a leading size-2 'parallel' axis.
    adj = jnp.stack([_pad_to(in_adjacent, (Np, Np)),
                     _pad_to(out_adjacent, (Np, Np))]).astype(bf16)

    w1p = _pad_to(params["gl1_w"], (Np, Hp)).astype(bf16)
    l1wp = _pad_to(params["l1_w"], (Hp, H2p)).astype(bf16)
    # Combined per-layer weight: [W_{l+1} | L1] -> one 256-wide epilogue matmul.
    wcomb_layers = [
        jnp.concatenate([_pad_to(params[f"gl{i}_w"], (Hp, Hp)).astype(bf16), l1wp],
                        axis=1)
        for i in (2, 3, 4)]
    gbias = [_pad_to(params[f"gl{i}_b"], (1, Hp)).astype(jnp.float32)
             for i in (1, 2, 3, 4)]

    mlp = dict(
        l1_b=_pad_to(params["l1_b"], (1, H2p)).astype(jnp.float32),
        l2_w=_pad_to(params["l2_w"], (H2p, H2p)).astype(bf16),
        l2_b=_pad_to(params["l2_b"], (1, H2p)).astype(jnp.float32),
        l3_w=_pad_to(params["l3_w"], (H2p, SCORE_W)).astype(bf16),
        l3_b=_pad_to(params["l3_b"], (1, SCORE_W)).astype(jnp.float32),
    )

    if use_fused:
        # Last layer has no next support; keep the stack uniform with a zero block.
        wcomb_last = jnp.concatenate([jnp.zeros((Hp, Hp), bf16), l1wp], axis=1)
        wcomb = jnp.stack(wcomb_layers + [wcomb_last])          # (4, Hp, Hp+H2p)
        gb = jnp.stack(gbias)                                   # (4, 1, Hp)
        score = _gnn_fused_all(adj, w1p, wcomb, gb, mlp, hp=Hp, vmem_limit=vmem_limit)
        return score[0, :N, 0:1] * score[1, :N, 0:1]

    # Tiled path for graphs whose adjacency does not fit VMEM.
    sup = jnp.stack([w1p, w1p])                                 # (2, Np, Hp) bf16
    score = jnp.zeros((2, Np), jnp.float32)
    for layer in range(4):
        has_next = layer < 3
        wc = wcomb_layers[layer] if has_next else l1wp
        out = _gnn_layer_tiled(adj, sup, gbias[layer], wc, mlp,
                               normalize=(layer < 3), has_next=has_next,
                               tm=tm, hp=Hp, vmem_limit=vmem_limit)
        if has_next:
            sup, sc = out
        else:
            sc = out
        score = score + sc[:, :, 0]                             # sum layer scores
    return (score[0, :N] * score[1, :N])[:, None]


# ------------------------- pure-JAX reference (same bf16/f32 precision) ---------

def _reference_forward(params, in_adj, out_adj):
    f32 = jnp.float32

    def bf(x):
        return x.astype(jnp.bfloat16)

    def mm(a, b):
        return jnp.dot(bf(a), bf(b), preferred_element_type=f32)

    def normalize(h):
        ssq = jnp.sum(h * h, axis=1, keepdims=True)
        return h * lax.rsqrt(jnp.maximum(ssq, 1e-24))

    def mlp(x):
        h1 = jnp.maximum(mm(x, params["l1_w"]) + params["l1_b"], 0.0)
        h2 = jnp.maximum(mm(h1, params["l2_w"]) + params["l2_b"], 0.0)
        return mm(h2, params["l3_w"]) + params["l3_b"]

    def branch(adj):
        adjb = bf(adj)
        sup = bf(params["gl1_w"])
        next_w = [params["gl2_w"], params["gl3_w"], params["gl4_w"], None]
        biases = [params["gl1_b"], params["gl2_b"], params["gl3_b"], params["gl4_b"]]
        score = 0.0
        for layer in range(4):
            h = jnp.dot(adjb, sup, preferred_element_type=f32) + biases[layer]
            h = jnp.maximum(h, 0.0)
            if layer < 3:
                h = normalize(h)
            score = score + mlp(h)
            if layer < 3:
                sup = mm(h, next_w[layer]).astype(jnp.bfloat16)
        return score

    return branch(in_adj) * branch(out_adj)


# ------------------------- main -------------------------

if __name__ == "__main__":
    N = 512            # number of graph nodes (node_input == N: adjacency is the input)
    NODE_INPUT = N
    NODE_HIDDEN = 32
    DROPOUT = 0.5      # unused at inference  # TODO(synk): training-mode dropout

    key = jax.random.PRNGKey(0)
    k_params, k_in, k_out = jax.random.split(key, 3)

    params = init_params(k_params, NODE_INPUT, NODE_HIDDEN)

    # Dense stand-ins for the (sparse) normalized adjacency matrices.
    in_adj = jax.random.uniform(k_in, (N, N), jnp.float32)
    out_adj = jax.random.uniform(k_out, (N, N), jnp.float32)
    in_adj = in_adj / jnp.sum(in_adj, axis=1, keepdims=True)
    out_adj = out_adj / jnp.sum(out_adj, axis=1, keepdims=True)

    ref = _reference_forward(params, in_adj, out_adj)
    scale = float(jnp.max(jnp.abs(ref))) + 1e-6

    # Main path: fully-fused single pallas_call (adjacency fits VMEM at N=512).
    fwd = jax.jit(gnn_bet_forward)
    result = fwd(params, in_adj, out_adj)
    jax.block_until_ready(result)
    assert result.shape == (N, 1) and result.dtype == jnp.float32
    err = float(jnp.max(jnp.abs(result - ref)))
    assert err <= 2e-2 * scale + 1e-5, ("fused", err, scale)

    # Large-graph fallback path: force the tiled per-layer kernels (4 row tiles).
    fwd_tiled = jax.jit(partial(gnn_bet_forward, force_tiled=True, tile_override=128))
    result_t = fwd_tiled(params, in_adj, out_adj)
    jax.block_until_ready(result_t)
    assert result_t.shape == (N, 1) and result_t.dtype == jnp.float32
    err_t = float(jnp.max(jnp.abs(result_t - ref)))
    assert err_t <= 2e-2 * scale + 1e-5, ("tiled", err_t, scale)

    print("KERNEL_OK")
</pallas_src>

<mosaic_0001>
module attributes {stable_mosaic.version = 11 : i64} {
  func.func @_fused_all_layers_kernel(%arg0: i32, %arg1: memref<1x512x512xbf16, #tpu.memory_space<vmem>>, %arg2: memref<512x128xbf16, #tpu.memory_space<vmem>>, %arg3: memref<4x128x256xbf16, #tpu.memory_space<vmem>>, %arg4: memref<4x1x128xf32, #tpu.memory_space<vmem>>, %arg5: memref<1x128xf32, #tpu.memory_space<vmem>>, %arg6: memref<128x128xbf16, #tpu.memory_space<vmem>>, %arg7: memref<1x128xf32, #tpu.memory_space<vmem>>, %arg8: memref<128x128xbf16, #tpu.memory_space<vmem>>, %arg9: memref<1x128xf32, #tpu.memory_space<vmem>>, %arg10: memref<1x512x128xf32, #tpu.memory_space<vmem>>) attributes {dimension_semantics = [#tpu.dimension_semantics<parallel>], iteration_bounds = array<i64: 2>, scalar_prefetch = 0 : i64, scratch_operands = 0 : i64, tpu.core_type = #tpu.core_type<tc>, window_params = [{transform_indices = @transform_0, window_bounds = array<i64: 1, 512, 512>}, {pipeline_mode = #tpu.pipeline_mode<synchronous>, transform_indices = @transform_1, window_bounds = array<i64: 512, 128>}, {pipeline_mode = #tpu.pipeline_mode<synchronous>, transform_indices = @transform_2, window_bounds = array<i64: 4, 128, 256>}, {pipeline_mode = #tpu.pipeline_mode<synchronous>, transform_indices = @transform_3, window_bounds = array<i64: 4, 1, 128>}, {pipeline_mode = #tpu.pipeline_mode<synchronous>, transform_indices = @transform_4, window_bounds = array<i64: 1, 128>}, {pipeline_mode = #tpu.pipeline_mode<synchronous>, transform_indices = @transform_5, window_bounds = array<i64: 128, 128>}, {pipeline_mode = #tpu.pipeline_mode<synchronous>, transform_indices = @transform_6, window_bounds = array<i64: 1, 128>}, {pipeline_mode = #tpu.pipeline_mode<synchronous>, transform_indices = @transform_7, window_bounds = array<i64: 128, 128>}, {pipeline_mode = #tpu.pipeline_mode<synchronous>, transform_indices = @transform_8, window_bounds = array<i64: 1, 128>}, {transform_indices = @transform_9, window_bounds = array<i64: 1, 512, 128>}]} {
    %c0 = arith.constant 0 : index
    %c0_0 = arith.constant 0 : index
    %c0_1 = arith.constant 0 : index
    %0 = vector.load %arg1[%c0, %c0_0, %c0_1] : memref<1x512x512xbf16, #tpu.memory_space<vmem>>, vector<1x512x512xbf16>
    %1 = vector.shape_cast %0 : vector<1x512x512xbf16> to vector<512x512xbf16>
    %c0_2 = arith.constant 0 : index
    %c0_3 = arith.constant 0 : index
    %2 = vector.load %arg2[%c0_2, %c0_3] : memref<512x128xbf16, #tpu.memory_space<vmem>>, vector<512x128xbf16>
    %cst = arith.constant 0.000000e+00 : f32
    %3 = vector.broadcast %cst : f32 to vector<512x128xf32>
    %cst_4 = arith.constant dense<0.000000e+00> : vector<512x128xf32>
    %4 = tpu.matmul %1, %2, %cst_4 {dimension_numbers = #tpu.dot_dimension_numbers<[1], [0], [0], [1], [0, 0, 1, 1], [], []>} : vector<512x512xbf16>, vector<512x128xbf16>, vector<512x128xf32> -> vector<512x128xf32>
    %c0_5 = arith.constant 0 : index
    %c0_6 = arith.constant 0 : index
    %c0_7 = arith.constant 0 : index
    %5 = vector.load %arg4[%c0_5, %c0_6, %c0_7] : memref<4x1x128xf32, #tpu.memory_space<vmem>>, vector<1x1x128xf32>
    %6 = vector.shape_cast %5 : vector<1x1x128xf32> to vector<1x128xf32>
    %7 = vector.broadcast %6 : vector<1x128xf32> to vector<512x128xf32>
    %8 = arith.addf %4, %7 : vector<512x128xf32>
    %cst_8 = arith.constant 0.000000e+00 : f32
    %9 = vector.broadcast %cst_8 : f32 to vector<512x128xf32>
    %10 = arith.maximumf %8, %9 : vector<512x128xf32>
    %11 = arith.mulf %10, %10 : vector<512x128xf32>
    %cst_9 = arith.constant dense<0.000000e+00> : vector<512xf32>
    %12 = vector.multi_reduction <add>, %11, %cst_9 [1] : vector<512x128xf32> to vector<512xf32>
    %13 = vector.shape_cast %12 : vector<512xf32> to vector<512x1xf32>
    %cst_10 = arith.constant 1.000000e-24 : f32
    %14 = vector.broadcast %cst_10 : f32 to vector<512x1xf32>
    %15 = arith.maximumf %13, %14 : vector<512x1xf32>
    %16 = math.rsqrt %15 : vector<512x1xf32>
    %17 = vector.broadcast %16 : vector<512x1xf32> to vector<512x128xf32>
    %18 = arith.mulf %10, %17 : vector<512x128xf32>
    %19 = arith.truncf %18 : vector<512x128xf32> to vector<512x128xbf16>
    %c0_11 = arith.constant 0 : index
    %c0_12 = arith.constant 0 : index
    %c0_13 = arith.constant 0 : index
    %20 = vector.load %arg3[%c0_11, %c0_12, %c0_13] : memref<4x128x256xbf16, #tpu.memory_space<vmem>>, vector<1x128x256xbf16>
    %21 = vector.shape_cast %20 : vector<1x128x256xbf16> to vector<128x256xbf16>
    %cst_14 = arith.constant dense<0.000000e+00> : vector<512x256xf32>
    %22 = tpu.matmul %19, %21, %cst_14 {dimension_numbers = #tpu.dot_dimension_numbers<[1], [0], [0], [1], [0, 0, 1, 1], [], []>} : vector<512x128xbf16>, vector<128x256xbf16>, vector<512x256xf32> -> vector<512x256xf32>
    %23 = vector.extract_strided_slice %22 {offsets = [0, 0], sizes = [512, 128], strides = [1, 1]} : vector<512x256xf32> to vector<512x128xf32>
    %24 = arith.truncf %23 : vector<512x128xf32> to vector<512x128xbf16>
    %25 = vector.extract_strided_slice %22 {offsets = [0, 128], sizes = [512, 128], strides = [1, 1]} : vector<512x256xf32> to vector<512x128xf32>
    %c0_15 = arith.constant 0 : index
    %c0_16 = arith.constant 0 : index
    %26 = vector.load %arg5[%c0_15, %c0_16] : memref<1x128xf32, #tpu.memory_space<vmem>>, vector<1x128xf32>
    %27 = vector.broadcast %26 : vector<1x128xf32> to vector<512x128xf32>
    %28 = arith.addf %25, %27 : vector<512x128xf32>
    %cst_17 = arith.constant 0.000000e+00 : f32
    %29 = vector.broadcast %cst_17 : f32 to vector<512x128xf32>
    %30 = arith.maximumf %28, %29 : vector<512x128xf32>
    %31 = arith.truncf %30 : vector<512x128xf32> to vector<512x128xbf16>
    %c0_18 = arith.constant 0 : index
    %c0_19 = arith.constant 0 : index
    %32 = vector.load %arg6[%c0_18, %c0_19] : memref<128x128xbf16, #tpu.memory_space<vmem>>, vector<128x128xbf16>
    %cst_20 = arith.constant dense<0.000000e+00> : vector<512x128xf32>
    %33 = tpu.matmul %31, %32, %cst_20 {dimension_numbers = #tpu.dot_dimension_numbers<[1], [0], [0], [1], [0, 0, 1, 1], [], []>} : vector<512x128xbf16>, vector<128x128xbf16>, vector<512x128xf32> -> vector<512x128xf32>
    %c0_21 = arith.constant 0 : index
    %c0_22 = arith.constant 0 : index
    %34 = vector.load %arg7[%c0_21, %c0_22] : memref<1x128xf32, #tpu.memory_space<vmem>>, vector<1x128xf32>
    %35 = vector.broadcast %34 : vector<1x128xf32> to vector<512x128xf32>
    %36 = arith.addf %33, %35 : vector<512x128xf32>
    %cst_23 = arith.constant 0.000000e+00 : f32
    %37 = vector.broadcast %cst_23 : f32 to vector<512x128xf32>
    %38 = arith.maximumf %36, %37 : vector<512x128xf32>
    %39 = arith.truncf %38 : vector<512x128xf32> to vector<512x128xbf16>
    %c0_24 = arith.constant 0 : index
    %c0_25 = arith.constant 0 : index
    %40 = vector.load %arg8[%c0_24, %c0_25] : memref<128x128xbf16, #tpu.memory_space<vmem>>, vector<128x128xbf16>
    %cst_26 = arith.constant dense<0.000000e+00> : vector<512x128xf32>
    %41 = tpu.matmul %39, %40, %cst_26 {dimension_numbers = #tpu.dot_dimension_numbers<[1], [0], [0], [1], [0, 0, 1, 1], [], []>} : vector<512x128xbf16>, vector<128x128xbf16>, vector<512x128xf32> -> vector<512x128xf32>
    %c0_27 = arith.constant 0 : index
    %c0_28 = arith.constant 0 : index
    %42 = vector.load %arg9[%c0_27, %c0_28] : memref<1x128xf32, #tpu.memory_space<vmem>>, vector<1x128xf32>
    %43 = vector.broadcast %42 : vector<1x128xf32> to vector<512x128xf32>
    %44 = arith.addf %41, %43 : vector<512x128xf32>
    %45 = arith.addf %3, %44 : vector<512x128xf32>
    %cst_29 = arith.constant dense<0.000000e+00> : vector<512x128xf32>
    %46 = tpu.matmul %1, %24, %cst_29 {dimension_numbers = #tpu.dot_dimension_numbers<[1], [0], [0], [1], [0, 0, 1, 1], [], []>} : vector<512x512xbf16>, vector<512x128xbf16>, vector<512x128xf32> -> vector<512x128xf32>
    %c1 = arith.constant 1 : index
    %c0_30 = arith.constant 0 : index
    %c0_31 = arith.constant 0 : index
    %47 = vector.load %arg4[%c1, %c0_30, %c0_31] : memref<4x1x128xf32, #tpu.memory_space<vmem>>, vector<1x1x128xf32>
    %48 = vector.shape_cast %47 : vector<1x1x128xf32> to vector<1x128xf32>
    %49 = vector.broadcast %48 : vector<1x128xf32> to vector<512x128xf32>
    %50 = arith.addf %46, %49 : vector<512x128xf32>
    %cst_32 = arith.constant 0.000000e+00 : f32
    %51 = vector.broadcast %cst_32 : f32 to vector<512x128xf32>
    %52 = arith.maximumf %50, %51 : vector<512x128xf32>
    %53 = arith.mulf %52, %52 : vector<512x128xf32>
    %cst_33 = arith.constant dense<0.000000e+00> : vector<512xf32>
    %54 = vector.multi_reduction <add>, %53, %cst_33 [1] : vector<512x128xf32> to vector<512xf32>
    %55 = vector.shape_cast %54 : vector<512xf32> to vector<512x1xf32>
    %cst_34 = arith.constant 1.000000e-24 : f32
    %56 = vector.broadcast %cst_34 : f32 to vector<512x1xf32>
    %57 = arith.maximumf %55, %56 : vector<512x1xf32>
    %58 = math.rsqrt %57 : vector<512x1xf32>
    %59 = vector.broadcast %58 : vector<512x1xf32> to vector<512x128xf32>
    %60 = arith.mulf %52, %59 : vector<512x128xf32>
    %61 = arith.truncf %60 : vector<512x128xf32> to vector<512x128xbf16>
    %c1_35 = arith.constant 1 : index
    %c0_36 = arith.constant 0 : index
    %c0_37 = arith.constant 0 : index
    %62 = vector.load %arg3[%c1_35, %c0_36, %c0_37] : memref<4x128x256xbf16, #tpu.memory_space<vmem>>, vector<1x128x256xbf16>
    %63 = vector.shape_cast %62 : vector<1x128x256xbf16> to vector<128x256xbf16>
    %cst_38 = arith.constant dense<0.000000e+00> : vector<512x256xf32>
    %64 = tpu.matmul %61, %63, %cst_38 {dimension_numbers = #tpu.dot_dimension_numbers<[1], [0], [0], [1], [0, 0, 1, 1], [], []>} : vector<512x128xbf16>, vector<128x256xbf16>, vector<512x256xf32> -> vector<512x256xf32>
    %65 = vector.extract_strided_slice %64 {offsets = [0, 0], sizes = [512, 128], strides = [1, 1]} : vector<512x256xf32> to vector<512x128xf32>
    %66 = arith.truncf %65 : vector<512x128xf32> to vector<512x128xbf16>
    %67 = vector.extract_strided_slice %64 {offsets = [0, 128], sizes = [512, 128], strides = [1, 1]} : vector<512x256xf32> to vector<512x128xf32>
    %c0_39 = arith.constant 0 : index
    %c0_40 = arith.constant 0 : index
    %68 = vector.load %arg5[%c0_39, %c0_40] : memref<1x128xf32, #tpu.memory_space<vmem>>, vector<1x128xf32>
    %69 = vector.broadcast %68 : vector<1x128xf32> to vector<512x128xf32>
    %70 = arith.addf %67, %69 : vector<512x128xf32>
    %cst_41 = arith.constant 0.000000e+00 : f32
    %71 = vector.broadcast %cst_41 : f32 to vector<512x128xf32>
    %72 = arith.maximumf %70, %71 : vector<512x128xf32>
    %73 = arith.truncf %72 : vector<512x128xf32> to vector<512x128xbf16>
    %c0_42 = arith.constant 0 : index
    %c0_43 = arith.constant 0 : index
    %74 = vector.load %arg6[%c0_42, %c0_43] : memref<128x128xbf16, #tpu.memory_space<vmem>>, vector<128x128xbf16>
    %cst_44 = arith.constant dense<0.000000e+00> : vector<512x128xf32>
    %75 = tpu.matmul %73, %74, %cst_44 {dimension_numbers = #tpu.dot_dimension_numbers<[1], [0], [0], [1], [0, 0, 1, 1], [], []>} : vector<512x128xbf16>, vector<128x128xbf16>, vector<512x128xf32> -> vector<512x128xf32>
    %c0_45 = arith.constant 0 : index
    %c0_46 = arith.constant 0 : index
    %76 = vector.load %arg7[%c0_45, %c0_46] : memref<1x128xf32, #tpu.memory_space<vmem>>, vector<1x128xf32>
    %77 = vector.broadcast %76 : vector<1x128xf32> to vector<512x128xf32>
    %78 = arith.addf %75, %77 : vector<512x128xf32>
    %cst_47 = arith.constant 0.000000e+00 : f32
    %79 = vector.broadcast %cst_47 : f32 to vector<512x128xf32>
    %80 = arith.maximumf %78, %79 : vector<512x128xf32>
    %81 = arith.truncf %80 : vector<512x128xf32> to vector<512x128xbf16>
    %c0_48 = arith.constant 0 : index
    %c0_49 = arith.constant 0 : index
    %82 = vector.load %arg8[%c0_48, %c0_49] : memref<128x128xbf16, #tpu.memory_space<vmem>>, vector<128x128xbf16>
    %cst_50 = arith.constant dense<0.000000e+00> : vector<512x128xf32>
    %83 = tpu.matmul %81, %82, %cst_50 {dimension_numbers = #tpu.dot_dimension_numbers<[1], [0], [0], [1], [0, 0, 1, 1], [], []>} : vector<512x128xbf16>, vector<128x128xbf16>, vector<512x128xf32> -> vector<512x128xf32>
    %c0_51 = arith.constant 0 : index
    %c0_52 = arith.constant 0 : index
    %84 = vector.load %arg9[%c0_51, %c0_52] : memref<1x128xf32, #tpu.memory_space<vmem>>, vector<1x128xf32>
    %85 = vector.broadcast %84 : vector<1x128xf32> to vector<512x128xf32>
    %86 = arith.addf %83, %85 : vector<512x128xf32>
    %87 = arith.addf %45, %86 : vector<512x128xf32>
    %cst_53 = arith.constant dense<0.000000e+00> : vector<512x128xf32>
    %88 = tpu.matmul %1, %66, %cst_53 {dimension_numbers = #tpu.dot_dimension_numbers<[1], [0], [0], [1], [0, 0, 1, 1], [], []>} : vector<512x512xbf16>, vector<512x128xbf16>, vector<512x128xf32> -> vector<512x128xf32>
    %c2 = arith.constant 2 : index
    %c0_54 = arith.constant 0 : index
    %c0_55 = arith.constant 0 : index
    %89 = vector.load %arg4[%c2, %c0_54, %c0_55] : memref<4x1x128xf32, #tpu.memory_space<vmem>>, vector<1x1x128xf32>
    %90 = vector.shape_cast %89 : vector<1x1x128xf32> to vector<1x128xf32>
    %91 = vector.broadcast %90 : vector<1x128xf32> to vector<512x128xf32>
    %92 = arith.addf %88, %91 : vector<512x128xf32>
    %cst_56 = arith.constant 0.000000e+00 : f32
    %93 = vector.broadcast %cst_56 : f32 to vector<512x128xf32>
    %94 = arith.maximumf %92, %93 : vector<512x128xf32>
    %95 = arith.mulf %94, %94 : vector<512x128xf32>
    %cst_57 = arith.constant dense<0.000000e+00> : vector<512xf32>
    %96 = vector.multi_reduction <add>, %95, %cst_57 [1] : vector<512x128xf32> to vector<512xf32>
    %97 = vector.shape_cast %96 : vector<512xf32> to vector<512x1xf32>
    %cst_58 = arith.constant 1.000000e-24 : f32
    %98 = vector.broadcast %cst_58 : f32 to vector<512x1xf32>
    %99 = arith.maximumf %97, %98 : vector<512x1xf32>
    %100 = math.rsqrt %99 : vector<512x1xf32>
    %101 = vector.broadcast %100 : vector<512x1xf32> to vector<512x128xf32>
    %102 = arith.mulf %94, %101 : vector<512x128xf32>
    %103 = arith.truncf %102 : vector<512x128xf32> to vector<512x128xbf16>
    %c2_59 = arith.constant 2 : index
    %c0_60 = arith.constant 0 : index
    %c0_61 = arith.constant 0 : index
    %104 = vector.load %arg3[%c2_59, %c0_60, %c0_61] : memref<4x128x256xbf16, #tpu.memory_space<vmem>>, vector<1x128x256xbf16>
    %105 = vector.shape_cast %104 : vector<1x128x256xbf16> to vector<128x256xbf16>
    %cst_62 = arith.constant dense<0.000000e+00> : vector<512x256xf32>
    %106 = tpu.matmul %103, %105, %cst_62 {dimension_numbers = #tpu.dot_dimension_numbers<[1], [0], [0], [1], [0, 0, 1, 1], [], []>} : vector<512x128xbf16>, vector<128x256xbf16>, vector<512x256xf32> -> vector<512x256xf32>
    %107 = vector.extract_strided_slice %106 {offsets = [0, 0], sizes = [512, 128], strides = [1, 1]} : vector<512x256xf32> to vector<512x128xf32>
    %108 = arith.truncf %107 : vector<512x128xf32> to vector<512x128xbf16>
    %109 = vector.extract_strided_slice %106 {offsets = [0, 128], sizes = [512, 128], strides = [1, 1]} : vector<512x256xf32> to vector<512x128xf32>
    %c0_63 = arith.constant 0 : index
    %c0_64 = arith.constant 0 : index
    %110 = vector.load %arg5[%c0_63, %c0_64] : memref<1x128xf32, #tpu.memory_space<vmem>>, vector<1x128xf32>
    %111 = vector.broadcast %110 : vector<1x128xf32> to vector<512x128xf32>
    %112 = arith.addf %109, %111 : vector<512x128xf32>
    %cst_65 = arith.constant 0.000000e+00 : f32
    %113 = vector.broadcast %cst_65 : f32 to vector<512x128xf32>
    %114 = arith.maximumf %112, %113 : vector<512x128xf32>
    %115 = arith.truncf %114 : vector<512x128xf32> to vector<512x128xbf16>
    %c0_66 = arith.constant 0 : index
    %c0_67 = arith.constant 0 : index
    %116 = vector.load %arg6[%c0_66, %c0_67] : memref<128x128xbf16, #tpu.memory_space<vmem>>, vector<128x128xbf16>
    %cst_68 = arith.constant dense<0.000000e+00> : vector<512x128xf32>
    %117 = tpu.matmul %115, %116, %cst_68 {dimension_numbers = #tpu.dot_dimension_numbers<[1], [0], [0], [1], [0, 0, 1, 1], [], []>} : vector<512x128xbf16>, vector<128x128xbf16>, vector<512x128xf32> -> vector<512x128xf32>
    %c0_69 = arith.constant 0 : index
    %c0_70 = arith.constant 0 : index
    %118 = vector.load %arg7[%c0_69, %c0_70] : memref<1x128xf32, #tpu.memory_space<vmem>>, vector<1x128xf32>
    %119 = vector.broadcast %118 : vector<1x128xf32> to vector<512x128xf32>
    %120 = arith.addf %117, %119 : vector<512x128xf32>
    %cst_71 = arith.constant 0.000000e+00 : f32
    %121 = vector.broadcast %cst_71 : f32 to vector<512x128xf32>
    %122 = arith.maximumf %120, %121 : vector<512x128xf32>
    %123 = arith.truncf %122 : vector<512x128xf32> to vector<512x128xbf16>
    %c0_72 = arith.constant 0 : index
    %c0_73 = arith.constant 0 : index
    %124 = vector.load %arg8[%c0_72, %c0_73] : memref<128x128xbf16, #tpu.memory_space<vmem>>, vector<128x128xbf16>
    %cst_74 = arith.constant dense<0.000000e+00> : vector<512x128xf32>
    %125 = tpu.matmul %123, %124, %cst_74 {dimension_numbers = #tpu.dot_dimension_numbers<[1], [0], [0], [1], [0, 0, 1, 1], [], []>} : vector<512x128xbf16>, vector<128x128xbf16>, vector<512x128xf32> -> vector<512x128xf32>
    %c0_75 = arith.constant 0 : index
    %c0_76 = arith.constant 0 : index
    %126 = vector.load %arg9[%c0_75, %c0_76] : memref<1x128xf32, #tpu.memory_space<vmem>>, vector<1x128xf32>
    %127 = vector.broadcast %126 : vector<1x128xf32> to vector<512x128xf32>
    %128 = arith.addf %125, %127 : vector<512x128xf32>
    %129 = arith.addf %87, %128 : vector<512x128xf32>
    %cst_77 = arith.constant dense<0.000000e+00> : vector<512x128xf32>
    %130 = tpu.matmul %1, %108, %cst_77 {dimension_numbers = #tpu.dot_dimension_numbers<[1], [0], [0], [1], [0, 0, 1, 1], [], []>} : vector<512x512xbf16>, vector<512x128xbf16>, vector<512x128xf32> -> vector<512x128xf32>
    %c3 = arith.constant 3 : index
    %c0_78 = arith.constant 0 : index
    %c0_79 = arith.constant 0 : index
    %131 = vector.load %arg4[%c3, %c0_78, %c0_79] : memref<4x1x128xf32, #tpu.memory_space<vmem>>, vector<1x1x128xf32>
    %132 = vector.shape_cast %131 : vector<1x1x128xf32> to vector<1x128xf32>
    %133 = vector.broadcast %132 : vector<1x128xf32> to vector<512x128xf32>
    %134 = arith.addf %130, %133 : vector<512x128xf32>
    %cst_80 = arith.constant 0.000000e+00 : f32
    %135 = vector.broadcast %cst_80 : f32 to vector<512x128xf32>
    %136 = arith.maximumf %134, %135 : vector<512x128xf32>
    %137 = arith.truncf %136 : vector<512x128xf32> to vector<512x128xbf16>
    %c3_81 = arith.constant 3 : index
    %c0_82 = arith.constant 0 : index
    %c0_83 = arith.constant 0 : index
    %138 = vector.load %arg3[%c3_81, %c0_82, %c0_83] : memref<4x128x256xbf16, #tpu.memory_space<vmem>>, vector<1x128x256xbf16>
    %139 = vector.shape_cast %138 : vector<1x128x256xbf16> to vector<128x256xbf16>
    %cst_84 = arith.constant dense<0.000000e+00> : vector<512x256xf32>
    %140 = tpu.matmul %137, %139, %cst_84 {dimension_numbers = #tpu.dot_dimension_numbers<[1], [0], [0], [1], [0, 0, 1, 1], [], []>} : vector<512x128xbf16>, vector<128x256xbf16>, vector<512x256xf32> -> vector<512x256xf32>
    %141 = vector.extract_strided_slice %140 {offsets = [0, 128], sizes = [512, 128], strides = [1, 1]} : vector<512x256xf32> to vector<512x128xf32>
    %c0_85 = arith.constant 0 : index
    %c0_86 = arith.constant 0 : index
    %142 = vector.load %arg5[%c0_85, %c0_86] : memref<1x128xf32, #tpu.memory_space<vmem>>, vector<1x128xf32>
    %143 = vector.broadcast %142 : vector<1x128xf32> to vector<512x128xf32>
    %144 = arith.addf %141, %143 : vector<512x128xf32>
    %cst_87 = arith.constant 0.000000e+00 : f32
    %145 = vector.broadcast %cst_87 : f32 to vector<512x128xf32>
    %146 = arith.maximumf %144, %145 : vector<512x128xf32>
    %147 = arith.truncf %146 : vector<512x128xf32> to vector<512x128xbf16>
    %c0_88 = arith.constant 0 : index
    %c0_89 = arith.constant 0 : index
    %148 = vector.load %arg6[%c0_88, %c0_89] : memref<128x128xbf16, #tpu.memory_space<vmem>>, vector<128x128xbf16>
    %cst_90 = arith.constant dense<0.000000e+00> : vector<512x128xf32>
    %149 = tpu.matmul %147, %148, %cst_90 {dimension_numbers = #tpu.dot_dimension_numbers<[1], [0], [0], [1], [0, 0, 1, 1], [], []>} : vector<512x128xbf16>, vector<128x128xbf16>, vector<512x128xf32> -> vector<512x128xf32>
    %c0_91 = arith.constant 0 : index
    %c0_92 = arith.constant 0 : index
    %150 = vector.load %arg7[%c0_91, %c0_92] : memref<1x128xf32, #tpu.memory_space<vmem>>, vector<1x128xf32>
    %151 = vector.broadcast %150 : vector<1x128xf32> to vector<512x128xf32>
    %152 = arith.addf %149, %151 : vector<512x128xf32>
    %cst_93 = arith.constant 0.000000e+00 : f32
    %153 = vector.broadcast %cst_93 : f32 to vector<512x128xf32>
    %154 = arith.maximumf %152, %153 : vector<512x128xf32>
    %155 = arith.truncf %154 : vector<512x128xf32> to vector<512x128xbf16>
    %c0_94 = arith.constant 0 : index
    %c0_95 = arith.constant 0 : index
    %156 = vector.load %arg8[%c0_94, %c0_95] : memref<128x128xbf16, #tpu.memory_space<vmem>>, vector<128x128xbf16>
    %cst_96 = arith.constant dense<0.000000e+00> : vector<512x128xf32>
    %157 = tpu.matmul %155, %156, %cst_96 {dimension_numbers = #tpu.dot_dimension_numbers<[1], [0], [0], [1], [0, 0, 1, 1], [], []>} : vector<512x128xbf16>, vector<128x128xbf16>, vector<512x128xf32> -> vector<512x128xf32>
    %c0_97 = arith.constant 0 : index
    %c0_98 = arith.constant 0 : index
    %158 = vector.load %arg9[%c0_97, %c0_98] : memref<1x128xf32, #tpu.memory_space<vmem>>, vector<1x128xf32>
    %159 = vector.broadcast %158 : vector<1x128xf32> to vector<512x128xf32>
    %160 = arith.addf %157, %159 : vector<512x128xf32>
    %161 = arith.addf %129, %160 : vector<512x128xf32>
    %c0_99 = arith.constant 0 : index
    %c0_100 = arith.constant 0 : index
    %c0_101 = arith.constant 0 : index
    %162 = vector.load %arg10[%c0_99, %c0_100, %c0_101] : memref<1x512x128xf32, #tpu.memory_space<vmem>>, vector<1x512x128xf32>
    %163 = vector.shape_cast %162 : vector<1x512x128xf32> to vector<512x128xf32>
    %164 = vector.shape_cast %161 : vector<512x128xf32> to vector<1x512x128xf32>
    tpu.vector_store %arg10[%c0_99, %c0_100, %c0_101], %164 {strides = array<i32>} : memref<1x512x128xf32, #tpu.memory_space<vmem>>, vector<1x512x128xf32>,
    return
  }
  func.func @transform_0(%arg0: i32) -> (i32, i32, i32) {
    %c0_i32 = arith.constant 0 : i32
    %c0_i32_0 = arith.constant 0 : i32
    %c0_i32_1 = arith.constant 0 : i32
    return %arg0, %c0_i32, %c0_i32_0 : i32, i32, i32
  }
  func.func @transform_1(%arg0: i32) -> (i32, i32) {
    %c0_i32 = arith.constant 0 : i32
    %c0_i32_0 = arith.constant 0 : i32
    %c0_i32_1 = arith.constant 0 : i32
    return %c0_i32, %c0_i32_0 : i32, i32
  }
  func.func @transform_2(%arg0: i32) -> (i32, i32, i32) {
    %c0_i32 = arith.constant 0 : i32
    %c0_i32_0 = arith.constant 0 : i32
    %c0_i32_1 = arith.constant 0 : i32
    %c0_i32_2 = arith.constant 0 : i32
    return %c0_i32, %c0_i32_0, %c0_i32_1 : i32, i32, i32
  }
  func.func @transform_3(%arg0: i32) -> (i32, i32, i32) {
    %c0_i32 = arith.constant 0 : i32
    %c0_i32_0 = arith.constant 0 : i32
    %c0_i32_1 = arith.constant 0 : i32
    %c0_i32_2 = arith.constant 0 : i32
    return %c0_i32, %c0_i32_0, %c0_i32_1 : i32, i32, i32
  }
  func.func @transform_4(%arg0: i32) -> (i32, i32) {
    %c0_i32 = arith.constant 0 : i32
    %c0_i32_0 = arith.constant 0 : i32
    %c0_i32_1 = arith.constant 0 : i32
    return %c0_i32, %c0_i32_0 : i32, i32
  }
  func.func @transform_5(%arg0: i32) -> (i32, i32) {
    %c0_i32 = arith.constant 0 : i32
    %c0_i32_0 = arith.constant 0 : i32
    %c0_i32_1 = arith.constant 0 : i32
    return %c0_i32, %c0_i32_0 : i32, i32
  }
  func.func @transform_6(%arg0: i32) -> (i32, i32) {
    %c0_i32 = arith.constant 0 : i32
    %c0_i32_0 = arith.constant 0 : i32
    %c0_i32_1 = arith.constant 0 : i32
    return %c0_i32, %c0_i32_0 : i32, i32
  }
  func.func @transform_7(%arg0: i32) -> (i32, i32) {
    %c0_i32 = arith.constant 0 : i32
    %c0_i32_0 = arith.constant 0 : i32
    %c0_i32_1 = arith.constant 0 : i32
    return %c0_i32, %c0_i32_0 : i32, i32
  }
  func.func @transform_8(%arg0: i32) -> (i32, i32) {
    %c0_i32 = arith.constant 0 : i32
    %c0_i32_0 = arith.constant 0 : i32
    %c0_i32_1 = arith.constant 0 : i32
    return %c0_i32, %c0_i32_0 : i32, i32
  }
  func.func @transform_9(%arg0: i32) -> (i32, i32, i32) {
    %c0_i32 = arith.constant 0 : i32
    %c0_i32_0 = arith.constant 0 : i32
    %c0_i32_1 = arith.constant 0 : i32
    return %arg0, %c0_i32, %c0_i32_0 : i32, i32, i32
  }
}

</mosaic_0001>

<bundles_post_ra>
// kernel: gnn_bet_forward.1
= control target key start
LH: loop header
LB: loop body
LE: loop exit
PB: predicated region body
PF: predicated region fallthrough
CT: control target
= control target key end

     0   :  { %s14659_s30 = smov 0   ;;  %s18425_s0 = inlined_call_operand.vmem [shape: bf16[2,512,512], index: 0, kind: input, shape index: {}]   ;;  %s18426_s1 = inlined_call_operand.vmem [shape: bf16[512,128], index: 1, kind: input, shape index: {}]   ;;  %s18427_s2 = inlined_call_operand.vmem [shape: bf16[4,128,256], index: 2, kind: input, shape index: {}]   ;;  %s18428_s3 = inlined_call_operand.vmem [shape: f32[4,1,128], index: 3, kind: input, shape index: {}]   ;;  %s18429_s4 = inlined_call_operand.vmem [shape: f32[1,128], index: 4, kind: input, shape index: {}]   ;;  %s18430_s5 = inlined_call_operand.vmem [shape: bf16[128,128], index: 5, kind: input, shape index: {}]   ;;  %s18431_s6 = inlined_call_operand.vmem [shape: f32[1,128], index: 6, kind: input, shape index: {}]   ;;  %s18432_s7 = inlined_call_operand.vmem [shape: bf16[128,128], index: 7, kind: input, shape index: {}]   ;;  %s18433_s8 = inlined_call_operand.vmem [shape: f32[1,128], index: 8, kind: input, shape index: {}]   ;;  %s18434_s9 = inlined_call_operand.vmem [shape: f32[2,512,128], index: 9, kind: output, shape index: {}]  }
   0x1 LB: > { %s10928_s10 = sadd.s32 4294967295, %s14606_s30   ;;  %p10932_p0 = scmp.ge.s32.totalorder %s14606_s30, 1  ;;  %s14606_s30 = sphi %s14659_s30, %s19_s30  }
   0x2   : > { %p287_p1 = scmp.lt.s32.totalorder %s14606_s30, 3 }
   0x4   : > { %p288_p2 = pnand %p10932_p0, %p287_p1 }
   0x6   : > { %291 = sbr.rel (%p288_p2) target bundleno = 4883 (0x1313), region = 56 }
   0xd   : > { %v13440_v0 = vld [vmem:[%s18426_s1] sm:$0xff]   ;;  %v18435_v1 = vmov 0   ;;  %v13441_v2 = vld [vmem:[%s18426_s1 + $0x8] sm:$0xff]   ;;  %p323_p3 = scmp.lt.s32.totalorder %s10928_s10, 1  ;;  %v13442_v3 = vld [vmem:[%s18426_s1 + $0x10] sm:$0xff]  }
   0xe   : > { %1365 = vmatprep.subr.bf16.mxu0 %v18435_v1  ;;  %2691 = vmatprep.mubr.bf16.mxu1 %v18435_v1  ;;  %v13443_v4 = vld [vmem:[%s18426_s1 + $0x18] sm:$0xff]   ;;  %v13444_v5 = vld [vmem:[%s18426_s1 + $0x20] sm:$0xff]   ;;  %v13445_v7 = vld [vmem:[%s18426_s1 + $0x28] sm:$0xff]  }
   0xf   : > { %1366 = vmatpush1.bf16.msra.mxu0 %v13440_v0  ;;  %s18551_s10 = smov (!%p323_p3, %s10928_s10), 1  ;;  %v13446_v8 = vld [vmem:[%s18426_s1 + $0x30] sm:$0xff]   ;;  %v13447_v9 = vld [vmem:[%s18426_s1 + $0x38] sm:$0xff]   ;;  %v13448_v10 = vld [vmem:[%s18426_s1 + $0x40] sm:$0xff]  }
  0x10   : > { %1367 = vmatprep.subr.bf16.mxu0 %v18435_v1  ;;  %s11237_s19 = sshll.u32 %s18551_s10, 10  ;;  %v13449_v11 = vld [vmem:[%s18426_s1 + $0x48] sm:$0xff]   ;;  %v13450_v12 = vld [vmem:[%s18426_s1 + $0x50] sm:$0xff]   ;;  %v13451_v13 = vld [vmem:[%s18426_s1 + $0x58] sm:$0xff]   ;;  %s11238_s23 = sshll.u32 %s18551_s10, 9 }
  0x11   : > { %s14690_s22 = scalar_lea.vmem %s18425_s0, %s11237_s19  ;;  %v13452_v14 = vld [vmem:[%s18426_s1 + $0x60] sm:$0xff]   ;;  %v13453_v15 = vld [vmem:[%s18426_s1 + $0x68] sm:$0xff]   ;;  %v13454_v16 = vld [vmem:[%s18426_s1 + $0x70] sm:$0xff]   ;;  %s18292_s26 = scalar_lea.vmem %s18434_s9, %s11238_s23 }
  0x12   : > { %v13456_v6 = vld [vmem:[%s14690_s22 + $0x4] ss:$16 sps:$4 sm:$0xff]   ;;  %v13455_v17 = vld [vmem:[%s18426_s1 + $0x78] sm:$0xff]   ;;  %v13458_v18 = vld [vmem:[%s14690_s22] ss:$16 sps:$4 sm:$0xff]  }
  0x13   : > { %1368 = vmatpush1.bf16.msra.mxu0 %v13441_v2  ;;  %1397 = vmatprep.mubr.bf16.mxu0 %v13456_v6  ;;  %v13459_v19 = vld [vmem:[%s14690_s22 + $0x24] ss:$16 sps:$4 sm:$0xff]   ;;  %v13461_v21 = vld [vmem:[%s14690_s22 + $0x20] ss:$16 sps:$4 sm:$0xff]   ;;  %v13514_v25 = vld [vmem:[%s18426_s1 + $0x88] sm:$0xff]  }
  0x14   : > { %1369 = vmatprep.subr.bf16.mxu0 %v18435_v1  ;;  %v13507_v20 = vld [vmem:[%s18426_s1 + $0x80] sm:$0xff]   ;;  %v13521_v30 = vld [vmem:[%s18426_s1 + $0x90] sm:$0xff]   ;;  %v13528_v35 = vld [vmem:[%s18426_s1 + $0x98] sm:$0xff]  }
  0x15   : > { %v13462_v22 = vld [vmem:[%s14690_s22 + $0x44] ss:$16 sps:$4 sm:$0xff]   ;;  %v13464_v23 = vld [vmem:[%s14690_s22 + $0x40] ss:$16 sps:$4 sm:$0xff]   ;;  %v13542_v45 = vld [vmem:[%s18426_s1 + $0xa8] sm:$0xff]  }
  0x16   : > { %v13465_v24 = vld [vmem:[%s14690_s22 + $0x64] ss:$16 sps:$4 sm:$0xff]   ;;  %v13467_v26 = vld [vmem:[%s14690_s22 + $0x60] ss:$16 sps:$4 sm:$0xff]   ;;  %v13547_v49 = vld [vmem:[%s18426_s1 + $0xb8] sm:$0xff]  }
  0x17   : > { %1370 = vmatpush1.bf16.msra.mxu0 %v13442_v3  ;;  %v13468_v27 = vld [vmem:[%s14690_s22 + $0x84] ss:$16 sps:$4 sm:$0xff]   ;;  %v13470_v28 = vld [vmem:[%s14690_s22 + $0x80] ss:$16 sps:$4 sm:$0xff]   ;;  %v13552_v53 = vld [vmem:[%s18426_s1 + $0xc8] sm:$0xff]  }
  0x18   : > { %1371 = vmatprep.subr.bf16.mxu0 %v18435_v1  ;;  %v13471_v29 = vld [vmem:[%s14690_s22 + $0xa4] ss:$16 sps:$4 sm:$0xff]   ;;  %v13473_v31 = vld [vmem:[%s14690_s22 + $0xa0] ss:$16 sps:$4 sm:$0xff]   ;;  %v13557_v57 = vld [vmem:[%s18426_s1 + $0xd8] sm:$0xff]  }
  0x19   : > { %v13474_v32 = vld [vmem:[%s14690_s22 + $0xc4] ss:$16 sps:$4 sm:$0xff]   ;;  %v13476_v33 = vld [vmem:[%s14690_s22 + $0xc0] ss:$16 sps:$4 sm:$0xff]   ;;  %v13562_v61 = vld [vmem:[%s18426_s1 + $0xe8] sm:$0xff]  }
  0x1a   : > { %v13477_v34 = vld [vmem:[%s14690_s22 + $0xe4] ss:$16 sps:$4 sm:$0xff]   ;;  %v13479_v36 = vld [vmem:[%s14690_s22 + $0xe0] ss:$16 sps:$4 sm:$0xff]   ;;  %v13567_v2 = vld [vmem:[%s18426_s1 + $0xf8] sm:$0xff]  }
  0x1b   : > { %1372 = vmatpush1.bf16.msra.mxu0 %v13443_v4  ;;  %v13480_v37 = vld [vmem:[%s14690_s22 + $0x104] ss:$16 sps:$4 sm:$0xff]   ;;  %v13482_v38 = vld [vmem:[%s14690_s22 + $0x100] ss:$16 sps:$4 sm:$0xff]  }
  0x1c   : > { %1373 = vmatprep.subr.bf16.mxu0 %v18435_v1  ;;  %v13483_v39 = vld [vmem:[%s14690_s22 + $0x124] ss:$16 sps:$4 sm:$0xff]   ;;  %v13485_v41 = vld [vmem:[%s14690_s22 + $0x120] ss:$16 sps:$4 sm:$0xff]  }
  0x1d   : > { %v13535_v40 = vld [vmem:[%s18426_s1 + $0xa0] sm:$0xff]   ;;  %v13546_v48 = vld [vmem:[%s18426_s1 + $0xb0] sm:$0xff]  }
  0x1e   : > { %v13486_v42 = vld [vmem:[%s14690_s22 + $0x144] ss:$16 sps:$4 sm:$0xff]   ;;  %v13488_v43 = vld [vmem:[%s14690_s22 + $0x140] ss:$16 sps:$4 sm:$0xff]  }
  0x1f   : > { %1374 = vmatpush1.bf16.msra.mxu0 %v13444_v5  ;;  %v13489_v44 = vld [vmem:[%s14690_s22 + $0x164] ss:$16 sps:$4 sm:$0xff]   ;;  %v13491_v46 = vld [vmem:[%s14690_s22 + $0x160] ss:$16 sps:$4 sm:$0xff]  }
  0x20   : > { %1375 = vmatprep.subr.bf16.mxu0 %v18435_v1  ;;  %v13492_v47 = vld [vmem:[%s14690_s22 + $0x184] ss:$16 sps:$4 sm:$0xff]   ;;  %v13494_v50 = vld [vmem:[%s14690_s22 + $0x180] ss:$16 sps:$4 sm:$0xff]  }
  0x21   : > { %v13495_v51 = vld [vmem:[%s14690_s22 + $0x1a4] ss:$16 sps:$4 sm:$0xff]   ;;  %v13497_v54 = vld [vmem:[%s14690_s22 + $0x1a0] ss:$16 sps:$4 sm:$0xff]  }
  0x22   : > { %v13551_v52 = vld [vmem:[%s18426_s1 + $0xc0] sm:$0xff]   ;;  %v13556_v56 = vld [vmem:[%s18426_s1 + $0xd0] sm:$0xff]  }
  0x23   : > { %1376 = vmatpush1.bf16.msra.mxu0 %v13445_v7  ;;  %v13498_v55 = vld [vmem:[%s14690_s22 + $0x1c4] ss:$16 sps:$4 sm:$0xff]   ;;  %v13500_v58 = vld [vmem:[%s14690_s22 + $0x1c0] ss:$16 sps:$4 sm:$0xff]  }
  0x24   : > { %1377 = vmatprep.subr.bf16.mxu0 %v18435_v1  ;;  %v13501_v59 = vld [vmem:[%s14690_s22 + $0x1e4] ss:$16 sps:$4 sm:$0xff]   ;;  %v13503_v62 = vld [vmem:[%s14690_s22 + $0x1e0] ss:$16 sps:$4 sm:$0xff]  }
  0x25   : > { %v13561_v60 = vld [vmem:[%s18426_s1 + $0xe0] sm:$0xff]   ;;  %v13566_v0 = vld [vmem:[%s18426_s1 + $0xf0] sm:$0xff]  }
  0x26   : > { %v13504_v63 = vld [vmem:[%s14690_s22 + $0x204] ss:$16 sps:$4 sm:$0xff]   ;;  %v13506_v3 = vld [vmem:[%s14690_s22 + $0x200] ss:$16 sps:$4 sm:$0xff]  }
  0x27   : > { %1378 = vmatpush1.bf16.msra.mxu0 %v13446_v8  ;;  %v13508_v4 = vld [vmem:[%s14690_s22 + $0x224] ss:$16 sps:$4 sm:$0xff]   ;;  %v13510_v5 = vld [vmem:[%s14690_s22 + $0x220] ss:$16 sps:$4 sm:$0xff]  }
  0x28   : > { %1379 = vmatprep.subr.bf16.mxu0 %v18435_v1  ;;  %v13511_v6 = vld [vmem:[%s14690_s22 + $0x244] ss:$16 sps:$4 sm:$0xff]   ;;  %v13513_v7 = vld [vmem:[%s14690_s22 + $0x240] ss:$16 sps:$4 sm:$0xff]  }
  0x29   : > { %v13515_v8 = vld [vmem:[%s14690_s22 + $0x264] ss:$16 sps:$4 sm:$0xff]  }
  0x2b   : > { %1380 = vmatpush1.bf16.msra.mxu0 %v13447_v9  ;;  %v13517_v9 = vld [vmem:[%s14690_s22 + $0x260] ss:$16 sps:$4 sm:$0xff]  }
  0x2c   : > { %1381 = vmatprep.subr.bf16.mxu0 %v18435_v1 }
  0x2f   : > { %1382 = vmatpush1.bf16.msra.mxu0 %v13448_v10  ;;  %v13518_v10 = vld [vmem:[%s14690_s22 + $0x284] ss:$16 sps:$4 sm:$0xff]  }
  0x30   : > { %1383 = vmatprep.subr.bf16.mxu0 %v18435_v1 }
  0x33   : > { %1384 = vmatpush1.bf16.msra.mxu0 %v13449_v11  ;;  %v13520_v11 = vld [vmem:[%s14690_s22 + $0x280] ss:$16 sps:$4 sm:$0xff]  }
  0x34   : > { %1385 = vmatprep.subr.bf16.mxu0 %v18435_v1 }
  0x37   : > { %1386 = vmatpush1.bf16.msra.mxu0 %v13450_v12  ;;  %v13522_v12 = vld [vmem:[%s14690_s22 + $0x2a4] ss:$16 sps:$4 sm:$0xff]  }
  0x38   : > { %1387 = vmatprep.subr.bf16.mxu0 %v18435_v1 }
  0x3b   : > { %1388 = vmatpush1.bf16.msra.mxu0 %v13451_v13  ;;  %v13524_v13 = vld [vmem:[%s14690_s22 + $0x2a0] ss:$16 sps:$4 sm:$0xff]  }
  0x3c   : > { %1389 = vmatprep.subr.bf16.mxu0 %v18435_v1 }
  0x3f   : > { %1390 = vmatpush1.bf16.msra.mxu0 %v13452_v14  ;;  %v13525_v14 = vld [vmem:[%s14690_s22 + $0x2c4] ss:$16 sps:$4 sm:$0xff]  }
  0x40   : > { %1391 = vmatprep.subr.bf16.mxu0 %v18435_v1 }
  0x43   : > { %1392 = vmatpush1.bf16.msra.mxu0 %v13453_v15  ;;  %v13527_v15 = vld [vmem:[%s14690_s22 + $0x2c0] ss:$16 sps:$4 sm:$0xff]  }
  0x44   : > { %1393 = vmatprep.subr.bf16.mxu0 %v18435_v1 }
  0x47   : > { %1394 = vmatpush1.bf16.msra.mxu0 %v13454_v16  ;;  %v13529_v16 = vld [vmem:[%s14690_s22 + $0x2e4] ss:$16 sps:$4 sm:$0xff]  }
  0x48   : > { %1395 = vmatprep.subr.bf16.mxu0 %v18435_v1 }
  0x4b   : > { %1396 = vmatpush1.bf16.msra.mxu0 %v13455_v17  ;;  %v13531_v17 = vld [vmem:[%s14690_s22 + $0x2e0] ss:$16 sps:$4 sm:$0xff]  }
  0x4c   : > { %1654 = vmatprep.subr.bf16.mxu0 %v18435_v1 }
  0x4e   : > { %1398 = vmatmul.mubr.bf16.vlgmr.msra.gmra.mrb[0].mxu0 %v13458_v18  ;;  %v13532_v18 = vld [vmem:[%s14690_s22 + $0x304] ss:$16 sps:$4 sm:$0xff]  }
  0x4f   : > { %1405 = vmatprep.mubr.bf16.mxu0 %v13459_v19  ;;  %1655 = vmatpush1.bf16.msra.mxu0 %v13507_v20  ;;  %v13534_v19 = vld [vmem:[%s14690_s22 + $0x300] ss:$16 sps:$4 sm:$0xff]   ;;  %v13536_v20 = vld [vmem:[%s14690_s22 + $0x324] ss:$16 sps:$4 sm:$0xff]  }
  0x50   : > { %1656 = vmatprep.subr.bf16.mxu0 %v18435_v1 }
  0x53   : > { %1657 = vmatpush1.bf16.msra.mxu0 %v13514_v25  ;;  %v13545_v25 = vld [vmem:[%s14690_s22 + $0x360] ss:$16 sps:$4 sm:$0xff]  }
  0x54   : > { %1658 = vmatprep.subr.bf16.mxu0 %v18435_v1 }
  0x56   : > { %1406 = vmatmul.mubr.bf16.gmra.mrb[4].mxu0 %v13461_v21  ;;  %v13538_v21 = vld [vmem:[%s14690_s22 + $0x320] ss:$16 sps:$4 sm:$0xff]  }
  0x57   : > { %1413 = vmatprep.mubr.bf16.mxu0 %v13462_v22  ;;  %1659 = vmatpush1.bf16.msra.mxu0 %v13521_v30  ;;  %v13539_v22 = vld [vmem:[%s14690_s22 + $0x344] ss:$16 sps:$4 sm:$0xff]  }
  0x58   : > { %1660 = vmatprep.subr.bf16.mxu0 %v18435_v1  ;;  %v13558_v30 = vld [vmem:[%s14690_s22 + $0x3c4] ss:$16 sps:$4 sm:$0xff]  }
  0x5b   : > { %1661 = vmatpush1.bf16.msra.mxu0 %v13528_v35  ;;  %v13568_v35 = vld [vmem:[%s14690_s22 + $0x8] ss:$16 sps:$4 sm:$0xff]  }
  0x5c   : > { %1662 = vmatprep.subr.bf16.mxu0 %v18435_v1 }
  0x5e   : > { %1414 = vmatmul.mubr.bf16.gmra.mrb[8].mxu0 %v13464_v23  ;;  %v13541_v23 = vld [vmem:[%s14690_s22 + $0x340] ss:$16 sps:$4 sm:$0xff]  }
  0x5f   : > { %1421 = vmatprep.mubr.bf16.mxu0 %v13465_v24  ;;  %1663 = vmatpush1.bf16.msra.mxu0 %v13535_v40  ;;  %v13543_v24 = vld [vmem:[%s14690_s22 + $0x364] ss:$16 sps:$4 sm:$0xff]   ;;  %v13577_v40 = vld [vmem:[%s14690_s22 + $0x6c] ss:$16 sps:$4 sm:$0xff]  }
  0x60   : > { %1664 = vmatprep.subr.bf16.mxu0 %v18435_v1 }
  0x63   : > { %1665 = vmatpush1.bf16.msra.mxu0 %v13542_v45  ;;  %v13585_v45 = vld [vmem:[%s14690_s22 + $0xa8] ss:$16 sps:$4 sm:$0xff]  }
  0x64   : > { %1666 = vmatprep.subr.bf16.mxu0 %v18435_v1 }
  0x66   : > { %1422 = vmatmul.mubr.bf16.gmra.mrb[12].mxu0 %v13467_v26  ;;  %v13548_v26 = vld [vmem:[%s14690_s22 + $0x384] ss:$16 sps:$4 sm:$0xff]  }
  0x67   : > { %1429 = vmatprep.mubr.bf16.mxu0 %v13468_v27  ;;  %1667 = vmatpush1.bf16.msra.mxu0 %v13546_v48  ;;  %v13550_v27 = vld [vmem:[%s14690_s22 + $0x380] ss:$16 sps:$4 sm:$0xff]   ;;  %v13589_v48 = vld [vmem:[%s14690_s22 + $0xec] ss:$16 sps:$4 sm:$0xff]  }
  0x68   : > { %1668 = vmatprep.subr.bf16.mxu0 %v18435_v1 }
  0x6b   : > { %1669 = vmatpush1.bf16.msra.mxu0 %v13547_v49  ;;  %v13591_v49 = vld [vmem:[%s14690_s22 + $0xe8] ss:$16 sps:$4 sm:$0xff]  }
  0x6c   : > { %1670 = vmatprep.subr.bf16.mxu0 %v18435_v1 }
  0x6e   : > { %1430 = vmatmul.mubr.bf16.gmra.mrb[16].mxu0 %v13470_v28  ;;  %v13553_v28 = vld [vmem:[%s14690_s22 + $0x3a4] ss:$16 sps:$4 sm:$0xff]  }
  0x6f   : > { %1437 = vmatprep.mubr.bf16.mxu0 %v13471_v29  ;;  %1671 = vmatpush1.bf16.msra.mxu0 %v13551_v52  ;;  %v13555_v29 = vld [vmem:[%s14690_s22 + $0x3a0] ss:$16 sps:$4 sm:$0xff]   ;;  %v13595_v52 = vld [vmem:[%s14690_s22 + $0x12c] ss:$16 sps:$4 sm:$0xff]  }
  0x70   : > { %1672 = vmatprep.subr.bf16.mxu0 %v18435_v1 }
  0x73   : > { %1673 = vmatpush1.bf16.msra.mxu0 %v13552_v53  ;;  %v13597_v53 = vld [vmem:[%s14690_s22 + $0x128] ss:$16 sps:$4 sm:$0xff]  }
  0x74   : > { %1674 = vmatprep.subr.bf16.mxu0 %v18435_v1 }
  0x76   : > { %1438 = vmatmul.mubr.bf16.gmra.mrb[20].mxu0 %v13473_v31  ;;  %v13560_v31 = vld [vmem:[%s14690_s22 + $0x3c0] ss:$16 sps:$4 sm:$0xff]  }
  0x77   : > { %1445 = vmatprep.mubr.bf16.mxu0 %v13474_v32  ;;  %1675 = vmatpush1.bf16.msra.mxu0 %v13556_v56  ;;  %v13563_v32 = vld [vmem:[%s14690_s22 + $0x3e4] ss:$16 sps:$4 sm:$0xff]   ;;  %v13601_v56 = vld [vmem:[%s14690_s22 + $0x16c] ss:$16 sps:$4 sm:$0xff]  }
  0x78   : > { %1676 = vmatprep.subr.bf16.mxu0 %v18435_v1 }
  0x7b   : > { %1677 = vmatpush1.bf16.msra.mxu0 %v13557_v57  ;;  %v13603_v57 = vld [vmem:[%s14690_s22 + $0x168] ss:$16 sps:$4 sm:$0xff]  }
  0x7c   : > { %1678 = vmatprep.subr.bf16.mxu0 %v18435_v1 }
  0x7e   : > { %1446 = vmatmul.mubr.bf16.gmra.mrb[24].mxu0 %v13476_v33  ;;  %v13565_v33 = vld [vmem:[%s14690_s22 + $0x3e0] ss:$16 sps:$4 sm:$0xff]  }
  0x7f   : > { %1453 = vmatprep.mubr.bf16.mxu0 %v13477_v34  ;;  %1679 = vmatpush1.bf16.msra.mxu0 %v13561_v60  ;;  %v13570_v34 = vld [vmem:[%s14690_s22 + $0xc] ss:$16 sps:$4 sm:$0xff]  }
  0x80   : > { %1680 = vmatprep.subr.bf16.mxu0 %v18435_v1  ;;  %v13607_v60 = vld [vmem:[%s14690_s22 + $0x1ac] ss:$16 sps:$4 sm:$0xff]  }
  0x83   : > { %1681 = vmatpush1.bf16.msra.mxu0 %v13562_v61  ;;  %v13609_v61 = vld [vmem:[%s14690_s22 + $0x1a8] ss:$16 sps:$4 sm:$0xff]  }
  0x84   : > { %1682 = vmatprep.subr.bf16.mxu0 %v18435_v1 }
  0x86   : > { %1454 = vmatmul.mubr.bf16.gmra.mrb[28].mxu0 %v13479_v36  ;;  %v13571_v36 = vld [vmem:[%s14690_s22 + $0x2c] ss:$16 sps:$4 sm:$0xff]  }
  0x87   : > { %1461 = vmatprep.mubr.bf16.mxu0 %v13480_v37  ;;  %1683 = vmatpush1.bf16.msra.mxu0 %v13566_v0  ;;  %v13573_v37 = vld [vmem:[%s14690_s22 + $0x28] ss:$16 sps:$4 sm:$0xff]   ;;  %v13613_v0 = vld [vmem:[%s14690_s22 + $0x1ec] ss:$16 sps:$4 sm:$0xff]  }
  0x88   : > { %1684 = vmatprep.subr.bf16.mxu0 %v18435_v1 }
  0x8b   : > { %1685 = vmatpush1.bf16.msra.mxu0 %v13567_v2  ;;  %v13615_v2 = vld [vmem:[%s14690_s22 + $0x1e8] ss:$16 sps:$4 sm:$0xff]  }
  0x8e   : > { %1462 = vmatmul.mubr.bf16.gmra.mrb[32].mxu0 %v13482_v38  ;;  %v13574_v38 = vld [vmem:[%s14690_s22 + $0x4c] ss:$16 sps:$4 sm:$0xff]  }
  0x8f   : > { %1469 = vmatprep.mubr.bf16.mxu0 %v13483_v39  ;;  %v13576_v39 = vld [vmem:[%s14690_s22 + $0x48] ss:$16 sps:$4 sm:$0xff]  }
  0x96   : > { %1470 = vmatmul.mubr.bf16.gmra.mrb[36].mxu0 %v13485_v41  ;;  %v13579_v41 = vld [vmem:[%s14690_s22 + $0x68] ss:$16 sps:$4 sm:$0xff]  }
  0x97   : > { %1477 = vmatprep.mubr.bf16.mxu0 %v13486_v42  ;;  %v13580_v42 = vld [vmem:[%s14690_s22 + $0x8c] ss:$16 sps:$4 sm:$0xff]  }
  0x9e   : > { %1478 = vmatmul.mubr.bf16.gmra.mrb[40].mxu0 %v13488_v43  ;;  %v13582_v43 = vld [vmem:[%s14690_s22 + $0x88] ss:$16 sps:$4 sm:$0xff]  }
  0x9f   : > { %1485 = vmatprep.mubr.bf16.mxu0 %v13489_v44  ;;  %v13583_v44 = vld [vmem:[%s14690_s22 + $0xac] ss:$16 sps:$4 sm:$0xff]  }
  0xa6   : > { %1486 = vmatmul.mubr.bf16.gmra.mrb[44].mxu0 %v13491_v46  ;;  %v13586_v46 = vld [vmem:[%s14690_s22 + $0xcc] ss:$16 sps:$4 sm:$0xff]  }
  0xa7   : > { %1493 = vmatprep.mubr.bf16.mxu0 %v13492_v47  ;;  %v13588_v47 = vld [vmem:[%s14690_s22 + $0xc8] ss:$16 sps:$4 sm:$0xff]  }
  0xae   : > { %1494 = vmatmul.mubr.bf16.gmra.mrb[48].mxu0 %v13494_v50  ;;  %v13592_v50 = vld [vmem:[%s14690_s22 + $0x10c] ss:$16 sps:$4 sm:$0xff]  }
  0xaf   : > { %1501 = vmatprep.mubr.bf16.mxu0 %v13495_v51  ;;  %v13594_v51 = vld [vmem:[%s14690_s22 + $0x108] ss:$16 sps:$4 sm:$0xff]  }
  0xb6   : > { %1502 = vmatmul.mubr.bf16.gmra.mrb[52].mxu0 %v13497_v54  ;;  %v13598_v54 = vld [vmem:[%s14690_s22 + $0x14c] ss:$16 sps:$4 sm:$0xff]  }
  0xb7   : > { %1509 = vmatprep.mubr.bf16.mxu0 %v13498_v55  ;;  %v13600_v55 = vld [vmem:[%s14690_s22 + $0x148] ss:$16 sps:$4 sm:$0xff]  }
  0xbe   : > { %1510 = vmatmul.mubr.bf16.gmra.mrb[56].mxu0 %v13500_v58  ;;  %v13604_v58 = vld [vmem:[%s14690_s22 + $0x18c] ss:$16 sps:$4 sm:$0xff]  }
  0xbf   : > { %1517 = vmatprep.mubr.bf16.mxu0 %v13501_v59  ;;  %v13606_v59 = vld [vmem:[%s14690_s22 + $0x188] ss:$16 sps:$4 sm:$0xff]  }
  0xc6   : > { %1518 = vmatmul.mubr.bf16.gmra.mrb[60].mxu0 %v13503_v62  ;;  %v13610_v62 = vld [vmem:[%s14690_s22 + $0x1cc] ss:$16 sps:$4 sm:$0xff]  }
  0xc7   : > { %1525 = vmatprep.mubr.bf16.mxu0 %v13504_v63  ;;  %v13612_v63 = vld [vmem:[%s14690_s22 + $0x1c8] ss:$16 sps:$4 sm:$0xff]  }
  0xce   : > { %1526 = vmatmul.mubr.bf16.gmra.mrb[64].mxu0 %v13506_v3  ;;  %v13616_v3 = vld [vmem:[%s14690_s22 + $0x20c] ss:$16 sps:$4 sm:$0xff]  }
  0xcf   : > { %1533 = vmatprep.mubr.bf16.mxu0 %v13508_v4  ;;  %v13618_v4 = vld [vmem:[%s14690_s22 + $0x208] ss:$16 sps:$4 sm:$0xff]  }
  0xd6   : > { %1534 = vmatmul.mubr.bf16.gmra.mrb[68].mxu0 %v13510_v5  ;;  %v13619_v5 = vld [vmem:[%s14690_s22 + $0x22c] ss:$16 sps:$4 sm:$0xff]  }
  0xd7   : > { %1541 = vmatprep.mubr.bf16.mxu0 %v13511_v6  ;;  %v13621_v6 = vld [vmem:[%s14690_s22 + $0x228] ss:$16 sps:$4 sm:$0xff]  }
  0xde   : > { %1542 = vmatmul.mubr.bf16.gmra.mrb[72].mxu0 %v13513_v7  ;;  %v13622_v7 = vld [vmem:[%s14690_s22 + $0x24c] ss:$16 sps:$4 sm:$0xff]  }
  0xdf   : > { %1549 = vmatprep.mubr.bf16.mxu0 %v13515_v8  ;;  %v13624_v8 = vld [vmem:[%s14690_s22 + $0x248] ss:$16 sps:$4 sm:$0xff]  }
  0xe6   : > { %1550 = vmatmul.mubr.bf16.gmra.mrb[76].mxu0 %v13517_v9  ;;  %v13625_v9 = vld [vmem:[%s14690_s22 + $0x26c] ss:$16 sps:$4 sm:$0xff]  }
  0xe7   : > { %1557 = vmatprep.mubr.bf16.mxu0 %v13518_v10  ;;  %v13627_v10 = vld [vmem:[%s14690_s22 + $0x268] ss:$16 sps:$4 sm:$0xff]  }
  0xee   : > { %1558 = vmatmul.mubr.bf16.gmra.mrb[80].mxu0 %v13520_v11  ;;  %v13628_v11 = vld [vmem:[%s14690_s22 + $0x28c] ss:$16 sps:$4 sm:$0xff]  }
  0xef   : > { %1565 = vmatprep.mubr.bf16.mxu0 %v13522_v12  ;;  %v13630_v12 = vld [vmem:[%s14690_s22 + $0x288] ss:$16 sps:$4 sm:$0xff]  }
  0xf6   : > { %1566 = vmatmul.mubr.bf16.gmra.mrb[84].mxu0 %v13524_v13  ;;  %v13631_v13 = vld [vmem:[%s14690_s22 + $0x2ac] ss:$16 sps:$4 sm:$0xff]  }
  0xf7   : > { %1573 = vmatprep.mubr.bf16.mxu0 %v13525_v14  ;;  %v13633_v14 = vld [vmem:[%s14690_s22 + $0x2a8] ss:$16 sps:$4 sm:$0xff]  }
  0xfe   : > { %1574 = vmatmul.mubr.bf16.gmra.mrb[88].mxu0 %v13527_v15  ;;  %v13634_v15 = vld [vmem:[%s14690_s22 + $0x2cc] ss:$16 sps:$4 sm:$0xff]  }
  0xff   : > { %1581 = vmatprep.mubr.bf16.mxu0 %v13529_v16  ;;  %v13636_v16 = vld [vmem:[%s14690_s22 + $0x2c8] ss:$16 sps:$4 sm:$0xff]  }
 0x106   : > { %1582 = vmatmul.mubr.bf16.gmra.mrb[92].mxu0 %v13531_v17  ;;  %v13637_v17 = vld [vmem:[%s14690_s22 + $0x2ec] ss:$16 sps:$4 sm:$0xff]  }
 0x107   : > { %1589 = vmatprep.mubr.bf16.mxu0 %v13532_v18  ;;  %v13639_v18 = vld [vmem:[%s14690_s22 + $0x2e8] ss:$16 sps:$4 sm:$0xff]  }
 0x10e   : > { %1590 = vmatmul.mubr.bf16.gmra.mrb[96].mxu0 %v13534_v19  ;;  %v13640_v19 = vld [vmem:[%s14690_s22 + $0x30c] ss:$16 sps:$4 sm:$0xff]  }
 0x10f   : > { %1597 = vmatprep.mubr.bf16.mxu0 %v13536_v20  ;;  %v13642_v20 = vld [vmem:[%s14690_s22 + $0x308] ss:$16 sps:$4 sm:$0xff]  }
 0x116   : > { %1598 = vmatmul.mubr.bf16.gmra.mrb[100].mxu0 %v13538_v21  ;;  %v13643_v21 = vld [vmem:[%s14690_s22 + $0x32c] ss:$16 sps:$4 sm:$0xff]  }
 0x117   : > { %1605 = vmatprep.mubr.bf16.mxu0 %v13539_v22  ;;  %v13645_v22 = vld [vmem:[%s14690_s22 + $0x328] ss:$16 sps:$4 sm:$0xff]  }
 0x11e   : > { %1606 = vmatmul.mubr.bf16.gmra.mrb[104].mxu0 %v13541_v23  ;;  %v13646_v23 = vld [vmem:[%s14690_s22 + $0x34c] ss:$16 sps:$4 sm:$0xff]  }
 0x11f   : > { %1613 = vmatprep.mubr.bf16.mxu0 %v13543_v24  ;;  %v13664_v24 = vld [vmem:[%s18427_s2] ss:$8 sps:$4 sm:$0xff]  }
 0x126   : > { %1614 = vmatmul.mubr.bf16.gmra.mrb[108].mxu0 %v13545_v25  ;;  %v13666_v25 = vld [vmem:[%s18427_s2 + $0x4] ss:$8 sps:$4 sm:$0xff]  }
 0x127   : > { %1621 = vmatprep.mubr.bf16.mxu0 %v13548_v26  ;;  %2519 = vmatprep.subr.bf16.mxu0 %v13666_v25  ;;  %v13648_v26 = vld [vmem:[%s14690_s22 + $0x348] ss:$16 sps:$4 sm:$0xff]  }
 0x128   : > { %12199 = vmatprep.subr.bf16.mxu1 %v13666_v25  ;;  %v13684_v25 = vld [vmem:[%s18427_s2 + $0x64] ss:$8 sps:$4 sm:$0xff]  }
 0x129   : > { %12207 = vmatpush1.bf16.msra.mxu1 %v13664_v24 }
 0x12e   : > { %1622 = vmatmul.mubr.bf16.gmra.mrb[112].mxu0 %v13550_v27  ;;  %v13649_v27 = vld [vmem:[%s14690_s22 + $0x36c] ss:$16 sps:$4 sm:$0xff]  }
 0x12f   : > { %1629 = vmatprep.mubr.bf16.mxu0 %v13553_v28  ;;  %v14932_v28 = vld [vmem:[%s18428_s3] ss:$0 sm:$0xff] }
 0x136   : > { %1630 = vmatmul.mubr.bf16.gmra.mrb[116].mxu0 %v13555_v29 }
 0x137   : > { %1637 = vmatprep.mubr.bf16.mxu0 %v13558_v30 }
 0x13e   : > { %1638 = vmatmul.mubr.bf16.gmra.mrb[120].mxu0 %v13560_v31  ;;  %v13651_v31 = vld [vmem:[%s14690_s22 + $0x368] ss:$16 sps:$4 sm:$0xff]  }
 0x13f   : > { %1645 = vmatprep.mubr.bf16.mxu0 %v13563_v32 }
 0x146   : > { %1646 = vmatmul.mubr.bf16.gmra.mrb[124].mxu0 %v13565_v33 }
 0x147   : > { %1686 = vmatprep.mubr.bf16.mxu0 %v13570_v34  ;;  %v13652_v34 = vld [vmem:[%s14690_s22 + $0x38c] ss:$16 sps:$4 sm:$0xff]  }
 0x14e   : > { %1687 = vmatmul.mubr.bf16.vlgmr.msra.gmra.mrb[0].mxu0 %v13568_v35 }
 0x14f   : > { %1694 = vmatprep.mubr.bf16.mxu0 %v13571_v36  ;;  %2520 = vmatpush1.bf16.msra.mxu0 %v13664_v24 }
 0x156   : > { %1695 = vmatmul.mubr.bf16.gmra.mrb[4].mxu0 %v13573_v37 }
 0x157   : > { %1702 = vmatprep.mubr.bf16.mxu0 %v13574_v38 }
 0x15e   : > { %1703 = vmatmul.mubr.bf16.gmra.mrb[8].mxu0 %v13576_v39 }
 0x15f   : > { %1710 = vmatprep.mubr.bf16.mxu0 %v13577_v40 }
 0x166   : > { %1711 = vmatmul.mubr.bf16.gmra.mrb[12].mxu0 %v13579_v41 }
 0x167   : > { %1718 = vmatprep.mubr.bf16.mxu0 %v13580_v42 }
 0x16e   : > { %1719 = vmatmul.mubr.bf16.gmra.mrb[16].mxu0 %v13582_v43  ;;  %v13654_v43 = vld [vmem:[%s14690_s22 + $0x388] ss:$16 sps:$4 sm:$0xff]  }
 0x16f   : > { %1726 = vmatprep.mubr.bf16.mxu0 %v13583_v44 }
 0x176   : > { %1727 = vmatmul.mubr.bf16.gmra.mrb[20].mxu0 %v13585_v45 }
 0x177   : > { %1734 = vmatprep.mubr.bf16.mxu0 %v13586_v46  ;;  %v13655_v46 = vld [vmem:[%s14690_s22 + $0x3ac] ss:$16 sps:$4 sm:$0xff]  }
 0x17e   : > { %1735 = vmatmul.mubr.bf16.gmra.mrb[24].mxu0 %v13588_v47 }
 0x17f   : > { %1742 = vmatprep.mubr.bf16.mxu0 %v13589_v48 }
 0x186   : > { %1743 = vmatmul.mubr.bf16.gmra.mrb[28].mxu0 %v13591_v49 }
 0x187   : > { %1750 = vmatprep.mubr.bf16.mxu0 %v13592_v50  ;;  %v13669_v50 = vld [vmem:[%s18427_s2 + $0x14] ss:$8 sps:$4 sm:$0xff]  }
 0x188   : > { %2521 = vmatprep.subr.bf16.mxu0 %v13669_v50  ;;  %12200 = vmatprep.subr.bf16.mxu1 %v13669_v50 }
 0x18e   : > { %1751 = vmatmul.mubr.bf16.gmra.mrb[32].mxu0 %v13594_v51 }
 0x18f   : > { %1758 = vmatprep.mubr.bf16.mxu0 %v13595_v52 }
 0x196   : > { %1759 = vmatmul.mubr.bf16.gmra.mrb[36].mxu0 %v13597_v53  ;;  %v13667_v53 = vld [vmem:[%s18427_s2 + $0x10] ss:$8 sps:$4 sm:$0xff]  }
 0x197   : > { %1766 = vmatprep.mubr.bf16.mxu0 %v13598_v54  ;;  %2522 = vmatpush1.bf16.msra.mxu0 %v13667_v53 }
 0x198   : > { %12208 = vmatpush1.bf16.msra.mxu1 %v13667_v53 }
 0x19e   : > { %1767 = vmatmul.mubr.bf16.gmra.mrb[40].mxu0 %v13600_v55  ;;  %v13672_v55 = vld [vmem:[%s18427_s2 + $0x24] ss:$8 sps:$4 sm:$0xff]  }
 0x19f   : > { %1774 = vmatprep.mubr.bf16.mxu0 %v13601_v56  ;;  %2523 = vmatprep.subr.bf16.mxu0 %v13672_v55 }
 0x1a0   : > { %12201 = vmatprep.subr.bf16.mxu1 %v13672_v55 }
 0x1a6   : > { %1775 = vmatmul.mubr.bf16.gmra.mrb[44].mxu0 %v13603_v57 }
 0x1a7   : > { %1782 = vmatprep.mubr.bf16.mxu0 %v13604_v58 }
 0x1ae   : > { %1783 = vmatmul.mubr.bf16.gmra.mrb[48].mxu0 %v13606_v59  ;;  %v13657_v59 = vld [vmem:[%s14690_s22 + $0x3a8] ss:$16 sps:$4 sm:$0xff]  }
 0x1af   : > { %1790 = vmatprep.mubr.bf16.mxu0 %v13607_v60  ;;  %v13670_v60 = vld [vmem:[%s18427_s2 + $0x20] ss:$8 sps:$4 sm:$0xff]  }
 0x1b0   : > { %2524 = vmatpush1.bf16.msra.mxu0 %v13670_v60  ;;  %12209 = vmatpush1.bf16.msra.mxu1 %v13670_v60 }
 0x1b6   : > { %1791 = vmatmul.mubr.bf16.gmra.mrb[52].mxu0 %v13609_v61 }
 0x1b7   : > { %1798 = vmatprep.mubr.bf16.mxu0 %v13610_v62  ;;  %v13658_v62 = vld [vmem:[%s14690_s22 + $0x3cc] ss:$16 sps:$4 sm:$0xff]  }
 0x1be   : > { %1799 = vmatmul.mubr.bf16.gmra.mrb[56].mxu0 %v13612_v63 }
 0x1bf   : > { %1806 = vmatprep.mubr.bf16.mxu0 %v13613_v0 }
 0x1c6   : > { %1807 = vmatmul.mubr.bf16.gmra.mrb[60].mxu0 %v13615_v2 }
 0x1c7   : > { %1814 = vmatprep.mubr.bf16.mxu0 %v13616_v3  ;;  %v13675_v3 = vld [vmem:[%s18427_s2 + $0x34] ss:$8 sps:$4 sm:$0xff]  }
 0x1c8   : > { %2525 = vmatprep.subr.bf16.mxu0 %v13675_v3  ;;  %12202 = vmatprep.subr.bf16.mxu1 %v13675_v3 }
 0x1ce   : > { %1815 = vmatmul.mubr.bf16.gmra.mrb[64].mxu0 %v13618_v4 }
 0x1cf   : > { %1822 = vmatprep.mubr.bf16.mxu0 %v13619_v5 }
 0x1d6   : > { %1823 = vmatmul.mubr.bf16.gmra.mrb[68].mxu0 %v13621_v6  ;;  %v13673_v6 = vld [vmem:[%s18427_s2 + $0x30] ss:$8 sps:$4 sm:$0xff]  }
 0x1d7   : > { %1830 = vmatprep.mubr.bf16.mxu0 %v13622_v7  ;;  %2526 = vmatpush1.bf16.msra.mxu0 %v13673_v6 }
 0x1d8   : > { %12210 = vmatpush1.bf16.msra.mxu1 %v13673_v6 }
 0x1de   : > { %1831 = vmatmul.mubr.bf16.gmra.mrb[72].mxu0 %v13624_v8 }
 0x1df   : > { %1838 = vmatprep.mubr.bf16.mxu0 %v13625_v9  ;;  %v13678_v9 = vld [vmem:[%s18427_s2 + $0x44] ss:$8 sps:$4 sm:$0xff]  }
 0x1e0   : > { %2527 = vmatprep.subr.bf16.mxu0 %v13678_v9  ;;  %12203 = vmatprep.subr.bf16.mxu1 %v13678_v9 }
 0x1e6   : > { %1839 = vmatmul.mubr.bf16.gmra.mrb[76].mxu0 %v13627_v10 }
 0x1e7   : > { %1846 = vmatprep.mubr.bf16.mxu0 %v13628_v11 }
 0x1ee   : > { %1847 = vmatmul.mubr.bf16.gmra.mrb[80].mxu0 %v13630_v12  ;;  %v13660_v12 = vld [vmem:[%s14690_s22 + $0x3c8] ss:$16 sps:$4 sm:$0xff]  }
 0x1ef   : > { %1854 = vmatprep.mubr.bf16.mxu0 %v13631_v13  ;;  %v13676_v13 = vld [vmem:[%s18427_s2 + $0x40] ss:$8 sps:$4 sm:$0xff]  }
 0x1f0   : > { %2528 = vmatpush1.bf16.msra.mxu0 %v13676_v13  ;;  %12211 = vmatpush1.bf16.msra.mxu1 %v13676_v13 }
 0x1f6   : > { %1855 = vmatmul.mubr.bf16.gmra.mrb[84].mxu0 %v13633_v14 }
 0x1f7   : > { %1862 = vmatprep.mubr.bf16.mxu0 %v13634_v15  ;;  %v13661_v15 = vld [vmem:[%s14690_s22 + $0x3ec] ss:$16 sps:$4 sm:$0xff]  }
 0x1fe   : > { %1863 = vmatmul.mubr.bf16.gmra.mrb[88].mxu0 %v13636_v16 }
 0x1ff   : > { %1870 = vmatprep.mubr.bf16.mxu0 %v13637_v17 }
 0x206   : > { %1871 = vmatmul.mubr.bf16.gmra.mrb[92].mxu0 %v13639_v18 }
 0x207   : > { %1878 = vmatprep.mubr.bf16.mxu0 %v13640_v19  ;;  %v13681_v19 = vld [vmem:[%s18427_s2 + $0x54] ss:$8 sps:$4 sm:$0xff]  }
 0x208   : > { %2529 = vmatprep.subr.bf16.mxu0 %v13681_v19  ;;  %12204 = vmatprep.subr.bf16.mxu1 %v13681_v19 }
 0x20e   : > { %1879 = vmatmul.mubr.bf16.gmra.mrb[96].mxu0 %v13642_v20 }
 0x20f   : > { %1886 = vmatprep.mubr.bf16.mxu0 %v13643_v21 }
 0x216   : > { %1887 = vmatmul.mubr.bf16.gmra.mrb[100].mxu0 %v13645_v22  ;;  %v13679_v22 = vld [vmem:[%s18427_s2 + $0x50] ss:$8 sps:$4 sm:$0xff]  }
 0x217   : > { %1894 = vmatprep.mubr.bf16.mxu0 %v13646_v23  ;;  %2530 = vmatpush1.bf16.msra.mxu0 %v13679_v22 }
 0x218   : > { %12212 = vmatpush1.bf16.msra.mxu1 %v13679_v22  ;;  %2531 = vmatprep.subr.bf16.mxu0 %v13684_v25 }
 0x219   : > { %12205 = vmatprep.subr.bf16.mxu1 %v13684_v25 }
 0x21e   : > { %1895 = vmatmul.mubr.bf16.gmra.mrb[104].mxu0 %v13648_v26 }
 0x21f   : > { %1902 = vmatprep.mubr.bf16.mxu0 %v13649_v27 }
 0x221   : > { %v1688_v29 = vpop.f32.mrb[0].mxu0 }
 0x222   : > { %v1690_v30 = vpop.f32.mrb[1].mxu0  ;;  %v12215_v32 = vadd.f32 %v14932_v28, %v1688_v29  ;;  %v13663_v29 = vld [vmem:[%s14690_s22 + $0x3e8] ss:$16 sps:$4 sm:$0xff]  }
 0x223   : > { %v1691_v33 = vpop.f32.mrb[2].mxu0  ;;  %v13682_v30 = vld [vmem:[%s18427_s2 + $0x60] ss:$8 sps:$4 sm:$0xff]  }
 0x224   : > { %v12216_v35 = vadd.f32 %v14932_v28, %v1691_v33  ;;  %v1693_v36 = vpop.f32.mrb[3].mxu0  ;;  %v14938_v37 = vmax.f32 %v12215_v32, 0.0  ;;  %2532 = vmatpush1.bf16.msra.mxu0 %v13682_v30  ;;  %12213 = vmatpush1.bf16.msra.mxu1 %v13682_v30 }
 0x226   : > { %1903 = vmatmul.mubr.bf16.gmra.mrb[108].mxu0 %v13651_v31  ;;  %v2007_v38 = vmul.f32 %v14938_v37, %v14938_v37  ;;  %v14942_v39 = vmax.f32 %v12216_v35, 0.0  ;;  %v13687_v35 = vld [vmem:[%s18427_s2 + $0x74] ss:$8 sps:$4 sm:$0xff]  }
 0x227   : > { %1910 = vmatprep.mubr.bf16.mxu0 %v13652_v34  ;;  %2533 = vmatprep.subr.bf16.mxu0 %v13687_v35 }
 0x228   : > { %2071 = vadd.xlane.f32.xlu0 %v2007_v38  ;;  %v2008_v42 = vmul.f32 %v14942_v39, %v14942_v39  ;;  %12206 = vmatprep.subr.bf16.mxu1 %v13687_v35 }
 0x229   : > { %v1696_v40 = vpop.f32.mrb[4].mxu0 }
 0x22a   : > { %v1698_v41 = vpop.f32.mrb[5].mxu0  ;;  %v12217_v44 = vadd.f32 %v14932_v28, %v1696_v40  ;;  %v13685_v40 = vld [vmem:[%s18427_s2 + $0x70] ss:$8 sps:$4 sm:$0xff]  }
 0x22b   : > { %v1699_v45 = vpop.f32.mrb[6].mxu0  ;;  %2534 = vmatpush1.bf16.msra.mxu0 %v13685_v40  ;;  %12214 = vmatpush1.bf16.msra.mxu1 %v13685_v40 }
 0x22c   : > { %v12218_v47 = vadd.f32 %v14932_v28, %v1699_v45  ;;  %v1701_v48 = vpop.f32.mrb[7].mxu0  ;;  %2073 = vadd.xlane.f32.xlu0 %v2008_v42  ;;  %v14950_v49 = vmax.f32 %v12217_v44, 0.0 }
 0x22e   : > { %1911 = vmatmul.mubr.bf16.gmra.mrb[112].mxu0 %v13654_v43  ;;  %v2009_v51 = vmul.f32 %v14950_v49, %v14950_v49  ;;  %v14957_v52 = vmax.f32 %v12218_v47, 0.0 }
 0x22f   : > { %1918 = vmatprep.mubr.bf16.mxu0 %v13655_v46 }
 0x230   : > { %2075 = vadd.xlane.f32.xlu1 %v2009_v51  ;;  %v2010_v58 = vmul.f32 %v14957_v52, %v14957_v52 }
 0x231   : > { %v1704_v54 = vpop.f32.mrb[8].mxu0 }
 0x232   : > { %v12219_v56 = vadd.f32 %v14932_v28, %v1704_v54  ;;  %v1706_v57 = vpop.f32.mrb[9].mxu0 }
 0x233   : > { %v1707_v61 = vpop.f32.mrb[10].mxu0 }
 0x234   : > { %v12220_v63 = vadd.f32 %v14932_v28, %v1707_v61  ;;  %v1709_v0 = vpop.f32.mrb[11].mxu0  ;;  %2077 = vadd.xlane.f32.xlu1 %v2010_v58  ;;  %v14974_v2 = vmax.f32 %v12219_v56, 0.0 }
 0x236   : > { %1919 = vmatmul.mubr.bf16.gmra.mrb[116].mxu0 %v13657_v59  ;;  %v2011_v4 = vmul.f32 %v14974_v2, %v14974_v2  ;;  %v14981_v5 = vmax.f32 %v12220_v63, 0.0 }
 0x237   : > { %1926 = vmatprep.mubr.bf16.mxu0 %v13658_v62 }
 0x238   : > { %2079 = vadd.xlane.f32.xlu0 %v2011_v4  ;;  %v2012_v7 = vmul.f32 %v14981_v5, %v14981_v5 }
 0x239   : > { %v1712_v8 = vpop.f32.mrb[12].mxu0 }
 0x23a   : > { %v12221_v10 = vadd.f32 %v14932_v28, %v1712_v8  ;;  %v1714_v11 = vpop.f32.mrb[13].mxu0  ;;  %2081 = vadd.xlane.f32.xlu1 %v2012_v7 }
 0x23b   : > { %v1715_v14 = vpop.f32.mrb[14].mxu0 }
 0x23c   : > { %v12222_v16 = vadd.f32 %v14932_v28, %v1715_v14  ;;  %v1717_v17 = vpop.f32.mrb[15].mxu0  ;;  %v14998_v18 = vmax.f32 %v12221_v10, 0.0 }
 0x23e   : > { %1927 = vmatmul.mubr.bf16.gmra.mrb[120].mxu0 %v13660_v12  ;;  %v2013_v20 = vmul.f32 %v14998_v18, %v14998_v18  ;;  %v15005_v21 = vmax.f32 %v12222_v16, 0.0 }
 0x23f   : > { %1934 = vmatprep.mubr.bf16.mxu0 %v13661_v15 }
 0x240   : > { %2083 = vadd.xlane.f32.xlu0 %v2013_v20  ;;  %v2014_v23 = vmul.f32 %v15005_v21, %v15005_v21 }
 0x241   : > { %v1720_v24 = vpop.f32.mrb[16].mxu0 }
 0x242   : > { %v12223_v26 = vadd.f32 %v14932_v28, %v1720_v24  ;;  %v1722_v27 = vpop.f32.mrb[17].mxu0  ;;  %2085 = vadd.xlane.f32.xlu1 %v2014_v23 }
 0x243   : > { %v1723_v31 = vpop.f32.mrb[18].mxu0 }
 0x244   : > { %v12224_v32 = vadd.f32 %v14932_v28, %v1723_v31  ;;  %v1725_v33 = vpop.f32.mrb[19].mxu0  ;;  %v15021_v34 = vmax.f32 %v12223_v26, 0.0 }
 0x246   : > { %1935 = vmatmul.mubr.bf16.gmra.mrb[124].mxu0 %v13663_v29  ;;  %v2015_v36 = vmul.f32 %v15021_v34, %v15021_v34  ;;  %v15028_v38 = vmax.f32 %v12224_v32, 0.0 }
 0x247   : > { %2551 = vmatprep.mubr.bf16.mxu0 %v18435_v1 }
 0x248   : > { %2087 = vadd.xlane.f32.xlu0 %v2015_v36  ;;  %v2016_v41 = vmul.f32 %v15028_v38, %v15028_v38 }
 0x249   : > { %v1728_v42 = vpop.f32.mrb[20].mxu0 }
 0x24a   : > { %v12225_v43 = vadd.f32 %v14932_v28, %v1728_v42  ;;  %v1730_v44 = vpop.f32.mrb[21].mxu0  ;;  %2089 = vadd.xlane.f32.xlu1 %v2016_v41 }
 0x24b   : > { %v1731_v45 = vpop.f32.mrb[22].mxu0 }
 0x24c   : > { %v12226_v46 = vadd.f32 %v14932_v28, %v1731_v45  ;;  %v1733_v47 = vpop.f32.mrb[23].mxu0  ;;  %v15038_v48 = vmax.f32 %v12225_v43, 0.0 }
 0x24e   : > { %v2017_v50 = vmul.f32 %v15038_v48, %v15038_v48  ;;  %v15042_v51 = vmax.f32 %v12226_v46, 0.0 }
 0x250   : > { %2091 = vadd.xlane.f32.xlu0 %v2017_v50  ;;  %v2018_v53 = vmul.f32 %v15042_v51, %v15042_v51 }
 0x251   : > { %v1736_v54 = vpop.f32.mrb[24].mxu0 }
 0x252   : > { %v1738_v55 = vpop.f32.mrb[25].mxu0  ;;  %2093 = vadd.xlane.f32.xlu1 %v2018_v53  ;;  %v12227_v29 = vadd.f32 %v14932_v28, %v1736_v54 }
 0x253   : > { %v1739_v56 = vpop.f32.mrb[26].mxu0 }
 0x254   : > { %v1741_v57 = vpop.f32.mrb[27].mxu0  ;;  %v12228_v33 = vadd.f32 %v14932_v28, %v1739_v56  ;;  %v15078_v43 = vmax.f32 %v12227_v29, 0.0 }
 0x256   : > { %v15082_v45 = vmax.f32 %v12228_v33, 0.0  ;;  %v2019_v54 = vmul.f32 %v15078_v43, %v15078_v43 }
 0x259   : > { %v1744_v58 = vpop.f32.mrb[28].mxu0 }
 0x25a   : > { %v1746_v59 = vpop.f32.mrb[29].mxu0  ;;  %v12229_v47 = vadd.f32 %v14932_v28, %v1744_v58 }
 0x25b   : > { %v1747_v60 = vpop.f32.mrb[30].mxu0 }
 0x25c   : > { %v1749_v61 = vpop.f32.mrb[31].mxu0  ;;  %v12230_v56 = vadd.f32 %v14932_v28, %v1747_v60 }
 0x25d   : > { %v2020_v61 = vmul.f32 %v15082_v45, %v15082_v45 }
 0x261   : > { %v1752_v62 = vpop.f32.mrb[32].mxu0 }
 0x262   : > { %v1754_v63 = vpop.f32.mrb[33].mxu0 }
 0x263   : > { %v15046_v0 = vpop.f32.mrb[34].mxu0 }
 0x264   : > { %v1757_v3 = vpop.f32.mrb[35].mxu0 }
 0x269   : > { %v15048_v4 = vpop.f32.mrb[36].mxu0 }
 0x26a   : > { %v1762_v6 = vpop.f32.mrb[37].mxu0 }
 0x26b   : > { %v15050_v7 = vpop.f32.mrb[38].mxu0  ;;  %v15098_v6 = vmax.f32 %v12229_v47, 0.0 }
 0x26c   : > { %v1765_v8 = vpop.f32.mrb[39].mxu0 }
 0x26d   : > { %v15102_v8 = vmax.f32 %v12230_v56, 0.0 }
 0x26f   : > { %v2022_v29 = vmul.f32 %v15102_v8, %v15102_v8 }
 0x271   : > { %v15052_v9 = vpop.f32.mrb[40].mxu0 }
 0x272   : > { %v1770_v10 = vpop.f32.mrb[41].mxu0 }
 0x273   : > { %v15054_v11 = vpop.f32.mrb[42].mxu0 }
 0x274   : > { %v1773_v12 = vpop.f32.mrb[43].mxu0 }
 0x275   : > { %v12231_v12 = vadd.f32 %v14932_v28, %v1752_v62 }
 0x279   : > { %v15056_v13 = vpop.f32.mrb[44].mxu0 }
 0x27a   : > { %v1778_v14 = vpop.f32.mrb[45].mxu0 }
 0x27b   : > { %v15058_v15 = vpop.f32.mrb[46].mxu0 }
 0x27c   : > { %v1781_v16 = vpop.f32.mrb[47].mxu0 }
 0x281   : > { %v15060_v17 = vpop.f32.mrb[48].mxu0 }
 0x282   : > { %v1786_v19 = vpop.f32.mrb[49].mxu0 }
 0x283   : > { %v15062_v20 = vpop.f32.mrb[50].mxu0  ;;  %v2021_v19 = vmul.f32 %v15098_v6, %v15098_v6 }
 0x284   : > { %v1789_v22 = vpop.f32.mrb[51].mxu0 }
 0x289   : > { %v15064_v23 = vpop.f32.mrb[52].mxu0 }
 0x28a   : > { %v1794_v24 = vpop.f32.mrb[53].mxu0 }
 0x28b   : > { %v15066_v25 = vpop.f32.mrb[54].mxu0  ;;  %v12232_v24 = vadd.f32 %v14932_v28, %v15046_v0 }
 0x28c   : > { %v1797_v26 = vpop.f32.mrb[55].mxu0 }
 0x28d   : > { %v15123_v33 = vmax.f32 %v12232_v24, 0.0 }
 0x291   : > { %v1800_v27 = vpop.f32.mrb[56].mxu0 }
 0x292   : > { %v12243_v30 = vadd.f32 %v14932_v28, %v1800_v27  ;;  %v1802_v31 = vpop.f32.mrb[57].mxu0 }
 0x293   : > { %v1803_v32 = vpop.f32.mrb[58].mxu0 }
 0x294   : > { %v12244_v35 = vadd.f32 %v14932_v28, %v1803_v32  ;;  %v1805_v36 = vpop.f32.mrb[59].mxu0  ;;  %v15072_v40 = vmax.f32 %v12243_v30, 0.0  ;;  %v15119_v32 = vmax.f32 %v12231_v12, 0.0 }
 0x295   : > { %v12233_v36 = vadd.f32 %v14932_v28, %v15048_v4 }
 0x296   : > { %v2035_v41 = vmul.f32 %v15072_v40, %v15072_v40  ;;  %v15076_v42 = vmax.f32 %v12244_v35, 0.0 }
 0x298   : > { %2127 = vadd.xlane.f32.xlu0 %v2035_v41  ;;  %v2036_v44 = vmul.f32 %v15076_v42, %v15076_v42 }
 0x299   : > { %v1808_v46 = vpop.f32.mrb[60].mxu0 }
 0x29a   : > { %v12245_v50 = vadd.f32 %v14932_v28, %v1808_v46  ;;  %v1810_v53 = vpop.f32.mrb[61].mxu0  ;;  %2129 = vadd.xlane.f32.xlu1 %v2036_v44  ;;  %v2023_v46 = vmul.f32 %v15119_v32, %v15119_v32 }
 0x29b   : > { %v1811_v55 = vpop.f32.mrb[62].mxu0 }
 0x29c   : > { %v12246_v57 = vadd.f32 %v14932_v28, %v1811_v55  ;;  %v1813_v59 = vpop.f32.mrb[63].mxu0  ;;  %2095 = vadd.xlane.f32.xlu0 %v2019_v54  ;;  %v15092_v63 = vmax.f32 %v12245_v50, 0.0  ;;  %v12234_v50 = vadd.f32 %v14932_v28, %v15050_v7  ;;  %v2024_v55 = vmul.f32 %v15123_v33, %v15123_v33 }
 0x29d   : > { %v15141_v59 = vmax.f32 %v12233_v36, 0.0 }
 0x29e   : > { %2097 = vadd.xlane.f32.xlu1 %v2020_v61  ;;  %v2037_v58 = vmul.f32 %v15092_v63, %v15092_v63  ;;  %v15096_v3 = vmax.f32 %v12246_v57, 0.0  ;;  %v15145_v61 = vmax.f32 %v12234_v50, 0.0 }
 0x2a0   : > { %2131 = vadd.xlane.f32.xlu0 %v2037_v58  ;;  %v2038_v60 = vmul.f32 %v15096_v3, %v15096_v3 }
 0x2a1   : > { %v1816_v10 = vpop.f32.mrb[64].mxu0 }
 0x2a2   : > { %v12247_v14 = vadd.f32 %v14932_v28, %v1816_v10  ;;  %v1818_v16 = vpop.f32.mrb[65].mxu0  ;;  %2133 = vadd.xlane.f32.xlu1 %v2038_v60  ;;  %v12235_v60 = vadd.f32 %v14932_v28, %v15052_v9 }
 0x2a3   : > { %v1819_v22 = vpop.f32.mrb[66].mxu0 }
 0x2a4   : > { %v12248_v26 = vadd.f32 %v14932_v28, %v1819_v22  ;;  %v1821_v27 = vpop.f32.mrb[67].mxu0  ;;  %2099 = vadd.xlane.f32.xlu0 %v2021_v19  ;;  %v15113_v30 = vmax.f32 %v12247_v14, 0.0  ;;  %v2025_v14 = vmul.f32 %v15141_v59, %v15141_v59  ;;  %v12236_v19 = vadd.f32 %v14932_v28, %v15054_v11 }
 0x2a6   : > { %2101 = vadd.xlane.f32.xlu1 %v2022_v29  ;;  %v2039_v62 = vmul.f32 %v15113_v30, %v15113_v30  ;;  %v15117_v31 = vmax.f32 %v12248_v26, 0.0  ;;  %v2026_v26 = vmul.f32 %v15145_v61, %v15145_v61  ;;  %v15167_v36 = vmax.f32 %v12236_v19, 0.0 }
 0x2a8   : > { %2135 = vadd.xlane.f32.xlu0 %v2039_v62  ;;  %v2040_v0 = vmul.f32 %v15117_v31, %v15117_v31 }
 0x2a9   : > { %v1824_v35 = vpop.f32.mrb[68].mxu0 }
 0x2aa   : > { %v12249_v41 = vadd.f32 %v14932_v28, %v1824_v35  ;;  %v1826_v44 = vpop.f32.mrb[69].mxu0  ;;  %2137 = vadd.xlane.f32.xlu1 %v2040_v0  ;;  %v15163_v35 = vmax.f32 %v12235_v60, 0.0 }
 0x2ab   : > { %v1827_v47 = vpop.f32.mrb[70].mxu0 }
 0x2ac   : > { %v12250_v53 = vadd.f32 %v14932_v28, %v1827_v47  ;;  %v1829_v54 = vpop.f32.mrb[71].mxu0  ;;  %2103 = vadd.xlane.f32.xlu0 %v2023_v46  ;;  %v15135_v56 = vmax.f32 %v12249_v41, 0.0  ;;  %v12237_v41 = vadd.f32 %v14932_v28, %v15056_v13  ;;  %v2028_v13 = vmul.f32 %v15167_v36, %v15167_v36 }
 0x2ad   : > { %v2027_v54 = vmul.f32 %v15163_v35, %v15163_v35 }
 0x2ae   : > { %2105 = vadd.xlane.f32.xlu1 %v2024_v55  ;;  %v2041_v4 = vmul.f32 %v15135_v56, %v15135_v56  ;;  %v15139_v57 = vmax.f32 %v12250_v53, 0.0  ;;  %v12238_v55 = vadd.f32 %v14932_v28, %v15058_v15 }
 0x2b0   : > { %2139 = vadd.xlane.f32.xlu0 %v2041_v4  ;;  %v2042_v7 = vmul.f32 %v15139_v57, %v15139_v57  ;;  %v15187_v19 = vmax.f32 %v12238_v55, 0.0 }
 0x2b1   : > { %v1832_v58 = vpop.f32.mrb[72].mxu0 }
 0x2b2   : > { %v12251_v10 = vadd.f32 %v14932_v28, %v1832_v58  ;;  %v1834_v12 = vpop.f32.mrb[73].mxu0  ;;  %2141 = vadd.xlane.f32.xlu1 %v2042_v7 }
 0x2b3   : > { %v1835_v16 = vpop.f32.mrb[74].mxu0  ;;  %v15181_v12 = vmax.f32 %v12237_v41, 0.0 }
 0x2b4   : > { %v12252_v22 = vadd.f32 %v14932_v28, %v1835_v16  ;;  %v1837_v24 = vpop.f32.mrb[75].mxu0  ;;  %2107 = vadd.xlane.f32.xlu0 %v2025_v14  ;;  %v15157_v27 = vmax.f32 %v12251_v10, 0.0 }
 0x2b5   : > { %v2072_v9 = vpop.xlane.xlu0 %2071 }
 0x2b6   : > { %v2199_v29 = vmax.f32 %v2072_v9, 1e-24  ;;  %2109 = vadd.xlane.f32.xlu1 %v2026_v26  ;;  %v2043_v62 = vmul.f32 %v15157_v27, %v15157_v27  ;;  %v15161_v0 = vmax.f32 %v12252_v22, 0.0  ;;  %v2029_v9 = vmul.f32 %v15181_v12, %v15181_v12 }
 0x2b8   : > { %2143 = vadd.xlane.f32.xlu0 %v2043_v62  ;;  %v2044_v11 = vmul.f32 %v15161_v0, %v15161_v0  ;;  %13776 = vrsqrt.f32 %v2199_v29  ;;  %v12239_v29 = vadd.f32 %v14932_v28, %v15060_v17 }
 0x2b9   : > { %v1840_v44 = vpop.f32.mrb[76].mxu0  ;;  %v2074_v46 = vpop.xlane.xlu0 %2073 }
 0x2ba   : > { %v12253_v47 = vadd.f32 %v14932_v28, %v1840_v44  ;;  %v2200_v50 = vmax.f32 %v2074_v46, 1e-24  ;;  %v1842_v53 = vpop.f32.mrb[77].mxu0  ;;  %2145 = vadd.xlane.f32.xlu1 %v2044_v11  ;;  %v2030_v46 = vmul.f32 %v15187_v19, %v15187_v19 }
 0x2bb   : > { %v1843_v4 = vpop.f32.mrb[78].mxu0 }
 0x2bc   : > { %13778 = vrsqrt.f32 %v2200_v50  ;;  %v12254_v7 = vadd.f32 %v14932_v28, %v1843_v4  ;;  %v1845_v58 = vpop.f32.mrb[79].mxu0  ;;  %2111 = vadd.xlane.f32.xlu0 %v2027_v54  ;;  %v15179_v60 = vmax.f32 %v12253_v47, 0.0  ;;  %v12240_v50 = vadd.f32 %v14932_v28, %v15062_v20 }
 0x2bd   : > { %v2076_v10 = vpop.xlane.xlu1 %2075 }
 0x2be   : > { %v2201_v14 = vmax.f32 %v2076_v10, 1e-24  ;;  %2113 = vadd.xlane.f32.xlu1 %v2028_v13  ;;  %v2045_v16 = vmul.f32 %v15179_v60, %v15179_v60  ;;  %v15185_v15 = vmax.f32 %v12254_v7, 0.0  ;;  %v15207_v10 = vmax.f32 %v12239_v29, 0.0 }
 0x2c0   : > { %2147 = vadd.xlane.f32.xlu0 %v2045_v16  ;;  %v2046_v22 = vmul.f32 %v15185_v15, %v15185_v15  ;;  %13780 = vrsqrt.f32 %v2201_v14 }
 0x2c1   : > { %v1848_v24 = vpop.f32.mrb[80].mxu0  ;;  %v2078_v26 = vpop.xlane.xlu1 %2077 }
 0x2c2   : > { %v12255_v62 = vadd.f32 %v14932_v28, %v1848_v24  ;;  %v2202_v11 = vmax.f32 %v2078_v26, 1e-24  ;;  %v1850_v41 = vpop.f32.mrb[81].mxu0  ;;  %2149 = vadd.xlane.f32.xlu1 %v2046_v22  ;;  %v13777_v47 = vpop.eup %13776  ;;  %v15213_v26 = vmax.f32 %v12240_v50, 0.0 }
 0x2c3   : > { %v1851_v44 = vpop.f32.mrb[82].mxu0  ;;  %v2327_v20 = vmul.f32 %v13777_v47, %v14938_v37 }
 0x2c4   : > { %13782 = vrsqrt.f32 %v2202_v11  ;;  %v12256_v53 = vadd.f32 %v14932_v28, %v1851_v44  ;;  %v1853_v54 = vpop.f32.mrb[83].mxu0  ;;  %2115 = vadd.xlane.f32.xlu0 %v2029_v9  ;;  %v15201_v17 = vmax.f32 %v12255_v62, 0.0  ;;  %v12241_v11 = vadd.f32 %v14932_v28, %v15064_v23 }
 0x2c5   : > { %v2080_v55 = vpop.xlane.xlu0 %2079  ;;  %v2032_v23 = vmul.f32 %v15213_v26, %v15213_v26 }
 0x2c6   : > { %v13779_v4 = vpop.eup %13778  ;;  %v2203_v7 = vmax.f32 %v2080_v55, 1e-24  ;;  %2117 = vadd.xlane.f32.xlu1 %v2030_v46  ;;  %v2047_v58 = vmul.f32 %v15201_v17, %v15201_v17  ;;  %v15205_v13 = vmax.f32 %v12256_v53, 0.0  ;;  %v12242_v46 = vadd.f32 %v14932_v28, %v15066_v25 }
 0x2c7   : > { %v2328_v14 = vmul.f32 %v13779_v4, %v14942_v39  ;;  %v2082_v16 = vpop.xlane.xlu1 %2081  ;;  %v2031_v39 = vmul.f32 %v15207_v10, %v15207_v10  ;;  %v15232_v25 = vmax.f32 %v12241_v11, 0.0 }
 0x2c8   : > { %v2204_v22 = vmax.f32 %v2082_v16, 1e-24  ;;  %2151 = vadd.xlane.f32.xlu0 %v2047_v58  ;;  %v2048_v24 = vmul.f32 %v15205_v13, %v15205_v13  ;;  %13784 = vrsqrt.f32 %v2203_v7 }
 0x2c9   : > { %v1856_v9 = vpop.f32.mrb[84].mxu0  ;;  %v2391_v62 = vpack.c.bf16 %v2328_v14, %v2327_v20 }
 0x2ca   : > { %13786 = vrsqrt.f32 %v2204_v22  ;;  %v12257_v29 = vadd.f32 %v14932_v28, %v1856_v9  ;;  %v1858_v37 = vpop.f32.mrb[85].mxu0  ;;  %2153 = vadd.xlane.f32.xlu1 %v2048_v24  ;;  %v13781_v44 = vpop.eup %13780  ;;  %v15238_v9 = vmax.f32 %v12242_v46, 0.0 }
 0x2cb   : > { %v1859_v41 = vpop.f32.mrb[86].mxu0  ;;  %2552 = vmatmul.mubr.bf16.vlgmr.msra.gmra.mrb[128].mxu0 %v2391_v62  ;;  %v2329_v14 = vmul.f32 %v13781_v44, %v14950_v49  ;;  %v2033_v49 = vmul.f32 %v15232_v25, %v15232_v25 }
 0x2cc   : > { %v12258_v47 = vadd.f32 %v14932_v28, %v1859_v41  ;;  %v1861_v50 = vpop.f32.mrb[87].mxu0  ;;  %2119 = vadd.xlane.f32.xlu0 %v2031_v39  ;;  %v15225_v53 = vmax.f32 %v12257_v29, 0.0  ;;  %2561 = vmatprep.mubr.bf16.mxu0 %v18435_v1  ;;  %v2034_v46 = vmul.f32 %v15238_v9, %v15238_v9 }
 0x2cd   : > { %v2084_v54 = vpop.xlane.xlu0 %2083 }
 0x2ce   : > { %v13783_v55 = vpop.eup %13782  ;;  %v2205_v4 = vmax.f32 %v2084_v54, 1e-24  ;;  %2121 = vadd.xlane.f32.xlu1 %v2032_v23  ;;  %v2049_v7 = vmul.f32 %v15225_v53, %v15225_v53  ;;  %v15230_v58 = vmax.f32 %v12258_v47, 0.0 }
 0x2cf   : > { %v2086_v20 = vpop.xlane.xlu1 %2085  ;;  %v2330_v16 = vmul.f32 %v13783_v55, %v14957_v52 }
 0x2d0   : > { %v2206_v22 = vmax.f32 %v2086_v20, 1e-24  ;;  %2155 = vadd.xlane.f32.xlu0 %v2049_v7  ;;  %v2050_v24 = vmul.f32 %v15230_v58, %v15230_v58  ;;  %13788 = vrsqrt.f32 %v2205_v4 }
 0x2d1   : > { %v1864_v62 = vpop.f32.mrb[88].mxu0  ;;  %v2392_v29 = vpack.c.bf16 %v2330_v16, %v2329_v14 }
 0x2d2   : > { %13790 = vrsqrt.f32 %v2206_v22  ;;  %v12259_v37 = vadd.f32 %v14932_v28, %v1864_v62  ;;  %v1866_v11 = vpop.f32.mrb[89].mxu0  ;;  %2157 = vadd.xlane.f32.xlu1 %v2050_v24  ;;  %v13785_v39 = vpop.eup %13784 }
 0x2d3   : > { %v1867_v52 = vpop.f32.mrb[90].mxu0  ;;  %2562 = vmatmul.mubr.bf16.gmra.mrb[132].mxu0 %v2392_v29  ;;  %v2331_v14 = vmul.f32 %v13785_v39, %v14974_v2 }
 0x2d4   : > { %v13787_v41 = vpop.eup %13786  ;;  %v12260_v44 = vadd.f32 %v14932_v28, %v1867_v52  ;;  %v1869_v47 = vpop.f32.mrb[91].mxu0  ;;  %2123 = vadd.xlane.f32.xlu0 %v2033_v49  ;;  %v15246_v50 = vmax.f32 %v12259_v37, 0.0  ;;  %2571 = vmatprep.mubr.bf16.mxu0 %v18435_v1 }
 0x2d5   : > { %v2088_v23 = vpop.xlane.xlu0 %2087  ;;  %v2332_v54 = vmul.f32 %v13787_v41, %v14981_v5 }
 0x2d6   : > { %v2207_v55 = vmax.f32 %v2088_v23, 1e-24  ;;  %2125 = vadd.xlane.f32.xlu1 %v2034_v46  ;;  %v2051_v4 = vmul.f32 %v15246_v50, %v15246_v50  ;;  %v15252_v7 = vmax.f32 %v12260_v44, 0.0 }
 0x2d7   : > { %v2090_v20 = vpop.xlane.xlu1 %2089  ;;  %v2393_v62 = vpack.c.bf16 %v2332_v54, %v2331_v14 }
 0x2d8   : > { %v2208_v16 = vmax.f32 %v2090_v20, 1e-24  ;;  %2159 = vadd.xlane.f32.xlu0 %v2051_v4  ;;  %v2052_v22 = vmul.f32 %v15252_v7, %v15252_v7  ;;  %13792 = vrsqrt.f32 %v2207_v55 }
 0x2d9   : > { %v1872_v24 = vpop.f32.mrb[92].mxu0 }
 0x2da   : > { %13794 = vrsqrt.f32 %v2208_v16  ;;  %v12261_v5 = vadd.f32 %v14932_v28, %v1872_v24  ;;  %v1874_v29 = vpop.f32.mrb[93].mxu0  ;;  %2161 = vadd.xlane.f32.xlu1 %v2052_v22  ;;  %v13789_v37 = vpop.eup %13788 }
 0x2db   : > { %v1875_v11 = vpop.f32.mrb[94].mxu0  ;;  %2572 = vmatmul.mubr.bf16.gmra.mrb[136].mxu0 %v2393_v62  ;;  %v2333_v55 = vmul.f32 %v13789_v37, %v14998_v18 }
 0x2dc   : > { %v13791_v49 = vpop.eup %13790  ;;  %v12262_v52 = vadd.f32 %v14932_v28, %v1875_v11  ;;  %v1877_v2 = vpop.f32.mrb[95].mxu0  ;;  %v15259_v39 = vmax.f32 %v12261_v5, 0.0  ;;  %2581 = vmatprep.mubr.bf16.mxu0 %v18435_v1 }
 0x2dd   : > { %v2092_v41 = vpop.xlane.xlu0 %2091  ;;  %v2334_v44 = vmul.f32 %v13791_v49, %v15005_v21 }
 0x2de   : > { %v2209_v47 = vmax.f32 %v2092_v41, 1e-24  ;;  %v2053_v46 = vmul.f32 %v15259_v39, %v15259_v39  ;;  %v15265_v23 = vmax.f32 %v12262_v52, 0.0 }
 0x2df   : > { %v2094_v54 = vpop.xlane.xlu1 %2093  ;;  %v2394_v16 = vpack.c.bf16 %v2334_v44, %v2333_v55 }
 0x2e0   : > { %v2210_v4 = vmax.f32 %v2094_v54, 1e-24  ;;  %2163 = vadd.xlane.f32.xlu0 %v2053_v46  ;;  %v2054_v20 = vmul.f32 %v15265_v23, %v15265_v23  ;;  %13796 = vrsqrt.f32 %v2209_v47 }
 0x2e1   : > { %v1880_v14 = vpop.f32.mrb[96].mxu0 }
 0x2e2   : > { %13798 = vrsqrt.f32 %v2210_v4  ;;  %v12263_v21 = vadd.f32 %v14932_v28, %v1880_v14  ;;  %v1882_v22 = vpop.f32.mrb[97].mxu0  ;;  %2165 = vadd.xlane.f32.xlu1 %v2054_v20  ;;  %v13793_v24 = vpop.eup %13792 }
 0x2e3   : > { %v1883_v62 = vpop.f32.mrb[98].mxu0  ;;  %2582 = vmatmul.mubr.bf16.gmra.mrb[140].mxu0 %v2394_v16  ;;  %v2335_v2 = vmul.f32 %v13793_v24, %v15021_v34 }
 0x2e4   : > { %v13795_v5 = vpop.eup %13794  ;;  %v12264_v29 = vadd.f32 %v14932_v28, %v1883_v62  ;;  %v1885_v18 = vpop.f32.mrb[99].mxu0  ;;  %v15272_v37 = vmax.f32 %v12263_v21, 0.0  ;;  %2591 = vmatprep.mubr.bf16.mxu0 %v18435_v1 }
 0x2e5   : > { %v2336_v11 = vmul.f32 %v13795_v5, %v15028_v38 }
 0x2e6   : > { %v2055_v49 = vmul.f32 %v15272_v37, %v15272_v37  ;;  %v15278_v52 = vmax.f32 %v12264_v29, 0.0 }
 0x2e7   : > { %v2395_v47 = vpack.c.bf16 %v2336_v11, %v2335_v2 }
 0x2e8   : > { %2167 = vadd.xlane.f32.xlu0 %v2055_v49  ;;  %v2056_v41 = vmul.f32 %v15278_v52, %v15278_v52 }
 0x2e9   : > { %v1888_v44 = vpop.f32.mrb[100].mxu0 }
 0x2ea   : > { %v12265_v46 = vadd.f32 %v14932_v28, %v1888_v44  ;;  %v1890_v54 = vpop.f32.mrb[101].mxu0  ;;  %2169 = vadd.xlane.f32.xlu1 %v2056_v41  ;;  %v13797_v55 = vpop.eup %13796 }
 0x2eb   : > { %v1891_v4 = vpop.f32.mrb[102].mxu0  ;;  %2592 = vmatmul.mubr.bf16.gmra.mrb[144].mxu0 %v2395_v47  ;;  %v2337_v24 = vmul.f32 %v13797_v55, %v15038_v48 }
 0x2ec   : > { %v13799_v38 = vpop.eup %13798  ;;  %v12266_v20 = vadd.f32 %v14932_v28, %v1891_v4  ;;  %v1893_v14 = vpop.f32.mrb[103].mxu0  ;;  %v15285_v16 = vmax.f32 %v12265_v46, 0.0  ;;  %2601 = vmatprep.mubr.bf16.mxu0 %v18435_v1 }
 0x2ed   : > { %v2338_v34 = vmul.f32 %v13799_v38, %v15042_v51 }
 0x2ee   : > { %v2057_v21 = vmul.f32 %v15285_v16, %v15285_v16  ;;  %v15291_v22 = vmax.f32 %v12266_v20, 0.0 }
 0x2ef   : > { %v2396_v29 = vpack.c.bf16 %v2338_v34, %v2337_v24 }
 0x2f0   : > { %2171 = vadd.xlane.f32.xlu0 %v2057_v21  ;;  %v2058_v62 = vmul.f32 %v15291_v22, %v15291_v22 }
 0x2f1   : > { %v1896_v5 = vpop.f32.mrb[104].mxu0 }
 0x2f2   : > { %v12267_v18 = vadd.f32 %v14932_v28, %v1896_v5  ;;  %v1898_v11 = vpop.f32.mrb[105].mxu0  ;;  %2173 = vadd.xlane.f32.xlu1 %v2058_v62 }
 0x2f3   : > { %v1899_v49 = vpop.f32.mrb[106].mxu0  ;;  %2602 = vmatmul.mubr.bf16.gmra.mrb[148].mxu0 %v2396_v29 }
 0x2f4   : > { %v12268_v51 = vadd.f32 %v14932_v28, %v1899_v49  ;;  %v1901_v2 = vpop.f32.mrb[107].mxu0  ;;  %v15298_v41 = vmax.f32 %v12267_v18, 0.0  ;;  %2611 = vmatprep.mubr.bf16.mxu0 %v18435_v1 }
 0x2f6   : > { %v2059_v48 = vmul.f32 %v15298_v41, %v15298_v41  ;;  %v15303_v44 = vmax.f32 %v12268_v51, 0.0 }
 0x2f8   : > { %2175 = vadd.xlane.f32.xlu0 %v2059_v48  ;;  %v2060_v47 = vmul.f32 %v15303_v44, %v15303_v44 }
 0x2f9   : > { %v1904_v46 = vpop.f32.mrb[108].mxu0 }
 0x2fa   : > { %v12269_v54 = vadd.f32 %v14932_v28, %v1904_v46  ;;  %v1906_v55 = vpop.f32.mrb[109].mxu0  ;;  %2177 = vadd.xlane.f32.xlu1 %v2060_v47 }
 0x2fb   : > { %v1907_v4 = vpop.f32.mrb[110].mxu0 }
 0x2fc   : > { %v12270_v38 = vadd.f32 %v14932_v28, %v1907_v4  ;;  %v1909_v20 = vpop.f32.mrb[111].mxu0  ;;  %v15309_v14 = vmax.f32 %v12269_v54, 0.0 }
 0x2fe   : > { %v2061_v34 = vmul.f32 %v15309_v14, %v15309_v14  ;;  %v15313_v21 = vmax.f32 %v12270_v38, 0.0 }
 0x300   : > { %2179 = vadd.xlane.f32.xlu0 %v2061_v34  ;;  %v2062_v24 = vmul.f32 %v15313_v21, %v15313_v21 }
 0x301   : > { %v1912_v62 = vpop.f32.mrb[112].mxu0 }
 0x302   : > { %v12271_v5 = vadd.f32 %v14932_v28, %v1912_v62  ;;  %v1914_v29 = vpop.f32.mrb[113].mxu0  ;;  %2181 = vadd.xlane.f32.xlu1 %v2062_v24 }
 0x303   : > { %v1915_v18 = vpop.f32.mrb[114].mxu0 }
 0x304   : > { %v12272_v11 = vadd.f32 %v14932_v28, %v1915_v18  ;;  %v1917_v49 = vpop.f32.mrb[115].mxu0  ;;  %v15319_v51 = vmax.f32 %v12271_v5, 0.0 }
 0x306   : > { %v2063_v2 = vmul.f32 %v15319_v51, %v15319_v51  ;;  %v15323_v48 = vmax.f32 %v12272_v11, 0.0 }
 0x308   : > { %2183 = vadd.xlane.f32.xlu0 %v2063_v2  ;;  %v2064_v47 = vmul.f32 %v15323_v48, %v15323_v48 }
 0x309   : > { %v1920_v46 = vpop.f32.mrb[116].mxu0 }
 0x30a   : > { %v12273_v54 = vadd.f32 %v14932_v28, %v1920_v46  ;;  %v1922_v55 = vpop.f32.mrb[117].mxu0  ;;  %2185 = vadd.xlane.f32.xlu1 %v2064_v47 }
 0x30b   : > { %v1923_v4 = vpop.f32.mrb[118].mxu0 }
 0x30c   : > { %v12274_v38 = vadd.f32 %v14932_v28, %v1923_v4  ;;  %v1925_v20 = vpop.f32.mrb[119].mxu0  ;;  %v15329_v34 = vmax.f32 %v12273_v54, 0.0 }
 0x30e   : > { %v2065_v24 = vmul.f32 %v15329_v34, %v15329_v34  ;;  %v15333_v62 = vmax.f32 %v12274_v38, 0.0 }
 0x310   : > { %18462 = vst [vmem:[#allocation2_spill] sm:$0xff] %v15333_v62  ;;  %2187 = vadd.xlane.f32.xlu0 %v2065_v24  ;;  %v2066_v5 = vmul.f32 %v15333_v62, %v15333_v62  ;;  %v14160_v24 = vld [vmem:[%s18428_s3] ss:$0 sm:$0xff] }
 0x311   : > { %v1928_v29 = vpop.f32.mrb[120].mxu0 }
 0x312   : > { %v1930_v18 = vpop.f32.mrb[121].mxu0  ;;  %2189 = vadd.xlane.f32.xlu1 %v2066_v5  ;;  %v12275_v11 = vadd.f32 %v14932_v28, %v1928_v29 }
 0x313   : > { %v1931_v49 = vpop.f32.mrb[122].mxu0 }
 0x314   : > { %v1933_v2 = vpop.f32.mrb[123].mxu0  ;;  %v15338_v47 = vmax.f32 %v12275_v11, 0.0  ;;  %v12276_v46 = vadd.f32 %v14932_v28, %v1931_v49 }
 0x316   : > { %18463 = vst [vmem:[#allocation3_spill] sm:$0xff] %v15338_v47  ;;  %v2067_v54 = vmul.f32 %v15338_v47, %v15338_v47  ;;  %v15343_v55 = vmax.f32 %v12276_v46, 0.0 }
 0x318   : > { %18464 = vst [vmem:[#allocation4_spill] sm:$0xff] %v15343_v55  ;;  %2191 = vadd.xlane.f32.xlu0 %v2067_v54  ;;  %v2068_v4 = vmul.f32 %v15343_v55, %v15343_v55 }
 0x319   : > { %v1936_v38 = vpop.f32.mrb[124].mxu0 }
 0x31a   : > { %v1938_v20 = vpop.f32.mrb[125].mxu0  ;;  %2193 = vadd.xlane.f32.xlu1 %v2068_v4  ;;  %v12277_v5 = vadd.f32 %v14160_v24, %v1936_v38  ;;  %v13688_v38 = vld [vmem:[%s18430_s5] sm:$0xff]  }
 0x31b   : > { %v1939_v29 = vpop.f32.mrb[126].mxu0  ;;  %11559 = vmatprep.subr.bf16.mxu1 %v13688_v38 }
 0x31c   : > { %v1941_v18 = vpop.f32.mrb[127].mxu0  ;;  %v15350_v28 = vmax.f32 %v12277_v5, 0.0  ;;  %v12278_v11 = vadd.f32 %v14160_v24, %v1939_v29 }
 0x31e   : > { %18465 = vst [vmem:[#allocation5_spill] sm:$0xff] %v15350_v28  ;;  %v2069_v49 = vmul.f32 %v15350_v28, %v15350_v28  ;;  %v15354_v2 = vmax.f32 %v12278_v11, 0.0 }
 0x320   : > { %18466 = vst [vmem:[#allocation6_spill] sm:$0xff] %v15354_v2  ;;  %2195 = vadd.xlane.f32.xlu0 %v2069_v49  ;;  %v2070_v46 = vmul.f32 %v15354_v2, %v15354_v2 }
 0x322   : > { %2197 = vadd.xlane.f32.xlu1 %v2070_v46 }
 0x325   : > { %v2128_v54 = vpop.xlane.xlu0 %2127 }
 0x326   : > { %v2227_v4 = vmax.f32 %v2128_v54, 1e-24 }
 0x327   : > { %v2130_v20 = vpop.xlane.xlu1 %2129 }
 0x328   : > { %13800 = vrsqrt.f32 %v2227_v4  ;;  %v2228_v5 = vmax.f32 %v2130_v20, 1e-24 }
 0x329   : > { %v2096_v24 = vpop.xlane.xlu0 %2095 }
 0x32a   : > { %13802 = vrsqrt.f32 %v2228_v5  ;;  %v2211_v29 = vmax.f32 %v2096_v24, 1e-24 }
 0x32b   : > { %v2098_v18 = vpop.xlane.xlu1 %2097 }
 0x32c   : > { %13804 = vrsqrt.f32 %v2211_v29  ;;  %v2212_v11 = vmax.f32 %v2098_v18, 1e-24 }
 0x32d   : > { %v2132_v49 = vpop.xlane.xlu0 %2131 }
 0x32e   : > { %13806 = vrsqrt.f32 %v2212_v11  ;;  %v2229_v1 = vmax.f32 %v2132_v49, 1e-24 }
 0x32f   : > { %v2134_v46 = vpop.xlane.xlu1 %2133 }
 0x330   : > { %13808 = vrsqrt.f32 %v2229_v1  ;;  %v2230_v54 = vmax.f32 %v2134_v46, 1e-24  ;;  %v13689_v1 = vld [vmem:[%s18430_s5 + $0x8] sm:$0xff]  }
 0x331   : > { %v2100_v2 = vpop.xlane.xlu0 %2099 }
 0x332   : > { %v13801_v28 = vpop.eup %13800  ;;  %13810 = vrsqrt.f32 %v2230_v54  ;;  %v2213_v55 = vmax.f32 %v2100_v2, 1e-24  ;;  %v18467_v54 = vmov 0  }
 0x333   : > { %v2102_v47 = vpop.xlane.xlu1 %2101  ;;  %v2355_v5 = vmul.f32 %v13801_v28, %v15072_v40 }
 0x334   : > { %v13803_v4 = vpop.eup %13802  ;;  %13812 = vrsqrt.f32 %v2213_v55  ;;  %v2214_v20 = vmax.f32 %v2102_v47, 1e-24 }
 0x335   : > { %v2136_v62 = vpop.xlane.xlu0 %2135  ;;  %v2356_v24 = vmul.f32 %v13803_v4, %v15076_v42 }
 0x336   : > { %v13805_v29 = vpop.eup %13804  ;;  %13814 = vrsqrt.f32 %v2214_v20  ;;  %v2231_v18 = vmax.f32 %v2136_v62, 1e-24  ;;  %v13690_v20 = vld [vmem:[%s18430_s5 + $0x10] sm:$0xff]  }
 0x337   : > { %v2138_v11 = vpop.xlane.xlu1 %2137  ;;  %v2405_v49 = vpack.c.bf16 %v2356_v24, %v2355_v5  ;;  %v2339_v47 = vmul.f32 %v13805_v29, %v15078_v43 }
 0x338   : > { %v13807_v46 = vpop.eup %13806  ;;  %13816 = vrsqrt.f32 %v2231_v18  ;;  %v2232_v2 = vmax.f32 %v2138_v11, 1e-24 }
 0x339   : > { %2692 = vmatmul.mubr.bf16.vlgmr.msra.gmra.mrb[0].mxu1 %v2405_v49  ;;  %v2104_v55 = vpop.xlane.xlu0 %2103  ;;  %v2340_v40 = vmul.f32 %v13807_v46, %v15082_v45  ;;  %v13691_v46 = vld [vmem:[%s18430_s5 + $0x18] sm:$0xff]  }
 0x33a   : > { %v13809_v28 = vpop.eup %13808  ;;  %13818 = vrsqrt.f32 %v2232_v2  ;;  %v2215_v42 = vmax.f32 %v2104_v55, 1e-24  ;;  %2701 = vmatprep.mubr.bf16.mxu1 %v18467_v54  ;;  %11560 = vmatpush3.bf16.msra.mxu1 %v13688_v38 }
 0x33b   : > { %v2106_v62 = vpop.xlane.xlu1 %2105  ;;  %v2397_v4 = vpack.c.bf16 %v2340_v40, %v2339_v47  ;;  %11561 = vmatprep.subr.bf16.mxu1 %v13689_v1  ;;  %v2357_v45 = vmul.f32 %v13809_v28, %v15092_v63 }
 0x33c   : > { %v13811_v5 = vpop.eup %13810  ;;  %13820 = vrsqrt.f32 %v2215_v42  ;;  %v2216_v24 = vmax.f32 %v2106_v62, 1e-24  ;;  %v13692_v62 = vld [vmem:[%s18430_s5 + $0x20] sm:$0xff]  }
 0x33d   : > { %2612 = vmatmul.mubr.bf16.gmra.mrb[152].mxu0 %v2397_v4  ;;  %v2140_v43 = vpop.xlane.xlu0 %2139  ;;  %v2358_v29 = vmul.f32 %v13811_v5, %v15096_v3 }
 0x33e   : > { %v13813_v18 = vpop.eup %13812  ;;  %13822 = vrsqrt.f32 %v2216_v24  ;;  %v2233_v11 = vmax.f32 %v2140_v43, 1e-24  ;;  %2621 = vmatprep.mubr.bf16.mxu0 %v18467_v54  ;;  %11562 = vmatpush3.bf16.msra.mxu1 %v13689_v1 }
 0x33f   : > { %v2142_v38 = vpop.xlane.xlu1 %2141  ;;  %v2406_v49 = vpack.c.bf16 %v2358_v29, %v2357_v45  ;;  %11563 = vmatprep.subr.bf16.mxu1 %v13690_v20  ;;  %v2341_v3 = vmul.f32 %v13813_v18, %v15098_v6  ;;  %v13693_v18 = vld [vmem:[%s18430_s5 + $0x28] sm:$0xff]  }
 0x340   : > { %v13815_v2 = vpop.eup %13814  ;;  %13824 = vrsqrt.f32 %v2233_v11  ;;  %v2234_v55 = vmax.f32 %v2142_v38, 1e-24 }
 0x341   : > { %2702 = vmatmul.mubr.bf16.gmra.mrb[4].mxu1 %v2406_v49  ;;  %v2108_v63 = vpop.xlane.xlu0 %2107  ;;  %v2342_v47 = vmul.f32 %v13815_v2, %v15102_v8 }
 0x342   : > { %v13817_v40 = vpop.eup %13816  ;;  %13826 = vrsqrt.f32 %v2234_v55  ;;  %v2217_v28 = vmax.f32 %v2108_v63, 1e-24  ;;  %2711 = vmatprep.mubr.bf16.mxu1 %v18467_v54  ;;  %11564 = vmatpush3.bf16.msra.mxu1 %v13690_v20 }
 0x343   : > { %v2110_v1 = vpop.xlane.xlu1 %2109  ;;  %v2398_v42 = vpack.c.bf16 %v2342_v47, %v2341_v3  ;;  %11565 = vmatprep.subr.bf16.mxu1 %v13691_v46  ;;  %v2359_v8 = vmul.f32 %v13817_v40, %v15113_v30  ;;  %v13694_v3 = vld [vmem:[%s18430_s5 + $0x30] sm:$0xff]  }
 0x344   : > { %v13819_v4 = vpop.eup %13818  ;;  %13828 = vrsqrt.f32 %v2217_v28  ;;  %v2218_v5 = vmax.f32 %v2110_v1, 1e-24 }
 0x345   : > { %2622 = vmatmul.mubr.bf16.gmra.mrb[156].mxu0 %v2398_v42  ;;  %v2144_v6 = vpop.xlane.xlu0 %2143  ;;  %v2360_v24 = vmul.f32 %v13819_v4, %v15117_v31 }
 0x346   : > { %v13821_v43 = vpop.eup %13820  ;;  %13830 = vrsqrt.f32 %v2218_v5  ;;  %v2235_v45 = vmax.f32 %v2144_v6, 1e-24  ;;  %2631 = vmatprep.mubr.bf16.mxu0 %v18467_v54  ;;  %11566 = vmatpush3.bf16.msra.mxu1 %v13691_v46  ;;  %v13695_v5 = vld [vmem:[%s18430_s5 + $0x38] sm:$0xff]  }
 0x347   : > { %v2146_v20 = vpop.xlane.xlu1 %2145  ;;  %v2407_v29 = vpack.c.bf16 %v2360_v24, %v2359_v8  ;;  %11567 = vmatprep.subr.bf16.mxu1 %v13692_v62  ;;  %v2343_v31 = vmul.f32 %v13821_v43, %v15119_v32 }
 0x348   : > { %v13823_v11 = vpop.eup %13822  ;;  %13832 = vrsqrt.f32 %v2235_v45  ;;  %v2236_v38 = vmax.f32 %v2146_v20, 1e-24 }
 0x349   : > { %2712 = vmatmul.mubr.bf16.gmra.mrb[8].mxu1 %v2407_v29  ;;  %v2112_v30 = vpop.xlane.xlu0 %2111  ;;  %v2344_v49 = vmul.f32 %v13823_v11, %v15123_v33 }
 0x34a   : > { %v13825_v2 = vpop.eup %13824  ;;  %13834 = vrsqrt.f32 %v2236_v38  ;;  %v2219_v55 = vmax.f32 %v2112_v30, 1e-24  ;;  %2721 = vmatprep.mubr.bf16.mxu1 %v18467_v54  ;;  %11568 = vmatpush3.bf16.msra.mxu1 %v13692_v62 }
 0x34b   : > { %v2114_v46 = vpop.xlane.xlu1 %2113  ;;  %v2399_v63 = vpack.c.bf16 %v2344_v49, %v2343_v31  ;;  %11569 = vmatprep.subr.bf16.mxu1 %v13693_v18  ;;  %v2361_v33 = vmul.f32 %v13825_v2, %v15135_v56 }
 0x34c   : > { %v13827_v47 = vpop.eup %13826  ;;  %13836 = vrsqrt.f32 %v2219_v55  ;;  %v2220_v40 = vmax.f32 %v2114_v46, 1e-24 }
 0x34d   : > { %2632 = vmatmul.mubr.bf16.gmra.mrb[160].mxu0 %v2399_v63  ;;  %v2148_v32 = vpop.xlane.xlu0 %2147  ;;  %v2362_v28 = vmul.f32 %v13827_v47, %v15139_v57 }
 0x34e   : > { %v13829_v1 = vpop.eup %13828  ;;  %13838 = vrsqrt.f32 %v2220_v40  ;;  %v2237_v42 = vmax.f32 %v2148_v32, 1e-24  ;;  %2641 = vmatprep.mubr.bf16.mxu0 %v18467_v54  ;;  %11570 = vmatpush3.bf16.msra.mxu1 %v13693_v18 }
 0x34f   : > { %v2150_v62 = vpop.xlane.xlu1 %2149  ;;  %v2408_v4 = vpack.c.bf16 %v2362_v28, %v2361_v33  ;;  %11571 = vmatprep.subr.bf16.mxu1 %v13694_v3  ;;  %v2345_v57 = vmul.f32 %v13829_v1, %v15141_v59 }
 0x350   : > { %v13831_v6 = vpop.eup %13830  ;;  %13840 = vrsqrt.f32 %v2237_v42  ;;  %v2238_v8 = vmax.f32 %v2150_v62, 1e-24 }
 0x351   : > { %2722 = vmatmul.mubr.bf16.gmra.mrb[12].mxu1 %v2408_v4  ;;  %v2116_v56 = vpop.xlane.xlu0 %2115  ;;  %v2346_v24 = vmul.f32 %v13831_v6, %v15145_v61 }
 0x352   : > { %v13833_v43 = vpop.eup %13832  ;;  %13842 = vrsqrt.f32 %v2238_v8  ;;  %v2221_v45 = vmax.f32 %v2116_v56, 1e-24  ;;  %2731 = vmatprep.mubr.bf16.mxu1 %v18467_v54  ;;  %11572 = vmatpush3.bf16.msra.mxu1 %v13694_v3 }
 0x353   : > { %v2118_v20 = vpop.xlane.xlu1 %2117  ;;  %v2400_v29 = vpack.c.bf16 %v2346_v24, %v2345_v57  ;;  %11573 = vmatprep.subr.bf16.mxu1 %v13695_v5  ;;  %v2363_v30 = vmul.f32 %v13833_v43, %v15157_v27 }
 0x354   : > { %v13835_v18 = vpop.eup %13834  ;;  %13844 = vrsqrt.f32 %v2221_v45  ;;  %v2222_v11 = vmax.f32 %v2118_v20, 1e-24 }
 0x355   : > { %2642 = vmatmul.mubr.bf16.gmra.mrb[164].mxu0 %v2400_v29  ;;  %v2152_v38 = vpop.xlane.xlu0 %2151  ;;  %v2364_v59 = vmul.f32 %v13835_v18, %v15161_v0 }
 0x356   : > { %v13837_v31 = vpop.eup %13836  ;;  %13846 = vrsqrt.f32 %v2222_v11  ;;  %v2239_v61 = vmax.f32 %v2152_v38, 1e-24  ;;  %2651 = vmatprep.mubr.bf16.mxu0 %v18467_v54  ;;  %11574 = vmatpush3.bf16.msra.mxu1 %v13695_v5 }
 0x357   : > { %v2154_v49 = vpop.xlane.xlu1 %2153  ;;  %v2409_v2 = vpack.c.bf16 %v2364_v59, %v2363_v30  ;;  %v2347_v3 = vmul.f32 %v13837_v31, %v15163_v35 }
 0x358   : > { %v13839_v55 = vpop.eup %13838  ;;  %13848 = vrsqrt.f32 %v2239_v61  ;;  %v2240_v46 = vmax.f32 %v2154_v49, 1e-24 }
 0x359   : > { %2732 = vmatmul.mubr.bf16.gmra.mrb[16].mxu1 %v2409_v2  ;;  %v2120_v63 = vpop.xlane.xlu0 %2119  ;;  %v2348_v47 = vmul.f32 %v13839_v55, %v15167_v36 }
 0x35a   : > { %v13841_v27 = vpop.eup %13840  ;;  %13850 = vrsqrt.f32 %v2240_v46  ;;  %v2223_v0 = vmax.f32 %v2120_v63, 1e-24  ;;  %2741 = vmatprep.mubr.bf16.mxu1 %v18467_v54 }
 0x35b   : > { %v2122_v40 = vpop.xlane.xlu1 %2121  ;;  %v2401_v32 = vpack.c.bf16 %v2348_v47, %v2347_v3  ;;  %v2365_v42 = vmul.f32 %v13841_v27, %v15179_v60 }
 0x35c   : > { %v13843_v33 = vpop.eup %13842  ;;  %13852 = vrsqrt.f32 %v2223_v0  ;;  %v2224_v28 = vmax.f32 %v2122_v40, 1e-24 }
 0x35d   : > { %2652 = vmatmul.mubr.bf16.gmra.mrb[168].mxu0 %v2401_v32  ;;  %v2156_v1 = vpop.xlane.xlu0 %2155  ;;  %v2366_v62 = vmul.f32 %v13843_v33, %v15185_v15 }
 0x35e   : > { %v13845_v4 = vpop.eup %13844  ;;  %13854 = vrsqrt.f32 %v2224_v28  ;;  %v2241_v35 = vmax.f32 %v2156_v1, 1e-24  ;;  %2661 = vmatprep.mubr.bf16.mxu0 %v18467_v54 }
 0x35f   : > { %v2158_v36 = vpop.xlane.xlu1 %2157  ;;  %v2410_v5 = vpack.c.bf16 %v2366_v62, %v2365_v42  ;;  %v2349_v57 = vmul.f32 %v13845_v4, %v15181_v12 }
 0x360   : > { %v13847_v6 = vpop.eup %13846  ;;  %13856 = vrsqrt.f32 %v2241_v35  ;;  %v2242_v8 = vmax.f32 %v2158_v36, 1e-24 }
 0x361   : > { %2742 = vmatmul.mubr.bf16.gmra.mrb[20].mxu1 %v2410_v5  ;;  %v2124_v56 = vpop.xlane.xlu0 %2123  ;;  %v2350_v24 = vmul.f32 %v13847_v6, %v15187_v19 }
 0x362   : > { %v13849_v43 = vpop.eup %13848  ;;  %13858 = vrsqrt.f32 %v2242_v8  ;;  %v2225_v60 = vmax.f32 %v2124_v56, 1e-24  ;;  %2751 = vmatprep.mubr.bf16.mxu1 %v18467_v54 }
 0x363   : > { %v2126_v15 = vpop.xlane.xlu1 %2125  ;;  %v2402_v45 = vpack.c.bf16 %v2350_v24, %v2349_v57  ;;  %v2367_v11 = vmul.f32 %v13849_v43, %v15201_v17 }
 0x364   : > { %v13851_v20 = vpop.eup %13850  ;;  %13860 = vrsqrt.f32 %v2225_v60  ;;  %v2226_v29 = vmax.f32 %v2126_v15, 1e-24 }
 0x365   : > { %2662 = vmatmul.mubr.bf16.gmra.mrb[172].mxu0 %v2402_v45  ;;  %v2160_v18 = vpop.xlane.xlu0 %2159  ;;  %v2368_v38 = vmul.f32 %v13851_v20, %v15205_v13 }
 0x366   : > { %v13853_v30 = vpop.eup %13852  ;;  %13862 = vrsqrt.f32 %v2226_v29  ;;  %v2243_v12 = vmax.f32 %v2160_v18, 1e-24  ;;  %2671 = vmatprep.mubr.bf16.mxu0 %v18467_v54 }
 0x367   : > { %v2162_v19 = vpop.xlane.xlu1 %2161  ;;  %v2411_v59 = vpack.c.bf16 %v2368_v38, %v2367_v11  ;;  %v2351_v49 = vmul.f32 %v13853_v30, %v15207_v10 }
 0x368   : > { %v13855_v31 = vpop.eup %13854  ;;  %13864 = vrsqrt.f32 %v2243_v12  ;;  %v2244_v61 = vmax.f32 %v2162_v19, 1e-24 }
 0x369   : > { %2752 = vmatmul.mubr.bf16.gmra.mrb[24].mxu1 %v2411_v59  ;;  %v2352_v2 = vmul.f32 %v13855_v31, %v15213_v26 }
 0x36a   : > { %v13857_v55 = vpop.eup %13856  ;;  %13866 = vrsqrt.f32 %v2244_v61  ;;  %2761 = vmatprep.mubr.bf16.mxu1 %v18467_v54 }
 0x36b   : > { %v2403_v17 = vpack.c.bf16 %v2352_v2, %v2351_v49  ;;  %v2369_v63 = vmul.f32 %v13857_v55, %v15225_v53 }
 0x36c   : > { %v13859_v13 = vpop.eup %13858 }
 0x36d   : > { %2672 = vmatmul.mubr.bf16.gmra.mrb[176].mxu0 %v2403_v17  ;;  %v2164_v46 = vpop.xlane.xlu0 %2163  ;;  %v2370_v3 = vmul.f32 %v13859_v13, %v15230_v58 }
 0x36e   : > { %v13861_v47 = vpop.eup %13860  ;;  %v2245_v27 = vmax.f32 %v2164_v46, 1e-24  ;;  %2681 = vmatprep.mubr.bf16.mxu0 %v18467_v54 }
 0x36f   : > { %v2166_v0 = vpop.xlane.xlu1 %2165  ;;  %v2412_v10 = vpack.c.bf16 %v2370_v3, %v2369_v63  ;;  %v2353_v32 = vmul.f32 %v13861_v47, %v15232_v25 }
 0x370   : > { %v13863_v40 = vpop.eup %13862  ;;  %13868 = vrsqrt.f32 %v2245_v27  ;;  %v2246_v26 = vmax.f32 %v2166_v0, 1e-24  ;;  %v15448_v27 = vld [vmem:[%s18429_s4] ss:$0 sm:$0xff] }
 0x371   : > { %2762 = vmatmul.mubr.bf16.gmra.mrb[28].mxu1 %v2412_v10  ;;  %v2354_v33 = vmul.f32 %v13863_v40, %v15238_v9 }
 0x372   : > { %v13865_v28 = vpop.eup %13864  ;;  %13870 = vrsqrt.f32 %v2246_v26  ;;  %2771 = vmatprep.mubr.bf16.mxu1 %v18467_v54 }
 0x373   : > { %v2404_v53 = vpack.c.bf16 %v2354_v33, %v2353_v32  ;;  %v2371_v42 = vmul.f32 %v13865_v28, %v15246_v50 }
 0x374   : > { %v13867_v58 = vpop.eup %13866 }
 0x375   : > { %2682 = vmatmul.mubr.bf16.gmra.mrb[180].mxu0 %v2404_v53  ;;  %v2168_v1 = vpop.xlane.xlu0 %2167  ;;  %v2372_v62 = vmul.f32 %v13867_v58, %v15252_v7 }
 0x376   : > { %v2247_v4 = vmax.f32 %v2168_v1, 1e-24  ;;  %5146 = vmatprep.mubr.bf16.mxu0 %v18467_v54 }
 0x377   : > { %v2170_v35 = vpop.xlane.xlu1 %2169  ;;  %v2413_v36 = vpack.c.bf16 %v2372_v62, %v2371_v42 }
 0x378   : > { %13872 = vrsqrt.f32 %v2247_v4  ;;  %v2248_v25 = vmax.f32 %v2170_v35, 1e-24 }
 0x379   : > { %2772 = vmatmul.mubr.bf16.gmra.mrb[32].mxu1 %v2413_v36 }
 0x37a   : > { %v13869_v9 = vpop.eup %13868  ;;  %13874 = vrsqrt.f32 %v2248_v25  ;;  %2781 = vmatprep.mubr.bf16.mxu1 %v18467_v54 }
 0x37b   : > { %v2373_v8 = vmul.f32 %v13869_v9, %v15259_v39 }
 0x37c   : > { %v13871_v5 = vpop.eup %13870 }
 0x37d   : > { %v2172_v6 = vpop.xlane.xlu0 %2171  ;;  %v2374_v50 = vmul.f32 %v13871_v5, %v15265_v23 }
 0x37e   : > { %v2249_v56 = vmax.f32 %v2172_v6, 1e-24 }
 0x37f   : > { %v2174_v7 = vpop.xlane.xlu1 %2173  ;;  %v2414_v57 = vpack.c.bf16 %v2374_v50, %v2373_v8 }
 0x380   : > { %13876 = vrsqrt.f32 %v2249_v56  ;;  %v2250_v24 = vmax.f32 %v2174_v7, 1e-24 }
 0x381   : > { %2782 = vmatmul.mubr.bf16.gmra.mrb[36].mxu1 %v2414_v57 }
 0x382   : > { %v13873_v43 = vpop.eup %13872  ;;  %13878 = vrsqrt.f32 %v2250_v24  ;;  %2791 = vmatprep.mubr.bf16.mxu1 %v18467_v54 }
 0x383   : > { %v2375_v45 = vmul.f32 %v13873_v43, %v15272_v37 }
 0x384   : > { %v13875_v60 = vpop.eup %13874 }
 0x385   : > { %v2176_v15 = vpop.xlane.xlu0 %2175  ;;  %v2376_v20 = vmul.f32 %v13875_v60, %v15278_v52 }
 0x386   : > { %v2251_v29 = vmax.f32 %v2176_v15, 1e-24 }
 0x387   : > { %v2178_v39 = vpop.xlane.xlu1 %2177  ;;  %v2415_v18 = vpack.c.bf16 %v2376_v20, %v2375_v45 }
 0x388   : > { %13880 = vrsqrt.f32 %v2251_v29  ;;  %v2252_v23 = vmax.f32 %v2178_v39, 1e-24 }
 0x389   : > { %2792 = vmatmul.mubr.bf16.gmra.mrb[40].mxu1 %v2415_v18  ;;  %v18468_v18 = vld [vmem:[#allocation2_spill] sm:$0xff] }
 0x38a   : > { %v13877_v11 = vpop.eup %13876  ;;  %13882 = vrsqrt.f32 %v2252_v23  ;;  %2801 = vmatprep.mubr.bf16.mxu1 %v18467_v54 }
 0x38b   : > { %v2377_v12 = vmul.f32 %v13877_v11, %v15285_v16 }
 0x38c   : > { %v13879_v38 = vpop.eup %13878 }
 0x38d   : > { %v2180_v30 = vpop.xlane.xlu0 %2179  ;;  %v2378_v19 = vmul.f32 %v13879_v38, %v15291_v22 }
 0x38e   : > { %v2253_v59 = vmax.f32 %v2180_v30, 1e-24 }
 0x38f   : > { %v2182_v37 = vpop.xlane.xlu1 %2181  ;;  %v2416_v31 = vpack.c.bf16 %v2378_v19, %v2377_v12 }
 0x390   : > { %13884 = vrsqrt.f32 %v2253_v59  ;;  %v2254_v52 = vmax.f32 %v2182_v37, 1e-24 }
 0x391   : > { %2802 = vmatmul.mubr.bf16.gmra.mrb[44].mxu1 %v2416_v31 }
 0x392   : > { %v13881_v61 = vpop.eup %13880  ;;  %13886 = vrsqrt.f32 %v2254_v52  ;;  %2811 = vmatprep.mubr.bf16.mxu1 %v18467_v54 }
 0x393   : > { %v2379_v55 = vmul.f32 %v13881_v61, %v15298_v41 }
 0x394   : > { %v13883_v49 = vpop.eup %13882 }
 0x395   : > { %v2184_v2 = vpop.xlane.xlu0 %2183  ;;  %v2380_v17 = vmul.f32 %v13883_v49, %v15303_v44 }
 0x396   : > { %v2255_v13 = vmax.f32 %v2184_v2, 1e-24 }
 0x397   : > { %v2186_v16 = vpop.xlane.xlu1 %2185  ;;  %v2417_v46 = vpack.c.bf16 %v2380_v17, %v2379_v55 }
 0x398   : > { %13888 = vrsqrt.f32 %v2255_v13  ;;  %v2256_v22 = vmax.f32 %v2186_v16, 1e-24  ;;  %v18469_v16 = vld [vmem:[#allocation3_spill] sm:$0xff] }
 0x399   : > { %2812 = vmatmul.mubr.bf16.gmra.mrb[48].mxu1 %v2417_v46 }
 0x39a   : > { %v13885_v63 = vpop.eup %13884  ;;  %13890 = vrsqrt.f32 %v2256_v22  ;;  %2821 = vmatprep.mubr.bf16.mxu1 %v18467_v54  ;;  %v18470_v22 = vld [vmem:[#allocation4_spill] sm:$0xff] }
 0x39b   : > { %v2381_v41 = vmul.f32 %v13885_v63, %v15309_v14 }
 0x39c   : > { %v13887_v3 = vpop.eup %13886 }
 0x39d   : > { %v2188_v47 = vpop.xlane.xlu0 %2187  ;;  %v2382_v44 = vmul.f32 %v13887_v3, %v15313_v21 }
 0x39e   : > { %v2257_v0 = vmax.f32 %v2188_v47, 1e-24  ;;  %v15452_v10 = vpop.f32.mrb[128].mxu0 }
 0x39f   : > { %v2190_v40 = vpop.xlane.xlu1 %2189  ;;  %v2555_v26 = vpop.f32.mrb[129].mxu0  ;;  %v2418_v32 = vpack.c.bf16 %v2382_v44, %v2381_v41 }
 0x3a0   : > { %13892 = vrsqrt.f32 %v2257_v0  ;;  %v2258_v33 = vmax.f32 %v2190_v40, 1e-24  ;;  %v2911_v28 = vadd.f32 %v15448_v27, %v2555_v26  ;;  %v15455_v53 = vpop.f32.mrb[130].mxu0 }
 0x3a1   : > { %v2559_v1 = vpop.f32.mrb[131].mxu0  ;;  %2822 = vmatmul.mubr.bf16.gmra.mrb[52].mxu1 %v2418_v32 }
 0x3a2   : > { %v13889_v14 = vpop.eup %13888  ;;  %13894 = vrsqrt.f32 %v2258_v33  ;;  %v2912_v21 = vadd.f32 %v15448_v27, %v2559_v1  ;;  %2831 = vmatprep.mubr.bf16.mxu1 %v18467_v54  ;;  %v2975_v62 = vmax.f32 %v2911_v28, 0.0 }
 0x3a3   : > { %v2383_v36 = vmul.f32 %v13889_v14, %v15319_v51 }
 0x3a4   : > { %v13891_v42 = vpop.eup %13890  ;;  %v2976_v4 = vmax.f32 %v2912_v21, 0.0 }
 0x3a5   : > { %v2192_v35 = vpop.xlane.xlu0 %2191  ;;  %v2384_v25 = vmul.f32 %v13891_v42, %v15323_v48  ;;  %v18471_v42 = vld [vmem:[#allocation5_spill] sm:$0xff] }
 0x3a6   : > { %v2259_v9 = vmax.f32 %v2192_v35, 1e-24  ;;  %v15463_v5 = vpop.f32.mrb[132].mxu0  ;;  %v15465_v6 = vpack.c.bf16 %v2976_v4, %v2975_v62  ;;  %v18472_v4 = vld [vmem:[#allocation6_spill] sm:$0xff] }
 0x3a7   : > { %v2194_v8 = vpop.xlane.xlu1 %2193  ;;  %v2565_v50 = vpop.f32.mrb[133].mxu0  ;;  %v2419_v56 = vpack.c.bf16 %v2384_v25, %v2383_v36 }
 0x3a8   : > { %13896 = vrsqrt.f32 %v2259_v9  ;;  %v2260_v7 = vmax.f32 %v2194_v8, 1e-24  ;;  %v2913_v57 = vadd.f32 %v15448_v27, %v2565_v50  ;;  %v15468_v24 = vpop.f32.mrb[134].mxu0 }
 0x3a9   : > { %v2569_v51 = vpop.f32.mrb[135].mxu0  ;;  %2832 = vmatmul.mubr.bf16.gmra.mrb[56].mxu1 %v2419_v56 }
 0x3aa   : > { %v13893_v48 = vpop.eup %13892  ;;  %13898 = vrsqrt.f32 %v2260_v7  ;;  %v2914_v60 = vadd.f32 %v15448_v27, %v2569_v51  ;;  %2841 = vmatprep.mubr.bf16.mxu1 %v18467_v54  ;;  %v2977_v45 = vmax.f32 %v2913_v57, 0.0 }
 0x3ab   : > { %v2385_v39 = vmul.f32 %v13893_v48, %v15329_v34 }
 0x3ac   : > { %v13895_v15 = vpop.eup %13894  ;;  %v2978_v20 = vmax.f32 %v2914_v60, 0.0 }
 0x3ad   : > { %v2196_v29 = vpop.xlane.xlu0 %2195  ;;  %v2386_v23 = vmul.f32 %v13895_v15, %v18468_v18 }
 0x3ae   : > { %v3040_v11 = vpack.c.bf16 %v2978_v20, %v2977_v45  ;;  %v2261_v38 = vmax.f32 %v2196_v29, 1e-24  ;;  %v15476_v30 = vpop.f32.mrb[136].mxu0 }
 0x3af   : > { %v2198_v12 = vpop.xlane.xlu1 %2197  ;;  %v2575_v19 = vpop.f32.mrb[137].mxu0  ;;  %v2420_v59 = vpack.c.bf16 %v2386_v23, %v2385_v39 }
 0x3b0   : > { %13900 = vrsqrt.f32 %v2261_v38  ;;  %v2262_v37 = vmax.f32 %v2198_v12, 1e-24  ;;  %v2915_v31 = vadd.f32 %v15448_v27, %v2575_v19  ;;  %v15479_v52 = vpop.f32.mrb[138].mxu0 }
 0x3b1   : > { %v2579_v49 = vpop.f32.mrb[139].mxu0  ;;  %2842 = vmatmul.mubr.bf16.gmra.mrb[60].mxu1 %v2420_v59  ;;  %v13696_v59 = vld [vmem:[%s18432_s7] sm:$0xff]  }
 0x3b2   : > { %v13897_v34 = vpop.eup %13896  ;;  %13902 = vrsqrt.f32 %v2262_v37  ;;  %v2916_v2 = vadd.f32 %v15448_v27, %v2579_v49  ;;  %2851 = vmatprep.mubr.bf16.mxu1 %v18467_v54  ;;  %v2979_v17 = vmax.f32 %v2915_v31, 0.0  ;;  %11639 = vmatprep.subr.bf16.mxu1 %v13696_v59  ;;  %v13697_v37 = vld [vmem:[%s18432_s7 + $0x8] sm:$0xff]   ;;  %v13698_v31 = vld [vmem:[%s18432_s7 + $0x10] sm:$0xff]  }
 0x3b3   : > { %v2387_v46 = vmul.f32 %v13897_v34, %v18469_v16 }
 0x3b4   : > { %v13899_v55 = vpop.eup %13898  ;;  %v2980_v13 = vmax.f32 %v2916_v2, 0.0 }
 0x3b5   : > { %v2388_v63 = vmul.f32 %v13899_v55, %v18470_v22 }
 0x3b6   : > { %v15487_v3 = vpop.f32.mrb[140].mxu0  ;;  %v3041_v47 = vpack.c.bf16 %v2980_v13, %v2979_v17 }
 0x3b7   : > { %v2585_v41 = vpop.f32.mrb[141].mxu0  ;;  %v2421_v44 = vpack.c.bf16 %v2388_v63, %v2387_v46  ;;  %v13699_v46 = vld [vmem:[%s18432_s7 + $0x18] sm:$0xff]  }
 0x3b8   : > { %v2917_v0 = vadd.f32 %v15448_v27, %v2585_v41  ;;  %v15490_v40 = vpop.f32.mrb[142].mxu0 }
 0x3b9   : > { %v2589_v32 = vpop.f32.mrb[143].mxu0  ;;  %2852 = vmatmul.mubr.bf16.gmra.mrb[64].mxu1 %v2421_v44 }
 0x3ba   : > { %v13901_v33 = vpop.eup %13900  ;;  %v2918_v28 = vadd.f32 %v15448_v27, %v2589_v32  ;;  %2861 = vmatprep.mubr.bf16.mxu1 %v18467_v54  ;;  %v2981_v14 = vmax.f32 %v2917_v0, 0.0 }
 0x3bb   : > { %v2389_v62 = vmul.f32 %v13901_v33, %v18471_v42 }
 0x3bc   : > { %v13903_v1 = vpop.eup %13902  ;;  %v2982_v21 = vmax.f32 %v2918_v28, 0.0 }
 0x3bd   : > { %v2390_v35 = vmul.f32 %v13903_v1, %v18472_v4 }
 0x3be   : > { %v15498_v36 = vpop.f32.mrb[144].mxu0  ;;  %v3042_v25 = vpack.c.bf16 %v2982_v21, %v2981_v14  ;;  %v13700_v14 = vld [vmem:[%s18432_s7 + $0x20] sm:$0xff]  }
 0x3bf   : > { %v2595_v9 = vpop.f32.mrb[145].mxu0  ;;  %v2422_v8 = vpack.c.bf16 %v2390_v35, %v2389_v62 }
 0x3c0   : > { %v2919_v50 = vadd.f32 %v15448_v27, %v2595_v9  ;;  %v15501_v56 = vpop.f32.mrb[146].mxu0 }
 0x3c1   : > { %v2599_v57 = vpop.f32.mrb[147].mxu0  ;;  %2862 = vmatmul.mubr.bf16.gmra.mrb[68].mxu1 %v2422_v8 }
 0x3c2   : > { %v2920_v51 = vadd.f32 %v15448_v27, %v2599_v57  ;;  %11575 = vmatprep.mubr.bf16.mxu1 %v15465_v6  ;;  %v2983_v48 = vmax.f32 %v2919_v50, 0.0 }
 0x3c4   : > { %v2984_v60 = vmax.f32 %v2920_v51, 0.0  ;;  %v13701_v51 = vld [vmem:[%s18432_s7 + $0x28] sm:$0xff]  }
 0x3c6   : > { %v15507_v15 = vpop.f32.mrb[148].mxu0  ;;  %v3043_v45 = vpack.c.bf16 %v2984_v60, %v2983_v48 }
 0x3c7   : > { %v2605_v20 = vpop.f32.mrb[149].mxu0 }
 0x3c8   : > { %v2921_v29 = vadd.f32 %v15448_v27, %v2605_v20  ;;  %v15510_v39 = vpop.f32.mrb[150].mxu0 }
 0x3c9   : > { %v2609_v23 = vpop.f32.mrb[151].mxu0  ;;  %11576 = vmatmul.mubr.bf16.vlgmr.msra.gmra.mrb[72].mxu1 %v3040_v11 }
 0x3ca   : > { %v2922_v38 = vadd.f32 %v15448_v27, %v2609_v23  ;;  %11579 = vmatprep.mubr.bf16.mxu1 %v3041_v47  ;;  %v2985_v12 = vmax.f32 %v2921_v29, 0.0  ;;  %11640 = vmatpush3.bf16.msra.mxu1 %v13696_v59  ;;  %v13702_v59 = vld [vmem:[%s18432_s7 + $0x30] sm:$0xff]  }
 0x3cb   : > { %11641 = vmatprep.subr.bf16.mxu1 %v13697_v37 }
 0x3cc   : > { %v2986_v6 = vmax.f32 %v2922_v38, 0.0 }
 0x3ce   : > { %v3044_v19 = vpack.c.bf16 %v2986_v6, %v2985_v12  ;;  %11642 = vmatpush3.bf16.msra.mxu1 %v13697_v37 }
 0x3cf   : > { %11643 = vmatprep.subr.bf16.mxu1 %v13698_v31 }
 0x3d1   : > { %11580 = vmatmul.mubr.bf16.gmra.mrb[76].mxu1 %v3042_v25 }
 0x3d2   : > { %11583 = vmatprep.mubr.bf16.mxu1 %v3043_v45  ;;  %11644 = vmatpush3.bf16.msra.mxu1 %v13698_v31 }
 0x3d3   : > { %11645 = vmatprep.subr.bf16.mxu1 %v13699_v46 }
 0x3d6   : > { %11646 = vmatpush3.bf16.msra.mxu1 %v13699_v46 }
 0x3d7   : > { %11647 = vmatprep.subr.bf16.mxu1 %v13700_v14 }
 0x3d9   : > { %11584 = vmatmul.mubr.bf16.gmra.mrb[80].mxu1 %v3044_v19 }
 0x3da   : > { %11648 = vmatpush3.bf16.msra.mxu1 %v13700_v14 }
 0x3db   : > { %11649 = vmatprep.subr.bf16.mxu1 %v13701_v51 }
 0x3de   : > { %11650 = vmatpush3.bf16.msra.mxu1 %v13701_v51 }
 0x3df   : > { %11651 = vmatprep.subr.bf16.mxu1 %v13702_v59 }
 0x3e2   : > { %11652 = vmatpush3.bf16.msra.mxu1 %v13702_v59 }
 0x40c   : > { %v15521_v11 = vpop.f32.mrb[0].mxu1 }
 0x40d   : > { %v2695_v49 = vpop.f32.mrb[1].mxu1 }
 0x40e   : > { %v2939_v34 = vadd.f32 %v15448_v27, %v2695_v49  ;;  %v15527_v2 = vpop.f32.mrb[2].mxu1 }
 0x40f   : > { %v2699_v17 = vpop.f32.mrb[3].mxu1 }
 0x410   : > { %v2940_v13 = vadd.f32 %v15448_v27, %v2699_v17  ;;  %v15532_v16 = vpop.f32.mrb[152].mxu0  ;;  %v3003_v41 = vmax.f32 %v2939_v34, 0.0 }
 0x411   : > { %v2615_v22 = vpop.f32.mrb[153].mxu0 }
 0x412   : > { %v2923_v63 = vadd.f32 %v15448_v27, %v2615_v22  ;;  %v15538_v47 = vpop.f32.mrb[154].mxu0  ;;  %v3004_v44 = vmax.f32 %v2940_v13, 0.0 }
 0x413   : > { %v2619_v32 = vpop.f32.mrb[155].mxu0 }
 0x414   : > { %v2924_v33 = vadd.f32 %v15448_v27, %v2619_v32  ;;  %v15543_v28 = vpop.f32.mrb[4].mxu1  ;;  %v15545_v1 = vpack.c.bf16 %v3004_v44, %v3003_v41  ;;  %v2987_v4 = vmax.f32 %v2923_v63, 0.0  ;;  %v13703_v44 = vld [vmem:[%s18432_s7 + $0x38] sm:$0xff]  }
 0x415   : > { %v2705_v21 = vpop.f32.mrb[5].mxu1  ;;  %11653 = vmatprep.subr.bf16.mxu1 %v13703_v44 }
 0x416   : > { %v2941_v42 = vadd.f32 %v15448_v27, %v2705_v21  ;;  %v15551_v62 = vpop.f32.mrb[6].mxu1  ;;  %v2988_v35 = vmax.f32 %v2924_v33, 0.0  ;;  %11654 = vmatpush3.bf16.msra.mxu1 %v13703_v44 }
 0x417   : > { %v2709_v9 = vpop.f32.mrb[7].mxu1  ;;  %3959 = vmatprep.subr.bf16.mxu1 %v18467_v54 }
 0x418   : > { %v2942_v8 = vadd.f32 %v15448_v27, %v2709_v9  ;;  %v15556_v50 = vpop.f32.mrb[156].mxu0  ;;  %v3045_v57 = vpack.c.bf16 %v2988_v35, %v2987_v4  ;;  %v3005_v20 = vmax.f32 %v2941_v42, 0.0 }
 0x419   : > { %v2625_v48 = vpop.f32.mrb[157].mxu0 }
 0x41a   : > { %v2925_v60 = vadd.f32 %v15448_v27, %v2625_v48  ;;  %v15562_v45 = vpop.f32.mrb[158].mxu0  ;;  %11587 = vmatprep.mubr.bf16.mxu1 %v3045_v57  ;;  %v3006_v29 = vmax.f32 %v2942_v8, 0.0 }
 0x41b   : > { %v2629_v38 = vpop.f32.mrb[159].mxu0 }
 0x41c   : > { %v2926_v12 = vadd.f32 %v15448_v27, %v2629_v38  ;;  %v15567_v6 = vpop.f32.mrb[8].mxu1  ;;  %v15569_v19 = vpack.c.bf16 %v3006_v29, %v3005_v20  ;;  %v2989_v34 = vmax.f32 %v2925_v60, 0.0 }
 0x41d   : > { %v2715_v37 = vpop.f32.mrb[9].mxu1 }
 0x41e   : > { %v2943_v31 = vadd.f32 %v15448_v27, %v2715_v37  ;;  %v15575_v49 = vpop.f32.mrb[10].mxu1  ;;  %v2990_v17 = vmax.f32 %v2926_v12, 0.0 }
 0x41f   : > { %v2719_v46 = vpop.f32.mrb[11].mxu1 }
 0x420   : > { %v2944_v22 = vadd.f32 %v15448_v27, %v2719_v46  ;;  %v15580_v63 = vpop.f32.mrb[160].mxu0  ;;  %v3046_v41 = vpack.c.bf16 %v2990_v17, %v2989_v34  ;;  %v3007_v21 = vmax.f32 %v2943_v31, 0.0 }
 0x421   : > { %v2635_v32 = vpop.f32.mrb[161].mxu0 }
 0x422   : > { %v2927_v33 = vadd.f32 %v15448_v27, %v2635_v32  ;;  %v15586_v14 = vpop.f32.mrb[162].mxu0  ;;  %11588 = vmatmul.mubr.bf16.gmra.mrb[84].mxu1 %v3046_v41  ;;  %v3008_v42 = vmax.f32 %v2944_v22, 0.0 }
 0x423   : > { %v2639_v35 = vpop.f32.mrb[163].mxu0 }
 0x424   : > { %v2928_v9 = vadd.f32 %v15448_v27, %v2639_v35  ;;  %v15591_v8 = vpop.f32.mrb[12].mxu1  ;;  %v15593_v57 = vpack.c.bf16 %v3008_v42, %v3007_v21  ;;  %v2991_v20 = vmax.f32 %v2927_v33, 0.0 }
 0x425   : > { %v2725_v51 = vpop.f32.mrb[13].mxu1 }
 0x426   : > { %v2945_v48 = vadd.f32 %v15448_v27, %v2725_v51  ;;  %v15597_v60 = vpop.f32.mrb[14].mxu1  ;;  %v2992_v29 = vmax.f32 %v2928_v9, 0.0 }
 0x427   : > { %v2729_v12 = vpop.f32.mrb[15].mxu1 }
 0x428   : > { %v2946_v59 = vadd.f32 %v15448_v27, %v2729_v12  ;;  %v15602_v37 = vpop.f32.mrb[164].mxu0  ;;  %v3047_v31 = vpack.c.bf16 %v2992_v29, %v2991_v20  ;;  %v3009_v22 = vmax.f32 %v2945_v48, 0.0 }
 0x429   : > { %v2645_v34 = vpop.f32.mrb[165].mxu0 }
 0x42a   : > { %v2929_v17 = vadd.f32 %v15448_v27, %v2645_v34  ;;  %v15605_v46 = vpop.f32.mrb[166].mxu0  ;;  %11591 = vmatprep.mubr.bf16.mxu1 %v3047_v31  ;;  %v3010_v41 = vmax.f32 %v2946_v59, 0.0 }
 0x42b   : > { %v2649_v32 = vpop.f32.mrb[167].mxu0 }
 0x42c   : > { %v2930_v33 = vadd.f32 %v15448_v27, %v2649_v32  ;;  %v15610_v21 = vpop.f32.mrb[16].mxu1  ;;  %v15612_v42 = vpack.c.bf16 %v3010_v41, %v3009_v22  ;;  %v2993_v20 = vmax.f32 %v2929_v17, 0.0 }
 0x42d   : > { %18473 = vst [vmem:[#allocation2_spill] sm:$0xff] %v15610_v21  ;;  %v2735_v35 = vpop.f32.mrb[17].mxu1 }
 0x42e   : > { %v2947_v9 = vadd.f32 %v15448_v27, %v2735_v35  ;;  %v15615_v51 = vpop.f32.mrb[18].mxu1  ;;  %v2994_v29 = vmax.f32 %v2930_v33, 0.0 }
 0x42f   : > { %v2739_v12 = vpop.f32.mrb[19].mxu1 }
 0x430   : > { %v2948_v59 = vadd.f32 %v15448_v27, %v2739_v12  ;;  %v15620_v31 = vpop.f32.mrb[168].mxu0  ;;  %v3048_v34 = vpack.c.bf16 %v2994_v29, %v2993_v20  ;;  %v3011_v35 = vmax.f32 %v2947_v9, 0.0 }
 0x431   : > { %v2655_v32 = vpop.f32.mrb[169].mxu0 }
 0x432   : > { %v2931_v22 = vadd.f32 %v15448_v27, %v2655_v32  ;;  %v15623_v41 = vpop.f32.mrb[170].mxu0  ;;  %11592 = vmatmul.mubr.bf16.gmra.mrb[88].mxu1 %v3048_v34  ;;  %v3012_v38 = vmax.f32 %v2948_v59, 0.0 }
 0x433   : > { %v2659_v33 = vpop.f32.mrb[171].mxu0 }
 0x434   : > { %v2932_v48 = vadd.f32 %v15448_v27, %v2659_v33  ;;  %v15628_v13 = vpop.f32.mrb[20].mxu1  ;;  %v15630_v12 = vpack.c.bf16 %v3012_v38, %v3011_v35  ;;  %v2995_v32 = vmax.f32 %v2931_v22, 0.0 }
 0x435   : > { %18474 = vst [vmem:[#allocation3_spill] sm:$0xff] %v15628_v13  ;;  %v2745_v25 = vpop.f32.mrb[21].mxu1 }
 0x436   : > { %v2949_v20 = vadd.f32 %v15448_v27, %v2745_v25  ;;  %v15633_v29 = vpop.f32.mrb[22].mxu1  ;;  %v2996_v55 = vmax.f32 %v2932_v48, 0.0 }
 0x437   : > { %18475 = vst [vmem:[#allocation4_spill] sm:$0xff] %v15633_v29  ;;  %v2749_v59 = vpop.f32.mrb[23].mxu1 }
 0x438   : > { %v2950_v34 = vadd.f32 %v15448_v27, %v2749_v59  ;;  %v15638_v17 = vpop.f32.mrb[172].mxu0  ;;  %v3049_v33 = vpack.c.bf16 %v2996_v55, %v2995_v32  ;;  %v3013_v25 = vmax.f32 %v2949_v20, 0.0 }
 0x439   : > { %v2665_v44 = vpop.f32.mrb[173].mxu0 }
 0x43a   : > { %v2933_v38 = vadd.f32 %v15448_v27, %v2665_v44  ;;  %v15641_v35 = vpop.f32.mrb[174].mxu0  ;;  %11595 = vmatprep.mubr.bf16.mxu1 %v3049_v33  ;;  %v3014_v4 = vmax.f32 %v2950_v34, 0.0 }
 0x43b   : > { %v2669_v22 = vpop.f32.mrb[175].mxu0 }
 0x43c   : > { %v2934_v9 = vadd.f32 %v15448_v27, %v2669_v22  ;;  %v15646_v23 = vpop.f32.mrb[24].mxu1  ;;  %v15648_v59 = vpack.c.bf16 %v3014_v4, %v3013_v25  ;;  %v2997_v44 = vmax.f32 %v2933_v38, 0.0 }
 0x43d   : > { %18476 = vst [vmem:[#allocation5_spill] sm:$0xff] %v15646_v23  ;;  %v2755_v0 = vpop.f32.mrb[25].mxu1 }
 0x43e   : > { %v2951_v55 = vadd.f32 %v15448_v27, %v2755_v0  ;;  %v15651_v32 = vpop.f32.mrb[26].mxu1  ;;  %v2998_v18 = vmax.f32 %v2934_v9, 0.0 }
 0x43f   : > { %18477 = vst [vmem:[#allocation6_spill] sm:$0xff] %v15651_v32  ;;  %v2759_v34 = vpop.f32.mrb[27].mxu1 }
 0x440   : > { %v2952_v33 = vadd.f32 %v15448_v27, %v2759_v34  ;;  %v15656_v48 = vpop.f32.mrb[176].mxu0  ;;  %v3050_v22 = vpack.c.bf16 %v2998_v18, %v2997_v44  ;;  %v3015_v0 = vmax.f32 %v2951_v55, 0.0 }
 0x441   : > { %v2675_v7 = vpop.f32.mrb[177].mxu0 }
 0x442   : > { %v2935_v4 = vadd.f32 %v15448_v27, %v2675_v7  ;;  %v15659_v25 = vpop.f32.mrb[178].mxu0  ;;  %11596 = vmatmul.mubr.bf16.gmra.mrb[92].mxu1 %v3050_v22  ;;  %v3016_v26 = vmax.f32 %v2952_v33, 0.0 }
 0x443   : > { %v2679_v38 = vpop.f32.mrb[179].mxu0 }
 0x444   : > { %v2936_v20 = vadd.f32 %v15448_v27, %v2679_v38  ;;  %v15664_v61 = vpop.f32.mrb[28].mxu1  ;;  %v15666_v34 = vpack.c.bf16 %v3016_v26, %v3015_v0  ;;  %v2999_v7 = vmax.f32 %v2935_v4, 0.0 }
 0x445   : > { %18478 = vst [vmem:[#allocation7_spill] sm:$0xff] %v15664_v61  ;;  %v2765_v43 = vpop.f32.mrb[29].mxu1 }
 0x446   : > { %v2953_v18 = vadd.f32 %v15448_v27, %v2765_v43  ;;  %v15669_v44 = vpop.f32.mrb[30].mxu1  ;;  %v3000_v58 = vmax.f32 %v2936_v20, 0.0 }
 0x447   : > { %18479 = vst [vmem:[#allocation8_spill] sm:$0xff] %v15669_v44  ;;  %v2769_v33 = vpop.f32.mrb[31].mxu1 }
 0x448   : > { %v2954_v22 = vadd.f32 %v15448_v27, %v2769_v33  ;;  %v15674_v9 = vpop.f32.mrb[180].mxu0  ;;  %v3051_v38 = vpack.c.bf16 %v3000_v58, %v2999_v7  ;;  %v3017_v43 = vmax.f32 %v2953_v18, 0.0 }
 0x449   : > { %v2685_v23 = vpop.f32.mrb[181].mxu0 }
 0x44a   : > { %v2937_v26 = vadd.f32 %v15448_v27, %v2685_v23  ;;  %v15677_v0 = vpop.f32.mrb[182].mxu0  ;;  %11599 = vmatprep.mubr.bf16.mxu1 %v3051_v38  ;;  %v3018_v32 = vmax.f32 %v2954_v22, 0.0 }
 0x44b   : > { %v2689_v4 = vpop.f32.mrb[183].mxu0 }
 0x44c   : > { %v2938_v55 = vadd.f32 %v15448_v27, %v2689_v4  ;;  %v15682_v61 = vpop.f32.mrb[32].mxu1  ;;  %v3060_v33 = vpack.c.bf16 %v3018_v32, %v3017_v43  ;;  %v3001_v23 = vmax.f32 %v2937_v26, 0.0 }
 0x44d   : > { %v2775_v44 = vpop.f32.mrb[33].mxu1 }
 0x44e   : > { %v2955_v58 = vadd.f32 %v15448_v27, %v2775_v44  ;;  %v15685_v7 = vpop.f32.mrb[34].mxu1  ;;  %v3002_v13 = vmax.f32 %v2938_v55, 0.0 }
 0x44f   : > { %v2779_v22 = vpop.f32.mrb[35].mxu1 }
 0x450   : > { %v2956_v38 = vadd.f32 %v15448_v27, %v2779_v22  ;;  %v3052_v20 = vpack.c.bf16 %v3002_v13, %v3001_v23  ;;  %v3019_v29 = vmax.f32 %v2955_v58, 0.0 }
 0x452   : > { %11600 = vmatmul.mubr.bf16.gmra.mrb[96].mxu1 %v3052_v20  ;;  %v3020_v4 = vmax.f32 %v2956_v38, 0.0 }
 0x453   : > { %11603 = vmatprep.mubr.bf16.mxu1 %v15545_v1 }
 0x454   : > { %v15691_v32 = vpop.f32.mrb[36].mxu1  ;;  %v3061_v43 = vpack.c.bf16 %v3020_v4, %v3019_v29 }
 0x455   : > { %v2785_v44 = vpop.f32.mrb[37].mxu1 }
 0x456   : > { %v2957_v21 = vadd.f32 %v15448_v27, %v2785_v44  ;;  %v15694_v26 = vpop.f32.mrb[38].mxu1 }
 0x457   : > { %v2789_v18 = vpop.f32.mrb[39].mxu1 }
 0x458   : > { %v2958_v22 = vadd.f32 %v15448_v27, %v2789_v18  ;;  %v3021_v13 = vmax.f32 %v2957_v21, 0.0 }
 0x45a   : > { %11604 = vmatmul.mubr.bf16.gmra.mrb[100].mxu1 %v15569_v19  ;;  %v3022_v20 = vmax.f32 %v2958_v22, 0.0 }
 0x45b   : > { %11607 = vmatprep.mubr.bf16.mxu1 %v15593_v57 }
 0x45c   : > { %v15701_v1 = vpop.f32.mrb[40].mxu1  ;;  %v3062_v29 = vpack.c.bf16 %v3022_v20, %v3021_v13 }
 0x45d   : > { %18480 = vst [vmem:[#allocation9_spill] sm:$0xff] %v15701_v1  ;;  %v2795_v58 = vpop.f32.mrb[41].mxu1 }
 0x45e   : > { %v2959_v23 = vadd.f32 %v15448_v27, %v2795_v58  ;;  %v15704_v38 = vpop.f32.mrb[42].mxu1 }
 0x45f   : > { %v2799_v44 = vpop.f32.mrb[43].mxu1 }
 0x460   : > { %v2960_v18 = vadd.f32 %v15448_v27, %v2799_v44  ;;  %v3023_v19 = vmax.f32 %v2959_v23, 0.0 }
 0x462   : > { %11608 = vmatmul.mubr.bf16.gmra.mrb[104].mxu1 %v15612_v42  ;;  %v3024_v21 = vmax.f32 %v2960_v18, 0.0 }
 0x463   : > { %11611 = vmatprep.mubr.bf16.mxu1 %v15630_v12 }
 0x464   : > { %v15711_v57 = vpop.f32.mrb[44].mxu1  ;;  %v3063_v22 = vpack.c.bf16 %v3024_v21, %v3023_v19 }
 0x465   : > { %18481 = vst [vmem:[#allocation10_spill] sm:$0xff] %v15711_v57  ;;  %v2805_v13 = vpop.f32.mrb[45].mxu1 }
 0x466   : > { %v2961_v20 = vadd.f32 %v15448_v27, %v2805_v13  ;;  %v15714_v58 = vpop.f32.mrb[46].mxu1 }
 0x467   : > { %18482 = vst [vmem:[#allocation11_spill] sm:$0xff] %v15714_v58  ;;  %v2809_v55 = vpop.f32.mrb[47].mxu1 }
 0x468   : > { %v2962_v44 = vadd.f32 %v15448_v27, %v2809_v55  ;;  %v3025_v42 = vmax.f32 %v2961_v20, 0.0 }
 0x46a   : > { %11612 = vmatmul.mubr.bf16.gmra.mrb[108].mxu1 %v15648_v59  ;;  %v3026_v23 = vmax.f32 %v2962_v44, 0.0 }
 0x46b   : > { %11615 = vmatprep.mubr.bf16.mxu1 %v15666_v34 }
 0x46c   : > { %v15721_v12 = vpop.f32.mrb[48].mxu1  ;;  %v3064_v18 = vpack.c.bf16 %v3026_v23, %v3025_v42 }
 0x46d   : > { %18483 = vst [vmem:[#allocation12_spill] sm:$0xff] %v15721_v12  ;;  %v2815_v19 = vpop.f32.mrb[49].mxu1 }
 0x46e   : > { %v2963_v21 = vadd.f32 %v15448_v27, %v2815_v19  ;;  %v15724_v13 = vpop.f32.mrb[50].mxu1 }
 0x46f   : > { %v2819_v57 = vpop.f32.mrb[51].mxu1 }
 0x470   : > { %v2964_v55 = vadd.f32 %v15448_v27, %v2819_v57  ;;  %v3027_v59 = vmax.f32 %v2963_v21, 0.0 }
 0x472   : > { %11616 = vmatmul.mubr.bf16.gmra.mrb[112].mxu1 %v3060_v33  ;;  %v3028_v20 = vmax.f32 %v2964_v55, 0.0 }
 0x473   : > { %11619 = vmatprep.mubr.bf16.mxu1 %v3061_v43 }
 0x474   : > { %v15729_v44 = vpop.f32.mrb[52].mxu1  ;;  %v3065_v34 = vpack.c.bf16 %v3028_v20, %v3027_v59 }
 0x475   : > { %18484 = vst [vmem:[#allocation13_spill] sm:$0xff] %v15729_v44  ;;  %v2825_v58 = vpop.f32.mrb[53].mxu1 }
 0x476   : > { %v2965_v42 = vadd.f32 %v15448_v27, %v2825_v58  ;;  %v15732_v23 = vpop.f32.mrb[54].mxu1 }
 0x477   : > { %v2829_v1 = vpop.f32.mrb[55].mxu1 }
 0x478   : > { %v2966_v4 = vadd.f32 %v15448_v27, %v2829_v1  ;;  %v3029_v57 = vmax.f32 %v2965_v42, 0.0 }
 0x47a   : > { %11620 = vmatmul.mubr.bf16.gmra.mrb[116].mxu1 %v3062_v29  ;;  %v3030_v33 = vmax.f32 %v2966_v4, 0.0 }
 0x47b   : > { %11623 = vmatprep.mubr.bf16.mxu1 %v3063_v22 }
 0x47c   : > { %v15737_v21 = vpop.f32.mrb[56].mxu1  ;;  %v3066_v43 = vpack.c.bf16 %v3030_v33, %v3029_v57 }
 0x47d   : > { %18485 = vst [vmem:[#allocation14_spill] sm:$0xff] %v15737_v21  ;;  %v2835_v55 = vpop.f32.mrb[57].mxu1 }
 0x47e   : > { %v2967_v59 = vadd.f32 %v15448_v27, %v2835_v55  ;;  %v15740_v20 = vpop.f32.mrb[58].mxu1 }
 0x47f   : > { %18486 = vst [vmem:[#allocation15_spill] sm:$0xff] %v15740_v20  ;;  %v2839_v12 = vpop.f32.mrb[59].mxu1 }
 0x480   : > { %v2968_v19 = vadd.f32 %v15448_v27, %v2839_v12  ;;  %v3031_v1 = vmax.f32 %v2967_v59, 0.0 }
 0x482   : > { %11624 = vmatmul.mubr.bf16.gmra.mrb[120].mxu1 %v3064_v18  ;;  %v3032_v29 = vmax.f32 %v2968_v19, 0.0 }
 0x483   : > { %11627 = vmatprep.mubr.bf16.mxu1 %v3065_v34 }
 0x484   : > { %v15745_v4 = vpop.f32.mrb[60].mxu1  ;;  %v3067_v22 = vpack.c.bf16 %v3032_v29, %v3031_v1 }
 0x485   : > { %18487 = vst [vmem:[#allocation16_spill] sm:$0xff] %v15745_v4  ;;  %v2845_v42 = vpop.f32.mrb[61].mxu1 }
 0x486   : > { %v2969_v57 = vadd.f32 %v15448_v27, %v2845_v42  ;;  %v15748_v33 = vpop.f32.mrb[62].mxu1 }
 0x487   : > { %18488 = vst [vmem:[#allocation17_spill] sm:$0xff] %v15748_v33  ;;  %v2849_v44 = vpop.f32.mrb[63].mxu1 }
 0x488   : > { %v2970_v58 = vadd.f32 %v15448_v27, %v2849_v44  ;;  %v3033_v12 = vmax.f32 %v2969_v57, 0.0 }
 0x48a   : > { %11628 = vmatmul.mubr.bf16.gmra.mrb[124].mxu1 %v3066_v43  ;;  %v3034_v18 = vmax.f32 %v2970_v58, 0.0 }
 0x48b   : > { %11631 = vmatprep.mubr.bf16.mxu1 %v3067_v22 }
 0x48c   : > { %v15753_v19 = vpop.f32.mrb[64].mxu1  ;;  %v3068_v34 = vpack.c.bf16 %v3034_v18, %v3033_v12 }
 0x48d   : > { %18489 = vst [vmem:[#allocation18_spill] sm:$0xff] %v15753_v19  ;;  %v2855_v59 = vpop.f32.mrb[65].mxu1 }
 0x48e   : > { %v2971_v1 = vadd.f32 %v15448_v27, %v2855_v59  ;;  %v15756_v29 = vpop.f32.mrb[66].mxu1 }
 0x48f   : > { %18490 = vst [vmem:[#allocation19_spill] sm:$0xff] %v15756_v29  ;;  %v2859_v21 = vpop.f32.mrb[67].mxu1 }
 0x490   : > { %v2972_v55 = vadd.f32 %v15448_v27, %v2859_v21  ;;  %v3035_v44 = vmax.f32 %v2971_v1, 0.0  ;;  %v15772_v21 = vld [vmem:[%s18431_s6] ss:$0 sm:$0xff] }
 0x492   : > { %11632 = vmatmul.mubr.bf16.gmra.mrb[128].mxu1 %v3068_v34  ;;  %v3036_v43 = vmax.f32 %v2972_v55, 0.0 }
 0x494   : > { %v15761_v57 = vpop.f32.mrb[68].mxu1  ;;  %v3069_v58 = vpack.c.bf16 %v3036_v43, %v3035_v44 }
 0x495   : > { %18491 = vst [vmem:[#allocation20_spill] sm:$0xff] %v15761_v57  ;;  %v2865_v22 = vpop.f32.mrb[69].mxu1 }
 0x496   : > { %v2973_v12 = vadd.f32 %v15448_v27, %v2865_v22  ;;  %v15764_v18 = vpop.f32.mrb[70].mxu1  ;;  %11635 = vmatprep.mubr.bf16.mxu1 %v3069_v58 }
 0x497   : > { %18492 = vst [vmem:[#allocation21_spill] sm:$0xff] %v15764_v18  ;;  %v2869_v4 = vpop.f32.mrb[71].mxu1 }
 0x498   : > { %v2974_v42 = vadd.f32 %v15448_v27, %v2869_v4  ;;  %v3037_v55 = vmax.f32 %v2973_v12, 0.0 }
 0x49a   : > { %v3038_v34 = vmax.f32 %v2974_v42, 0.0 }
 0x49c   : > { %v11577_v1 = vpop.f32.mrb[72].mxu1  ;;  %v3070_v44 = vpack.c.bf16 %v3038_v34, %v3037_v55 }
 0x49d   : > { %v3185_v43 = vadd.f32 %v11577_v1, %v15772_v21  ;;  %v3176_v22 = vpop.f32.mrb[73].mxu1 }
 0x49e   : > { %v3177_v58 = vadd.f32 %v15772_v21, %v3176_v22  ;;  %v11578_v19 = vpop.f32.mrb[74].mxu1  ;;  %11636 = vmatmul.mubr.bf16.gmra.mrb[132].mxu1 %v3070_v44 }
 0x49f   : > { %v3188_v59 = vadd.f32 %v11578_v19, %v15772_v21  ;;  %v3179_v57 = vpop.f32.mrb[75].mxu1  ;;  %v3433_v4 = vmax.f32 %v3185_v43, 0.0 }
 0x4a0   : > { %v3180_v27 = vadd.f32 %v15772_v21, %v3179_v57  ;;  %v3431_v29 = vmax.f32 %v3177_v58, 0.0 }
 0x4a1   : > { %v3434_v18 = vmax.f32 %v3188_v59, 0.0  ;;  %v18493_v59 = vpack.c.bf16 %v15455_v53, %v15452_v10 }
 0x4a2   : > { %v3432_v33 = vmax.f32 %v3180_v27, 0.0 }
 0x4a3   : > { %v3496_v12 = vpack.c.bf16 %v3434_v18, %v3433_v4 }
 0x4a4   : > { %v11581_v42 = vpop.f32.mrb[76].mxu1  ;;  %v3495_v20 = vpack.c.bf16 %v3432_v33, %v3431_v29 }
 0x4a5   : > { %v3201_v55 = vadd.f32 %v11581_v42, %v15772_v21  ;;  %v3192_v34 = vpop.f32.mrb[77].mxu1 }
 0x4a6   : > { %v3193_v1 = vadd.f32 %v15772_v21, %v3192_v34  ;;  %v11582_v22 = vpop.f32.mrb[78].mxu1  ;;  %11655 = vmatprep.mubr.bf16.mxu1 %v3495_v20  ;;  %v18494_v20 = vpack.c.bf16 %v15468_v24, %v15463_v5  ;;  %v18495_v5 = vpack.c.bf16 %v15479_v52, %v15476_v30  ;;  %v18497_v30 = vpack.c.bf16 %v15501_v56, %v15498_v36 }
 0x4a7   : > { %v3204_v44 = vadd.f32 %v11582_v22, %v15772_v21  ;;  %v3195_v19 = vpop.f32.mrb[79].mxu1  ;;  %11656 = vmatmul.mubr.bf16.vlgmr.msra.gmra.mrb[136].mxu1 %v3496_v12  ;;  %v3437_v18 = vmax.f32 %v3201_v55, 0.0  ;;  %v18498_v52 = vpack.c.bf16 %v15510_v39, %v15507_v15  ;;  %v18501_v36 = vpack.c.bf16 %v15586_v14, %v15580_v63 }
 0x4a8   : > { %v3196_v57 = vadd.f32 %v15772_v21, %v3195_v19  ;;  %3960 = vmatpush1.bf16.msra.mxu1 %v18493_v59  ;;  %v3435_v33 = vmax.f32 %v3193_v1, 0.0  ;;  %v18496_v59 = vpack.c.bf16 %v15490_v40, %v15487_v3  ;;  %v18499_v3 = vpack.c.bf16 %v15538_v47, %v15532_v16 }
 0x4a9   : > { %v3438_v43 = vmax.f32 %v3204_v44, 0.0  ;;  %3961 = vmatprep.subr.bf16.mxu1 %v18467_v54  ;;  %v18500_v40 = vpack.c.bf16 %v15562_v45, %v15556_v50  ;;  %v18502_v56 = vpack.c.bf16 %v15605_v46, %v15602_v37  ;;  %v18503_v15 = vpack.c.bf16 %v15623_v41, %v15620_v31 }
 0x4aa   : > { %v3436_v29 = vmax.f32 %v3196_v57, 0.0  ;;  %v18504_v39 = vpack.c.bf16 %v15641_v35, %v15638_v17  ;;  %v18505_v16 = vpack.c.bf16 %v15659_v25, %v15656_v48  ;;  %v18506_v47 = vpack.c.bf16 %v15677_v0, %v15674_v9 }
 0x4ab   : > { %v3498_v58 = vpack.c.bf16 %v3438_v43, %v3437_v18  ;;  %v18507_v50 = vpack.c.bf16 %v15527_v2, %v15521_v11  ;;  %v18508_v45 = vpack.c.bf16 %v15551_v62, %v15543_v28 }
 0x4ac   : > { %3962 = vmatpush1.bf16.msra.mxu1 %v18494_v20  ;;  %v11585_v27 = vpop.f32.mrb[80].mxu1  ;;  %v3497_v4 = vpack.c.bf16 %v3436_v29, %v3435_v33 }
 0x4ad   : > { %v3217_v12 = vadd.f32 %v11585_v27, %v15772_v21  ;;  %v3208_v42 = vpop.f32.mrb[81].mxu1  ;;  %3963 = vmatprep.subr.bf16.mxu1 %v18467_v54 }
 0x4ae   : > { %v3209_v10 = vadd.f32 %v15772_v21, %v3208_v42  ;;  %v11586_v53 = vpop.f32.mrb[82].mxu1  ;;  %11659 = vmatprep.mubr.bf16.mxu1 %v3497_v4 }
 0x4af   : > { %v3220_v55 = vadd.f32 %v11586_v53, %v15772_v21  ;;  %v3211_v34 = vpop.f32.mrb[83].mxu1  ;;  %11660 = vmatmul.mubr.bf16.gmra.mrb[140].mxu1 %v3498_v58  ;;  %v3441_v24 = vmax.f32 %v3217_v12, 0.0 }
 0x4b0   : > { %v3212_v1 = vadd.f32 %v15772_v21, %v3211_v34  ;;  %3964 = vmatpush1.bf16.msra.mxu1 %v18495_v5  ;;  %v3439_v44 = vmax.f32 %v3209_v10, 0.0 }
 0x4b1   : > { %v3442_v22 = vmax.f32 %v3220_v55, 0.0  ;;  %3965 = vmatprep.subr.bf16.mxu1 %v18467_v54 }
 0x4b2   : > { %v3440_v19 = vmax.f32 %v3212_v1, 0.0 }
 0x4b3   : > { %v3500_v57 = vpack.c.bf16 %v3442_v22, %v3441_v24 }
 0x4b4   : > { %3966 = vmatpush1.bf16.msra.mxu1 %v18496_v59  ;;  %v3499_v18 = vpack.c.bf16 %v3440_v19, %v3439_v44 }
 0x4b5   : > { %3967 = vmatprep.subr.bf16.mxu1 %v18467_v54 }
 0x4b6   : > { %11663 = vmatprep.mubr.bf16.mxu1 %v3499_v18 }
 0x4b7   : > { %11664 = vmatmul.mubr.bf16.gmra.mrb[144].mxu1 %v3500_v57 }
 0x4b8   : > { %3968 = vmatpush1.bf16.msra.mxu1 %v18497_v30 }
 0x4b9   : > { %3969 = vmatprep.subr.bf16.mxu1 %v18467_v54 }
 0x4bc   : > { %3970 = vmatpush1.bf16.msra.mxu1 %v18498_v52 }
 0x4bd   : > { %3971 = vmatprep.subr.bf16.mxu1 %v18467_v54 }
 0x4c0   : > { %3972 = vmatpush1.bf16.msra.mxu1 %v18499_v3 }
 0x4c1   : > { %3973 = vmatprep.subr.bf16.mxu1 %v18467_v54 }
 0x4c4   : > { %3974 = vmatpush1.bf16.msra.mxu1 %v18500_v40 }
 0x4c5   : > { %3975 = vmatprep.subr.bf16.mxu1 %v18467_v54 }
 0x4c8   : > { %3976 = vmatpush1.bf16.msra.mxu1 %v18501_v36 }
 0x4c9   : > { %3977 = vmatprep.subr.bf16.mxu1 %v18467_v54 }
 0x4cc   : > { %3978 = vmatpush1.bf16.msra.mxu1 %v18502_v56 }
 0x4cd   : > { %3979 = vmatprep.subr.bf16.mxu1 %v18467_v54 }
 0x4d0   : > { %3980 = vmatpush1.bf16.msra.mxu1 %v18503_v15 }
 0x4d1   : > { %3981 = vmatprep.subr.bf16.mxu1 %v18467_v54 }
 0x4d4   : > { %3982 = vmatpush1.bf16.msra.mxu1 %v18504_v39 }
 0x4d5   : > { %3983 = vmatprep.subr.bf16.mxu1 %v18467_v54 }
 0x4d8   : > { %3984 = vmatpush1.bf16.msra.mxu1 %v18505_v16 }
 0x4d9   : > { %3985 = vmatprep.subr.bf16.mxu1 %v18467_v54 }
 0x4dc   : > { %3986 = vmatpush1.bf16.msra.mxu1 %v18506_v47 }
 0x4dd   : > { %3987 = vmatprep.subr.bf16.mxu1 %v18467_v54 }
 0x4e0   : > { %3988 = vmatpush1.bf16.msra.mxu1 %v18507_v50 }
 0x4e1   : > { %3989 = vmatprep.subr.bf16.mxu1 %v18467_v54 }
 0x4e4   : > { %3990 = vmatpush1.bf16.msra.mxu1 %v18508_v45 }
 0x4e5   : > { %4248 = vmatprep.subr.bf16.mxu1 %v18467_v54 }
 0x4f5   : > { %v11589_v63 = vpop.f32.mrb[84].mxu1 }
 0x4f6   : > { %v3233_v14 = vadd.f32 %v11589_v63, %v15772_v21  ;;  %v3224_v37 = vpop.f32.mrb[85].mxu1 }
 0x4f7   : > { %v3225_v46 = vadd.f32 %v15772_v21, %v3224_v37  ;;  %v11590_v31 = vpop.f32.mrb[86].mxu1 }
 0x4f8   : > { %v3236_v41 = vadd.f32 %v11590_v31, %v15772_v21  ;;  %v3227_v17 = vpop.f32.mrb[87].mxu1  ;;  %v3445_v2 = vmax.f32 %v3233_v14, 0.0 }
 0x4f9   : > { %v3228_v11 = vadd.f32 %v15772_v21, %v3227_v17  ;;  %v3443_v48 = vmax.f32 %v3225_v46, 0.0 }
 0x4fa   : > { %v3446_v35 = vmax.f32 %v3236_v41, 0.0 }
 0x4fb   : > { %v3444_v25 = vmax.f32 %v3228_v11, 0.0 }
 0x4fc   : > { %v3502_v28 = vpack.c.bf16 %v3446_v35, %v3445_v2 }
 0x4fd   : > { %v3501_v62 = vpack.c.bf16 %v3444_v25, %v3443_v48 }
 0x4ff   : > { %11667 = vmatprep.mubr.bf16.mxu1 %v3501_v62 }
 0x500   : > { %11668 = vmatmul.mubr.bf16.gmra.mrb[148].mxu1 %v3502_v28 }
 0x505   : > { %v11593_v9 = vpop.f32.mrb[88].mxu1 }
 0x506   : > { %v3249_v0 = vadd.f32 %v11593_v9, %v15772_v21  ;;  %v3240_v43 = vpop.f32.mrb[89].mxu1 }
 0x507   : > { %v3241_v33 = vadd.f32 %v15772_v21, %v3240_v43  ;;  %v11594_v29 = vpop.f32.mrb[90].mxu1 }
 0x508   : > { %v3252_v58 = vadd.f32 %v11594_v29, %v15772_v21  ;;  %v3243_v20 = vpop.f32.mrb[91].mxu1  ;;  %v3449_v4 = vmax.f32 %v3249_v0, 0.0 }
 0x509   : > { %v3244_v27 = vadd.f32 %v15772_v21, %v3243_v20  ;;  %v3447_v42 = vmax.f32 %v3241_v33, 0.0 }
 0x50a   : > { %v3450_v12 = vmax.f32 %v3252_v58, 0.0 }
 0x50b   : > { %v3448_v10 = vmax.f32 %v3244_v27, 0.0 }
 0x50c   : > { %v3504_v53 = vpack.c.bf16 %v3450_v12, %v3449_v4 }
 0x50d   : > { %v3503_v55 = vpack.c.bf16 %v3448_v10, %v3447_v42 }
 0x50f   : > { %11671 = vmatprep.mubr.bf16.mxu1 %v3503_v55 }
 0x510   : > { %11672 = vmatmul.mubr.bf16.gmra.mrb[152].mxu1 %v3504_v53 }
 0x515   : > { %v11597_v34 = vpop.f32.mrb[92].mxu1 }
 0x516   : > { %v3265_v1 = vadd.f32 %v11597_v34, %v15772_v21  ;;  %v3256_v5 = vpop.f32.mrb[93].mxu1 }
 0x517   : > { %v3257_v24 = vadd.f32 %v15772_v21, %v3256_v5  ;;  %v11598_v22 = vpop.f32.mrb[94].mxu1 }
 0x518   : > { %v3268_v44 = vadd.f32 %v11598_v22, %v15772_v21  ;;  %v3259_v19 = vpop.f32.mrb[95].mxu1  ;;  %v3453_v59 = vmax.f32 %v3265_v1, 0.0 }
 0x519   : > { %v3260_v57 = vadd.f32 %v15772_v21, %v3259_v19  ;;  %v3451_v30 = vmax.f32 %v3257_v24, 0.0 }
 0x51a   : > { %v3454_v18 = vmax.f32 %v3268_v44, 0.0 }
 0x51b   : > { %v3452_v52 = vmax.f32 %v3260_v57, 0.0 }
 0x51c   : > { %v3506_v3 = vpack.c.bf16 %v3454_v18, %v3453_v59 }
 0x51d   : > { %v3505_v40 = vpack.c.bf16 %v3452_v52, %v3451_v30 }
 0x51f   : > { %11675 = vmatprep.mubr.bf16.mxu1 %v3505_v40 }
 0x520   : > { %11676 = vmatmul.mubr.bf16.gmra.mrb[156].mxu1 %v3506_v3 }
 0x525   : > { %v11601_v36 = vpop.f32.mrb[96].mxu1 }
 0x526   : > { %v3281_v56 = vadd.f32 %v11601_v36, %v15772_v21  ;;  %v3272_v15 = vpop.f32.mrb[97].mxu1 }
 0x527   : > { %v3273_v39 = vadd.f32 %v15772_v21, %v3272_v15  ;;  %v11602_v16 = vpop.f32.mrb[98].mxu1 }
 0x528   : > { %v3284_v47 = vadd.f32 %v11602_v16, %v15772_v21  ;;  %v3275_v50 = vpop.f32.mrb[99].mxu1  ;;  %v3457_v63 = vmax.f32 %v3281_v56, 0.0 }
 0x529   : > { %v3276_v45 = vadd.f32 %v15772_v21, %v3275_v50  ;;  %v3455_v37 = vmax.f32 %v3273_v39, 0.0 }
 0x52a   : > { %v3458_v14 = vmax.f32 %v3284_v47, 0.0 }
 0x52b   : > { %v3456_v46 = vmax.f32 %v3276_v45, 0.0 }
 0x52c   : > { %v3508_v31 = vpack.c.bf16 %v3458_v14, %v3457_v63 }
 0x52d   : > { %v11605_v41 = vpop.f32.mrb[100].mxu1  ;;  %v3507_v17 = vpack.c.bf16 %v3456_v46, %v3455_v37 }
 0x52e   : > { %v3297_v11 = vadd.f32 %v11605_v41, %v15772_v21  ;;  %v3288_v2 = vpop.f32.mrb[101].mxu1 }
 0x52f   : > { %v3289_v35 = vadd.f32 %v15772_v21, %v3288_v2  ;;  %v11606_v48 = vpop.f32.mrb[102].mxu1  ;;  %11679 = vmatprep.mubr.bf16.mxu1 %v3507_v17 }
 0x530   : > { %v3300_v25 = vadd.f32 %v11606_v48, %v15772_v21  ;;  %v3291_v28 = vpop.f32.mrb[103].mxu1  ;;  %11680 = vmatmul.mubr.bf16.gmra.mrb[160].mxu1 %v3508_v31  ;;  %v3461_v9 = vmax.f32 %v3297_v11, 0.0 }
 0x531   : > { %v3292_v62 = vadd.f32 %v15772_v21, %v3291_v28  ;;  %v3459_v43 = vmax.f32 %v3289_v35, 0.0 }
 0x532   : > { %v3462_v0 = vmax.f32 %v3300_v25, 0.0 }
 0x533   : > { %v3460_v33 = vmax.f32 %v3292_v62, 0.0 }
 0x534   : > { %v3510_v29 = vpack.c.bf16 %v3462_v0, %v3461_v9 }
 0x535   : > { %v11609_v58 = vpop.f32.mrb[104].mxu1  ;;  %v3509_v20 = vpack.c.bf16 %v3460_v33, %v3459_v43 }
 0x536   : > { %v3313_v27 = vadd.f32 %v11609_v58, %v15772_v21  ;;  %v3304_v4 = vpop.f32.mrb[105].mxu1 }
 0x537   : > { %v3305_v12 = vadd.f32 %v15772_v21, %v3304_v4  ;;  %v11610_v42 = vpop.f32.mrb[106].mxu1  ;;  %11683 = vmatprep.mubr.bf16.mxu1 %v3509_v20 }
 0x538   : > { %v3316_v10 = vadd.f32 %v11610_v42, %v15772_v21  ;;  %v3307_v53 = vpop.f32.mrb[107].mxu1  ;;  %11684 = vmatmul.mubr.bf16.gmra.mrb[164].mxu1 %v3510_v29  ;;  %v3465_v34 = vmax.f32 %v3313_v27, 0.0 }
 0x539   : > { %v3308_v55 = vadd.f32 %v15772_v21, %v3307_v53  ;;  %v3463_v5 = vmax.f32 %v3305_v12, 0.0 }
 0x53a   : > { %v3466_v1 = vmax.f32 %v3316_v10, 0.0 }
 0x53b   : > { %v3464_v24 = vmax.f32 %v3308_v55, 0.0 }
 0x53c   : > { %v3512_v22 = vpack.c.bf16 %v3466_v1, %v3465_v34 }
 0x53d   : > { %v11613_v44 = vpop.f32.mrb[108].mxu1  ;;  %v3511_v19 = vpack.c.bf16 %v3464_v24, %v3463_v5 }
 0x53e   : > { %v3329_v57 = vadd.f32 %v11613_v44, %v15772_v21  ;;  %v3320_v59 = vpop.f32.mrb[109].mxu1 }
 0x53f   : > { %v3321_v18 = vadd.f32 %v15772_v21, %v3320_v59  ;;  %v11614_v30 = vpop.f32.mrb[110].mxu1  ;;  %11687 = vmatprep.mubr.bf16.mxu1 %v3511_v19 }
 0x540   : > { %v3332_v52 = vadd.f32 %v11614_v30, %v15772_v21  ;;  %v3323_v3 = vpop.f32.mrb[111].mxu1  ;;  %11688 = vmatmul.mubr.bf16.gmra.mrb[168].mxu1 %v3512_v22  ;;  %v3469_v36 = vmax.f32 %v3329_v57, 0.0 }
 0x541   : > { %v3324_v40 = vadd.f32 %v15772_v21, %v3323_v3  ;;  %v3467_v15 = vmax.f32 %v3321_v18, 0.0 }
 0x542   : > { %v3470_v56 = vmax.f32 %v3332_v52, 0.0 }
 0x543   : > { %v3468_v39 = vmax.f32 %v3324_v40, 0.0 }
 0x544   : > { %v3514_v16 = vpack.c.bf16 %v3470_v56, %v3469_v36 }
 0x545   : > { %v11617_v47 = vpop.f32.mrb[112].mxu1  ;;  %v3513_v50 = vpack.c.bf16 %v3468_v39, %v3467_v15 }
 0x546   : > { %v3345_v45 = vadd.f32 %v11617_v47, %v15772_v21  ;;  %v3336_v63 = vpop.f32.mrb[113].mxu1 }
 0x547   : > { %v3337_v14 = vadd.f32 %v15772_v21, %v3336_v63  ;;  %v11618_v37 = vpop.f32.mrb[114].mxu1  ;;  %11691 = vmatprep.mubr.bf16.mxu1 %v3513_v50 }
 0x548   : > { %v3348_v46 = vadd.f32 %v11618_v37, %v15772_v21  ;;  %v3339_v31 = vpop.f32.mrb[115].mxu1  ;;  %11692 = vmatmul.mubr.bf16.gmra.mrb[172].mxu1 %v3514_v16  ;;  %v3473_v17 = vmax.f32 %v3345_v45, 0.0 }
 0x549   : > { %v3340_v41 = vadd.f32 %v15772_v21, %v3339_v31  ;;  %v3471_v2 = vmax.f32 %v3337_v14, 0.0 }
 0x54a   : > { %v3474_v11 = vmax.f32 %v3348_v46, 0.0 }
 0x54b   : > { %v3472_v35 = vmax.f32 %v3340_v41, 0.0 }
 0x54c   : > { %v3516_v48 = vpack.c.bf16 %v3474_v11, %v3473_v17 }
 0x54d   : > { %v11621_v25 = vpop.f32.mrb[116].mxu1  ;;  %v3515_v28 = vpack.c.bf16 %v3472_v35, %v3471_v2 }
 0x54e   : > { %v3361_v62 = vadd.f32 %v11621_v25, %v15772_v21  ;;  %v3352_v9 = vpop.f32.mrb[117].mxu1 }
 0x54f   : > { %v3353_v0 = vadd.f32 %v15772_v21, %v3352_v9  ;;  %v11622_v43 = vpop.f32.mrb[118].mxu1  ;;  %11695 = vmatprep.mubr.bf16.mxu1 %v3515_v28 }
 0x550   : > { %v3364_v33 = vadd.f32 %v11622_v43, %v15772_v21  ;;  %v3355_v29 = vpop.f32.mrb[119].mxu1  ;;  %11696 = vmatmul.mubr.bf16.gmra.mrb[176].mxu1 %v3516_v48  ;;  %v3477_v20 = vmax.f32 %v3361_v62, 0.0 }
 0x551   : > { %v3356_v58 = vadd.f32 %v15772_v21, %v3355_v29  ;;  %v3475_v4 = vmax.f32 %v3353_v0, 0.0 }
 0x552   : > { %v3478_v27 = vmax.f32 %v3364_v33, 0.0 }
 0x553   : > { %v3476_v12 = vmax.f32 %v3356_v58, 0.0 }
 0x554   : > { %v3518_v42 = vpack.c.bf16 %v3478_v27, %v3477_v20 }
 0x555   : > { %v11625_v10 = vpop.f32.mrb[120].mxu1  ;;  %v3517_v53 = vpack.c.bf16 %v3476_v12, %v3475_v4 }
 0x556   : > { %v3377_v55 = vadd.f32 %v11625_v10, %v15772_v21  ;;  %v3368_v34 = vpop.f32.mrb[121].mxu1 }
 0x557   : > { %v3369_v1 = vadd.f32 %v15772_v21, %v3368_v34  ;;  %v11626_v5 = vpop.f32.mrb[122].mxu1  ;;  %11699 = vmatprep.mubr.bf16.mxu1 %v3517_v53 }
 0x558   : > { %v3380_v24 = vadd.f32 %v11626_v5, %v15772_v21  ;;  %v3371_v22 = vpop.f32.mrb[123].mxu1  ;;  %11700 = vmatmul.mubr.bf16.gmra.mrb[180].mxu1 %v3518_v42  ;;  %v3481_v19 = vmax.f32 %v3377_v55, 0.0 }
 0x559   : > { %v3372_v44 = vadd.f32 %v15772_v21, %v3371_v22  ;;  %v3479_v59 = vmax.f32 %v3369_v1, 0.0  ;;  %v14161_v22 = vld [vmem:[%s14690_s22 + $0x4] ss:$16 sps:$4 sm:$0xff]  }
 0x55a   : > { %v3482_v57 = vmax.f32 %v3380_v24, 0.0 }
 0x55b   : > { %v3480_v18 = vmax.f32 %v3372_v44, 0.0  ;;  %v14162_v44 = vld [vmem:[%s14690_s22] ss:$16 sps:$4 sm:$0xff]  }
 0x55c   : > { %v3520_v30 = vpack.c.bf16 %v3482_v57, %v3481_v19  ;;  %v18509_v19 = vpack.c.bf16 %v15575_v49, %v15567_v6  ;;  %v18510_v57 = vpack.c.bf16 %v15597_v60, %v15591_v8  ;;  %v14165_v6 = vld [vmem:[%s14690_s22 + $0x44] ss:$16 sps:$4 sm:$0xff]   ;;  %v14166_v8 = vld [vmem:[%s14690_s22 + $0x40] ss:$16 sps:$4 sm:$0xff]  }
 0x55d   : > { %v11629_v52 = vpop.f32.mrb[124].mxu1  ;;  %v3519_v3 = vpack.c.bf16 %v3480_v18, %v3479_v59  ;;  %v14164_v59 = vld [vmem:[%s14690_s22 + $0x20] ss:$16 sps:$4 sm:$0xff]  }
 0x55e   : > { %v3393_v40 = vadd.f32 %v11629_v52, %v15772_v21  ;;  %v3384_v36 = vpop.f32.mrb[125].mxu1  ;;  %v18511_v18 = vld [vmem:[#allocation2_spill] sm:$0xff]  ;;  %v18513_v49 = vld [vmem:[#allocation4_spill] sm:$0xff]  ;;  %v18514_v52 = vld [vmem:[#allocation3_spill] sm:$0xff] }
 0x55f   : > { %v3385_v56 = vadd.f32 %v15772_v21, %v3384_v36  ;;  %v11630_v15 = vpop.f32.mrb[126].mxu1  ;;  %11703 = vmatprep.mubr.bf16.mxu1 %v3519_v3  ;;  %v18515_v3 = vpack.c.bf16 %v18513_v49, %v18514_v52  ;;  %v18516_v60 = vld [vmem:[#allocation6_spill] sm:$0xff] }
 0x560   : > { %v3396_v39 = vadd.f32 %v11630_v15, %v15772_v21  ;;  %v3387_v16 = vpop.f32.mrb[127].mxu1  ;;  %11704 = vmatmul.mubr.bf16.gmra.mrb[184].mxu1 %v3520_v30  ;;  %v3485_v50 = vmax.f32 %v3393_v40, 0.0  ;;  %v18512_v30 = vpack.c.bf16 %v15615_v51, %v18511_v18  ;;  %v18517_v40 = vld [vmem:[#allocation5_spill] sm:$0xff]  ;;  %v14167_v51 = vld [vmem:[%s14690_s22 + $0x64] ss:$16 sps:$4 sm:$0xff]   ;;  %v18520_v15 = vld [vmem:[#allocation7_spill] sm:$0xff] }
 0x561   : > { %v3388_v47 = vadd.f32 %v15772_v21, %v3387_v16  ;;  %v3483_v63 = vmax.f32 %v3385_v56, 0.0  ;;  %v18518_v36 = vpack.c.bf16 %v18516_v60, %v18517_v40  ;;  %v18519_v56 = vld [vmem:[#allocation8_spill] sm:$0xff] }
 0x562   : > { %v3486_v45 = vmax.f32 %v3396_v39, 0.0  ;;  %v18521_v39 = vpack.c.bf16 %v18519_v56, %v18520_v15  ;;  %v14168_v16 = vld [vmem:[%s14690_s22 + $0x60] ss:$16 sps:$4 sm:$0xff]   ;;  %v14194_v18 = vld [vmem:[%s14690_s22 + $0x204] ss:$16 sps:$4 sm:$0xff]  }
 0x563   : > { %v3484_v14 = vmax.f32 %v3388_v47, 0.0  ;;  %v18522_v47 = vpack.c.bf16 %v15685_v7, %v15682_v61  ;;  %v14171_v61 = vld [vmem:[%s14690_s22 + $0xa4] ss:$16 sps:$4 sm:$0xff]   ;;  %v18526_v7 = vld [vmem:[#allocation11_spill] sm:$0xff]  ;;  %v14197_v49 = vld [vmem:[%s14690_s22 + $0x220] ss:$16 sps:$4 sm:$0xff]  }
 0x564   : > { %v3522_v37 = vpack.c.bf16 %v3486_v45, %v3485_v50  ;;  %v14169_v50 = vld [vmem:[%s14690_s22 + $0x84] ss:$16 sps:$4 sm:$0xff]   ;;  %v18523_v45 = vpack.c.bf16 %v15694_v26, %v15691_v32  ;;  %v14172_v32 = vld [vmem:[%s14690_s22 + $0xa0] ss:$16 sps:$4 sm:$0xff]  }
 0x565   : > { %v11633_v46 = vpop.f32.mrb[128].mxu1  ;;  %v3521_v31 = vpack.c.bf16 %v3484_v14, %v3483_v63  ;;  %v14170_v63 = vld [vmem:[%s14690_s22 + $0x80] ss:$16 sps:$4 sm:$0xff]   ;;  %v18524_v14 = vld [vmem:[#allocation9_spill] sm:$0xff]  ;;  %v14198_v52 = vld [vmem:[%s14690_s22 + $0x244] ss:$16 sps:$4 sm:$0xff]  }
 0x566   : > { %v3409_v41 = vadd.f32 %v11633_v46, %v15772_v21  ;;  %v3400_v17 = vpop.f32.mrb[129].mxu1  ;;  %v18527_v46 = vld [vmem:[#allocation10_spill] sm:$0xff]  ;;  %v18529_v26 = vld [vmem:[#allocation12_spill] sm:$0xff] }
 0x567   : > { %v3401_v11 = vadd.f32 %v15772_v21, %v3400_v17  ;;  %v11634_v2 = vpop.f32.mrb[130].mxu1  ;;  %11707 = vmatprep.mubr.bf16.mxu1 %v3521_v31  ;;  %v18528_v31 = vpack.c.bf16 %v18526_v7, %v18527_v46  ;;  %v18531_v17 = vld [vmem:[#allocation13_spill] sm:$0xff]  ;;  %v14201_v60 = vld [vmem:[%s14690_s22 + $0x260] ss:$16 sps:$4 sm:$0xff]   ;;  %v14202_v40 = vld [vmem:[%s14690_s22 + $0x284] ss:$16 sps:$4 sm:$0xff]  }
 0x568   : > { %v3412_v35 = vadd.f32 %v11634_v2, %v15772_v21  ;;  %v3403_v48 = vpop.f32.mrb[131].mxu1  ;;  %11708 = vmatmul.mubr.bf16.gmra.mrb[188].mxu1 %v3522_v37  ;;  %v3489_v28 = vmax.f32 %v3409_v41, 0.0  ;;  %v18525_v37 = vpack.c.bf16 %v15704_v38, %v18524_v14  ;;  %v18530_v41 = vpack.c.bf16 %v15724_v13, %v18529_v26  ;;  %v14173_v38 = vld [vmem:[%s14690_s22 + $0xc4] ss:$16 sps:$4 sm:$0xff]   ;;  %v14174_v2 = vld [vmem:[%s14690_s22 + $0xc0] ss:$16 sps:$4 sm:$0xff]  }
 0x569   : > { %v3404_v25 = vadd.f32 %v15772_v21, %v3403_v48  ;;  %v3487_v9 = vmax.f32 %v3401_v11, 0.0  ;;  %v18532_v11 = vpack.c.bf16 %v15732_v23, %v18531_v17  ;;  %v18534_v48 = vld [vmem:[#allocation14_spill] sm:$0xff] }
 0x56a   : > { %v3490_v62 = vmax.f32 %v3412_v35, 0.0  ;;  %v18533_v35 = vld [vmem:[#allocation15_spill] sm:$0xff]  ;;  %v14175_v13 = vld [vmem:[%s14690_s22 + $0xe4] ss:$16 sps:$4 sm:$0xff]   ;;  %v14176_v23 = vld [vmem:[%s14690_s22 + $0xe0] ss:$16 sps:$4 sm:$0xff]  }
 0x56b   : > { %v3488_v0 = vmax.f32 %v3404_v25, 0.0  ;;  %v18535_v25 = vpack.c.bf16 %v18533_v35, %v18534_v48  ;;  %v14205_v56 = vld [vmem:[%s14690_s22 + $0x2a0] ss:$16 sps:$4 sm:$0xff]   ;;  %v14206_v15 = vld [vmem:[%s14690_s22 + $0x2c4] ss:$16 sps:$4 sm:$0xff]  }
 0x56c   : > { %v3524_v43 = vpack.c.bf16 %v3490_v62, %v3489_v28  ;;  %v18536_v28 = vld [vmem:[#allocation17_spill] sm:$0xff]  ;;  %v18537_v62 = vld [vmem:[#allocation16_spill] sm:$0xff] }
 0x56d   : > { %v3523_v33 = vpack.c.bf16 %v3488_v0, %v3487_v9  ;;  %v18538_v9 = vpack.c.bf16 %v18536_v28, %v18537_v62  ;;  %v18539_v0 = vld [vmem:[#allocation19_spill] sm:$0xff]  ;;  %v14213_v14 = vld [vmem:[%s14690_s22 + $0x320] ss:$16 sps:$4 sm:$0xff]   ;;  %v14216_v7 = vld [vmem:[%s14690_s22 + $0x364] ss:$16 sps:$4 sm:$0xff]  }
 0x56e   : > { %v14217_v46 = vld [vmem:[%s14690_s22 + $0x360] ss:$16 sps:$4 sm:$0xff]   ;;  %v14220_v26 = vld [vmem:[%s14690_s22 + $0x3a4] ss:$16 sps:$4 sm:$0xff]   ;;  %v14226_v35 = vld [vmem:[%s14690_s22 + $0xc] ss:$16 sps:$4 sm:$0xff]  }
 0x56f   : > { %11711 = vmatprep.mubr.bf16.mxu1 %v3523_v33  ;;  %v14223_v17 = vld [vmem:[%s14690_s22 + $0x3c0] ss:$16 sps:$4 sm:$0xff]   ;;  %v14227_v48 = vld [vmem:[%s14690_s22 + $0x8] ss:$16 sps:$4 sm:$0xff]  }
 0x570   : > { %11712 = vmatmul.mubr.bf16.gmra.mrb[192].mxu1 %v3524_v43  ;;  %v18540_v43 = vld [vmem:[#allocation18_spill] sm:$0xff]  ;;  %v14230_v28 = vld [vmem:[%s18432_s7 + $0x10] sm:$0xff]   ;;  %v14231_v62 = vld [vmem:[%s14690_s22 + $0x28] ss:$16 sps:$4 sm:$0xff]  }
 0x571   : > { %v11637_v29 = vpop.f32.mrb[132].mxu1  ;;  %v18541_v33 = vpack.c.bf16 %v18539_v0, %v18540_v43  ;;  %v14234_v0 = vld [vmem:[%s18432_s7 + $0x20] sm:$0xff]   ;;  %v14235_v43 = vld [vmem:[%s14690_s22 + $0x48] ss:$16 sps:$4 sm:$0xff]  }
 0x572   : > { %v3425_v58 = vadd.f32 %v11637_v29, %v15772_v21  ;;  %v3416_v20 = vpop.f32.mrb[133].mxu1  ;;  %v14177_v29 = vld [vmem:[%s14690_s22 + $0x104] ss:$16 sps:$4 sm:$0xff]  }
 0x573   : > { %v3417_v27 = vadd.f32 %v15772_v21, %v3416_v20  ;;  %v11638_v4 = vpop.f32.mrb[134].mxu1  ;;  %v18543_v20 = vld [vmem:[#allocation20_spill] sm:$0xff] }
 0x574   : > { %v3428_v12 = vadd.f32 %v11638_v4, %v15772_v21  ;;  %v3419_v42 = vpop.f32.mrb[135].mxu1  ;;  %v3493_v53 = vmax.f32 %v3425_v58, 0.0  ;;  %v18542_v58 = vld [vmem:[#allocation21_spill] sm:$0xff]  ;;  %v15985_v4 = vld [vmem:[%s18432_s7] sm:$0xff]  }
 0x575   : > { %v3420_v10 = vadd.f32 %v15772_v21, %v3419_v42  ;;  %v3491_v34 = vmax.f32 %v3417_v27, 0.0  ;;  %v14163_v21 = vld [vmem:[%s14690_s22 + $0x24] ss:$16 sps:$4 sm:$0xff]   ;;  %v18544_v27 = vpack.c.bf16 %v18542_v58, %v18543_v20  ;;  %v14239_v20 = vld [vmem:[%s14690_s22 + $0x68] ss:$16 sps:$4 sm:$0xff]  }
 0x576   : > { %v3494_v55 = vmax.f32 %v3428_v12, 0.0  ;;  %v14179_v12 = vld [vmem:[%s14690_s22 + $0x100] ss:$16 sps:$4 sm:$0xff]   ;;  %v14180_v42 = vld [vmem:[%s14690_s22 + $0x124] ss:$16 sps:$4 sm:$0xff]  }
 0x577   : > { %v3492_v1 = vmax.f32 %v3420_v10, 0.0  ;;  %v14181_v10 = vld [vmem:[%s14690_s22 + $0x120] ss:$16 sps:$4 sm:$0xff]  }
 0x578   : > { %v3526_v5 = vpack.c.bf16 %v3494_v55, %v3493_v53  ;;  %v14182_v53 = vld [vmem:[%s14690_s22 + $0x144] ss:$16 sps:$4 sm:$0xff]   ;;  %v14183_v55 = vld [vmem:[%s14690_s22 + $0x140] ss:$16 sps:$4 sm:$0xff]  }
 0x579   : > { %v3525_v24 = vpack.c.bf16 %v3492_v1, %v3491_v34  ;;  %v14184_v34 = vld [vmem:[%s14690_s22 + $0x164] ss:$16 sps:$4 sm:$0xff]   ;;  %v14185_v1 = vld [vmem:[%s14690_s22 + $0x160] ss:$16 sps:$4 sm:$0xff]  }
 0x57a   : > { %v14238_v58 = vld [vmem:[%s18432_s7 + $0x30] sm:$0xff]  }
 0x57b   : > { %11715 = vmatprep.mubr.bf16.mxu1 %v3525_v24  ;;  %v14187_v24 = vld [vmem:[%s14690_s22 + $0x180] ss:$16 sps:$4 sm:$0xff]  }
 0x57c   : > { %11716 = vmatmul.mubr.bf16.gmra.mrb[196].mxu1 %v3526_v5  ;;  %v14186_v5 = vld [vmem:[%s14690_s22 + $0x184] ss:$16 sps:$4 sm:$0xff]  }
 0x57d   : > { %3991 = vmatprep.mubr.bf16.mxu1 %v14161_v22  ;;  %v14188_v22 = vld [vmem:[%s14690_s22 + $0x1a4] ss:$16 sps:$4 sm:$0xff]  }
 0x584   : > { %3992 = vmatmul.mubr.bf16.vlgmr.msra.gmra.mrb[200].mxu1 %v14162_v44  ;;  %v14189_v44 = vld [vmem:[%s14690_s22 + $0x1a0] ss:$16 sps:$4 sm:$0xff]  }
 0x585   : > { %4249 = vmatpush1.bf16.msra.mxu1 %v18509_v19  ;;  %3999 = vmatprep.mubr.bf16.mxu1 %v14163_v21  ;;  %v14190_v19 = vld [vmem:[%s14690_s22 + $0x1c4] ss:$16 sps:$4 sm:$0xff]   ;;  %v14191_v21 = vld [vmem:[%s14690_s22 + $0x1c0] ss:$16 sps:$4 sm:$0xff]  }
 0x586   : > { %4250 = vmatprep.subr.bf16.mxu1 %v18467_v54 }
 0x589   : > { %4251 = vmatpush1.bf16.msra.mxu1 %v18510_v57  ;;  %v14192_v57 = vld [vmem:[%s14690_s22 + $0x1e4] ss:$16 sps:$4 sm:$0xff]  }
 0x58a   : > { %4252 = vmatprep.subr.bf16.mxu1 %v18467_v54 }
 0x58c   : > { %4000 = vmatmul.mubr.bf16.gmra.mrb[204].mxu1 %v14164_v59  ;;  %v14193_v59 = vld [vmem:[%s14690_s22 + $0x1e0] ss:$16 sps:$4 sm:$0xff]  }
 0x58d   : > { %4253 = vmatpush1.bf16.msra.mxu1 %v18512_v30  ;;  %4007 = vmatprep.mubr.bf16.mxu1 %v14165_v6  ;;  %v14195_v30 = vld [vmem:[%s14690_s22 + $0x200] ss:$16 sps:$4 sm:$0xff]   ;;  %v14196_v6 = vld [vmem:[%s14690_s22 + $0x224] ss:$16 sps:$4 sm:$0xff]  }
 0x58e   : > { %4254 = vmatprep.subr.bf16.mxu1 %v18467_v54 }
 0x591   : > { %4255 = vmatpush1.bf16.msra.mxu1 %v18515_v3  ;;  %v14199_v3 = vld [vmem:[%s14690_s22 + $0x240] ss:$16 sps:$4 sm:$0xff]  }
 0x592   : > { %4256 = vmatprep.subr.bf16.mxu1 %v18467_v54 }
 0x594   : > { %4008 = vmatmul.mubr.bf16.gmra.mrb[208].mxu1 %v14166_v8  ;;  %v14200_v8 = vld [vmem:[%s14690_s22 + $0x264] ss:$16 sps:$4 sm:$0xff]  }
 0x595   : > { %4257 = vmatpush1.bf16.msra.mxu1 %v18518_v36  ;;  %4015 = vmatprep.mubr.bf16.mxu1 %v14167_v51  ;;  %v14203_v36 = vld [vmem:[%s14690_s22 + $0x280] ss:$16 sps:$4 sm:$0xff]   ;;  %v14204_v51 = vld [vmem:[%s14690_s22 + $0x2a4] ss:$16 sps:$4 sm:$0xff]  }
 0x596   : > { %4258 = vmatprep.subr.bf16.mxu1 %v18467_v54 }
 0x599   : > { %4259 = vmatpush1.bf16.msra.mxu1 %v18521_v39  ;;  %v14207_v39 = vld [vmem:[%s14690_s22 + $0x2c0] ss:$16 sps:$4 sm:$0xff]  }
 0x59a   : > { %4260 = vmatprep.subr.bf16.mxu1 %v18467_v54 }
 0x59c   : > { %4016 = vmatmul.mubr.bf16.gmra.mrb[212].mxu1 %v14168_v16  ;;  %v14208_v16 = vld [vmem:[%s14690_s22 + $0x2e4] ss:$16 sps:$4 sm:$0xff]  }
 0x59d   : > { %4261 = vmatpush1.bf16.msra.mxu1 %v18522_v47  ;;  %4023 = vmatprep.mubr.bf16.mxu1 %v14169_v50  ;;  %v14209_v47 = vld [vmem:[%s14690_s22 + $0x2e0] ss:$16 sps:$4 sm:$0xff]   ;;  %v14210_v50 = vld [vmem:[%s14690_s22 + $0x304] ss:$16 sps:$4 sm:$0xff]  }
 0x59e   : > { %4262 = vmatprep.subr.bf16.mxu1 %v18467_v54 }
 0x5a1   : > { %4263 = vmatpush1.bf16.msra.mxu1 %v18523_v45  ;;  %v14211_v45 = vld [vmem:[%s14690_s22 + $0x300] ss:$16 sps:$4 sm:$0xff]  }
 0x5a2   : > { %4264 = vmatprep.subr.bf16.mxu1 %v18467_v54 }
 0x5a4   : > { %4024 = vmatmul.mubr.bf16.gmra.mrb[216].mxu1 %v14170_v63  ;;  %v14212_v63 = vld [vmem:[%s14690_s22 + $0x324] ss:$16 sps:$4 sm:$0xff]  }
 0x5a5   : > { %4265 = vmatpush1.bf16.msra.mxu1 %v18525_v37  ;;  %4031 = vmatprep.mubr.bf16.mxu1 %v14171_v61  ;;  %v14214_v37 = vld [vmem:[%s14690_s22 + $0x344] ss:$16 sps:$4 sm:$0xff]   ;;  %v14215_v61 = vld [vmem:[%s14690_s22 + $0x340] ss:$16 sps:$4 sm:$0xff]  }
 0x5a6   : > { %4266 = vmatprep.subr.bf16.mxu1 %v18467_v54 }
 0x5a9   : > { %4267 = vmatpush1.bf16.msra.mxu1 %v18528_v31  ;;  %v14218_v31 = vld [vmem:[%s14690_s22 + $0x384] ss:$16 sps:$4 sm:$0xff]  }
 0x5aa   : > { %4268 = vmatprep.subr.bf16.mxu1 %v18467_v54 }
 0x5ac   : > { %4032 = vmatmul.mubr.bf16.gmra.mrb[220].mxu1 %v14172_v32  ;;  %v14219_v32 = vld [vmem:[%s14690_s22 + $0x380] ss:$16 sps:$4 sm:$0xff]  }
 0x5ad   : > { %4269 = vmatpush1.bf16.msra.mxu1 %v18530_v41  ;;  %4039 = vmatprep.mubr.bf16.mxu1 %v14173_v38  ;;  %v14221_v41 = vld [vmem:[%s14690_s22 + $0x3a0] ss:$16 sps:$4 sm:$0xff]   ;;  %v14222_v38 = vld [vmem:[%s14690_s22 + $0x3c4] ss:$16 sps:$4 sm:$0xff]  }
 0x5ae   : > { %4270 = vmatprep.subr.bf16.mxu1 %v18467_v54 }
 0x5b1   : > { %4271 = vmatpush1.bf16.msra.mxu1 %v18532_v11  ;;  %v14224_v11 = vld [vmem:[%s14690_s22 + $0x3e4] ss:$16 sps:$4 sm:$0xff]  }
 0x5b2   : > { %4272 = vmatprep.subr.bf16.mxu1 %v18467_v54 }
 0x5b4   : > { %4040 = vmatmul.mubr.bf16.gmra.mrb[224].mxu1 %v14174_v2  ;;  %v14225_v2 = vld [vmem:[%s14690_s22 + $0x3e0] ss:$16 sps:$4 sm:$0xff]  }
 0x5b5   : > { %4273 = vmatpush1.bf16.msra.mxu1 %v18535_v25  ;;  %4047 = vmatprep.mubr.bf16.mxu1 %v14175_v13  ;;  %v14228_v25 = vld [vmem:[%s14690_s22 + $0x2c] ss:$16 sps:$4 sm:$0xff]  }
 0x5b6   : > { %4274 = vmatprep.subr.bf16.mxu1 %v18467_v54  ;;  %v14229_v13 = vld [vmem:[%s18432_s7 + $0x8] sm:$0xff]  }
 0x5b9   : > { %4275 = vmatpush1.bf16.msra.mxu1 %v18538_v9  ;;  %v14232_v9 = vld [vmem:[%s14690_s22 + $0x4c] ss:$16 sps:$4 sm:$0xff]  }
 0x5ba   : > { %4276 = vmatprep.subr.bf16.mxu1 %v18467_v54 }
 0x5bc   : > { %4048 = vmatmul.mubr.bf16.gmra.mrb[228].mxu1 %v14176_v23  ;;  %v14233_v23 = vld [vmem:[%s18432_s7 + $0x18] sm:$0xff]  }
 0x5bd   : > { %4277 = vmatpush1.bf16.msra.mxu1 %v18541_v33  ;;  %4055 = vmatprep.mubr.bf16.mxu1 %v14177_v29  ;;  %v14236_v33 = vld [vmem:[%s14690_s22 + $0x6c] ss:$16 sps:$4 sm:$0xff]  }
 0x5be   : > { %4278 = vmatprep.subr.bf16.mxu1 %v18467_v54  ;;  %v14237_v29 = vld [vmem:[%s18432_s7 + $0x28] sm:$0xff]  }
 0x5c1   : > { %4279 = vmatpush1.bf16.msra.mxu1 %v18544_v27  ;;  %v14240_v27 = vld [vmem:[%s14690_s22 + $0x8c] ss:$16 sps:$4 sm:$0xff]  }
 0x5c2   : > { %11799 = vmatprep.subr.bf16.mxu1 %v15985_v4 }
 0x5c4   : > { %4056 = vmatmul.mubr.bf16.gmra.mrb[232].mxu1 %v14179_v12  ;;  %v14242_v12 = vld [vmem:[%s14690_s22 + $0x88] ss:$16 sps:$4 sm:$0xff]  }
 0x5c5   : > { %4063 = vmatprep.mubr.bf16.mxu1 %v14180_v42  ;;  %v14243_v42 = vld [vmem:[%s14690_s22 + $0xac] ss:$16 sps:$4 sm:$0xff]  }
 0x5cc   : > { %4064 = vmatmul.mubr.bf16.gmra.mrb[236].mxu1 %v14181_v10  ;;  %v14244_v10 = vld [vmem:[%s14690_s22 + $0xa8] ss:$16 sps:$4 sm:$0xff]  }
 0x5cd   : > { %4071 = vmatprep.mubr.bf16.mxu1 %v14182_v53  ;;  %v14245_v53 = vld [vmem:[%s14690_s22 + $0xcc] ss:$16 sps:$4 sm:$0xff]  }
 0x5d4   : > { %4072 = vmatmul.mubr.bf16.gmra.mrb[240].mxu1 %v14183_v55  ;;  %v14246_v55 = vld [vmem:[%s14690_s22 + $0xc8] ss:$16 sps:$4 sm:$0xff]  }
 0x5d5   : > { %4079 = vmatprep.mubr.bf16.mxu1 %v14184_v34  ;;  %v14247_v34 = vld [vmem:[%s14690_s22 + $0xec] ss:$16 sps:$4 sm:$0xff]  }
 0x5dc   : > { %4080 = vmatmul.mubr.bf16.gmra.mrb[244].mxu1 %v14185_v1  ;;  %v14248_v1 = vld [vmem:[%s14690_s22 + $0xe8] ss:$16 sps:$4 sm:$0xff]  }
 0x5dd   : > { %4087 = vmatprep.mubr.bf16.mxu1 %v14186_v5  ;;  %v14249_v5 = vld [vmem:[%s14690_s22 + $0x10c] ss:$16 sps:$4 sm:$0xff]  }
 0x5e4   : > { %4088 = vmatmul.mubr.bf16.gmra.mrb[248].mxu1 %v14187_v24  ;;  %v14250_v24 = vld [vmem:[%s14690_s22 + $0x108] ss:$16 sps:$4 sm:$0xff]  }
 0x5e5   : > { %4095 = vmatprep.mubr.bf16.mxu1 %v14188_v22  ;;  %v14251_v22 = vld [vmem:[%s14690_s22 + $0x12c] ss:$16 sps:$4 sm:$0xff]  }
 0x5ec   : > { %4096 = vmatmul.mubr.bf16.gmra.mrb[252].mxu1 %v14189_v44  ;;  %v14252_v44 = vld [vmem:[%s14690_s22 + $0x128] ss:$16 sps:$4 sm:$0xff]  }
 0x5ed   : > { %4103 = vmatprep.mubr.bf16.mxu1 %v14190_v19  ;;  %v14253_v19 = vld [vmem:[%s14690_s22 + $0x14c] ss:$16 sps:$4 sm:$0xff]  }
 0x5f4   : > { %4104 = vmatmul.mubr.bf16.gmra.mrb[0].mxu1 %v14191_v21  ;;  %v14254_v21 = vld [vmem:[%s14690_s22 + $0x148] ss:$16 sps:$4 sm:$0xff]  }
 0x5f5   : > { %4111 = vmatprep.mubr.bf16.mxu1 %v14192_v57  ;;  %v14255_v57 = vld [vmem:[%s14690_s22 + $0x16c] ss:$16 sps:$4 sm:$0xff]  }
 0x5fc   : > { %4112 = vmatmul.mubr.bf16.gmra.mrb[4].mxu1 %v14193_v59  ;;  %v14256_v59 = vld [vmem:[%s14690_s22 + $0x168] ss:$16 sps:$4 sm:$0xff]  }
 0x5fd   : > { %4119 = vmatprep.mubr.bf16.mxu1 %v14194_v18  ;;  %v14257_v18 = vld [vmem:[%s14690_s22 + $0x18c] ss:$16 sps:$4 sm:$0xff]  }
 0x604   : > { %4120 = vmatmul.mubr.bf16.gmra.mrb[8].mxu1 %v14195_v30  ;;  %v14258_v30 = vld [vmem:[%s14690_s22 + $0x188] ss:$16 sps:$4 sm:$0xff]  }
 0x605   : > { %4127 = vmatprep.mubr.bf16.mxu1 %v14196_v6  ;;  %v14259_v6 = vld [vmem:[%s14690_s22 + $0x1ac] ss:$16 sps:$4 sm:$0xff]  }
 0x60c   : > { %4128 = vmatmul.mubr.bf16.gmra.mrb[12].mxu1 %v14197_v49  ;;  %v14260_v49 = vld [vmem:[%s14690_s22 + $0x1a8] ss:$16 sps:$4 sm:$0xff]  }
 0x60d   : > { %4135 = vmatprep.mubr.bf16.mxu1 %v14198_v52  ;;  %v14261_v52 = vld [vmem:[%s14690_s22 + $0x1cc] ss:$16 sps:$4 sm:$0xff]  }
 0x614   : > { %4136 = vmatmul.mubr.bf16.gmra.mrb[16].mxu1 %v14199_v3  ;;  %v14262_v3 = vld [vmem:[%s14690_s22 + $0x1c8] ss:$16 sps:$4 sm:$0xff]  }
 0x615   : > { %4143 = vmatprep.mubr.bf16.mxu1 %v14200_v8  ;;  %v14263_v8 = vld [vmem:[%s14690_s22 + $0x1ec] ss:$16 sps:$4 sm:$0xff]  }
 0x61c   : > { %4144 = vmatmul.mubr.bf16.gmra.mrb[20].mxu1 %v14201_v60  ;;  %v14264_v60 = vld [vmem:[%s14690_s22 + $0x1e8] ss:$16 sps:$4 sm:$0xff]  }
 0x61d   : > { %4151 = vmatprep.mubr.bf16.mxu1 %v14202_v40  ;;  %v14265_v40 = vld [vmem:[%s14690_s22 + $0x20c] ss:$16 sps:$4 sm:$0xff]  }
 0x624   : > { %4152 = vmatmul.mubr.bf16.gmra.mrb[24].mxu1 %v14203_v36  ;;  %v14266_v36 = vld [vmem:[%s14690_s22 + $0x208] ss:$16 sps:$4 sm:$0xff]  }
 0x625   : > { %4159 = vmatprep.mubr.bf16.mxu1 %v14204_v51  ;;  %v14267_v51 = vld [vmem:[%s14690_s22 + $0x22c] ss:$16 sps:$4 sm:$0xff]  }
 0x62c   : > { %4160 = vmatmul.mubr.bf16.gmra.mrb[28].mxu1 %v14205_v56  ;;  %v14268_v56 = vld [vmem:[%s14690_s22 + $0x228] ss:$16 sps:$4 sm:$0xff]  }
 0x62d   : > { %4167 = vmatprep.mubr.bf16.mxu1 %v14206_v15  ;;  %v14269_v15 = vld [vmem:[%s14690_s22 + $0x24c] ss:$16 sps:$4 sm:$0xff]  }
 0x634   : > { %4168 = vmatmul.mubr.bf16.gmra.mrb[32].mxu1 %v14207_v39  ;;  %v14270_v39 = vld [vmem:[%s14690_s22 + $0x248] ss:$16 sps:$4 sm:$0xff]  }
 0x635   : > { %4175 = vmatprep.mubr.bf16.mxu1 %v14208_v16  ;;  %v14271_v16 = vld [vmem:[%s14690_s22 + $0x26c] ss:$16 sps:$4 sm:$0xff]  }
 0x63c   : > { %4176 = vmatmul.mubr.bf16.gmra.mrb[36].mxu1 %v14209_v47  ;;  %v14272_v47 = vld [vmem:[%s14690_s22 + $0x268] ss:$16 sps:$4 sm:$0xff]  }
 0x63d   : > { %4183 = vmatprep.mubr.bf16.mxu1 %v14210_v50  ;;  %v14273_v50 = vld [vmem:[%s14690_s22 + $0x28c] ss:$16 sps:$4 sm:$0xff]  }
 0x644   : > { %4184 = vmatmul.mubr.bf16.gmra.mrb[40].mxu1 %v14211_v45  ;;  %v14274_v45 = vld [vmem:[%s14690_s22 + $0x288] ss:$16 sps:$4 sm:$0xff]  }
 0x645   : > { %4191 = vmatprep.mubr.bf16.mxu1 %v14212_v63  ;;  %v14275_v63 = vld [vmem:[%s14690_s22 + $0x2ac] ss:$16 sps:$4 sm:$0xff]  }
 0x64c   : > { %4192 = vmatmul.mubr.bf16.gmra.mrb[44].mxu1 %v14213_v14  ;;  %v14276_v14 = vld [vmem:[%s14690_s22 + $0x2a8] ss:$16 sps:$4 sm:$0xff]  }
 0x64d   : > { %4199 = vmatprep.mubr.bf16.mxu1 %v14214_v37  ;;  %v14277_v37 = vld [vmem:[%s14690_s22 + $0x2cc] ss:$16 sps:$4 sm:$0xff]  }
 0x654   : > { %4200 = vmatmul.mubr.bf16.gmra.mrb[48].mxu1 %v14215_v61  ;;  %v14278_v61 = vld [vmem:[%s14690_s22 + $0x2c8] ss:$16 sps:$4 sm:$0xff]  }
 0x655   : > { %4207 = vmatprep.mubr.bf16.mxu1 %v14216_v7  ;;  %v14279_v7 = vld [vmem:[%s14690_s22 + $0x2ec] ss:$16 sps:$4 sm:$0xff]  }
 0x65c   : > { %4208 = vmatmul.mubr.bf16.gmra.mrb[52].mxu1 %v14217_v46  ;;  %v14280_v46 = vld [vmem:[%s14690_s22 + $0x2e8] ss:$16 sps:$4 sm:$0xff]  }
 0x65d   : > { %4215 = vmatprep.mubr.bf16.mxu1 %v14218_v31  ;;  %v14281_v31 = vld [vmem:[%s14690_s22 + $0x30c] ss:$16 sps:$4 sm:$0xff]  }
 0x664   : > { %4216 = vmatmul.mubr.bf16.gmra.mrb[56].mxu1 %v14219_v32  ;;  %v14282_v32 = vld [vmem:[%s14690_s22 + $0x308] ss:$16 sps:$4 sm:$0xff]  }
 0x665   : > { %4223 = vmatprep.mubr.bf16.mxu1 %v14220_v26  ;;  %v14283_v26 = vld [vmem:[%s14690_s22 + $0x32c] ss:$16 sps:$4 sm:$0xff]  }
 0x66c   : > { %4224 = vmatmul.mubr.bf16.gmra.mrb[60].mxu1 %v14221_v41  ;;  %v14284_v41 = vld [vmem:[%s14690_s22 + $0x328] ss:$16 sps:$4 sm:$0xff]  }
 0x66d   : > { %4231 = vmatprep.mubr.bf16.mxu1 %v14222_v38  ;;  %v14285_v38 = vld [vmem:[%s14690_s22 + $0x34c] ss:$16 sps:$4 sm:$0xff]  }
 0x674   : > { %4232 = vmatmul.mubr.bf16.gmra.mrb[64].mxu1 %v14223_v17  ;;  %v14286_v17 = vld [vmem:[%s14690_s22 + $0x348] ss:$16 sps:$4 sm:$0xff]  }
 0x675   : > { %4239 = vmatprep.mubr.bf16.mxu1 %v14224_v11  ;;  %v16114_v11 = vld [vmem:[%s18428_s3 + $0x1] ss:$0 sm:$0xff] }
 0x67c   : > { %4240 = vmatmul.mubr.bf16.gmra.mrb[68].mxu1 %v14225_v2  ;;  %v14287_v2 = vld [vmem:[%s14690_s22 + $0x36c] ss:$16 sps:$4 sm:$0xff]  }
 0x67d   : > { %4280 = vmatprep.mubr.bf16.mxu1 %v14226_v35 }
 0x684   : > { %4281 = vmatmul.mubr.bf16.vlgmr.msra.gmra.mrb[200].mxu1 %v14227_v48 }
 0x685   : > { %4288 = vmatprep.mubr.bf16.mxu1 %v14228_v25  ;;  %11800 = vmatpush3.bf16.msra.mxu1 %v15985_v4  ;;  %v14241_v4 = vld [vmem:[%s18432_s7 + $0x38] sm:$0xff]  }
 0x686   : > { %11801 = vmatprep.subr.bf16.mxu1 %v14229_v13 }
 0x689   : > { %11802 = vmatpush3.bf16.msra.mxu1 %v14229_v13 }
 0x68a   : > { %11803 = vmatprep.subr.bf16.mxu1 %v14230_v28 }
 0x68c   : > { %4289 = vmatmul.mubr.bf16.gmra.mrb[204].mxu1 %v14231_v62 }
 0x68d   : > { %4296 = vmatprep.mubr.bf16.mxu1 %v14232_v9  ;;  %11804 = vmatpush3.bf16.msra.mxu1 %v14230_v28 }
 0x68e   : > { %11805 = vmatprep.subr.bf16.mxu1 %v14233_v23 }
 0x691   : > { %11806 = vmatpush3.bf16.msra.mxu1 %v14233_v23  ;;  %v14288_v23 = vld [vmem:[%s14690_s22 + $0x368] ss:$16 sps:$4 sm:$0xff]  }
 0x692   : > { %11807 = vmatprep.subr.bf16.mxu1 %v14234_v0 }
 0x694   : > { %4297 = vmatmul.mubr.bf16.gmra.mrb[208].mxu1 %v14235_v43 }
 0x695   : > { %4304 = vmatprep.mubr.bf16.mxu1 %v14236_v33  ;;  %11808 = vmatpush3.bf16.msra.mxu1 %v14234_v0  ;;  %v14289_v33 = vld [vmem:[%s14690_s22 + $0x38c] ss:$16 sps:$4 sm:$0xff]  }
 0x696   : > { %11809 = vmatprep.subr.bf16.mxu1 %v14237_v29 }
 0x699   : > { %11810 = vmatpush3.bf16.msra.mxu1 %v14237_v29 }
 0x69a   : > { %11811 = vmatprep.subr.bf16.mxu1 %v14238_v58 }
 0x69c   : > { %4305 = vmatmul.mubr.bf16.gmra.mrb[212].mxu1 %v14239_v20 }
 0x69d   : > { %4312 = vmatprep.mubr.bf16.mxu1 %v14240_v27  ;;  %11812 = vmatpush3.bf16.msra.mxu1 %v14238_v58  ;;  %v13706_v58 = vld [vmem:[%s18427_s2 + $0x84] ss:$8 sps:$4 sm:$0xff]   ;;  %v13704_v27 = vld [vmem:[%s18427_s2 + $0x80] ss:$8 sps:$4 sm:$0xff]  }
 0x69e   : > { %11813 = vmatprep.subr.bf16.mxu1 %v14241_v4  ;;  %5114 = vmatprep.subr.bf16.mxu0 %v13706_v58 }
 0x69f   : > { %5115 = vmatpush1.bf16.msra.mxu0 %v13704_v27 }
 0x6a1   : > { %11814 = vmatpush3.bf16.msra.mxu1 %v14241_v4 }
 0x6a4   : > { %4313 = vmatmul.mubr.bf16.gmra.mrb[216].mxu1 %v14242_v12 }
 0x6a5   : > { %4320 = vmatprep.mubr.bf16.mxu1 %v14243_v42 }
 0x6ac   : > { %4321 = vmatmul.mubr.bf16.gmra.mrb[220].mxu1 %v14244_v10 }
 0x6ad   : > { %4328 = vmatprep.mubr.bf16.mxu1 %v14245_v53 }
 0x6b4   : > { %4329 = vmatmul.mubr.bf16.gmra.mrb[224].mxu1 %v14246_v55 }
 0x6b5   : > { %4336 = vmatprep.mubr.bf16.mxu1 %v14247_v34  ;;  %v13709_v34 = vld [vmem:[%s18427_s2 + $0x94] ss:$8 sps:$4 sm:$0xff]  }
 0x6b6   : > { %5116 = vmatprep.subr.bf16.mxu0 %v13709_v34 }
 0x6bc   : > { %4337 = vmatmul.mubr.bf16.gmra.mrb[228].mxu1 %v14248_v1  ;;  %v13707_v1 = vld [vmem:[%s18427_s2 + $0x90] ss:$8 sps:$4 sm:$0xff]  }
 0x6bd   : > { %4344 = vmatprep.mubr.bf16.mxu1 %v14249_v5  ;;  %v14290_v5 = vld [vmem:[%s14690_s22 + $0x388] ss:$16 sps:$4 sm:$0xff]   ;;  %5117 = vmatpush1.bf16.msra.mxu0 %v13707_v1 }
 0x6c4   : > { %4345 = vmatmul.mubr.bf16.gmra.mrb[232].mxu1 %v14250_v24 }
 0x6c5   : > { %4352 = vmatprep.mubr.bf16.mxu1 %v14251_v22 }
 0x6cc   : > { %4353 = vmatmul.mubr.bf16.gmra.mrb[236].mxu1 %v14252_v44  ;;  %v14291_v44 = vld [vmem:[%s14690_s22 + $0x3ac] ss:$16 sps:$4 sm:$0xff]  }
 0x6cd   : > { %4360 = vmatprep.mubr.bf16.mxu1 %v14253_v19 }
 0x6d4   : > { %4361 = vmatmul.mubr.bf16.gmra.mrb[240].mxu1 %v14254_v21  ;;  %v13712_v21 = vld [vmem:[%s18427_s2 + $0xa4] ss:$8 sps:$4 sm:$0xff]  }
 0x6d5   : > { %4368 = vmatprep.mubr.bf16.mxu1 %v14255_v57  ;;  %5118 = vmatprep.subr.bf16.mxu0 %v13712_v21 }
 0x6dc   : > { %4369 = vmatmul.mubr.bf16.gmra.mrb[244].mxu1 %v14256_v59  ;;  %v13710_v59 = vld [vmem:[%s18427_s2 + $0xa0] ss:$8 sps:$4 sm:$0xff]  }
 0x6dd   : > { %4376 = vmatprep.mubr.bf16.mxu1 %v14257_v18  ;;  %5119 = vmatpush1.bf16.msra.mxu0 %v13710_v59 }
 0x6e4   : > { %4377 = vmatmul.mubr.bf16.gmra.mrb[248].mxu1 %v14258_v30 }
 0x6e5   : > { %4384 = vmatprep.mubr.bf16.mxu1 %v14259_v6 }
 0x6ec   : > { %4385 = vmatmul.mubr.bf16.gmra.mrb[252].mxu1 %v14260_v49 }
 0x6ed   : > { %4392 = vmatprep.mubr.bf16.mxu1 %v14261_v52 }
 0x6f4   : > { %4393 = vmatmul.mubr.bf16.gmra.mrb[0].mxu1 %v14262_v3 }
 0x6f5   : > { %4400 = vmatprep.mubr.bf16.mxu1 %v14263_v8  ;;  %v13715_v8 = vld [vmem:[%s18427_s2 + $0xb4] ss:$8 sps:$4 sm:$0xff]  }
 0x6f6   : > { %5120 = vmatprep.subr.bf16.mxu0 %v13715_v8 }
 0x6fc   : > { %4401 = vmatmul.mubr.bf16.gmra.mrb[4].mxu1 %v14264_v60  ;;  %v13713_v60 = vld [vmem:[%s18427_s2 + $0xb0] ss:$8 sps:$4 sm:$0xff]  }
 0x6fd   : > { %4408 = vmatprep.mubr.bf16.mxu1 %v14265_v40  ;;  %v14292_v40 = vld [vmem:[%s14690_s22 + $0x3a8] ss:$16 sps:$4 sm:$0xff]   ;;  %5121 = vmatpush1.bf16.msra.mxu0 %v13713_v60 }
 0x704   : > { %4409 = vmatmul.mubr.bf16.gmra.mrb[8].mxu1 %v14266_v36 }
 0x705   : > { %4416 = vmatprep.mubr.bf16.mxu1 %v14267_v51 }
 0x70c   : > { %4417 = vmatmul.mubr.bf16.gmra.mrb[12].mxu1 %v14268_v56  ;;  %v14293_v56 = vld [vmem:[%s14690_s22 + $0x3cc] ss:$16 sps:$4 sm:$0xff]  }
 0x70d   : > { %4424 = vmatprep.mubr.bf16.mxu1 %v14269_v15 }
 0x714   : > { %4425 = vmatmul.mubr.bf16.gmra.mrb[16].mxu1 %v14270_v39  ;;  %v13718_v39 = vld [vmem:[%s18427_s2 + $0xc4] ss:$8 sps:$4 sm:$0xff]  }
 0x715   : > { %4432 = vmatprep.mubr.bf16.mxu1 %v14271_v16  ;;  %5122 = vmatprep.subr.bf16.mxu0 %v13718_v39 }
 0x71c   : > { %4433 = vmatmul.mubr.bf16.gmra.mrb[20].mxu1 %v14272_v47  ;;  %v13716_v47 = vld [vmem:[%s18427_s2 + $0xc0] ss:$8 sps:$4 sm:$0xff]  }
 0x71d   : > { %4440 = vmatprep.mubr.bf16.mxu1 %v14273_v50  ;;  %5123 = vmatpush1.bf16.msra.mxu0 %v13716_v47 }
 0x724   : > { %4441 = vmatmul.mubr.bf16.gmra.mrb[24].mxu1 %v14274_v45 }
 0x725   : > { %4448 = vmatprep.mubr.bf16.mxu1 %v14275_v63 }
 0x72c   : > { %4449 = vmatmul.mubr.bf16.gmra.mrb[28].mxu1 %v14276_v14 }
 0x72d   : > { %4456 = vmatprep.mubr.bf16.mxu1 %v14277_v37 }
 0x734   : > { %4457 = vmatmul.mubr.bf16.gmra.mrb[32].mxu1 %v14278_v61 }
 0x735   : > { %4464 = vmatprep.mubr.bf16.mxu1 %v14279_v7  ;;  %v13721_v7 = vld [vmem:[%s18427_s2 + $0xd4] ss:$8 sps:$4 sm:$0xff]  }
 0x736   : > { %5124 = vmatprep.subr.bf16.mxu0 %v13721_v7 }
 0x73c   : > { %4465 = vmatmul.mubr.bf16.gmra.mrb[36].mxu1 %v14280_v46  ;;  %v13719_v46 = vld [vmem:[%s18427_s2 + $0xd0] ss:$8 sps:$4 sm:$0xff]  }
 0x73d   : > { %4472 = vmatprep.mubr.bf16.mxu1 %v14281_v31  ;;  %v14294_v31 = vld [vmem:[%s14690_s22 + $0x3c8] ss:$16 sps:$4 sm:$0xff]   ;;  %5125 = vmatpush1.bf16.msra.mxu0 %v13719_v46 }
 0x744   : > { %4473 = vmatmul.mubr.bf16.gmra.mrb[40].mxu1 %v14282_v32 }
 0x745   : > { %4480 = vmatprep.mubr.bf16.mxu1 %v14283_v26 }
 0x74c   : > { %4481 = vmatmul.mubr.bf16.gmra.mrb[44].mxu1 %v14284_v41  ;;  %v14295_v41 = vld [vmem:[%s14690_s22 + $0x3ec] ss:$16 sps:$4 sm:$0xff]  }
 0x74d   : > { %4488 = vmatprep.mubr.bf16.mxu1 %v14285_v38 }
 0x754   : > { %4489 = vmatmul.mubr.bf16.gmra.mrb[48].mxu1 %v14286_v17  ;;  %v13724_v17 = vld [vmem:[%s18427_s2 + $0xe4] ss:$8 sps:$4 sm:$0xff]  }
 0x755   : > { %4496 = vmatprep.mubr.bf16.mxu1 %v14287_v2  ;;  %5126 = vmatprep.subr.bf16.mxu0 %v13724_v17 }
 0x757   : > { %v4282_v35 = vpop.f32.mrb[200].mxu1 }
 0x758   : > { %v12535_v48 = vadd.f32 %v16114_v11, %v4282_v35  ;;  %v4284_v25 = vpop.f32.mrb[201].mxu1  ;;  %v13722_v35 = vld [vmem:[%s18427_s2 + $0xe0] ss:$8 sps:$4 sm:$0xff]  }
 0x759   : > { %v4285_v13 = vpop.f32.mrb[202].mxu1  ;;  %5127 = vmatpush1.bf16.msra.mxu0 %v13722_v35 }
 0x75a   : > { %v12536_v28 = vadd.f32 %v16114_v11, %v4285_v13  ;;  %v4287_v62 = vpop.f32.mrb[203].mxu1  ;;  %v16119_v9 = vmax.f32 %v12535_v48, 0.0 }
 0x75c   : > { %4497 = vmatmul.mubr.bf16.gmra.mrb[52].mxu1 %v14288_v23  ;;  %v4601_v0 = vmul.f32 %v16119_v9, %v16119_v9  ;;  %v16124_v43 = vmax.f32 %v12536_v28, 0.0 }
 0x75d   : > { %4504 = vmatprep.mubr.bf16.mxu1 %v14289_v33  ;;  %v13725_v33 = vld [vmem:[%s18427_s2 + $0xf0] ss:$8 sps:$4 sm:$0xff]  }
 0x75e   : > { %4665 = vadd.xlane.f32.xlu0 %v4601_v0  ;;  %v4602_v29 = vmul.f32 %v16124_v43, %v16124_v43  ;;  %v13727_v0 = vld [vmem:[%s18427_s2 + $0xf4] ss:$8 sps:$4 sm:$0xff]  }
 0x75f   : > { %v4290_v20 = vpop.f32.mrb[204].mxu1  ;;  %5128 = vmatprep.subr.bf16.mxu0 %v13727_v0 }
 0x760   : > { %v12537_v4 = vadd.f32 %v16114_v11, %v4290_v20  ;;  %v4292_v12 = vpop.f32.mrb[205].mxu1  ;;  %4667 = vadd.xlane.f32.xlu1 %v4602_v29  ;;  %v14296_v29 = vld [vmem:[%s14690_s22 + $0x3e8] ss:$16 sps:$4 sm:$0xff]   ;;  %5129 = vmatpush1.bf16.msra.mxu0 %v13725_v33 }
 0x761   : > { %v4293_v42 = vpop.f32.mrb[206].mxu1 }
 0x762   : > { %v12538_v10 = vadd.f32 %v16114_v11, %v4293_v42  ;;  %v4295_v53 = vpop.f32.mrb[207].mxu1  ;;  %v16137_v55 = vmax.f32 %v12537_v4, 0.0  ;;  %v16227_v4 = vld [vmem:[%s18430_s5] sm:$0xff]  }
 0x763   : > { %11719 = vmatprep.subr.bf16.mxu0 %v16227_v4 }
 0x764   : > { %4505 = vmatmul.mubr.bf16.gmra.mrb[56].mxu1 %v14290_v5  ;;  %v4603_v24 = vmul.f32 %v16137_v55, %v16137_v55  ;;  %v16148_v22 = vmax.f32 %v12538_v10, 0.0 }
 0x765   : > { %4512 = vmatprep.mubr.bf16.mxu1 %v14291_v44 }
 0x766   : > { %4669 = vadd.xlane.f32.xlu0 %v4603_v24  ;;  %v4604_v19 = vmul.f32 %v16148_v22, %v16148_v22 }
 0x767   : > { %v4298_v57 = vpop.f32.mrb[208].mxu1 }
 0x768   : > { %v12539_v18 = vadd.f32 %v16114_v11, %v4298_v57  ;;  %v4300_v30 = vpop.f32.mrb[209].mxu1  ;;  %4671 = vadd.xlane.f32.xlu1 %v4604_v19 }
 0x769   : > { %v4301_v6 = vpop.f32.mrb[210].mxu1 }
 0x76a   : > { %v12540_v49 = vadd.f32 %v16114_v11, %v4301_v6  ;;  %v4303_v52 = vpop.f32.mrb[211].mxu1  ;;  %v16161_v3 = vmax.f32 %v12539_v18, 0.0 }
 0x76c   : > { %4513 = vmatmul.mubr.bf16.gmra.mrb[60].mxu1 %v14292_v40  ;;  %v4605_v36 = vmul.f32 %v16161_v3, %v16161_v3  ;;  %v16172_v51 = vmax.f32 %v12540_v49, 0.0 }
 0x76d   : > { %4520 = vmatprep.mubr.bf16.mxu1 %v14293_v56 }
 0x76e   : > { %4673 = vadd.xlane.f32.xlu0 %v4605_v36  ;;  %v4606_v15 = vmul.f32 %v16172_v51, %v16172_v51 }
 0x76f   : > { %v4306_v16 = vpop.f32.mrb[212].mxu1 }
 0x770   : > { %v12541_v50 = vadd.f32 %v16114_v11, %v4306_v16  ;;  %v4308_v45 = vpop.f32.mrb[213].mxu1  ;;  %4675 = vadd.xlane.f32.xlu1 %v4606_v15 }
 0x771   : > { %v4309_v63 = vpop.f32.mrb[214].mxu1 }
 0x772   : > { %v12542_v14 = vadd.f32 %v16114_v11, %v4309_v63  ;;  %v4311_v37 = vpop.f32.mrb[215].mxu1  ;;  %v16185_v61 = vmax.f32 %v12541_v50, 0.0 }
 0x774   : > { %4521 = vmatmul.mubr.bf16.gmra.mrb[64].mxu1 %v14294_v31  ;;  %v4607_v32 = vmul.f32 %v16185_v61, %v16185_v61  ;;  %v16196_v26 = vmax.f32 %v12542_v14, 0.0 }
 0x775   : > { %4528 = vmatprep.mubr.bf16.mxu1 %v14295_v41 }
 0x776   : > { %4677 = vadd.xlane.f32.xlu0 %v4607_v32  ;;  %v4608_v38 = vmul.f32 %v16196_v26, %v16196_v26 }
 0x777   : > { %v4314_v2 = vpop.f32.mrb[216].mxu1 }
 0x778   : > { %v12543_v48 = vadd.f32 %v16114_v11, %v4314_v2  ;;  %v4316_v25 = vpop.f32.mrb[217].mxu1  ;;  %4679 = vadd.xlane.f32.xlu1 %v4608_v38 }
 0x779   : > { %v4317_v13 = vpop.f32.mrb[218].mxu1 }
 0x77a   : > { %v12544_v28 = vadd.f32 %v16114_v11, %v4317_v13  ;;  %v4319_v62 = vpop.f32.mrb[219].mxu1  ;;  %v16209_v23 = vmax.f32 %v12543_v48, 0.0 }
 0x77c   : > { %4529 = vmatmul.mubr.bf16.gmra.mrb[68].mxu1 %v14296_v29  ;;  %v4609_v58 = vmul.f32 %v16209_v23, %v16209_v23  ;;  %v16220_v20 = vmax.f32 %v12544_v28, 0.0 }
 0x77e   : > { %4681 = vadd.xlane.f32.xlu0 %v4609_v58  ;;  %v4610_v27 = vmul.f32 %v16220_v20, %v16220_v20 }
 0x77f   : > { %v4322_v12 = vpop.f32.mrb[220].mxu1 }
 0x780   : > { %v12545_v42 = vadd.f32 %v16114_v11, %v4322_v12  ;;  %v4324_v10 = vpop.f32.mrb[221].mxu1  ;;  %4683 = vadd.xlane.f32.xlu1 %v4610_v27 }
 0x781   : > { %v4325_v53 = vpop.f32.mrb[222].mxu1 }
 0x782   : > { %v12546_v34 = vadd.f32 %v16114_v11, %v4325_v53  ;;  %v4327_v1 = vpop.f32.mrb[223].mxu1  ;;  %v16232_v5 = vmax.f32 %v12545_v42, 0.0 }
 0x784   : > { %v4611_v24 = vmul.f32 %v16232_v5, %v16232_v5  ;;  %v16236_v44 = vmax.f32 %v12546_v34, 0.0 }
 0x786   : > { %4685 = vadd.xlane.f32.xlu0 %v4611_v24  ;;  %v4612_v19 = vmul.f32 %v16236_v44, %v16236_v44 }
 0x787   : > { %v4330_v21 = vpop.f32.mrb[224].mxu1 }
 0x788   : > { %v12547_v57 = vadd.f32 %v16114_v11, %v4330_v21  ;;  %v4332_v59 = vpop.f32.mrb[225].mxu1  ;;  %4687 = vadd.xlane.f32.xlu1 %v4612_v19 }
 0x789   : > { %v4333_v18 = vpop.f32.mrb[226].mxu1 }
 0x78a   : > { %v12548_v30 = vadd.f32 %v16114_v11, %v4333_v18  ;;  %v4335_v6 = vpop.f32.mrb[227].mxu1  ;;  %v16242_v49 = vmax.f32 %v12547_v57, 0.0 }
 0x78c   : > { %v4613_v52 = vmul.f32 %v16242_v49, %v16242_v49  ;;  %v16246_v8 = vmax.f32 %v12548_v30, 0.0 }
 0x78e   : > { %4689 = vadd.xlane.f32.xlu0 %v4613_v52  ;;  %v4614_v60 = vmul.f32 %v16246_v8, %v16246_v8 }
 0x78f   : > { %v4338_v40 = vpop.f32.mrb[228].mxu1 }
 0x790   : > { %v12549_v36 = vadd.f32 %v16114_v11, %v4338_v40  ;;  %v4340_v56 = vpop.f32.mrb[229].mxu1  ;;  %4691 = vadd.xlane.f32.xlu1 %v4614_v60 }
 0x791   : > { %v4341_v15 = vpop.f32.mrb[230].mxu1 }
 0x792   : > { %v12550_v39 = vadd.f32 %v16114_v11, %v4341_v15  ;;  %v4343_v16 = vpop.f32.mrb[231].mxu1  ;;  %v16252_v47 = vmax.f32 %v12549_v36, 0.0 }
 0x794   : > { %v4615_v50 = vmul.f32 %v16252_v47, %v16252_v47  ;;  %v16256_v45 = vmax.f32 %v12550_v39, 0.0 }
 0x796   : > { %4693 = vadd.xlane.f32.xlu0 %v4615_v50  ;;  %v4616_v63 = vmul.f32 %v16256_v45, %v16256_v45 }
 0x797   : > { %v4346_v14 = vpop.f32.mrb[232].mxu1 }
 0x798   : > { %v12551_v37 = vadd.f32 %v16114_v11, %v4346_v14  ;;  %v4348_v7 = vpop.f32.mrb[233].mxu1  ;;  %4695 = vadd.xlane.f32.xlu1 %v4616_v63 }
 0x799   : > { %v4349_v46 = vpop.f32.mrb[234].mxu1 }
 0x79a   : > { %v12552_v31 = vadd.f32 %v16114_v11, %v4349_v46  ;;  %v4351_v32 = vpop.f32.mrb[235].mxu1  ;;  %v16262_v41 = vmax.f32 %v12551_v37, 0.0 }
 0x79c   : > { %v4617_v38 = vmul.f32 %v16262_v41, %v16262_v41  ;;  %v16266_v17 = vmax.f32 %v12552_v31, 0.0 }
 0x79e   : > { %4697 = vadd.xlane.f32.xlu0 %v4617_v38  ;;  %v4618_v2 = vmul.f32 %v16266_v17, %v16266_v17 }
 0x79f   : > { %v4354_v35 = vpop.f32.mrb[236].mxu1 }
 0x7a0   : > { %v12553_v48 = vadd.f32 %v16114_v11, %v4354_v35  ;;  %v4356_v25 = vpop.f32.mrb[237].mxu1  ;;  %4699 = vadd.xlane.f32.xlu1 %v4618_v2 }
 0x7a1   : > { %v4357_v13 = vpop.f32.mrb[238].mxu1 }
 0x7a2   : > { %v12554_v28 = vadd.f32 %v16114_v11, %v4357_v13  ;;  %v4359_v62 = vpop.f32.mrb[239].mxu1  ;;  %v16272_v0 = vmax.f32 %v12553_v48, 0.0 }
 0x7a4   : > { %v4619_v33 = vmul.f32 %v16272_v0, %v16272_v0  ;;  %v16276_v29 = vmax.f32 %v12554_v28, 0.0 }
 0x7a6   : > { %4701 = vadd.xlane.f32.xlu0 %v4619_v33  ;;  %v4620_v58 = vmul.f32 %v16276_v29, %v16276_v29 }
 0x7a7   : > { %v4362_v27 = vpop.f32.mrb[240].mxu1 }
 0x7a8   : > { %v12555_v12 = vadd.f32 %v16114_v11, %v4362_v27  ;;  %v4364_v42 = vpop.f32.mrb[241].mxu1  ;;  %4703 = vadd.xlane.f32.xlu1 %v4620_v58 }
 0x7a9   : > { %v4365_v10 = vpop.f32.mrb[242].mxu1 }
 0x7aa   : > { %v12556_v53 = vadd.f32 %v16114_v11, %v4365_v10  ;;  %v4367_v34 = vpop.f32.mrb[243].mxu1  ;;  %v16282_v1 = vmax.f32 %v12555_v12, 0.0 }
 0x7ac   : > { %v4621_v24 = vmul.f32 %v16282_v1, %v16282_v1  ;;  %v16286_v19 = vmax.f32 %v12556_v53, 0.0 }
 0x7ae   : > { %4705 = vadd.xlane.f32.xlu0 %v4621_v24  ;;  %v4622_v21 = vmul.f32 %v16286_v19, %v16286_v19 }
 0x7af   : > { %v4370_v57 = vpop.f32.mrb[244].mxu1 }
 0x7b0   : > { %v12557_v59 = vadd.f32 %v16114_v11, %v4370_v57  ;;  %v4372_v18 = vpop.f32.mrb[245].mxu1  ;;  %4707 = vadd.xlane.f32.xlu1 %v4622_v21 }
 0x7b1   : > { %v4373_v30 = vpop.f32.mrb[246].mxu1 }
 0x7b2   : > { %v12558_v6 = vadd.f32 %v16114_v11, %v4373_v30  ;;  %v4375_v52 = vpop.f32.mrb[247].mxu1  ;;  %v16292_v60 = vmax.f32 %v12557_v59, 0.0 }
 0x7b4   : > { %v4623_v40 = vmul.f32 %v16292_v60, %v16292_v60  ;;  %v16296_v36 = vmax.f32 %v12558_v6, 0.0 }
 0x7b6   : > { %4709 = vadd.xlane.f32.xlu0 %v4623_v40  ;;  %v4624_v56 = vmul.f32 %v16296_v36, %v16296_v36 }
 0x7b7   : > { %v4378_v15 = vpop.f32.mrb[248].mxu1 }
 0x7b8   : > { %v12559_v39 = vadd.f32 %v16114_v11, %v4378_v15  ;;  %v4380_v16 = vpop.f32.mrb[249].mxu1  ;;  %4711 = vadd.xlane.f32.xlu1 %v4624_v56 }
 0x7b9   : > { %v4381_v50 = vpop.f32.mrb[250].mxu1 }
 0x7ba   : > { %v12560_v63 = vadd.f32 %v16114_v11, %v4381_v50  ;;  %v4383_v14 = vpop.f32.mrb[251].mxu1  ;;  %v16302_v37 = vmax.f32 %v12559_v39, 0.0 }
 0x7bc   : > { %v4625_v7 = vmul.f32 %v16302_v37, %v16302_v37  ;;  %v16306_v46 = vmax.f32 %v12560_v63, 0.0 }
 0x7be   : > { %4713 = vadd.xlane.f32.xlu0 %v4625_v7  ;;  %v4626_v31 = vmul.f32 %v16306_v46, %v16306_v46 }
 0x7bf   : > { %v4386_v32 = vpop.f32.mrb[252].mxu1 }
 0x7c0   : > { %v12561_v38 = vadd.f32 %v16114_v11, %v4386_v32  ;;  %v4388_v2 = vpop.f32.mrb[253].mxu1  ;;  %4715 = vadd.xlane.f32.xlu1 %v4626_v31 }
 0x7c1   : > { %v4389_v35 = vpop.f32.mrb[254].mxu1 }
 0x7c2   : > { %v12562_v48 = vadd.f32 %v16114_v11, %v4389_v35  ;;  %v4391_v25 = vpop.f32.mrb[255].mxu1  ;;  %v16312_v13 = vmax.f32 %v12561_v38, 0.0 }
 0x7c4   : > { %v4627_v28 = vmul.f32 %v16312_v13, %v16312_v13  ;;  %v16316_v62 = vmax.f32 %v12562_v48, 0.0 }
 0x7c6   : > { %4717 = vadd.xlane.f32.xlu0 %v4627_v28  ;;  %v4628_v33 = vmul.f32 %v16316_v62, %v16316_v62 }
 0x7c7   : > { %v4394_v58 = vpop.f32.mrb[0].mxu1 }
 0x7c8   : > { %v12563_v27 = vadd.f32 %v16114_v11, %v4394_v58  ;;  %v4396_v12 = vpop.f32.mrb[1].mxu1  ;;  %4719 = vadd.xlane.f32.xlu1 %v4628_v33 }
 0x7c9   : > { %v4397_v42 = vpop.f32.mrb[2].mxu1 }
 0x7ca   : > { %v12564_v10 = vadd.f32 %v16114_v11, %v4397_v42  ;;  %v4399_v53 = vpop.f32.mrb[3].mxu1  ;;  %v16322_v34 = vmax.f32 %v12563_v27, 0.0 }
 0x7cc   : > { %v4629_v24 = vmul.f32 %v16322_v34, %v16322_v34  ;;  %v16326_v21 = vmax.f32 %v12564_v10, 0.0 }
 0x7ce   : > { %4721 = vadd.xlane.f32.xlu0 %v4629_v24  ;;  %v4630_v57 = vmul.f32 %v16326_v21, %v16326_v21 }
 0x7cf   : > { %v4402_v59 = vpop.f32.mrb[4].mxu1 }
 0x7d0   : > { %v12565_v18 = vadd.f32 %v16114_v11, %v4402_v59  ;;  %v4404_v30 = vpop.f32.mrb[5].mxu1  ;;  %4723 = vadd.xlane.f32.xlu1 %v4630_v57 }
 0x7d1   : > { %v4405_v6 = vpop.f32.mrb[6].mxu1 }
 0x7d2   : > { %v12566_v52 = vadd.f32 %v16114_v11, %v4405_v6  ;;  %v4407_v40 = vpop.f32.mrb[7].mxu1  ;;  %v16332_v56 = vmax.f32 %v12565_v18, 0.0 }
 0x7d4   : > { %v4631_v15 = vmul.f32 %v16332_v56, %v16332_v56  ;;  %v16336_v39 = vmax.f32 %v12566_v52, 0.0 }
 0x7d6   : > { %4725 = vadd.xlane.f32.xlu0 %v4631_v15  ;;  %v4632_v16 = vmul.f32 %v16336_v39, %v16336_v39 }
 0x7d7   : > { %v4410_v50 = vpop.f32.mrb[8].mxu1 }
 0x7d8   : > { %v12567_v63 = vadd.f32 %v16114_v11, %v4410_v50  ;;  %v4412_v14 = vpop.f32.mrb[9].mxu1  ;;  %4727 = vadd.xlane.f32.xlu1 %v4632_v16 }
 0x7d9   : > { %v4413_v7 = vpop.f32.mrb[10].mxu1 }
 0x7da   : > { %v12568_v31 = vadd.f32 %v16114_v11, %v4413_v7  ;;  %v4415_v32 = vpop.f32.mrb[11].mxu1  ;;  %v16342_v38 = vmax.f32 %v12567_v63, 0.0 }
 0x7dc   : > { %v4633_v2 = vmul.f32 %v16342_v38, %v16342_v38  ;;  %v16346_v35 = vmax.f32 %v12568_v31, 0.0 }
 0x7de   : > { %4729 = vadd.xlane.f32.xlu0 %v4633_v2  ;;  %v4634_v48 = vmul.f32 %v16346_v35, %v16346_v35 }
 0x7df   : > { %v4418_v25 = vpop.f32.mrb[12].mxu1 }
 0x7e0   : > { %v12569_v28 = vadd.f32 %v16114_v11, %v4418_v25  ;;  %v4420_v33 = vpop.f32.mrb[13].mxu1  ;;  %4731 = vadd.xlane.f32.xlu1 %v4634_v48 }
 0x7e1   : > { %v4421_v58 = vpop.f32.mrb[14].mxu1 }
 0x7e2   : > { %v16351_v27 = vmax.f32 %v12569_v28, 0.0  ;;  %v12570_v12 = vadd.f32 %v16114_v11, %v4421_v58  ;;  %v4423_v42 = vpop.f32.mrb[15].mxu1 }
 0x7e4   : > { %v16354_v10 = vmax.f32 %v12570_v12, 0.0  ;;  %v4635_v53 = vmul.f32 %v16351_v27, %v16351_v27 }
 0x7e6   : > { %4733 = vadd.xlane.f32.xlu0 %v4635_v53  ;;  %v4636_v24 = vmul.f32 %v16354_v10, %v16354_v10 }
 0x7e7   : > { %v4426_v57 = vpop.f32.mrb[16].mxu1 }
 0x7e8   : > { %v12571_v59 = vadd.f32 %v16114_v11, %v4426_v57  ;;  %v4428_v18 = vpop.f32.mrb[17].mxu1  ;;  %4735 = vadd.xlane.f32.xlu1 %v4636_v24 }
 0x7e9   : > { %v4429_v30 = vpop.f32.mrb[18].mxu1 }
 0x7ea   : > { %v16361_v6 = vmax.f32 %v12571_v59, 0.0  ;;  %v12572_v52 = vadd.f32 %v16114_v11, %v4429_v30  ;;  %v4431_v40 = vpop.f32.mrb[19].mxu1 }
 0x7eb   : > { %v4666_v15 = vpop.xlane.xlu0 %4665 }
 0x7ec   : > { %v16364_v16 = vmax.f32 %v12572_v52, 0.0  ;;  %v4793_v50 = vmax.f32 %v4666_v15, 1e-24  ;;  %v4637_v63 = vmul.f32 %v16361_v6, %v16361_v6 }
 0x7ed   : > { %v4668_v14 = vpop.xlane.xlu1 %4667 }
 0x7ee   : > { %13904 = vrsqrt.f32 %v4793_v50  ;;  %v4794_v7 = vmax.f32 %v4668_v14, 1e-24  ;;  %4737 = vadd.xlane.f32.xlu0 %v4637_v63  ;;  %v4638_v31 = vmul.f32 %v16364_v16, %v16364_v16 }
 0x7ef   : > { %v4434_v32 = vpop.f32.mrb[20].mxu1 }
 0x7f0   : > { %13906 = vrsqrt.f32 %v4794_v7  ;;  %v12573_v2 = vadd.f32 %v16114_v11, %v4434_v32  ;;  %v4436_v48 = vpop.f32.mrb[21].mxu1  ;;  %4739 = vadd.xlane.f32.xlu1 %v4638_v31 }
 0x7f1   : > { %v4437_v25 = vpop.f32.mrb[22].mxu1 }
 0x7f2   : > { %v16371_v28 = vmax.f32 %v12573_v2, 0.0  ;;  %v12574_v33 = vadd.f32 %v16114_v11, %v4437_v25  ;;  %v4439_v58 = vpop.f32.mrb[23].mxu1 }
 0x7f3   : > { %v4670_v12 = vpop.xlane.xlu0 %4669 }
 0x7f4   : > { %v16374_v42 = vmax.f32 %v12574_v33, 0.0  ;;  %v4795_v53 = vmax.f32 %v4670_v12, 1e-24  ;;  %v4639_v24 = vmul.f32 %v16371_v28, %v16371_v28 }
 0x7f5   : > { %v4672_v57 = vpop.xlane.xlu1 %4671 }
 0x7f6   : > { %13908 = vrsqrt.f32 %v4795_v53  ;;  %v4796_v59 = vmax.f32 %v4672_v57, 1e-24  ;;  %4741 = vadd.xlane.f32.xlu0 %v4639_v24  ;;  %v4640_v18 = vmul.f32 %v16374_v42, %v16374_v42 }
 0x7f7   : > { %v4442_v30 = vpop.f32.mrb[24].mxu1 }
 0x7f8   : > { %v13905_v52 = vpop.eup %13904  ;;  %13910 = vrsqrt.f32 %v4796_v59  ;;  %v12575_v40 = vadd.f32 %v16114_v11, %v4442_v30  ;;  %v4444_v15 = vpop.f32.mrb[25].mxu1  ;;  %4743 = vadd.xlane.f32.xlu1 %v4640_v18 }
 0x7f9   : > { %v4445_v50 = vpop.f32.mrb[26].mxu1  ;;  %v4921_v32 = vmul.f32 %v13905_v52, %v16119_v9 }
 0x7fa   : > { %v13907_v63 = vpop.eup %13906  ;;  %v16381_v14 = vmax.f32 %v12575_v40, 0.0  ;;  %v12576_v7 = vadd.f32 %v16114_v11, %v4445_v50  ;;  %v4447_v31 = vpop.f32.mrb[27].mxu1 }
 0x7fb   : > { %v4922_v2 = vmul.f32 %v13907_v63, %v16124_v43  ;;  %v4674_v48 = vpop.xlane.xlu0 %4673  ;;  %v14298_v63 = vld [vmem:[%s18430_s5 + $0x8] sm:$0xff]  }
 0x7fc   : > { %v16386_v25 = vmax.f32 %v12576_v7, 0.0  ;;  %v4797_v33 = vmax.f32 %v4674_v48, 1e-24  ;;  %v4641_v58 = vmul.f32 %v16381_v14, %v16381_v14 }
 0x7fd   : > { %v4676_v12 = vpop.xlane.xlu1 %4675  ;;  %v4985_v53 = vpack.c.bf16 %v4922_v2, %v4921_v32 }
 0x7fe   : > { %13912 = vrsqrt.f32 %v4797_v33  ;;  %v4798_v24 = vmax.f32 %v4676_v12, 1e-24  ;;  %4745 = vadd.xlane.f32.xlu0 %v4641_v58  ;;  %v4642_v57 = vmul.f32 %v16386_v25, %v16386_v25 }
 0x7ff   : > { %v4450_v59 = vpop.f32.mrb[28].mxu1  ;;  %5147 = vmatmul.mubr.bf16.vlgmr.msra.gmra.mrb[184].mxu0 %v4985_v53 }
 0x800   : > { %v13909_v9 = vpop.eup %13908  ;;  %13914 = vrsqrt.f32 %v4798_v24  ;;  %v12577_v43 = vadd.f32 %v16114_v11, %v4450_v59  ;;  %v4452_v18 = vpop.f32.mrb[29].mxu1  ;;  %4747 = vadd.xlane.f32.xlu1 %v4642_v57  ;;  %5156 = vmatprep.mubr.bf16.mxu0 %v18467_v54 }
 0x801   : > { %v4453_v30 = vpop.f32.mrb[30].mxu1  ;;  %11720 = vmatpush3.bf16.msra.mxu0 %v16227_v4  ;;  %v4923_v31 = vmul.f32 %v13909_v9, %v16137_v55  ;;  %v14299_v55 = vld [vmem:[%s18430_s5 + $0x10] sm:$0xff]  }
 0x802   : > { %v13911_v52 = vpop.eup %13910  ;;  %v16395_v40 = vmax.f32 %v12577_v43, 0.0  ;;  %v12578_v15 = vadd.f32 %v16114_v11, %v4453_v30  ;;  %v4455_v50 = vpop.f32.mrb[31].mxu1  ;;  %11721 = vmatprep.subr.bf16.mxu0 %v14298_v63 }
 0x803   : > { %v4678_v7 = vpop.xlane.xlu0 %4677  ;;  %v4924_v32 = vmul.f32 %v13911_v52, %v16148_v22 }
 0x804   : > { %v16403_v2 = vmax.f32 %v12578_v15, 0.0  ;;  %v4799_v48 = vmax.f32 %v4678_v7, 1e-24  ;;  %v4643_v4 = vmul.f32 %v16395_v40, %v16395_v40  ;;  %v14300_v15 = vld [vmem:[%s18430_s5 + $0x18] sm:$0xff]  }
 0x805   : > { %v4680_v33 = vpop.xlane.xlu1 %4679  ;;  %v4986_v58 = vpack.c.bf16 %v4924_v32, %v4923_v31  ;;  %11722 = vmatpush3.bf16.msra.mxu0 %v14298_v63 }
 0x806   : > { %13916 = vrsqrt.f32 %v4799_v48  ;;  %v4800_v12 = vmax.f32 %v4680_v33, 1e-24  ;;  %4749 = vadd.xlane.f32.xlu0 %v4643_v4  ;;  %v4644_v53 = vmul.f32 %v16403_v2, %v16403_v2  ;;  %11723 = vmatprep.subr.bf16.mxu0 %v14299_v55 }
 0x807   : > { %v4458_v22 = vpop.f32.mrb[32].mxu1  ;;  %5157 = vmatmul.mubr.bf16.gmra.mrb[188].mxu0 %v4986_v58 }
 0x808   : > { %v13913_v24 = vpop.eup %13912  ;;  %13918 = vrsqrt.f32 %v4800_v12  ;;  %v12579_v57 = vadd.f32 %v16114_v11, %v4458_v22  ;;  %v4460_v59 = vpop.f32.mrb[33].mxu1  ;;  %4751 = vadd.xlane.f32.xlu1 %v4644_v53  ;;  %5166 = vmatprep.mubr.bf16.mxu0 %v18467_v54 }
 0x809   : > { %v4461_v9 = vpop.f32.mrb[34].mxu1  ;;  %11724 = vmatpush3.bf16.msra.mxu0 %v14299_v55  ;;  %v4925_v63 = vmul.f32 %v13913_v24, %v16161_v3  ;;  %v14301_v3 = vld [vmem:[%s18430_s5 + $0x20] sm:$0xff]  }
 0x80a   : > { %v13915_v43 = vpop.eup %13914  ;;  %v16414_v18 = vmax.f32 %v12579_v57, 0.0  ;;  %v12580_v30 = vadd.f32 %v16114_v11, %v4461_v9  ;;  %v4463_v52 = vpop.f32.mrb[35].mxu1  ;;  %11725 = vmatprep.subr.bf16.mxu0 %v14300_v15 }
 0x80b   : > { %v4682_v50 = vpop.xlane.xlu0 %4681  ;;  %v4926_v7 = vmul.f32 %v13915_v43, %v16172_v51 }
 0x80c   : > { %v16422_v31 = vmax.f32 %v12580_v30, 0.0  ;;  %v4801_v32 = vmax.f32 %v4682_v50, 1e-24  ;;  %v4645_v48 = vmul.f32 %v16414_v18, %v16414_v18  ;;  %v14302_v30 = vld [vmem:[%s18430_s5 + $0x28] sm:$0xff]  }
 0x80d   : > { %v4684_v4 = vpop.xlane.xlu1 %4683  ;;  %v4987_v33 = vpack.c.bf16 %v4926_v7, %v4925_v63  ;;  %11726 = vmatpush3.bf16.msra.mxu0 %v14300_v15 }
 0x80e   : > { %13920 = vrsqrt.f32 %v4801_v32  ;;  %v4802_v58 = vmax.f32 %v4684_v4, 1e-24  ;;  %4753 = vadd.xlane.f32.xlu0 %v4645_v48  ;;  %v4646_v12 = vmul.f32 %v16422_v31, %v16422_v31  ;;  %11727 = vmatprep.subr.bf16.mxu0 %v14301_v3 }
 0x80f   : > { %v4466_v51 = vpop.f32.mrb[36].mxu1  ;;  %5167 = vmatmul.mubr.bf16.gmra.mrb[192].mxu0 %v4987_v33 }
 0x810   : > { %v13917_v53 = vpop.eup %13916  ;;  %13922 = vrsqrt.f32 %v4802_v58  ;;  %v12581_v55 = vadd.f32 %v16114_v11, %v4466_v51  ;;  %v4468_v22 = vpop.f32.mrb[37].mxu1  ;;  %4755 = vadd.xlane.f32.xlu1 %v4646_v12  ;;  %5176 = vmatprep.mubr.bf16.mxu0 %v18467_v54 }
 0x811   : > { %v4469_v24 = vpop.f32.mrb[38].mxu1  ;;  %11728 = vmatpush3.bf16.msra.mxu0 %v14301_v3  ;;  %v4927_v15 = vmul.f32 %v13917_v53, %v16185_v61  ;;  %v14303_v61 = vld [vmem:[%s18430_s5 + $0x30] sm:$0xff]  }
 0x812   : > { %v13919_v57 = vpop.eup %13918  ;;  %v16433_v59 = vmax.f32 %v12581_v55, 0.0  ;;  %v12582_v9 = vadd.f32 %v16114_v11, %v4469_v24  ;;  %v4471_v43 = vpop.f32.mrb[39].mxu1  ;;  %11729 = vmatprep.subr.bf16.mxu0 %v14302_v30 }
 0x813   : > { %v4686_v52 = vpop.xlane.xlu0 %4685  ;;  %v4928_v50 = vmul.f32 %v13919_v57, %v16196_v26 }
 0x814   : > { %v16441_v63 = vmax.f32 %v12582_v9, 0.0  ;;  %v4803_v7 = vmax.f32 %v4686_v52, 1e-24  ;;  %v4647_v32 = vmul.f32 %v16433_v59, %v16433_v59  ;;  %v14304_v9 = vld [vmem:[%s18430_s5 + $0x38] sm:$0xff]  }
 0x815   : > { %v4688_v48 = vpop.xlane.xlu1 %4687  ;;  %v4988_v4 = vpack.c.bf16 %v4928_v50, %v4927_v15  ;;  %11730 = vmatpush3.bf16.msra.mxu0 %v14302_v30 }
 0x816   : > { %13924 = vrsqrt.f32 %v4803_v7  ;;  %v4804_v33 = vmax.f32 %v4688_v48, 1e-24  ;;  %4757 = vadd.xlane.f32.xlu0 %v4647_v32  ;;  %v4648_v58 = vmul.f32 %v16441_v63, %v16441_v63  ;;  %11731 = vmatprep.subr.bf16.mxu0 %v14303_v61 }
 0x817   : > { %v4474_v26 = vpop.f32.mrb[40].mxu1  ;;  %5177 = vmatmul.mubr.bf16.gmra.mrb[196].mxu0 %v4988_v4 }
 0x818   : > { %v13921_v12 = vpop.eup %13920  ;;  %13926 = vrsqrt.f32 %v4804_v33  ;;  %v12583_v3 = vadd.f32 %v16114_v11, %v4474_v26  ;;  %v4476_v51 = vpop.f32.mrb[41].mxu1  ;;  %4759 = vadd.xlane.f32.xlu1 %v4648_v58  ;;  %5186 = vmatprep.mubr.bf16.mxu0 %v18467_v54 }
 0x819   : > { %v4477_v53 = vpop.f32.mrb[42].mxu1  ;;  %11732 = vmatpush3.bf16.msra.mxu0 %v14303_v61  ;;  %v4929_v30 = vmul.f32 %v13921_v12, %v16209_v23 }
 0x81a   : > { %v13923_v55 = vpop.eup %13922  ;;  %v16452_v22 = vmax.f32 %v12583_v3, 0.0  ;;  %v12584_v24 = vadd.f32 %v16114_v11, %v4477_v53  ;;  %v4479_v57 = vpop.f32.mrb[43].mxu1  ;;  %11733 = vmatprep.subr.bf16.mxu0 %v14304_v9 }
 0x81b   : > { %v4690_v43 = vpop.xlane.xlu0 %4689  ;;  %v4930_v52 = vmul.f32 %v13923_v55, %v16220_v20 }
 0x81c   : > { %v16460_v15 = vmax.f32 %v12584_v24, 0.0  ;;  %v4805_v50 = vmax.f32 %v4690_v43, 1e-24  ;;  %v4649_v7 = vmul.f32 %v16452_v22, %v16452_v22 }
 0x81d   : > { %v4692_v32 = vpop.xlane.xlu1 %4691  ;;  %v4989_v48 = vpack.c.bf16 %v4930_v52, %v4929_v30  ;;  %11734 = vmatpush3.bf16.msra.mxu0 %v14304_v9 }
 0x81e   : > { %13928 = vrsqrt.f32 %v4805_v50  ;;  %v4806_v4 = vmax.f32 %v4692_v32, 1e-24  ;;  %4761 = vadd.xlane.f32.xlu0 %v4649_v7  ;;  %v4650_v33 = vmul.f32 %v16460_v15, %v16460_v15  ;;  %6405 = vmatprep.subr.bf16.mxu0 %v18467_v54 }
 0x81f   : > { %v4482_v23 = vpop.f32.mrb[44].mxu1  ;;  %5187 = vmatmul.mubr.bf16.gmra.mrb[200].mxu0 %v4989_v48 }
 0x820   : > { %v13925_v20 = vpop.eup %13924  ;;  %13930 = vrsqrt.f32 %v4806_v4  ;;  %v12585_v58 = vadd.f32 %v16114_v11, %v4482_v23  ;;  %v4484_v61 = vpop.f32.mrb[45].mxu1  ;;  %4763 = vadd.xlane.f32.xlu1 %v4650_v33  ;;  %5196 = vmatprep.mubr.bf16.mxu0 %v18467_v54 }
 0x821   : > { %v4485_v26 = vpop.f32.mrb[46].mxu1  ;;  %v4931_v24 = vmul.f32 %v13925_v20, %v16232_v5 }
 0x822   : > { %v13927_v12 = vpop.eup %13926  ;;  %v16469_v3 = vmax.f32 %v12585_v58, 0.0  ;;  %v12586_v51 = vadd.f32 %v16114_v11, %v4485_v26  ;;  %v4487_v53 = vpop.f32.mrb[47].mxu1 }
 0x823   : > { %v4694_v55 = vpop.xlane.xlu0 %4693  ;;  %v4932_v57 = vmul.f32 %v13927_v12, %v16236_v44 }
 0x824   : > { %v16474_v9 = vmax.f32 %v12586_v51, 0.0  ;;  %v4807_v43 = vmax.f32 %v4694_v55, 1e-24  ;;  %v4651_v30 = vmul.f32 %v16469_v3, %v16469_v3 }
 0x825   : > { %v4696_v52 = vpop.xlane.xlu1 %4695  ;;  %v4990_v50 = vpack.c.bf16 %v4932_v57, %v4931_v24 }
 0x826   : > { %13932 = vrsqrt.f32 %v4807_v43  ;;  %v4808_v7 = vmax.f32 %v4696_v52, 1e-24  ;;  %4765 = vadd.xlane.f32.xlu0 %v4651_v30  ;;  %v4652_v32 = vmul.f32 %v16474_v9, %v16474_v9 }
 0x827   : > { %v4490_v48 = vpop.f32.mrb[48].mxu1  ;;  %5197 = vmatmul.mubr.bf16.gmra.mrb[204].mxu0 %v4990_v50 }
 0x828   : > { %v13929_v4 = vpop.eup %13928  ;;  %13934 = vrsqrt.f32 %v4808_v7  ;;  %v12587_v5 = vadd.f32 %v16114_v11, %v4490_v48  ;;  %v4492_v44 = vpop.f32.mrb[49].mxu1  ;;  %4767 = vadd.xlane.f32.xlu1 %v4652_v32  ;;  %5206 = vmatprep.mubr.bf16.mxu0 %v18467_v54 }
 0x829   : > { %v4493_v33 = vpop.f32.mrb[50].mxu1  ;;  %v4933_v12 = vmul.f32 %v13929_v4, %v16242_v49 }
 0x82a   : > { %v13931_v23 = vpop.eup %13930  ;;  %v16482_v20 = vmax.f32 %v12587_v5, 0.0  ;;  %v12588_v58 = vadd.f32 %v16114_v11, %v4493_v33  ;;  %v4495_v61 = vpop.f32.mrb[51].mxu1 }
 0x82b   : > { %v4698_v26 = vpop.xlane.xlu0 %4697  ;;  %v4934_v51 = vmul.f32 %v13931_v23, %v16246_v8 }
 0x82c   : > { %v16487_v53 = vmax.f32 %v12588_v58, 0.0  ;;  %v4809_v55 = vmax.f32 %v4698_v26, 1e-24  ;;  %v4653_v24 = vmul.f32 %v16482_v20, %v16482_v20 }
 0x82d   : > { %v4700_v57 = vpop.xlane.xlu1 %4699  ;;  %v4991_v43 = vpack.c.bf16 %v4934_v51, %v4933_v12 }
 0x82e   : > { %13936 = vrsqrt.f32 %v4809_v55  ;;  %v4810_v30 = vmax.f32 %v4700_v57, 1e-24  ;;  %4769 = vadd.xlane.f32.xlu0 %v4653_v24  ;;  %v4654_v52 = vmul.f32 %v16487_v53, %v16487_v53 }
 0x82f   : > { %v4498_v50 = vpop.f32.mrb[52].mxu1  ;;  %5207 = vmatmul.mubr.bf16.gmra.mrb[208].mxu0 %v4991_v43 }
 0x830   : > { %v13933_v7 = vpop.eup %13932  ;;  %13938 = vrsqrt.f32 %v4810_v30  ;;  %v12589_v49 = vadd.f32 %v16114_v11, %v4498_v50  ;;  %v4500_v8 = vpop.f32.mrb[53].mxu1  ;;  %4771 = vadd.xlane.f32.xlu1 %v4654_v52  ;;  %5216 = vmatprep.mubr.bf16.mxu0 %v18467_v54 }
 0x831   : > { %v4501_v32 = vpop.f32.mrb[54].mxu1  ;;  %v4935_v23 = vmul.f32 %v13933_v7, %v16252_v47  ;;  %v16509_v47 = vld [vmem:[%s18428_s3 + $0x1] ss:$0 sm:$0xff] }
 0x832   : > { %v13935_v48 = vpop.eup %13934  ;;  %v16495_v4 = vmax.f32 %v12589_v49, 0.0  ;;  %v12590_v5 = vadd.f32 %v16114_v11, %v4501_v32  ;;  %v4503_v44 = vpop.f32.mrb[55].mxu1 }
 0x833   : > { %v4702_v33 = vpop.xlane.xlu0 %4701  ;;  %v4936_v58 = vmul.f32 %v13935_v48, %v16256_v45 }
 0x834   : > { %v16500_v61 = vmax.f32 %v12590_v5, 0.0  ;;  %v4811_v26 = vmax.f32 %v4702_v33, 1e-24  ;;  %v4655_v12 = vmul.f32 %v16495_v4, %v16495_v4 }
 0x835   : > { %v4704_v51 = vpop.xlane.xlu1 %4703  ;;  %v4992_v55 = vpack.c.bf16 %v4936_v58, %v4935_v23 }
 0x836   : > { %13940 = vrsqrt.f32 %v4811_v26  ;;  %v4812_v24 = vmax.f32 %v4704_v51, 1e-24  ;;  %4773 = vadd.xlane.f32.xlu0 %v4655_v12  ;;  %v4656_v11 = vmul.f32 %v16500_v61, %v16500_v61 }
 0x837   : > { %v4506_v57 = vpop.f32.mrb[56].mxu1  ;;  %5217 = vmatmul.mubr.bf16.gmra.mrb[212].mxu0 %v4992_v55 }
 0x838   : > { %v13937_v43 = vpop.eup %13936  ;;  %13942 = vrsqrt.f32 %v4812_v24  ;;  %v12591_v45 = vadd.f32 %v16509_v47, %v4506_v57  ;;  %v4508_v30 = vpop.f32.mrb[57].mxu1  ;;  %4775 = vadd.xlane.f32.xlu1 %v4656_v11  ;;  %5226 = vmatprep.mubr.bf16.mxu0 %v18467_v54 }
 0x839   : > { %v4509_v52 = vpop.f32.mrb[58].mxu1  ;;  %v4937_v48 = vmul.f32 %v13937_v43, %v16262_v41 }
 0x83a   : > { %v13939_v50 = vpop.eup %13938  ;;  %v16513_v7 = vmax.f32 %v12591_v45, 0.0  ;;  %v12592_v49 = vadd.f32 %v16509_v47, %v4509_v52  ;;  %v4511_v8 = vpop.f32.mrb[59].mxu1 }
 0x83b   : > { %v4706_v32 = vpop.xlane.xlu0 %4705  ;;  %v4938_v5 = vmul.f32 %v13939_v50, %v16266_v17 }
 0x83c   : > { %v16518_v44 = vmax.f32 %v12592_v49, 0.0  ;;  %v4813_v33 = vmax.f32 %v4706_v32, 1e-24  ;;  %v4657_v23 = vmul.f32 %v16513_v7, %v16513_v7 }
 0x83d   : > { %v4708_v58 = vpop.xlane.xlu1 %4707  ;;  %v4993_v26 = vpack.c.bf16 %v4938_v5, %v4937_v48 }
 0x83e   : > { %13944 = vrsqrt.f32 %v4813_v33  ;;  %v4814_v12 = vmax.f32 %v4708_v58, 1e-24  ;;  %4777 = vadd.xlane.f32.xlu0 %v4657_v23  ;;  %v4658_v51 = vmul.f32 %v16518_v44, %v16518_v44 }
 0x83f   : > { %v4514_v55 = vpop.f32.mrb[60].mxu1  ;;  %5227 = vmatmul.mubr.bf16.gmra.mrb[216].mxu0 %v4993_v26 }
 0x840   : > { %v13941_v24 = vpop.eup %13940  ;;  %13946 = vrsqrt.f32 %v4814_v12  ;;  %v12593_v41 = vadd.f32 %v16509_v47, %v4514_v55  ;;  %v4516_v17 = vpop.f32.mrb[61].mxu1  ;;  %4779 = vadd.xlane.f32.xlu1 %v4658_v51  ;;  %5236 = vmatprep.mubr.bf16.mxu0 %v18467_v54 }
 0x841   : > { %v4517_v11 = vpop.f32.mrb[62].mxu1  ;;  %v4939_v50 = vmul.f32 %v13941_v24, %v16272_v0 }
 0x842   : > { %v13943_v57 = vpop.eup %13942  ;;  %v16526_v43 = vmax.f32 %v12593_v41, 0.0  ;;  %v12594_v45 = vadd.f32 %v16509_v47, %v4517_v11  ;;  %v4519_v30 = vpop.f32.mrb[63].mxu1 }
 0x843   : > { %v4710_v52 = vpop.xlane.xlu0 %4709  ;;  %v4940_v49 = vmul.f32 %v13943_v57, %v16276_v29 }
 0x844   : > { %v16531_v8 = vmax.f32 %v12594_v45, 0.0  ;;  %v4815_v32 = vmax.f32 %v4710_v52, 1e-24  ;;  %v4659_v48 = vmul.f32 %v16526_v43, %v16526_v43 }
 0x845   : > { %v4712_v5 = vpop.xlane.xlu1 %4711  ;;  %v4994_v33 = vpack.c.bf16 %v4940_v49, %v4939_v50 }
 0x846   : > { %13948 = vrsqrt.f32 %v4815_v32  ;;  %v4816_v23 = vmax.f32 %v4712_v5, 1e-24  ;;  %4781 = vadd.xlane.f32.xlu0 %v4659_v48  ;;  %v4660_v58 = vmul.f32 %v16531_v8, %v16531_v8 }
 0x847   : > { %v4522_v26 = vpop.f32.mrb[64].mxu1  ;;  %5237 = vmatmul.mubr.bf16.gmra.mrb[220].mxu0 %v4994_v33 }
 0x848   : > { %v13945_v12 = vpop.eup %13944  ;;  %13950 = vrsqrt.f32 %v4816_v23  ;;  %v12595_v0 = vadd.f32 %v16509_v47, %v4522_v26  ;;  %v4524_v29 = vpop.f32.mrb[65].mxu1  ;;  %4783 = vadd.xlane.f32.xlu1 %v4660_v58  ;;  %5246 = vmatprep.mubr.bf16.mxu0 %v18467_v54 }
 0x849   : > { %v4525_v51 = vpop.f32.mrb[66].mxu1  ;;  %v4941_v57 = vmul.f32 %v13945_v12, %v16282_v1 }
 0x84a   : > { %v13947_v55 = vpop.eup %13946  ;;  %v16539_v24 = vmax.f32 %v12595_v0, 0.0  ;;  %v12596_v41 = vadd.f32 %v16509_v47, %v4525_v51  ;;  %v4527_v17 = vpop.f32.mrb[67].mxu1 }
 0x84b   : > { %v4714_v11 = vpop.xlane.xlu0 %4713  ;;  %v4942_v45 = vmul.f32 %v13947_v55, %v16286_v19 }
 0x84c   : > { %v16544_v30 = vmax.f32 %v12596_v41, 0.0  ;;  %v4817_v52 = vmax.f32 %v4714_v11, 1e-24  ;;  %v4661_v50 = vmul.f32 %v16539_v24, %v16539_v24 }
 0x84d   : > { %v4716_v49 = vpop.xlane.xlu1 %4715  ;;  %v4995_v32 = vpack.c.bf16 %v4942_v45, %v4941_v57 }
 0x84e   : > { %13952 = vrsqrt.f32 %v4817_v52  ;;  %v4818_v48 = vmax.f32 %v4716_v49, 1e-24  ;;  %4785 = vadd.xlane.f32.xlu0 %v4661_v50  ;;  %v4662_v5 = vmul.f32 %v16544_v30, %v16544_v30 }
 0x84f   : > { %v4530_v33 = vpop.f32.mrb[68].mxu1  ;;  %5247 = vmatmul.mubr.bf16.gmra.mrb[224].mxu0 %v4995_v32 }
 0x850   : > { %v13949_v23 = vpop.eup %13948  ;;  %13954 = vrsqrt.f32 %v4818_v48  ;;  %v12597_v1 = vadd.f32 %v16509_v47, %v4530_v33  ;;  %v4532_v19 = vpop.f32.mrb[69].mxu1  ;;  %4787 = vadd.xlane.f32.xlu1 %v4662_v5  ;;  %5256 = vmatprep.mubr.bf16.mxu0 %v18467_v54 }
 0x851   : > { %v4533_v58 = vpop.f32.mrb[70].mxu1  ;;  %v4943_v55 = vmul.f32 %v13949_v23, %v16292_v60 }
 0x852   : > { %v13951_v26 = vpop.eup %13950  ;;  %v16552_v12 = vmax.f32 %v12597_v1, 0.0  ;;  %v12598_v0 = vadd.f32 %v16509_v47, %v4533_v58  ;;  %v4535_v29 = vpop.f32.mrb[71].mxu1 }
 0x853   : > { %v4718_v51 = vpop.xlane.xlu0 %4717  ;;  %v4944_v41 = vmul.f32 %v13951_v26, %v16296_v36 }
 0x854   : > { %v16557_v17 = vmax.f32 %v12598_v0, 0.0  ;;  %v4819_v11 = vmax.f32 %v4718_v51, 1e-24  ;;  %v4663_v57 = vmul.f32 %v16552_v12, %v16552_v12 }
 0x855   : > { %v4720_v45 = vpop.xlane.xlu1 %4719  ;;  %v4996_v52 = vpack.c.bf16 %v4944_v41, %v4943_v55 }
 0x856   : > { %13956 = vrsqrt.f32 %v4819_v11  ;;  %v4820_v50 = vmax.f32 %v4720_v45, 1e-24  ;;  %4789 = vadd.xlane.f32.xlu0 %v4663_v57  ;;  %v4664_v47 = vmul.f32 %v16557_v17, %v16557_v17 }
 0x857   : > { %5257 = vmatmul.mubr.bf16.gmra.mrb[228].mxu0 %v4996_v52 }
 0x858   : > { %v13953_v49 = vpop.eup %13952  ;;  %13958 = vrsqrt.f32 %v4820_v50  ;;  %4791 = vadd.xlane.f32.xlu1 %v4664_v47  ;;  %5266 = vmatprep.mubr.bf16.mxu0 %v18467_v54 }
 0x859   : > { %v4945_v32 = vmul.f32 %v13953_v49, %v16302_v37 }
 0x85a   : > { %v13955_v60 = vpop.eup %13954 }
 0x85b   : > { %v4722_v36 = vpop.xlane.xlu0 %4721  ;;  %v4946_v48 = vmul.f32 %v13955_v60, %v16306_v46 }
 0x85c   : > { %v4821_v5 = vmax.f32 %v4722_v36, 1e-24 }
 0x85d   : > { %v4724_v33 = vpop.xlane.xlu1 %4723  ;;  %v4997_v23 = vpack.c.bf16 %v4946_v48, %v4945_v32 }
 0x85e   : > { %13960 = vrsqrt.f32 %v4821_v5  ;;  %v4822_v1 = vmax.f32 %v4724_v33, 1e-24 }
 0x85f   : > { %5267 = vmatmul.mubr.bf16.gmra.mrb[232].mxu0 %v4997_v23 }
 0x860   : > { %v13957_v19 = vpop.eup %13956  ;;  %13962 = vrsqrt.f32 %v4822_v1  ;;  %5276 = vmatprep.mubr.bf16.mxu0 %v18467_v54 }
 0x861   : > { %v4947_v0 = vmul.f32 %v13957_v19, %v16312_v13 }
 0x862   : > { %v13959_v58 = vpop.eup %13958 }
 0x863   : > { %v4726_v26 = vpop.xlane.xlu0 %4725  ;;  %v4948_v29 = vmul.f32 %v13959_v58, %v16316_v62 }
 0x864   : > { %v4823_v51 = vmax.f32 %v4726_v26, 1e-24 }
 0x865   : > { %v4728_v37 = vpop.xlane.xlu1 %4727  ;;  %v4998_v55 = vpack.c.bf16 %v4948_v29, %v4947_v0 }
 0x866   : > { %13964 = vrsqrt.f32 %v4823_v51  ;;  %v4824_v46 = vmax.f32 %v4728_v37, 1e-24 }
 0x867   : > { %5277 = vmatmul.mubr.bf16.gmra.mrb[236].mxu0 %v4998_v55 }
 0x868   : > { %v13961_v41 = vpop.eup %13960  ;;  %13966 = vrsqrt.f32 %v4824_v46  ;;  %5286 = vmatprep.mubr.bf16.mxu0 %v18467_v54 }
 0x869   : > { %v4949_v45 = vmul.f32 %v13961_v41, %v16322_v34 }
 0x86a   : > { %v13963_v11 = vpop.eup %13962 }
 0x86b   : > { %v4730_v57 = vpop.xlane.xlu0 %4729  ;;  %v4950_v52 = vmul.f32 %v13963_v11, %v16326_v21 }
 0x86c   : > { %v4825_v50 = vmax.f32 %v4730_v57, 1e-24 }
 0x86d   : > { %v4732_v13 = vpop.xlane.xlu1 %4731  ;;  %v4999_v47 = vpack.c.bf16 %v4950_v52, %v4949_v45 }
 0x86e   : > { %13968 = vrsqrt.f32 %v4825_v50  ;;  %v4826_v62 = vmax.f32 %v4732_v13, 1e-24 }
 0x86f   : > { %5287 = vmatmul.mubr.bf16.gmra.mrb[240].mxu0 %v4999_v47 }
 0x870   : > { %v13965_v49 = vpop.eup %13964  ;;  %13970 = vrsqrt.f32 %v4826_v62  ;;  %5296 = vmatprep.mubr.bf16.mxu0 %v18467_v54 }
 0x871   : > { %v4951_v32 = vmul.f32 %v13965_v49, %v16332_v56 }
 0x872   : > { %v13967_v60 = vpop.eup %13966 }
 0x873   : > { %v4734_v36 = vpop.xlane.xlu0 %4733  ;;  %v4952_v48 = vmul.f32 %v13967_v60, %v16336_v39 }
 0x874   : > { %v4827_v5 = vmax.f32 %v4734_v36, 1e-24 }
 0x875   : > { %v4736_v34 = vpop.xlane.xlu1 %4735  ;;  %v5000_v33 = vpack.c.bf16 %v4952_v48, %v4951_v32 }
 0x876   : > { %13972 = vrsqrt.f32 %v4827_v5  ;;  %v4828_v21 = vmax.f32 %v4736_v34, 1e-24 }
 0x877   : > { %5297 = vmatmul.mubr.bf16.gmra.mrb[244].mxu0 %v5000_v33 }
 0x878   : > { %v13969_v23 = vpop.eup %13968  ;;  %13974 = vrsqrt.f32 %v4828_v21  ;;  %5306 = vmatprep.mubr.bf16.mxu0 %v18467_v54 }
 0x879   : > { %v4953_v58 = vmul.f32 %v13969_v23, %v16342_v38 }
 0x87a   : > { %v13971_v1 = vpop.eup %13970 }
 0x87b   : > { %v4738_v19 = vpop.xlane.xlu0 %4737  ;;  %v4954_v26 = vmul.f32 %v13971_v1, %v16346_v35 }
 0x87c   : > { %v4829_v0 = vmax.f32 %v4738_v19, 1e-24 }
 0x87d   : > { %v4740_v56 = vpop.xlane.xlu1 %4739  ;;  %v5001_v29 = vpack.c.bf16 %v4954_v26, %v4953_v58 }
 0x87e   : > { %13976 = vrsqrt.f32 %v4829_v0  ;;  %v4830_v39 = vmax.f32 %v4740_v56, 1e-24 }
 0x87f   : > { %5307 = vmatmul.mubr.bf16.gmra.mrb[248].mxu0 %v5001_v29 }
 0x880   : > { %v13973_v51 = vpop.eup %13972  ;;  %13978 = vrsqrt.f32 %v4830_v39  ;;  %5316 = vmatprep.mubr.bf16.mxu0 %v18467_v54 }
 0x881   : > { %v4955_v46 = vmul.f32 %v13973_v51, %v16351_v27 }
 0x882   : > { %v13975_v37 = vpop.eup %13974 }
 0x883   : > { %v4742_v55 = vpop.xlane.xlu0 %4741  ;;  %v4956_v41 = vmul.f32 %v13975_v37, %v16354_v10 }
 0x884   : > { %v4831_v11 = vmax.f32 %v4742_v55, 1e-24 }
 0x885   : > { %v4744_v38 = vpop.xlane.xlu1 %4743  ;;  %v5002_v57 = vpack.c.bf16 %v4956_v41, %v4955_v46 }
 0x886   : > { %13980 = vrsqrt.f32 %v4831_v11  ;;  %v4832_v35 = vmax.f32 %v4744_v38, 1e-24 }
 0x887   : > { %5317 = vmatmul.mubr.bf16.gmra.mrb[252].mxu0 %v5002_v57 }
 0x888   : > { %v13977_v45 = vpop.eup %13976  ;;  %13982 = vrsqrt.f32 %v4832_v35  ;;  %5326 = vmatprep.mubr.bf16.mxu0 %v18467_v54 }
 0x889   : > { %v4957_v50 = vmul.f32 %v13977_v45, %v16361_v6 }
 0x88a   : > { %v13979_v52 = vpop.eup %13978 }
 0x88b   : > { %v4958_v13 = vmul.f32 %v13979_v52, %v16364_v16  ;;  %v4746_v47 = vpop.xlane.xlu0 %4745 }
 0x88c   : > { %v4833_v62 = vmax.f32 %v4746_v47, 1e-24 }
 0x88d   : > { %v5003_v27 = vpack.c.bf16 %v4958_v13, %v4957_v50  ;;  %v4748_v49 = vpop.xlane.xlu1 %4747 }
 0x88e   : > { %13984 = vrsqrt.f32 %v4833_v62  ;;  %v4834_v10 = vmax.f32 %v4748_v49, 1e-24 }
 0x88f   : > { %5327 = vmatmul.mubr.bf16.gmra.mrb[0].mxu0 %v5003_v27 }
 0x890   : > { %v13981_v60 = vpop.eup %13980  ;;  %13986 = vrsqrt.f32 %v4834_v10  ;;  %5336 = vmatprep.mubr.bf16.mxu0 %v18467_v54 }
 0x891   : > { %v4959_v32 = vmul.f32 %v13981_v60, %v16371_v28 }
 0x892   : > { %v13983_v36 = vpop.eup %13982 }
 0x893   : > { %v4960_v48 = vmul.f32 %v13983_v36, %v16374_v42  ;;  %v4750_v5 = vpop.xlane.xlu0 %4749 }
 0x894   : > { %v4835_v6 = vmax.f32 %v4750_v5, 1e-24 }
 0x895   : > { %v5004_v34 = vpack.c.bf16 %v4960_v48, %v4959_v32  ;;  %v4752_v16 = vpop.xlane.xlu1 %4751 }
 0x896   : > { %13988 = vrsqrt.f32 %v4835_v6  ;;  %v4836_v33 = vmax.f32 %v4752_v16, 1e-24 }
 0x897   : > { %5337 = vmatmul.mubr.bf16.gmra.mrb[4].mxu0 %v5004_v34 }
 0x898   : > { %v13985_v21 = vpop.eup %13984  ;;  %13990 = vrsqrt.f32 %v4836_v33  ;;  %5346 = vmatprep.mubr.bf16.mxu0 %v18467_v54 }
 0x899   : > { %v4961_v1 = vmul.f32 %v13985_v21, %v16381_v14 }
 0x89a   : > { %v13987_v23 = vpop.eup %13986 }
 0x89b   : > { %v4962_v19 = vmul.f32 %v13987_v23, %v16386_v25  ;;  %v4754_v58 = vpop.xlane.xlu0 %4753 }
 0x89c   : > { %v4837_v28 = vmax.f32 %v4754_v58, 1e-24 }
 0x89d   : > { %v5005_v26 = vpack.c.bf16 %v4962_v19, %v4961_v1  ;;  %v4756_v42 = vpop.xlane.xlu1 %4755 }
 0x89e   : > { %13992 = vrsqrt.f32 %v4837_v28  ;;  %v4838_v0 = vmax.f32 %v4756_v42, 1e-24 }
 0x89f   : > { %5347 = vmatmul.mubr.bf16.gmra.mrb[8].mxu0 %v5005_v26 }
 0x8a0   : > { %v13989_v56 = vpop.eup %13988  ;;  %13994 = vrsqrt.f32 %v4838_v0  ;;  %5356 = vmatprep.mubr.bf16.mxu0 %v18467_v54 }
 0x8a1   : > { %v4963_v39 = vmul.f32 %v13989_v56, %v16395_v40 }
 0x8a2   : > { %v13991_v29 = vpop.eup %13990 }
 0x8a3   : > { %v4964_v51 = vmul.f32 %v13991_v29, %v16403_v2  ;;  %v4758_v37 = vpop.xlane.xlu0 %4757 }
 0x8a4   : > { %v4839_v14 = vmax.f32 %v4758_v37, 1e-24 }
 0x8a5   : > { %v5006_v55 = vpack.c.bf16 %v4964_v51, %v4963_v39  ;;  %v4760_v25 = vpop.xlane.xlu1 %4759 }
 0x8a6   : > { %13996 = vrsqrt.f32 %v4839_v14  ;;  %v4840_v46 = vmax.f32 %v4760_v25, 1e-24 }
 0x8a7   : > { %5357 = vmatmul.mubr.bf16.gmra.mrb[12].mxu0 %v5006_v55 }
 0x8a8   : > { %v13993_v41 = vpop.eup %13992  ;;  %13998 = vrsqrt.f32 %v4840_v46  ;;  %5366 = vmatprep.mubr.bf16.mxu0 %v18467_v54  ;;  %v16616_v46 = vld [vmem:[%s18429_s4] ss:$0 sm:$0xff] }
 0x8a9   : > { %v4965_v38 = vmul.f32 %v13993_v41, %v16414_v18 }
 0x8aa   : > { %v13995_v11 = vpop.eup %13994 }
 0x8ab   : > { %v4966_v57 = vmul.f32 %v13995_v11, %v16422_v31  ;;  %v4762_v35 = vpop.xlane.xlu0 %4761 }
 0x8ac   : > { %v4841_v40 = vmax.f32 %v4762_v35, 1e-24 }
 0x8ad   : > { %v5007_v45 = vpack.c.bf16 %v4966_v57, %v4965_v38  ;;  %v4764_v2 = vpop.xlane.xlu1 %4763 }
 0x8ae   : > { %14000 = vrsqrt.f32 %v4841_v40  ;;  %v4842_v52 = vmax.f32 %v4764_v2, 1e-24 }
 0x8af   : > { %5367 = vmatmul.mubr.bf16.gmra.mrb[16].mxu0 %v5007_v45 }
 0x8b0   : > { %v13997_v50 = vpop.eup %13996  ;;  %14002 = vrsqrt.f32 %v4842_v52  ;;  %5376 = vmatprep.mubr.bf16.mxu0 %v18467_v54 }
 0x8b1   : > { %v4967_v47 = vmul.f32 %v13997_v50, %v16433_v59 }
 0x8b2   : > { %v13999_v13 = vpop.eup %13998 }
 0x8b3   : > { %v4968_v62 = vmul.f32 %v13999_v13, %v16441_v63  ;;  %v4766_v27 = vpop.xlane.xlu0 %4765 }
 0x8b4   : > { %v4843_v18 = vmax.f32 %v4766_v27, 1e-24 }
 0x8b5   : > { %v5008_v49 = vpack.c.bf16 %v4968_v62, %v4967_v47  ;;  %v4768_v31 = vpop.xlane.xlu1 %4767 }
 0x8b6   : > { %14004 = vrsqrt.f32 %v4843_v18  ;;  %v4844_v10 = vmax.f32 %v4768_v31, 1e-24 }
 0x8b7   : > { %5377 = vmatmul.mubr.bf16.gmra.mrb[20].mxu0 %v5008_v49 }
 0x8b8   : > { %v14001_v60 = vpop.eup %14000  ;;  %14006 = vrsqrt.f32 %v4844_v10  ;;  %5386 = vmatprep.mubr.bf16.mxu0 %v18467_v54 }
 0x8b9   : > { %v4969_v32 = vmul.f32 %v14001_v60, %v16452_v22 }
 0x8ba   : > { %v14003_v36 = vpop.eup %14002 }
 0x8bb   : > { %v4970_v48 = vmul.f32 %v14003_v36, %v16460_v15  ;;  %v4770_v5 = vpop.xlane.xlu0 %4769 }
 0x8bc   : > { %v4845_v59 = vmax.f32 %v4770_v5, 1e-24 }
 0x8bd   : > { %v5009_v6 = vpack.c.bf16 %v4970_v48, %v4969_v32  ;;  %v4772_v63 = vpop.xlane.xlu1 %4771 }
 0x8be   : > { %14008 = vrsqrt.f32 %v4845_v59  ;;  %v4846_v34 = vmax.f32 %v4772_v63, 1e-24 }
 0x8bf   : > { %5387 = vmatmul.mubr.bf16.gmra.mrb[24].mxu0 %v5009_v6 }
 0x8c0   : > { %v14005_v16 = vpop.eup %14004  ;;  %14010 = vrsqrt.f32 %v4846_v34  ;;  %5396 = vmatprep.mubr.bf16.mxu0 %v18467_v54 }
 0x8c1   : > { %v4971_v21 = vmul.f32 %v14005_v16, %v16469_v3 }
 0x8c2   : > { %v14007_v33 = vpop.eup %14006 }
 0x8c3   : > { %v4972_v23 = vmul.f32 %v14007_v33, %v16474_v9  ;;  %v4774_v1 = vpop.xlane.xlu0 %4773 }
 0x8c4   : > { %v4847_v22 = vmax.f32 %v4774_v1, 1e-24 }
 0x8c5   : > { %v5010_v19 = vpack.c.bf16 %v4972_v23, %v4971_v21  ;;  %v4776_v15 = vpop.xlane.xlu1 %4775 }
 0x8c6   : > { %14012 = vrsqrt.f32 %v4847_v22  ;;  %v4848_v58 = vmax.f32 %v4776_v15, 1e-24 }
 0x8c7   : > { %5397 = vmatmul.mubr.bf16.gmra.mrb[28].mxu0 %v5010_v19 }
 0x8c8   : > { %v14009_v28 = vpop.eup %14008  ;;  %14014 = vrsqrt.f32 %v4848_v58  ;;  %5406 = vmatprep.mubr.bf16.mxu0 %v18467_v54 }
 0x8c9   : > { %v4973_v42 = vmul.f32 %v14009_v28, %v16482_v20 }
 0x8ca   : > { %v14011_v26 = vpop.eup %14010 }
 0x8cb   : > { %v4974_v0 = vmul.f32 %v14011_v26, %v16487_v53  ;;  %v4778_v56 = vpop.xlane.xlu0 %4777 }
 0x8cc   : > { %v4849_v3 = vmax.f32 %v4778_v56, 1e-24 }
 0x8cd   : > { %v5011_v29 = vpack.c.bf16 %v4974_v0, %v4973_v42  ;;  %v4780_v9 = vpop.xlane.xlu1 %4779 }
 0x8ce   : > { %14016 = vrsqrt.f32 %v4849_v3  ;;  %v4850_v39 = vmax.f32 %v4780_v9, 1e-24 }
 0x8cf   : > { %5407 = vmatmul.mubr.bf16.gmra.mrb[32].mxu0 %v5011_v29 }
 0x8d0   : > { %v14013_v51 = vpop.eup %14012  ;;  %14018 = vrsqrt.f32 %v4850_v39  ;;  %5416 = vmatprep.mubr.bf16.mxu0 %v18467_v54 }
 0x8d1   : > { %v4975_v55 = vmul.f32 %v14013_v51, %v16495_v4 }
 0x8d2   : > { %v14015_v37 = vpop.eup %14014  ;;  %v16609_v14 = vpop.f32.mrb[184].mxu0 }
 0x8d3   : > { %v4976_v20 = vmul.f32 %v14015_v37, %v16500_v61  ;;  %v5150_v25 = vpop.f32.mrb[185].mxu0  ;;  %v4782_v53 = vpop.xlane.xlu0 %4781 }
 0x8d4   : > { %v5499_v41 = vadd.f32 %v16616_v46, %v5150_v25  ;;  %v4851_v11 = vmax.f32 %v4782_v53, 1e-24  ;;  %v16619_v38 = vpop.f32.mrb[186].mxu0 }
 0x8d5   : > { %v5012_v57 = vpack.c.bf16 %v4976_v20, %v4975_v55  ;;  %v5467_v35 = vpack.c.bf16 %v16619_v38, %v16609_v14  ;;  %v4784_v40 = vpop.xlane.xlu1 %4783  ;;  %v5154_v4 = vpop.f32.mrb[187].mxu0 }
 0x8d6   : > { %14020 = vrsqrt.f32 %v4851_v11  ;;  %v4852_v61 = vmax.f32 %v4784_v40, 1e-24  ;;  %v5500_v45 = vadd.f32 %v16616_v46, %v5154_v4  ;;  %v5563_v52 = vmax.f32 %v5499_v41, 0.0 }
 0x8d7   : > { %5417 = vmatmul.mubr.bf16.gmra.mrb[36].mxu0 %v5012_v57 }
 0x8d8   : > { %v14017_v2 = vpop.eup %14016  ;;  %14022 = vrsqrt.f32 %v4852_v61  ;;  %5426 = vmatprep.mubr.bf16.mxu0 %v18467_v54  ;;  %v5564_v50 = vmax.f32 %v5500_v45, 0.0 }
 0x8d9   : > { %v4977_v27 = vmul.f32 %v14017_v2, %v16513_v7 }
 0x8da   : > { %v14019_v13 = vpop.eup %14018  ;;  %v16625_v47 = vpop.f32.mrb[188].mxu0  ;;  %v16627_v62 = vpack.c.bf16 %v5564_v50, %v5563_v52 }
 0x8db   : > { %v4978_v18 = vmul.f32 %v14019_v13, %v16518_v44  ;;  %v5160_v49 = vpop.f32.mrb[189].mxu0  ;;  %v4786_v31 = vpop.xlane.xlu0 %4785 }
 0x8dc   : > { %v5501_v10 = vadd.f32 %v16616_v46, %v5160_v49  ;;  %v4853_v60 = vmax.f32 %v4786_v31, 1e-24  ;;  %v16632_v36 = vpop.f32.mrb[190].mxu0 }
 0x8dd   : > { %v5013_v32 = vpack.c.bf16 %v4978_v18, %v4977_v27  ;;  %v5468_v48 = vpack.c.bf16 %v16632_v36, %v16625_v47  ;;  %v4788_v5 = vpop.xlane.xlu1 %4787  ;;  %v5164_v59 = vpop.f32.mrb[191].mxu0 }
 0x8de   : > { %14024 = vrsqrt.f32 %v4853_v60  ;;  %v4854_v6 = vmax.f32 %v4788_v5, 1e-24  ;;  %v5502_v63 = vadd.f32 %v16616_v46, %v5164_v59  ;;  %v5565_v44 = vmax.f32 %v5501_v10, 0.0 }
 0x8df   : > { %5427 = vmatmul.mubr.bf16.gmra.mrb[40].mxu0 %v5013_v32 }
 0x8e0   : > { %v14021_v7 = vpop.eup %14020  ;;  %14026 = vrsqrt.f32 %v4854_v6  ;;  %v5566_v34 = vmax.f32 %v5502_v63, 0.0  ;;  %5436 = vmatprep.mubr.bf16.mxu0 %v18467_v54 }
 0x8e1   : > { %v4979_v23 = vmul.f32 %v14021_v7, %v16526_v43 }
 0x8e2   : > { %v14023_v16 = vpop.eup %14022  ;;  %v16638_v33 = vpack.c.bf16 %v5566_v34, %v5565_v44  ;;  %v16640_v21 = vpop.f32.mrb[192].mxu0 }
 0x8e3   : > { %v4980_v1 = vmul.f32 %v14023_v16, %v16531_v8  ;;  %v5170_v22 = vpop.f32.mrb[193].mxu0  ;;  %v4790_v19 = vpop.xlane.xlu0 %4789 }
 0x8e4   : > { %v5503_v15 = vadd.f32 %v16616_v46, %v5170_v22  ;;  %v4855_v58 = vmax.f32 %v4790_v19, 1e-24  ;;  %v16645_v28 = vpop.f32.mrb[194].mxu0 }
 0x8e5   : > { %v5014_v26 = vpack.c.bf16 %v4980_v1, %v4979_v23  ;;  %v5469_v42 = vpack.c.bf16 %v16645_v28, %v16640_v21  ;;  %v4792_v0 = vpop.xlane.xlu1 %4791  ;;  %v5174_v56 = vpop.f32.mrb[195].mxu0 }
 0x8e6   : > { %14028 = vrsqrt.f32 %v4855_v58  ;;  %v4856_v3 = vmax.f32 %v4792_v0, 1e-24  ;;  %v5504_v29 = vadd.f32 %v16616_v46, %v5174_v56  ;;  %v5567_v8 = vmax.f32 %v5503_v15, 0.0 }
 0x8e7   : > { %5437 = vmatmul.mubr.bf16.gmra.mrb[44].mxu0 %v5014_v26 }
 0x8e8   : > { %v14025_v43 = vpop.eup %14024  ;;  %14030 = vrsqrt.f32 %v4856_v3  ;;  %5446 = vmatprep.mubr.bf16.mxu0 %v18467_v54  ;;  %v5568_v9 = vmax.f32 %v5504_v29, 0.0 }
 0x8e9   : > { %v4981_v55 = vmul.f32 %v14025_v43, %v16539_v24 }
 0x8ea   : > { %v14027_v39 = vpop.eup %14026  ;;  %v16651_v51 = vpop.f32.mrb[196].mxu0  ;;  %v5629_v37 = vpack.c.bf16 %v5568_v9, %v5567_v8 }
 0x8eb   : > { %v4982_v20 = vmul.f32 %v14027_v39, %v16544_v30  ;;  %v5180_v25 = vpop.f32.mrb[197].mxu0 }
 0x8ec   : > { %v5505_v53 = vadd.f32 %v16616_v46, %v5180_v25  ;;  %v5182_v41 = vpop.f32.mrb[198].mxu0 }
 0x8ed   : > { %v5015_v11 = vpack.c.bf16 %v4982_v20, %v4981_v55  ;;  %v5470_v57 = vpack.c.bf16 %v5182_v41, %v16651_v51  ;;  %v5184_v40 = vpop.f32.mrb[199].mxu0 }
 0x8ee   : > { %v5506_v4 = vadd.f32 %v16616_v46, %v5184_v40  ;;  %v5569_v45 = vmax.f32 %v5505_v53, 0.0 }
 0x8ef   : > { %5447 = vmatmul.mubr.bf16.gmra.mrb[48].mxu0 %v5015_v11 }
 0x8f0   : > { %v14029_v61 = vpop.eup %14028  ;;  %v5570_v2 = vmax.f32 %v5506_v4, 0.0  ;;  %5456 = vmatprep.mubr.bf16.mxu0 %v18467_v54 }
 0x8f1   : > { %v4983_v30 = vmul.f32 %v14029_v61, %v16552_v12 }
 0x8f2   : > { %v14031_v52 = vpop.eup %14030  ;;  %v5630_v24 = vpack.c.bf16 %v5570_v2, %v5569_v45  ;;  %v5188_v50 = vpop.f32.mrb[200].mxu0 }
 0x8f3   : > { %v4984_v13 = vmul.f32 %v14031_v52, %v16557_v17  ;;  %v5190_v27 = vpop.f32.mrb[201].mxu0 }
 0x8f4   : > { %v5507_v18 = vadd.f32 %v16616_v46, %v5190_v27  ;;  %v5192_v49 = vpop.f32.mrb[202].mxu0 }
 0x8f5   : > { %v5016_v31 = vpack.c.bf16 %v4984_v13, %v4983_v30  ;;  %v5471_v10 = vpack.c.bf16 %v5192_v49, %v5188_v50  ;;  %v5194_v60 = vpop.f32.mrb[203].mxu0 }
 0x8f6   : > { %v5508_v32 = vadd.f32 %v16616_v46, %v5194_v60  ;;  %v5571_v5 = vmax.f32 %v5507_v18, 0.0 }
 0x8f7   : > { %5457 = vmatmul.mubr.bf16.gmra.mrb[52].mxu0 %v5016_v31 }
 0x8f8   : > { %11735 = vmatprep.mubr.bf16.mxu0 %v16627_v62  ;;  %v5572_v59 = vmax.f32 %v5508_v32, 0.0 }
 0x8fa   : > { %v5198_v6 = vpop.f32.mrb[204].mxu0  ;;  %v5631_v63 = vpack.c.bf16 %v5572_v59, %v5571_v5 }
 0x8fb   : > { %v5200_v7 = vpop.f32.mrb[205].mxu0 }
 0x8fc   : > { %v5509_v12 = vadd.f32 %v16616_v46, %v5200_v7  ;;  %v5202_v17 = vpop.f32.mrb[206].mxu0 }
 0x8fd   : > { %v5472_v44 = vpack.c.bf16 %v5202_v17, %v5198_v6  ;;  %v5204_v34 = vpop.f32.mrb[207].mxu0 }
 0x8fe   : > { %v5510_v16 = vadd.f32 %v16616_v46, %v5204_v34  ;;  %v5573_v23 = vmax.f32 %v5509_v12, 0.0 }
 0x8ff   : > { %11736 = vmatmul.mubr.bf16.vlgmr.msra.gmra.mrb[56].mxu0 %v16638_v33 }
 0x900   : > { %v5574_v1 = vmax.f32 %v5510_v16, 0.0  ;;  %6406 = vmatpush1.bf16.msra.mxu0 %v5467_v35  ;;  %11739 = vmatprep.mubr.bf16.mxu0 %v5629_v37 }
 0x901   : > { %6407 = vmatprep.subr.bf16.mxu0 %v18467_v54 }
 0x902   : > { %v5632_v62 = vpack.c.bf16 %v5574_v1, %v5573_v23  ;;  %v5208_v22 = vpop.f32.mrb[208].mxu0 }
 0x903   : > { %v5210_v19 = vpop.f32.mrb[209].mxu0 }
 0x904   : > { %v5511_v15 = vadd.f32 %v16616_v46, %v5210_v19  ;;  %6408 = vmatpush1.bf16.msra.mxu0 %v5468_v48  ;;  %v5212_v58 = vpop.f32.mrb[210].mxu0 }
 0x905   : > { %v5473_v33 = vpack.c.bf16 %v5212_v58, %v5208_v22  ;;  %v5214_v26 = vpop.f32.mrb[211].mxu0  ;;  %6409 = vmatprep.subr.bf16.mxu0 %v18467_v54 }
 0x906   : > { %v5512_v14 = vadd.f32 %v16616_v46, %v5214_v26  ;;  %v5575_v38 = vmax.f32 %v5511_v15, 0.0 }
 0x907   : > { %11740 = vmatmul.mubr.bf16.gmra.mrb[60].mxu0 %v5630_v24 }
 0x908   : > { %6410 = vmatpush1.bf16.msra.mxu0 %v5469_v42  ;;  %11743 = vmatprep.mubr.bf16.mxu0 %v5631_v63  ;;  %v5576_v35 = vmax.f32 %v5512_v14, 0.0 }
 0x909   : > { %6411 = vmatprep.subr.bf16.mxu0 %v18467_v54 }
 0x90a   : > { %v5218_v0 = vpop.f32.mrb[212].mxu0  ;;  %v5633_v47 = vpack.c.bf16 %v5576_v35, %v5575_v38 }
 0x90b   : > { %v5220_v36 = vpop.f32.mrb[213].mxu0 }
 0x90c   : > { %v5513_v48 = vadd.f32 %v16616_v46, %v5220_v36  ;;  %6412 = vmatpush1.bf16.msra.mxu0 %v5470_v57  ;;  %v5222_v56 = vpop.f32.mrb[214].mxu0 }
 0x90d   : > { %v5474_v3 = vpack.c.bf16 %v5222_v56, %v5218_v0  ;;  %v5224_v29 = vpop.f32.mrb[215].mxu0  ;;  %6413 = vmatprep.subr.bf16.mxu0 %v18467_v54 }
 0x90e   : > { %v5514_v43 = vadd.f32 %v16616_v46, %v5224_v29  ;;  %v5577_v21 = vmax.f32 %v5513_v48, 0.0 }
 0x90f   : > { %11744 = vmatmul.mubr.bf16.gmra.mrb[64].mxu0 %v5632_v62 }
 0x910   : > { %v5578_v28 = vmax.f32 %v5514_v43, 0.0  ;;  %6414 = vmatpush1.bf16.msra.mxu0 %v5471_v10  ;;  %11747 = vmatprep.mubr.bf16.mxu0 %v5633_v47 }
 0x911   : > { %6415 = vmatprep.subr.bf16.mxu0 %v18467_v54 }
 0x912   : > { %v5634_v42 = vpack.c.bf16 %v5578_v28, %v5577_v21  ;;  %v5228_v8 = vpop.f32.mrb[216].mxu0 }
 0x913   : > { %v5230_v9 = vpop.f32.mrb[217].mxu0 }
 0x914   : > { %v5515_v39 = vadd.f32 %v16616_v46, %v5230_v9  ;;  %6416 = vmatpush1.bf16.msra.mxu0 %v5472_v44  ;;  %v5232_v51 = vpop.f32.mrb[218].mxu0 }
 0x915   : > { %v5475_v37 = vpack.c.bf16 %v5232_v51, %v5228_v8  ;;  %v5234_v55 = vpop.f32.mrb[219].mxu0  ;;  %6417 = vmatprep.subr.bf16.mxu0 %v18467_v54 }
 0x916   : > { %v5516_v20 = vadd.f32 %v16616_v46, %v5234_v55  ;;  %v5579_v25 = vmax.f32 %v5515_v39, 0.0 }
 0x917   : > { %11748 = vmatmul.mubr.bf16.gmra.mrb[68].mxu0 %v5634_v42 }
 0x918   : > { %6418 = vmatpush1.bf16.msra.mxu0 %v5473_v33  ;;  %v5580_v53 = vmax.f32 %v5516_v20, 0.0 }
 0x919   : > { %6419 = vmatprep.subr.bf16.mxu0 %v18467_v54 }
 0x91a   : > { %v5238_v41 = vpop.f32.mrb[220].mxu0  ;;  %v5635_v11 = vpack.c.bf16 %v5580_v53, %v5579_v25 }
 0x91b   : > { %v5240_v57 = vpop.f32.mrb[221].mxu0 }
 0x91c   : > { %v5517_v40 = vadd.f32 %v16616_v46, %v5240_v57  ;;  %6420 = vmatpush1.bf16.msra.mxu0 %v5474_v3  ;;  %v5242_v4 = vpop.f32.mrb[222].mxu0  ;;  %11751 = vmatprep.mubr.bf16.mxu0 %v5635_v11 }
 0x91d   : > { %v5476_v61 = vpack.c.bf16 %v5242_v4, %v5238_v41  ;;  %v5244_v45 = vpop.f32.mrb[223].mxu0  ;;  %6421 = vmatprep.subr.bf16.mxu0 %v18467_v54 }
 0x91e   : > { %v5518_v2 = vadd.f32 %v16616_v46, %v5244_v45  ;;  %v5581_v52 = vmax.f32 %v5517_v40, 0.0 }
 0x920   : > { %v5582_v24 = vmax.f32 %v5518_v2, 0.0  ;;  %6422 = vmatpush1.bf16.msra.mxu0 %v5475_v37 }
 0x921   : > { %6423 = vmatprep.subr.bf16.mxu0 %v18467_v54 }
 0x922   : > { %v5636_v50 = vpack.c.bf16 %v5582_v24, %v5581_v52  ;;  %v5248_v30 = vpop.f32.mrb[224].mxu0 }
 0x923   : > { %v5250_v13 = vpop.f32.mrb[225].mxu0 }
 0x924   : > { %v5519_v27 = vadd.f32 %v16616_v46, %v5250_v13  ;;  %6424 = vmatpush1.bf16.msra.mxu0 %v5476_v61  ;;  %v5252_v18 = vpop.f32.mrb[226].mxu0 }
 0x925   : > { %v5477_v49 = vpack.c.bf16 %v5252_v18, %v5248_v30  ;;  %11752 = vmatmul.mubr.bf16.gmra.mrb[72].mxu0 %v5636_v50  ;;  %v5254_v31 = vpop.f32.mrb[227].mxu0  ;;  %6425 = vmatprep.subr.bf16.mxu0 %v18467_v54 }
 0x926   : > { %v5520_v10 = vadd.f32 %v16616_v46, %v5254_v31  ;;  %v5583_v60 = vmax.f32 %v5519_v27, 0.0 }
 0x928   : > { %6426 = vmatpush1.bf16.msra.mxu0 %v5477_v49  ;;  %v5584_v32 = vmax.f32 %v5520_v10, 0.0 }
 0x929   : > { %6427 = vmatprep.subr.bf16.mxu0 %v18467_v54 }
 0x92a   : > { %v5258_v5 = vpop.f32.mrb[228].mxu0  ;;  %v5637_v59 = vpack.c.bf16 %v5584_v32, %v5583_v60 }
 0x92b   : > { %v5260_v6 = vpop.f32.mrb[229].mxu0 }
 0x92c   : > { %v5521_v63 = vadd.f32 %v16616_v46, %v5260_v6  ;;  %v5262_v7 = vpop.f32.mrb[230].mxu0  ;;  %11755 = vmatprep.mubr.bf16.mxu0 %v5637_v59 }
 0x92d   : > { %v5478_v12 = vpack.c.bf16 %v5262_v7, %v5258_v5  ;;  %v5264_v17 = vpop.f32.mrb[231].mxu0 }
 0x92e   : > { %v5522_v44 = vadd.f32 %v16616_v46, %v5264_v17  ;;  %v5585_v34 = vmax.f32 %v5521_v63, 0.0 }
 0x92f   : > { %6428 = vmatpush1.bf16.msra.mxu0 %v5478_v12 }
 0x930   : > { %v5586_v16 = vmax.f32 %v5522_v44, 0.0  ;;  %6429 = vmatprep.subr.bf16.mxu0 %v18467_v54 }
 0x932   : > { %v5638_v23 = vpack.c.bf16 %v5586_v16, %v5585_v34  ;;  %v5268_v1 = vpop.f32.mrb[232].mxu0 }
 0x933   : > { %v5270_v62 = vpop.f32.mrb[233].mxu0 }
 0x934   : > { %v5523_v22 = vadd.f32 %v16616_v46, %v5270_v62  ;;  %v5272_v19 = vpop.f32.mrb[234].mxu0  ;;  %11756 = vmatmul.mubr.bf16.gmra.mrb[76].mxu0 %v5638_v23 }
 0x935   : > { %v5479_v15 = vpack.c.bf16 %v5272_v19, %v5268_v1  ;;  %v5274_v58 = vpop.f32.mrb[235].mxu0 }
 0x936   : > { %v5524_v33 = vadd.f32 %v16616_v46, %v5274_v58  ;;  %v5587_v26 = vmax.f32 %v5523_v22, 0.0 }
 0x937   : > { %6430 = vmatpush1.bf16.msra.mxu0 %v5479_v15 }
 0x938   : > { %v5588_v14 = vmax.f32 %v5524_v33, 0.0  ;;  %6431 = vmatprep.subr.bf16.mxu0 %v18467_v54 }
 0x93a   : > { %v5278_v38 = vpop.f32.mrb[236].mxu0  ;;  %v5639_v35 = vpack.c.bf16 %v5588_v14, %v5587_v26 }
 0x93b   : > { %v5280_v0 = vpop.f32.mrb[237].mxu0 }
 0x93c   : > { %v5525_v47 = vadd.f32 %v16616_v46, %v5280_v0  ;;  %v5282_v36 = vpop.f32.mrb[238].mxu0  ;;  %11759 = vmatprep.mubr.bf16.mxu0 %v5639_v35 }
 0x93d   : > { %v5480_v48 = vpack.c.bf16 %v5282_v36, %v5278_v38  ;;  %v5284_v56 = vpop.f32.mrb[239].mxu0 }
 0x93e   : > { %v5526_v3 = vadd.f32 %v16616_v46, %v5284_v56  ;;  %v5589_v29 = vmax.f32 %v5525_v47, 0.0 }
 0x93f   : > { %6432 = vmatpush1.bf16.msra.mxu0 %v5480_v48 }
 0x940   : > { %v5590_v43 = vmax.f32 %v5526_v3, 0.0  ;;  %6433 = vmatprep.subr.bf16.mxu0 %v18467_v54 }
 0x942   : > { %v5640_v21 = vpack.c.bf16 %v5590_v43, %v5589_v29  ;;  %v5288_v28 = vpop.f32.mrb[240].mxu0 }
 0x943   : > { %v5290_v42 = vpop.f32.mrb[241].mxu0 }
 0x944   : > { %v5527_v8 = vadd.f32 %v16616_v46, %v5290_v42  ;;  %v5292_v9 = vpop.f32.mrb[242].mxu0  ;;  %11760 = vmatmul.mubr.bf16.gmra.mrb[80].mxu0 %v5640_v21 }
 0x945   : > { %v5481_v39 = vpack.c.bf16 %v5292_v9, %v5288_v28  ;;  %v5294_v51 = vpop.f32.mrb[243].mxu0 }
 0x946   : > { %v5528_v37 = vadd.f32 %v16616_v46, %v5294_v51  ;;  %v5591_v55 = vmax.f32 %v5527_v8, 0.0 }
 0x947   : > { %6434 = vmatpush1.bf16.msra.mxu0 %v5481_v39 }
 0x948   : > { %v5592_v20 = vmax.f32 %v5528_v37, 0.0  ;;  %6435 = vmatprep.subr.bf16.mxu0 %v18467_v54 }
 0x94a   : > { %v5298_v25 = vpop.f32.mrb[244].mxu0  ;;  %v5641_v53 = vpack.c.bf16 %v5592_v20, %v5591_v55 }
 0x94b   : > { %v5300_v41 = vpop.f32.mrb[245].mxu0 }
 0x94c   : > { %v5529_v11 = vadd.f32 %v16616_v46, %v5300_v41  ;;  %v5302_v57 = vpop.f32.mrb[246].mxu0  ;;  %11763 = vmatprep.mubr.bf16.mxu0 %v5641_v53 }
 0x94d   : > { %v5482_v40 = vpack.c.bf16 %v5302_v57, %v5298_v25  ;;  %v5304_v4 = vpop.f32.mrb[247].mxu0 }
 0x94e   : > { %v5530_v61 = vadd.f32 %v16616_v46, %v5304_v4  ;;  %v5593_v45 = vmax.f32 %v5529_v11, 0.0 }
 0x94f   : > { %6436 = vmatpush1.bf16.msra.mxu0 %v5482_v40 }
 0x950   : > { %v5594_v2 = vmax.f32 %v5530_v61, 0.0  ;;  %6694 = vmatprep.subr.bf16.mxu0 %v18467_v54 }
 0x952   : > { %v5642_v52 = vpack.c.bf16 %v5594_v2, %v5593_v45  ;;  %v16712_v24 = vpop.f32.mrb[248].mxu0 }
 0x953   : > { %v5310_v50 = vpop.f32.mrb[249].mxu0 }
 0x954   : > { %v5531_v30 = vadd.f32 %v16616_v46, %v5310_v50  ;;  %v16715_v13 = vpop.f32.mrb[250].mxu0  ;;  %11764 = vmatmul.mubr.bf16.gmra.mrb[84].mxu0 %v5642_v52 }
 0x955   : > { %v5483_v27 = vpack.c.bf16 %v16715_v13, %v16712_v24  ;;  %v5314_v18 = vpop.f32.mrb[251].mxu0 }
 0x956   : > { %v5532_v49 = vadd.f32 %v16616_v46, %v5314_v18  ;;  %v5595_v31 = vmax.f32 %v5531_v30, 0.0 }
 0x958   : > { %v5596_v10 = vmax.f32 %v5532_v49, 0.0 }
 0x95a   : > { %v16720_v60 = vpop.f32.mrb[252].mxu0  ;;  %v5643_v32 = vpack.c.bf16 %v5596_v10, %v5595_v31 }
 0x95b   : > { %v5320_v5 = vpop.f32.mrb[253].mxu0 }
 0x95c   : > { %v5533_v59 = vadd.f32 %v16616_v46, %v5320_v5  ;;  %v16723_v6 = vpop.f32.mrb[254].mxu0  ;;  %11767 = vmatprep.mubr.bf16.mxu0 %v5643_v32 }
 0x95d   : > { %v5484_v63 = vpack.c.bf16 %v16723_v6, %v16720_v60  ;;  %v5324_v7 = vpop.f32.mrb[255].mxu0 }
 0x95e   : > { %v5534_v12 = vadd.f32 %v16616_v46, %v5324_v7  ;;  %v5597_v17 = vmax.f32 %v5533_v59, 0.0 }
 0x960   : > { %v5598_v44 = vmax.f32 %v5534_v12, 0.0 }
 0x962   : > { %v5644_v34 = vpack.c.bf16 %v5598_v44, %v5597_v17  ;;  %v16728_v16 = vpop.f32.mrb[0].mxu0 }
 0x963   : > { %v5330_v23 = vpop.f32.mrb[1].mxu0 }
 0x964   : > { %v5535_v1 = vadd.f32 %v16616_v46, %v5330_v23  ;;  %v16731_v62 = vpop.f32.mrb[2].mxu0  ;;  %11768 = vmatmul.mubr.bf16.gmra.mrb[88].mxu0 %v5644_v34 }
 0x965   : > { %v5485_v22 = vpack.c.bf16 %v16731_v62, %v16728_v16  ;;  %v5334_v19 = vpop.f32.mrb[3].mxu0 }
 0x966   : > { %v5536_v15 = vadd.f32 %v16616_v46, %v5334_v19  ;;  %v5599_v58 = vmax.f32 %v5535_v1, 0.0 }
 0x968   : > { %v5600_v33 = vmax.f32 %v5536_v15, 0.0 }
 0x96a   : > { %v16736_v26 = vpop.f32.mrb[4].mxu0  ;;  %v5645_v14 = vpack.c.bf16 %v5600_v33, %v5599_v58 }
 0x96b   : > { %v5340_v38 = vpop.f32.mrb[5].mxu0 }
 0x96c   : > { %v5537_v35 = vadd.f32 %v16616_v46, %v5340_v38  ;;  %v16739_v0 = vpop.f32.mrb[6].mxu0  ;;  %11771 = vmatprep.mubr.bf16.mxu0 %v5645_v14 }
 0x96d   : > { %v5486_v47 = vpack.c.bf16 %v16739_v0, %v16736_v26  ;;  %v5344_v36 = vpop.f32.mrb[7].mxu0 }
 0x96e   : > { %v5538_v48 = vadd.f32 %v16616_v46, %v5344_v36  ;;  %v5601_v56 = vmax.f32 %v5537_v35, 0.0 }
 0x970   : > { %v5602_v3 = vmax.f32 %v5538_v48, 0.0 }
 0x972   : > { %v5646_v29 = vpack.c.bf16 %v5602_v3, %v5601_v56  ;;  %v16744_v43 = vpop.f32.mrb[8].mxu0 }
 0x973   : > { %v5350_v21 = vpop.f32.mrb[9].mxu0 }
 0x974   : > { %v5539_v28 = vadd.f32 %v16616_v46, %v5350_v21  ;;  %v16747_v42 = vpop.f32.mrb[10].mxu0  ;;  %11772 = vmatmul.mubr.bf16.gmra.mrb[92].mxu0 %v5646_v29 }
 0x975   : > { %v5487_v8 = vpack.c.bf16 %v16747_v42, %v16744_v43  ;;  %v5354_v9 = vpop.f32.mrb[11].mxu0 }
 0x976   : > { %v5540_v39 = vadd.f32 %v16616_v46, %v5354_v9  ;;  %v5603_v51 = vmax.f32 %v5539_v28, 0.0 }
 0x978   : > { %v5604_v37 = vmax.f32 %v5540_v39, 0.0 }
 0x97a   : > { %v16752_v55 = vpop.f32.mrb[12].mxu0  ;;  %v5647_v20 = vpack.c.bf16 %v5604_v37, %v5603_v51 }
 0x97b   : > { %v5360_v25 = vpop.f32.mrb[13].mxu0 }
 0x97c   : > { %v5541_v53 = vadd.f32 %v16616_v46, %v5360_v25  ;;  %v16755_v41 = vpop.f32.mrb[14].mxu0  ;;  %11775 = vmatprep.mubr.bf16.mxu0 %v5647_v20 }
 0x97d   : > { %v5488_v11 = vpack.c.bf16 %v16755_v41, %v16752_v55  ;;  %v5364_v57 = vpop.f32.mrb[15].mxu0 }
 0x97e   : > { %v5542_v40 = vadd.f32 %v16616_v46, %v5364_v57  ;;  %v5605_v4 = vmax.f32 %v5541_v53, 0.0 }
 0x980   : > { %v5606_v61 = vmax.f32 %v5542_v40, 0.0 }
 0x982   : > { %v5648_v45 = vpack.c.bf16 %v5606_v61, %v5605_v4  ;;  %v16760_v2 = vpop.f32.mrb[16].mxu0 }
 0x983   : > { %v5370_v52 = vpop.f32.mrb[17].mxu0 }
 0x984   : > { %v5543_v50 = vadd.f32 %v16616_v46, %v5370_v52  ;;  %v16763_v30 = vpop.f32.mrb[18].mxu0  ;;  %11776 = vmatmul.mubr.bf16.gmra.mrb[96].mxu0 %v5648_v45 }
 0x985   : > { %v5489_v18 = vpack.c.bf16 %v16763_v30, %v16760_v2  ;;  %v5374_v49 = vpop.f32.mrb[19].mxu0 }
 0x986   : > { %v5544_v31 = vadd.f32 %v16616_v46, %v5374_v49  ;;  %v5607_v10 = vmax.f32 %v5543_v50, 0.0 }
 0x988   : > { %v5608_v32 = vmax.f32 %v5544_v31, 0.0 }
 0x98a   : > { %v16768_v5 = vpop.f32.mrb[20].mxu0  ;;  %v5649_v59 = vpack.c.bf16 %v5608_v32, %v5607_v10 }
 0x98b   : > { %v5380_v7 = vpop.f32.mrb[21].mxu0 }
 0x98c   : > { %v5545_v12 = vadd.f32 %v16616_v46, %v5380_v7  ;;  %v16771_v17 = vpop.f32.mrb[22].mxu0  ;;  %11779 = vmatprep.mubr.bf16.mxu0 %v5649_v59 }
 0x98d   : > { %v5490_v44 = vpack.c.bf16 %v16771_v17, %v16768_v5  ;;  %v5384_v34 = vpop.f32.mrb[23].mxu0  ;;  %v14318_v17 = vld [vmem:[%s14690_s22 + $0xa4] ss:$16 sps:$4 sm:$0xff]  }
 0x98e   : > { %v5546_v23 = vadd.f32 %v16616_v46, %v5384_v34  ;;  %v5609_v1 = vmax.f32 %v5545_v12, 0.0 }
 0x990   : > { %v5610_v19 = vmax.f32 %v5546_v23, 0.0 }
 0x992   : > { %v5650_v15 = vpack.c.bf16 %v5610_v19, %v5609_v1  ;;  %v16776_v58 = vpop.f32.mrb[24].mxu0 }
 0x993   : > { %v5390_v33 = vpop.f32.mrb[25].mxu0 }
 0x994   : > { %v5547_v14 = vadd.f32 %v16616_v46, %v5390_v33  ;;  %v16779_v38 = vpop.f32.mrb[26].mxu0  ;;  %11780 = vmatmul.mubr.bf16.gmra.mrb[100].mxu0 %v5650_v15 }
 0x995   : > { %v5491_v35 = vpack.c.bf16 %v16779_v38, %v16776_v58  ;;  %v5394_v36 = vpop.f32.mrb[27].mxu0  ;;  %v14319_v58 = vld [vmem:[%s14690_s22 + $0xa0] ss:$16 sps:$4 sm:$0xff]   ;;  %v14320_v38 = vld [vmem:[%s14690_s22 + $0xc4] ss:$16 sps:$4 sm:$0xff]  }
 0x996   : > { %v5548_v48 = vadd.f32 %v16616_v46, %v5394_v36  ;;  %v5611_v56 = vmax.f32 %v5547_v14, 0.0 }
 0x998   : > { %v5612_v3 = vmax.f32 %v5548_v48, 0.0 }
 0x99a   : > { %v16784_v29 = vpop.f32.mrb[28].mxu0  ;;  %v5651_v21 = vpack.c.bf16 %v5612_v3, %v5611_v56 }
 0x99b   : > { %v5400_v28 = vpop.f32.mrb[29].mxu0 }
 0x99c   : > { %v5549_v9 = vadd.f32 %v16616_v46, %v5400_v28  ;;  %v16787_v39 = vpop.f32.mrb[30].mxu0  ;;  %11783 = vmatprep.mubr.bf16.mxu0 %v5651_v21  ;;  %v14309_v21 = vld [vmem:[%s14690_s22] ss:$16 sps:$4 sm:$0xff]  }
 0x99d   : > { %v5492_v51 = vpack.c.bf16 %v16787_v39, %v16784_v29  ;;  %v5404_v37 = vpop.f32.mrb[31].mxu0 }
 0x99e   : > { %v5550_v20 = vadd.f32 %v16616_v46, %v5404_v37  ;;  %v5613_v25 = vmax.f32 %v5549_v9, 0.0 }
 0x9a0   : > { %v5614_v53 = vmax.f32 %v5550_v20, 0.0 }
 0x9a2   : > { %v5652_v57 = vpack.c.bf16 %v5614_v53, %v5613_v25  ;;  %v16792_v40 = vpop.f32.mrb[32].mxu0 }
 0x9a3   : > { %v5410_v4 = vpop.f32.mrb[33].mxu0 }
 0x9a4   : > { %v5551_v61 = vadd.f32 %v16616_v46, %v5410_v4  ;;  %v16795_v45 = vpop.f32.mrb[34].mxu0  ;;  %11784 = vmatmul.mubr.bf16.gmra.mrb[104].mxu0 %v5652_v57 }
 0x9a5   : > { %v5493_v52 = vpack.c.bf16 %v16795_v45, %v16792_v40  ;;  %v5414_v50 = vpop.f32.mrb[35].mxu0 }
 0x9a6   : > { %v5552_v49 = vadd.f32 %v16616_v46, %v5414_v50  ;;  %v5615_v31 = vmax.f32 %v5551_v61, 0.0 }
 0x9a8   : > { %v5616_v10 = vmax.f32 %v5552_v49, 0.0 }
 0x9aa   : > { %v16800_v32 = vpop.f32.mrb[36].mxu0  ;;  %v5653_v59 = vpack.c.bf16 %v5616_v10, %v5615_v31 }
 0x9ab   : > { %v5420_v7 = vpop.f32.mrb[37].mxu0 }
 0x9ac   : > { %v5553_v12 = vadd.f32 %v16616_v46, %v5420_v7  ;;  %v16803_v34 = vpop.f32.mrb[38].mxu0  ;;  %11787 = vmatprep.mubr.bf16.mxu0 %v5653_v59 }
 0x9ad   : > { %v5424_v1 = vpop.f32.mrb[39].mxu0 }
 0x9ae   : > { %v5554_v19 = vadd.f32 %v16616_v46, %v5424_v1  ;;  %v5617_v15 = vmax.f32 %v5553_v12, 0.0 }
 0x9b0   : > { %v5618_v33 = vmax.f32 %v5554_v19, 0.0 }
 0x9b2   : > { %v5654_v14 = vpack.c.bf16 %v5618_v33, %v5617_v15  ;;  %v16808_v36 = vpop.f32.mrb[40].mxu0 }
 0x9b3   : > { %v5430_v48 = vpop.f32.mrb[41].mxu0 }
 0x9b4   : > { %v5555_v56 = vadd.f32 %v16616_v46, %v5430_v48  ;;  %v16811_v3 = vpop.f32.mrb[42].mxu0  ;;  %11788 = vmatmul.mubr.bf16.gmra.mrb[108].mxu0 %v5654_v14 }
 0x9b5   : > { %v5434_v28 = vpop.f32.mrb[43].mxu0 }
 0x9b6   : > { %v5556_v9 = vadd.f32 %v16616_v46, %v5434_v28  ;;  %v5619_v37 = vmax.f32 %v5555_v56, 0.0 }
 0x9b8   : > { %v5620_v20 = vmax.f32 %v5556_v9, 0.0 }
 0x9ba   : > { %v16816_v25 = vpop.f32.mrb[44].mxu0  ;;  %v5655_v53 = vpack.c.bf16 %v5620_v20, %v5619_v37 }
 0x9bb   : > { %v5440_v57 = vpop.f32.mrb[45].mxu0 }
 0x9bc   : > { %v5557_v4 = vadd.f32 %v16616_v46, %v5440_v57  ;;  %v16819_v61 = vpop.f32.mrb[46].mxu0  ;;  %11791 = vmatprep.mubr.bf16.mxu0 %v5655_v53 }
 0x9bd   : > { %v5444_v49 = vpop.f32.mrb[47].mxu0 }
 0x9be   : > { %v5558_v31 = vadd.f32 %v16616_v46, %v5444_v49  ;;  %v5621_v10 = vmax.f32 %v5557_v4, 0.0 }
 0x9c0   : > { %v5622_v59 = vmax.f32 %v5558_v31, 0.0 }
 0x9c2   : > { %v5656_v7 = vpack.c.bf16 %v5622_v59, %v5621_v10  ;;  %v16824_v12 = vpop.f32.mrb[48].mxu0 }
 0x9c3   : > { %v5450_v1 = vpop.f32.mrb[49].mxu0 }
 0x9c4   : > { %v5559_v19 = vadd.f32 %v16616_v46, %v5450_v1  ;;  %v16827_v15 = vpop.f32.mrb[50].mxu0  ;;  %11792 = vmatmul.mubr.bf16.gmra.mrb[112].mxu0 %v5656_v7 }
 0x9c5   : > { %v5454_v14 = vpop.f32.mrb[51].mxu0 }
 0x9c6   : > { %v5560_v48 = vadd.f32 %v16616_v46, %v5454_v14  ;;  %v5623_v56 = vmax.f32 %v5559_v19, 0.0  ;;  %v16843_v19 = vld [vmem:[%s18431_s6] ss:$0 sm:$0xff] }
 0x9c8   : > { %v5624_v28 = vmax.f32 %v5560_v48, 0.0 }
 0x9ca   : > { %v16832_v9 = vpop.f32.mrb[52].mxu0  ;;  %v5657_v37 = vpack.c.bf16 %v5624_v28, %v5623_v56 }
 0x9cb   : > { %v5460_v20 = vpop.f32.mrb[53].mxu0 }
 0x9cc   : > { %v5561_v53 = vadd.f32 %v16616_v46, %v5460_v20  ;;  %v16835_v57 = vpop.f32.mrb[54].mxu0  ;;  %11795 = vmatprep.mubr.bf16.mxu0 %v5657_v37 }
 0x9cd   : > { %v5464_v49 = vpop.f32.mrb[55].mxu0 }
 0x9ce   : > { %v5562_v31 = vadd.f32 %v16616_v46, %v5464_v49  ;;  %v5625_v10 = vmax.f32 %v5561_v53, 0.0  ;;  %v16849_v46 = vld [vmem:[%s14690_s22 + $0x4] ss:$16 sps:$4 sm:$0xff]  }
 0x9d0   : > { %v5626_v59 = vmax.f32 %v5562_v31, 0.0 }
 0x9d2   : > { %v5658_v7 = vpack.c.bf16 %v5626_v59, %v5625_v10  ;;  %v11737_v1 = vpop.f32.mrb[56].mxu0 }
 0x9d3   : > { %v5702_v14 = vadd.f32 %v16843_v19, %v11737_v1  ;;  %v5693_v48 = vpop.f32.mrb[57].mxu0 }
 0x9d4   : > { %v5694_v56 = vadd.f32 %v16843_v19, %v5693_v48  ;;  %v11738_v28 = vpop.f32.mrb[58].mxu0  ;;  %11796 = vmatmul.mubr.bf16.gmra.mrb[116].mxu0 %v5658_v7 }
 0x9d5   : > { %v5705_v37 = vadd.f32 %v16843_v19, %v11738_v28  ;;  %v5696_v20 = vpop.f32.mrb[59].mxu0  ;;  %6437 = vmatprep.mubr.bf16.mxu0 %v16849_v46  ;;  %v5950_v49 = vmax.f32 %v5702_v14, 0.0 }
 0x9d6   : > { %v5697_v53 = vadd.f32 %v16843_v19, %v5696_v20  ;;  %v5948_v10 = vmax.f32 %v5694_v56, 0.0 }
 0x9d7   : > { %v5951_v31 = vmax.f32 %v5705_v37, 0.0 }
 0x9d8   : > { %v5949_v59 = vmax.f32 %v5697_v53, 0.0 }
 0x9d9   : > { %v6013_v1 = vpack.c.bf16 %v5951_v31, %v5950_v49 }
 0x9da   : > { %v11741_v4 = vpop.f32.mrb[60].mxu0  ;;  %v6012_v48 = vpack.c.bf16 %v5949_v59, %v5948_v10 }
 0x9db   : > { %v5718_v7 = vadd.f32 %v16843_v19, %v11741_v4  ;;  %v5709_v33 = vpop.f32.mrb[61].mxu0  ;;  %v14310_v4 = vld [vmem:[%s14690_s22 + $0x24] ss:$16 sps:$4 sm:$0xff]  }
 0x9dc   : > { %v5710_v28 = vadd.f32 %v16843_v19, %v5709_v33  ;;  %v11742_v50 = vpop.f32.mrb[62].mxu0  ;;  %11815 = vmatprep.mubr.bf16.mxu1 %v6012_v48  ;;  %6438 = vmatmul.mubr.bf16.vlgmr.msra.gmra.mrb[120].mxu0 %v14309_v21 }
 0x9dd   : > { %v5721_v23 = vadd.f32 %v16843_v19, %v11742_v50  ;;  %6695 = vmatpush1.bf16.msra.mxu0 %v5483_v27  ;;  %v5712_v14 = vpop.f32.mrb[63].mxu0  ;;  %11816 = vmatmul.mubr.bf16.vlgmr.msra.gmra.mrb[136].mxu1 %v6013_v1  ;;  %v5954_v33 = vmax.f32 %v5718_v7, 0.0 }
 0x9de   : > { %v5713_v56 = vadd.f32 %v16843_v19, %v5712_v14  ;;  %6696 = vmatprep.subr.bf16.mxu0 %v18467_v54  ;;  %6445 = vmatprep.mubr.bf16.mxu0 %v14310_v4  ;;  %v5952_v20 = vmax.f32 %v5710_v28, 0.0 }
 0x9df   : > { %v5955_v37 = vmax.f32 %v5721_v23, 0.0  ;;  %v14311_v23 = vld [vmem:[%s14690_s22 + $0x20] ss:$16 sps:$4 sm:$0xff]  }
 0x9e0   : > { %v5953_v53 = vmax.f32 %v5713_v56, 0.0 }
 0x9e1   : > { %6697 = vmatpush1.bf16.msra.mxu0 %v5484_v63  ;;  %v6015_v21 = vpack.c.bf16 %v5955_v37, %v5954_v33  ;;  %v14312_v63 = vld [vmem:[%s14690_s22 + $0x44] ss:$16 sps:$4 sm:$0xff]   ;;  %v14313_v33 = vld [vmem:[%s14690_s22 + $0x40] ss:$16 sps:$4 sm:$0xff]  }
 0x9e2   : > { %v11745_v24 = vpop.f32.mrb[64].mxu0  ;;  %6698 = vmatprep.subr.bf16.mxu0 %v18467_v54  ;;  %v6014_v13 = vpack.c.bf16 %v5953_v53, %v5952_v20 }
 0x9e3   : > { %v5734_v27 = vadd.f32 %v16843_v19, %v11745_v24  ;;  %v5725_v50 = vpop.f32.mrb[65].mxu0 }
 0x9e4   : > { %v5726_v49 = vadd.f32 %v16843_v19, %v5725_v50  ;;  %v11746_v31 = vpop.f32.mrb[66].mxu0  ;;  %11819 = vmatprep.mubr.bf16.mxu1 %v6014_v13  ;;  %6446 = vmatmul.mubr.bf16.gmra.mrb[124].mxu0 %v14311_v23  ;;  %v14316_v13 = vld [vmem:[%s14690_s22 + $0x84] ss:$16 sps:$4 sm:$0xff]  }
 0x9e5   : > { %v5737_v10 = vadd.f32 %v16843_v19, %v11746_v31  ;;  %6699 = vmatpush1.bf16.msra.mxu0 %v5485_v22  ;;  %v5728_v60 = vpop.f32.mrb[67].mxu0  ;;  %11820 = vmatmul.mubr.bf16.gmra.mrb[140].mxu1 %v6015_v21  ;;  %v5958_v59 = vmax.f32 %v5734_v27, 0.0 }
 0x9e6   : > { %v5729_v6 = vadd.f32 %v16843_v19, %v5728_v60  ;;  %6700 = vmatprep.subr.bf16.mxu0 %v18467_v54  ;;  %6453 = vmatprep.mubr.bf16.mxu0 %v14312_v63  ;;  %v5956_v48 = vmax.f32 %v5726_v49, 0.0  ;;  %v14317_v49 = vld [vmem:[%s14690_s22 + $0x80] ss:$16 sps:$4 sm:$0xff]  }
 0x9e7   : > { %v5959_v1 = vmax.f32 %v5737_v10, 0.0 }
 0x9e8   : > { %v5957_v7 = vmax.f32 %v5729_v6, 0.0 }
 0x9e9   : > { %6701 = vmatpush1.bf16.msra.mxu0 %v5486_v47  ;;  %v6017_v28 = vpack.c.bf16 %v5959_v1, %v5958_v59  ;;  %v14314_v47 = vld [vmem:[%s14690_s22 + $0x64] ss:$16 sps:$4 sm:$0xff]  }
 0x9ea   : > { %v11749_v16 = vpop.f32.mrb[68].mxu0  ;;  %6702 = vmatprep.subr.bf16.mxu0 %v18467_v54  ;;  %v6016_v62 = vpack.c.bf16 %v5957_v7, %v5956_v48  ;;  %v18546_v7 = vpack.c.bf16 %v16811_v3, %v16808_v36  ;;  %v18548_v36 = vpack.c.bf16 %v16827_v15, %v16824_v12  ;;  %v14324_v3 = vld [vmem:[%s14690_s22 + $0x104] ss:$16 sps:$4 sm:$0xff]  }
 0x9eb   : > { %v5750_v22 = vadd.f32 %v16843_v19, %v11749_v16  ;;  %v5741_v14 = vpop.f32.mrb[69].mxu0 }
 0x9ec   : > { %v5742_v56 = vadd.f32 %v16843_v19, %v5741_v14  ;;  %v11750_v4 = vpop.f32.mrb[70].mxu0  ;;  %11823 = vmatprep.mubr.bf16.mxu1 %v6016_v62  ;;  %6454 = vmatmul.mubr.bf16.gmra.mrb[128].mxu0 %v14313_v33  ;;  %v14323_v14 = vld [vmem:[%s14690_s22 + $0xe0] ss:$16 sps:$4 sm:$0xff]   ;;  %v18549_v33 = vpack.c.bf16 %v16835_v57, %v16832_v9 }
 0x9ed   : > { %v5753_v37 = vadd.f32 %v16843_v19, %v11750_v4  ;;  %6703 = vmatpush1.bf16.msra.mxu0 %v5487_v8  ;;  %v5744_v26 = vpop.f32.mrb[71].mxu0  ;;  %11824 = vmatmul.mubr.bf16.gmra.mrb[144].mxu1 %v6017_v28  ;;  %v5962_v20 = vmax.f32 %v5750_v22, 0.0  ;;  %v14315_v8 = vld [vmem:[%s14690_s22 + $0x60] ss:$16 sps:$4 sm:$0xff]   ;;  %v14322_v28 = vld [vmem:[%s14690_s22 + $0xe4] ss:$16 sps:$4 sm:$0xff]   ;;  %v18547_v22 = vpack.c.bf16 %v16819_v61, %v16816_v25 }
 0x9ee   : > { %v5745_v0 = vadd.f32 %v16843_v19, %v5744_v26  ;;  %6704 = vmatprep.subr.bf16.mxu0 %v18467_v54  ;;  %6461 = vmatprep.mubr.bf16.mxu0 %v14314_v47  ;;  %v5960_v21 = vmax.f32 %v5742_v56, 0.0 }
 0x9ef   : > { %v5963_v53 = vmax.f32 %v5753_v37, 0.0 }
 0x9f0   : > { %v5961_v24 = vmax.f32 %v5745_v0, 0.0  ;;  %v14325_v0 = vld [vmem:[%s14690_s22 + $0x100] ss:$16 sps:$4 sm:$0xff]  }
 0x9f1   : > { %6705 = vmatpush1.bf16.msra.mxu0 %v5488_v11  ;;  %v6019_v43 = vpack.c.bf16 %v5963_v53, %v5962_v20 }
 0x9f2   : > { %6706 = vmatprep.subr.bf16.mxu0 %v18467_v54  ;;  %v6018_v42 = vpack.c.bf16 %v5961_v24, %v5960_v21  ;;  %v14326_v24 = vld [vmem:[%s14690_s22 + $0x124] ss:$16 sps:$4 sm:$0xff]  }
 0x9f4   : > { %11827 = vmatprep.mubr.bf16.mxu1 %v6018_v42  ;;  %6462 = vmatmul.mubr.bf16.gmra.mrb[132].mxu0 %v14315_v8  ;;  %v14328_v42 = vld [vmem:[%s14690_s22 + $0x144] ss:$16 sps:$4 sm:$0xff]  }
 0x9f5   : > { %6707 = vmatpush1.bf16.msra.mxu0 %v5489_v18  ;;  %11828 = vmatmul.mubr.bf16.gmra.mrb[148].mxu1 %v6019_v43  ;;  %v14327_v43 = vld [vmem:[%s14690_s22 + $0x120] ss:$16 sps:$4 sm:$0xff]  }
 0x9f6   : > { %6708 = vmatprep.subr.bf16.mxu0 %v18467_v54  ;;  %6469 = vmatprep.mubr.bf16.mxu0 %v14316_v13 }
 0x9f8   : > { %v11753_v55 = vpop.f32.mrb[72].mxu0 }
 0x9f9   : > { %v5766_v41 = vadd.f32 %v16843_v19, %v11753_v55  ;;  %v5757_v11 = vpop.f32.mrb[73].mxu0  ;;  %6709 = vmatpush1.bf16.msra.mxu0 %v5490_v44 }
 0x9fa   : > { %v5758_v27 = vadd.f32 %v16843_v19, %v5757_v11  ;;  %v11754_v50 = vpop.f32.mrb[74].mxu0  ;;  %6710 = vmatprep.subr.bf16.mxu0 %v18467_v54 }
 0x9fb   : > { %v5769_v2 = vadd.f32 %v16843_v19, %v11754_v50  ;;  %v5760_v30 = vpop.f32.mrb[75].mxu0  ;;  %v5966_v31 = vmax.f32 %v5766_v41, 0.0 }
 0x9fc   : > { %v5761_v18 = vadd.f32 %v16843_v19, %v5760_v30  ;;  %6470 = vmatmul.mubr.bf16.gmra.mrb[136].mxu0 %v14317_v49  ;;  %v5964_v44 = vmax.f32 %v5758_v27, 0.0  ;;  %v14329_v30 = vld [vmem:[%s14690_s22 + $0x140] ss:$16 sps:$4 sm:$0xff]  }
 0x9fd   : > { %6711 = vmatpush1.bf16.msra.mxu0 %v5491_v35  ;;  %v5967_v5 = vmax.f32 %v5769_v2, 0.0  ;;  %6477 = vmatprep.mubr.bf16.mxu0 %v14318_v17  ;;  %v14330_v17 = vld [vmem:[%s14690_s22 + $0x164] ss:$16 sps:$4 sm:$0xff]  }
 0x9fe   : > { %6712 = vmatprep.subr.bf16.mxu0 %v18467_v54  ;;  %v5965_v23 = vmax.f32 %v5761_v18, 0.0 }
 0x9ff   : > { %v6021_v10 = vpack.c.bf16 %v5967_v5, %v5966_v31 }
 0xa00   : > { %v6020_v60 = vpack.c.bf16 %v5965_v23, %v5964_v44 }
 0xa01   : > { %6713 = vmatpush1.bf16.msra.mxu0 %v5492_v51  ;;  %v18545_v51 = vpack.c.bf16 %v16803_v34, %v16800_v32 }
 0xa02   : > { %11831 = vmatprep.mubr.bf16.mxu1 %v6020_v60  ;;  %6714 = vmatprep.subr.bf16.mxu0 %v18467_v54  ;;  %v14332_v60 = vld [vmem:[%s14690_s22 + $0x184] ss:$16 sps:$4 sm:$0xff]  }
 0xa03   : > { %11832 = vmatmul.mubr.bf16.gmra.mrb[152].mxu1 %v6021_v10  ;;  %v14331_v10 = vld [vmem:[%s14690_s22 + $0x160] ss:$16 sps:$4 sm:$0xff]  }
 0xa04   : > { %6478 = vmatmul.mubr.bf16.gmra.mrb[140].mxu0 %v14319_v58 }
 0xa05   : > { %6715 = vmatpush1.bf16.msra.mxu0 %v5493_v52  ;;  %6485 = vmatprep.mubr.bf16.mxu0 %v14320_v38  ;;  %v14321_v52 = vld [vmem:[%s14690_s22 + $0xc0] ss:$16 sps:$4 sm:$0xff]  }
 0xa06   : > { %6716 = vmatprep.subr.bf16.mxu0 %v18467_v54 }
 0xa07   : > { %v11757_v35 = vpop.f32.mrb[76].mxu0 }
 0xa08   : > { %v5782_v6 = vadd.f32 %v16843_v19, %v11757_v35  ;;  %v5773_v29 = vpop.f32.mrb[77].mxu0 }
 0xa09   : > { %v5774_v39 = vadd.f32 %v16843_v19, %v5773_v29  ;;  %6717 = vmatpush1.bf16.msra.mxu0 %v18545_v51  ;;  %v11758_v63 = vpop.f32.mrb[78].mxu0 }
 0xa0a   : > { %v5785_v59 = vadd.f32 %v16843_v19, %v11758_v63  ;;  %v5776_v40 = vpop.f32.mrb[79].mxu0  ;;  %6718 = vmatprep.subr.bf16.mxu0 %v18467_v54  ;;  %v5970_v1 = vmax.f32 %v5782_v6, 0.0 }
 0xa0b   : > { %v5777_v45 = vadd.f32 %v16843_v19, %v5776_v40  ;;  %v5968_v32 = vmax.f32 %v5774_v39, 0.0 }
 0xa0c   : > { %6486 = vmatmul.mubr.bf16.gmra.mrb[144].mxu0 %v14321_v52  ;;  %v5971_v48 = vmax.f32 %v5785_v59, 0.0  ;;  %v14333_v59 = vld [vmem:[%s14690_s22 + $0x180] ss:$16 sps:$4 sm:$0xff]  }
 0xa0d   : > { %6719 = vmatpush1.bf16.msra.mxu0 %v18546_v7  ;;  %v5969_v34 = vmax.f32 %v5777_v45, 0.0  ;;  %6493 = vmatprep.mubr.bf16.mxu0 %v14322_v28  ;;  %v14336_v28 = vld [vmem:[%s14690_s22 + $0x1c4] ss:$16 sps:$4 sm:$0xff]  }
 0xa0e   : > { %6720 = vmatprep.subr.bf16.mxu0 %v18467_v54  ;;  %v6023_v16 = vpack.c.bf16 %v5971_v48, %v5970_v1  ;;  %v14334_v48 = vld [vmem:[%s14690_s22 + $0x1a4] ss:$16 sps:$4 sm:$0xff]  }
 0xa0f   : > { %v6022_v62 = vpack.c.bf16 %v5969_v34, %v5968_v32  ;;  %v14335_v34 = vld [vmem:[%s14690_s22 + $0x1a0] ss:$16 sps:$4 sm:$0xff]  }
 0xa11   : > { %6721 = vmatpush1.bf16.msra.mxu0 %v18547_v22  ;;  %11835 = vmatprep.mubr.bf16.mxu1 %v6022_v62 }
 0xa12   : > { %11836 = vmatmul.mubr.bf16.gmra.mrb[156].mxu1 %v6023_v16  ;;  %6722 = vmatprep.subr.bf16.mxu0 %v18467_v54 }
 0xa14   : > { %6494 = vmatmul.mubr.bf16.gmra.mrb[148].mxu0 %v14323_v14 }
 0xa15   : > { %6723 = vmatpush1.bf16.msra.mxu0 %v18548_v36  ;;  %6501 = vmatprep.mubr.bf16.mxu0 %v14324_v3 }
 0xa16   : > { %6724 = vmatprep.subr.bf16.mxu0 %v18467_v54 }
 0xa17   : > { %v11761_v56 = vpop.f32.mrb[80].mxu0 }
 0xa18   : > { %v5798_v25 = vadd.f32 %v16843_v19, %v11761_v56  ;;  %v5789_v61 = vpop.f32.mrb[81].mxu0 }
 0xa19   : > { %v5790_v4 = vadd.f32 %v16843_v19, %v5789_v61  ;;  %6725 = vmatpush1.bf16.msra.mxu0 %v18549_v33  ;;  %v11762_v37 = vpop.f32.mrb[82].mxu0  ;;  %v14337_v61 = vld [vmem:[%s14690_s22 + $0x1c0] ss:$16 sps:$4 sm:$0xff]  }
 0xa1a   : > { %v5801_v26 = vadd.f32 %v16843_v19, %v11762_v37  ;;  %v5792_v12 = vpop.f32.mrb[83].mxu0  ;;  %8851 = vmatprep.subr.bf16.mxu0 %v18467_v54  ;;  %v5974_v47 = vmax.f32 %v5798_v25, 0.0 }
 0xa1b   : > { %v5793_v15 = vadd.f32 %v16843_v19, %v5792_v12  ;;  %v5972_v53 = vmax.f32 %v5790_v4, 0.0  ;;  %v14338_v12 = vld [vmem:[%s14690_s22 + $0x1e4] ss:$16 sps:$4 sm:$0xff]  }
 0xa1c   : > { %6502 = vmatmul.mubr.bf16.gmra.mrb[152].mxu0 %v14325_v0  ;;  %v5975_v20 = vmax.f32 %v5801_v26, 0.0 }
 0xa1d   : > { %v5973_v21 = vmax.f32 %v5793_v15, 0.0  ;;  %6509 = vmatprep.mubr.bf16.mxu0 %v14326_v24 }
 0xa1e   : > { %v6025_v9 = vpack.c.bf16 %v5975_v20, %v5974_v47  ;;  %v14339_v47 = vld [vmem:[%s14690_s22 + $0x1e0] ss:$16 sps:$4 sm:$0xff]   ;;  %v14340_v20 = vld [vmem:[%s14690_s22 + $0x204] ss:$16 sps:$4 sm:$0xff]  }
 0xa1f   : > { %v6024_v57 = vpack.c.bf16 %v5973_v21, %v5972_v53 }
 0xa21   : > { %11839 = vmatprep.mubr.bf16.mxu1 %v6024_v57 }
 0xa22   : > { %11840 = vmatmul.mubr.bf16.gmra.mrb[160].mxu1 %v6025_v9 }
 0xa24   : > { %6510 = vmatmul.mubr.bf16.gmra.mrb[156].mxu0 %v14327_v43 }
 0xa25   : > { %6517 = vmatprep.mubr.bf16.mxu0 %v14328_v42 }
 0xa27   : > { %v11765_v8 = vpop.f32.mrb[84].mxu0 }
 0xa28   : > { %v5814_v13 = vadd.f32 %v16843_v19, %v11765_v8  ;;  %v5805_v55 = vpop.f32.mrb[85].mxu0 }
 0xa29   : > { %v5806_v41 = vadd.f32 %v16843_v19, %v5805_v55  ;;  %v11766_v11 = vpop.f32.mrb[86].mxu0 }
 0xa2a   : > { %v5817_v27 = vadd.f32 %v16843_v19, %v11766_v11  ;;  %v5808_v50 = vpop.f32.mrb[87].mxu0  ;;  %v5978_v18 = vmax.f32 %v5814_v13, 0.0  ;;  %v14341_v13 = vld [vmem:[%s14690_s22 + $0x200] ss:$16 sps:$4 sm:$0xff]  }
 0xa2b   : > { %v5809_v2 = vadd.f32 %v16843_v19, %v5808_v50  ;;  %v5976_v31 = vmax.f32 %v5806_v41, 0.0  ;;  %v14342_v50 = vld [vmem:[%s14690_s22 + $0x224] ss:$16 sps:$4 sm:$0xff]  }
 0xa2c   : > { %6518 = vmatmul.mubr.bf16.gmra.mrb[160].mxu0 %v14329_v30  ;;  %v5979_v49 = vmax.f32 %v5817_v27, 0.0 }
 0xa2d   : > { %v5977_v5 = vmax.f32 %v5809_v2, 0.0  ;;  %6525 = vmatprep.mubr.bf16.mxu0 %v14330_v17 }
 0xa2e   : > { %v6027_v44 = vpack.c.bf16 %v5979_v49, %v5978_v18  ;;  %v14343_v18 = vld [vmem:[%s14690_s22 + $0x220] ss:$16 sps:$4 sm:$0xff]   ;;  %v14344_v49 = vld [vmem:[%s14690_s22 + $0x244] ss:$16 sps:$4 sm:$0xff]  }
 0xa2f   : > { %v6026_v23 = vpack.c.bf16 %v5977_v5, %v5976_v31 }
 0xa31   : > { %11843 = vmatprep.mubr.bf16.mxu1 %v6026_v23 }
 0xa32   : > { %11844 = vmatmul.mubr.bf16.gmra.mrb[164].mxu1 %v6027_v44 }
 0xa34   : > { %6526 = vmatmul.mubr.bf16.gmra.mrb[164].mxu0 %v14331_v10 }
 0xa35   : > { %6533 = vmatprep.mubr.bf16.mxu0 %v14332_v60 }
 0xa37   : > { %v11769_v58 = vpop.f32.mrb[88].mxu0 }
 0xa38   : > { %v5830_v38 = vadd.f32 %v16843_v19, %v11769_v58  ;;  %v5821_v35 = vpop.f32.mrb[89].mxu0 }
 0xa39   : > { %v5822_v6 = vadd.f32 %v16843_v19, %v5821_v35  ;;  %v11770_v29 = vpop.f32.mrb[90].mxu0 }
 0xa3a   : > { %v5833_v39 = vadd.f32 %v16843_v19, %v11770_v29  ;;  %v5824_v51 = vpop.f32.mrb[91].mxu0  ;;  %v5982_v40 = vmax.f32 %v5830_v38, 0.0  ;;  %v14345_v38 = vld [vmem:[%s14690_s22 + $0x240] ss:$16 sps:$4 sm:$0xff]  }
 0xa3b   : > { %v5825_v63 = vadd.f32 %v16843_v19, %v5824_v51  ;;  %v5980_v52 = vmax.f32 %v5822_v6, 0.0  ;;  %v14346_v51 = vld [vmem:[%s14690_s22 + $0x264] ss:$16 sps:$4 sm:$0xff]  }
 0xa3c   : > { %6534 = vmatmul.mubr.bf16.gmra.mrb[168].mxu0 %v14333_v59  ;;  %v5983_v45 = vmax.f32 %v5833_v39, 0.0 }
 0xa3d   : > { %v5981_v1 = vmax.f32 %v5825_v63, 0.0  ;;  %6541 = vmatprep.mubr.bf16.mxu0 %v14334_v48 }
 0xa3e   : > { %v6029_v7 = vpack.c.bf16 %v5983_v45, %v5982_v40  ;;  %v14347_v40 = vld [vmem:[%s14690_s22 + $0x260] ss:$16 sps:$4 sm:$0xff]   ;;  %v14348_v45 = vld [vmem:[%s14690_s22 + $0x284] ss:$16 sps:$4 sm:$0xff]  }
 0xa3f   : > { %v6028_v32 = vpack.c.bf16 %v5981_v1, %v5980_v52 }
 0xa41   : > { %11847 = vmatprep.mubr.bf16.mxu1 %v6028_v32 }
 0xa42   : > { %11848 = vmatmul.mubr.bf16.gmra.mrb[168].mxu1 %v6029_v7 }
 0xa44   : > { %6542 = vmatmul.mubr.bf16.gmra.mrb[172].mxu0 %v14335_v34 }
 0xa45   : > { %6549 = vmatprep.mubr.bf16.mxu0 %v14336_v28 }
 0xa47   : > { %v11773_v16 = vpop.f32.mrb[92].mxu0 }
 0xa48   : > { %v5846_v62 = vadd.f32 %v16843_v19, %v11773_v16  ;;  %v5837_v22 = vpop.f32.mrb[93].mxu0 }
 0xa49   : > { %v5838_v14 = vadd.f32 %v16843_v19, %v5837_v22  ;;  %v11774_v36 = vpop.f32.mrb[94].mxu0 }
 0xa4a   : > { %v5849_v3 = vadd.f32 %v16843_v19, %v11774_v36  ;;  %v5840_v56 = vpop.f32.mrb[95].mxu0  ;;  %v5986_v4 = vmax.f32 %v5846_v62, 0.0  ;;  %v14349_v62 = vld [vmem:[%s14690_s22 + $0x280] ss:$16 sps:$4 sm:$0xff]  }
 0xa4b   : > { %v5841_v25 = vadd.f32 %v16843_v19, %v5840_v56  ;;  %v5984_v37 = vmax.f32 %v5838_v14, 0.0  ;;  %v14350_v56 = vld [vmem:[%s14690_s22 + $0x2a4] ss:$16 sps:$4 sm:$0xff]  }
 0xa4c   : > { %6550 = vmatmul.mubr.bf16.gmra.mrb[176].mxu0 %v14337_v61  ;;  %v5987_v33 = vmax.f32 %v5849_v3, 0.0 }
 0xa4d   : > { %v5985_v26 = vmax.f32 %v5841_v25, 0.0  ;;  %6557 = vmatprep.mubr.bf16.mxu0 %v14338_v12 }
 0xa4e   : > { %v6031_v15 = vpack.c.bf16 %v5987_v33, %v5986_v4  ;;  %v14351_v4 = vld [vmem:[%s14690_s22 + $0x2a0] ss:$16 sps:$4 sm:$0xff]   ;;  %v14352_v33 = vld [vmem:[%s14690_s22 + $0x2c4] ss:$16 sps:$4 sm:$0xff]  }
 0xa4f   : > { %v6030_v0 = vpack.c.bf16 %v5985_v26, %v5984_v37 }
 0xa51   : > { %11851 = vmatprep.mubr.bf16.mxu1 %v6030_v0 }
 0xa52   : > { %11852 = vmatmul.mubr.bf16.gmra.mrb[172].mxu1 %v6031_v15 }
 0xa54   : > { %6558 = vmatmul.mubr.bf16.gmra.mrb[180].mxu0 %v14339_v47 }
 0xa55   : > { %6565 = vmatprep.mubr.bf16.mxu0 %v14340_v20 }
 0xa57   : > { %v11777_v53 = vpop.f32.mrb[96].mxu0 }
 0xa58   : > { %v5862_v21 = vadd.f32 %v16843_v19, %v11777_v53  ;;  %v5853_v24 = vpop.f32.mrb[97].mxu0 }
 0xa59   : > { %v5854_v9 = vadd.f32 %v16843_v19, %v5853_v24  ;;  %v11778_v57 = vpop.f32.mrb[98].mxu0 }
 0xa5a   : > { %v5865_v43 = vadd.f32 %v16843_v19, %v11778_v57  ;;  %v5856_v42 = vpop.f32.mrb[99].mxu0  ;;  %v5990_v55 = vmax.f32 %v5862_v21, 0.0  ;;  %v14353_v21 = vld [vmem:[%s14690_s22 + $0x2c0] ss:$16 sps:$4 sm:$0xff]  }
 0xa5b   : > { %v5857_v8 = vadd.f32 %v16843_v19, %v5856_v42  ;;  %v5988_v11 = vmax.f32 %v5854_v9, 0.0  ;;  %v14354_v42 = vld [vmem:[%s14690_s22 + $0x2e4] ss:$16 sps:$4 sm:$0xff]  }
 0xa5c   : > { %6566 = vmatmul.mubr.bf16.gmra.mrb[184].mxu0 %v14341_v13  ;;  %v5991_v41 = vmax.f32 %v5865_v43, 0.0 }
 0xa5d   : > { %v5989_v27 = vmax.f32 %v5857_v8, 0.0  ;;  %6573 = vmatprep.mubr.bf16.mxu0 %v14342_v50 }
 0xa5e   : > { %v6033_v2 = vpack.c.bf16 %v5991_v41, %v5990_v55  ;;  %v14355_v55 = vld [vmem:[%s14690_s22 + $0x2e0] ss:$16 sps:$4 sm:$0xff]   ;;  %v14356_v41 = vld [vmem:[%s14690_s22 + $0x304] ss:$16 sps:$4 sm:$0xff]  }
 0xa5f   : > { %v6032_v30 = vpack.c.bf16 %v5989_v27, %v5988_v11 }
 0xa61   : > { %11855 = vmatprep.mubr.bf16.mxu1 %v6032_v30 }
 0xa62   : > { %11856 = vmatmul.mubr.bf16.gmra.mrb[176].mxu1 %v6033_v2 }
 0xa64   : > { %6574 = vmatmul.mubr.bf16.gmra.mrb[188].mxu0 %v14343_v18 }
 0xa65   : > { %6581 = vmatprep.mubr.bf16.mxu0 %v14344_v49 }
 0xa67   : > { %v11781_v31 = vpop.f32.mrb[100].mxu0 }
 0xa68   : > { %v5878_v5 = vadd.f32 %v16843_v19, %v11781_v31  ;;  %v5869_v17 = vpop.f32.mrb[101].mxu0 }
 0xa69   : > { %v5870_v44 = vadd.f32 %v16843_v19, %v5869_v17  ;;  %v11782_v23 = vpop.f32.mrb[102].mxu0 }
 0xa6a   : > { %v5881_v10 = vadd.f32 %v16843_v19, %v11782_v23  ;;  %v5872_v60 = vpop.f32.mrb[103].mxu0  ;;  %v5994_v35 = vmax.f32 %v5878_v5, 0.0  ;;  %v14357_v5 = vld [vmem:[%s14690_s22 + $0x300] ss:$16 sps:$4 sm:$0xff]  }
 0xa6b   : > { %v5873_v58 = vadd.f32 %v16843_v19, %v5872_v60  ;;  %v5992_v29 = vmax.f32 %v5870_v44, 0.0  ;;  %v14358_v60 = vld [vmem:[%s14690_s22 + $0x324] ss:$16 sps:$4 sm:$0xff]  }
 0xa6c   : > { %6582 = vmatmul.mubr.bf16.gmra.mrb[192].mxu0 %v14345_v38  ;;  %v5995_v6 = vmax.f32 %v5881_v10, 0.0 }
 0xa6d   : > { %v5993_v39 = vmax.f32 %v5873_v58, 0.0  ;;  %6589 = vmatprep.mubr.bf16.mxu0 %v14346_v51 }
 0xa6e   : > { %v6035_v63 = vpack.c.bf16 %v5995_v6, %v5994_v35  ;;  %v14359_v35 = vld [vmem:[%s14690_s22 + $0x320] ss:$16 sps:$4 sm:$0xff]   ;;  %v14360_v6 = vld [vmem:[%s14690_s22 + $0x344] ss:$16 sps:$4 sm:$0xff]  }
 0xa6f   : > { %v6034_v59 = vpack.c.bf16 %v5993_v39, %v5992_v29 }
 0xa71   : > { %11859 = vmatprep.mubr.bf16.mxu1 %v6034_v59 }
 0xa72   : > { %11860 = vmatmul.mubr.bf16.gmra.mrb[180].mxu1 %v6035_v63 }
 0xa74   : > { %6590 = vmatmul.mubr.bf16.gmra.mrb[196].mxu0 %v14347_v40 }
 0xa75   : > { %6597 = vmatprep.mubr.bf16.mxu0 %v14348_v45 }
 0xa77   : > { %v11785_v52 = vpop.f32.mrb[104].mxu0 }
 0xa78   : > { %v5894_v1 = vadd.f32 %v16843_v19, %v11785_v52  ;;  %v5885_v48 = vpop.f32.mrb[105].mxu0 }
 0xa79   : > { %v5886_v7 = vadd.f32 %v16843_v19, %v5885_v48  ;;  %v11786_v32 = vpop.f32.mrb[106].mxu0 }
 0xa7a   : > { %v5897_v34 = vadd.f32 %v16843_v19, %v11786_v32  ;;  %v5888_v28 = vpop.f32.mrb[107].mxu0  ;;  %v5998_v22 = vmax.f32 %v5894_v1, 0.0  ;;  %v14361_v1 = vld [vmem:[%s14690_s22 + $0x340] ss:$16 sps:$4 sm:$0xff]  }
 0xa7b   : > { %v5889_v16 = vadd.f32 %v16843_v19, %v5888_v28  ;;  %v5996_v36 = vmax.f32 %v5886_v7, 0.0  ;;  %v14362_v28 = vld [vmem:[%s14690_s22 + $0x364] ss:$16 sps:$4 sm:$0xff]  }
 0xa7c   : > { %6598 = vmatmul.mubr.bf16.gmra.mrb[200].mxu0 %v14349_v62  ;;  %v5999_v14 = vmax.f32 %v5897_v34, 0.0 }
 0xa7d   : > { %v5997_v3 = vmax.f32 %v5889_v16, 0.0  ;;  %6605 = vmatprep.mubr.bf16.mxu0 %v14350_v56  ;;  %v14368_v56 = vld [vmem:[%s14690_s22 + $0x3c4] ss:$16 sps:$4 sm:$0xff]  }
 0xa7e   : > { %v6037_v25 = vpack.c.bf16 %v5999_v14, %v5998_v22  ;;  %v14364_v22 = vld [vmem:[%s14690_s22 + $0x384] ss:$16 sps:$4 sm:$0xff]   ;;  %v14365_v14 = vld [vmem:[%s14690_s22 + $0x380] ss:$16 sps:$4 sm:$0xff]  }
 0xa7f   : > { %v6036_v61 = vpack.c.bf16 %v5997_v3, %v5996_v36  ;;  %v14366_v36 = vld [vmem:[%s14690_s22 + $0x3a4] ss:$16 sps:$4 sm:$0xff]   ;;  %v14367_v3 = vld [vmem:[%s14690_s22 + $0x3a0] ss:$16 sps:$4 sm:$0xff]  }
 0xa81   : > { %11863 = vmatprep.mubr.bf16.mxu1 %v6036_v61  ;;  %v14370_v61 = vld [vmem:[%s14690_s22 + $0x3e4] ss:$16 sps:$4 sm:$0xff]  }
 0xa82   : > { %11864 = vmatmul.mubr.bf16.gmra.mrb[184].mxu1 %v6037_v25  ;;  %v14369_v25 = vld [vmem:[%s14690_s22 + $0x3c0] ss:$16 sps:$4 sm:$0xff]  }
 0xa84   : > { %6606 = vmatmul.mubr.bf16.gmra.mrb[204].mxu0 %v14351_v4  ;;  %v14371_v4 = vld [vmem:[%s14690_s22 + $0x3e0] ss:$16 sps:$4 sm:$0xff]  }
 0xa85   : > { %6613 = vmatprep.mubr.bf16.mxu0 %v14352_v33  ;;  %v14372_v33 = vld [vmem:[%s14690_s22 + $0xc] ss:$16 sps:$4 sm:$0xff]  }
 0xa87   : > { %v11789_v37 = vpop.f32.mrb[108].mxu0 }
 0xa88   : > { %v5910_v26 = vadd.f32 %v16843_v19, %v11789_v37  ;;  %v5901_v12 = vpop.f32.mrb[109].mxu0  ;;  %v14373_v37 = vld [vmem:[%s14690_s22 + $0x8] ss:$16 sps:$4 sm:$0xff]  }
 0xa89   : > { %v5902_v15 = vadd.f32 %v16843_v19, %v5901_v12  ;;  %v11790_v0 = vpop.f32.mrb[110].mxu0  ;;  %v14375_v12 = vld [vmem:[%s14690_s22 + $0x28] ss:$16 sps:$4 sm:$0xff]  }
 0xa8a   : > { %v5913_v47 = vadd.f32 %v16843_v19, %v11790_v0  ;;  %v5904_v20 = vpop.f32.mrb[111].mxu0  ;;  %v6002_v24 = vmax.f32 %v5910_v26, 0.0  ;;  %v14374_v26 = vld [vmem:[%s14690_s22 + $0x2c] ss:$16 sps:$4 sm:$0xff]   ;;  %v14377_v0 = vld [vmem:[%s14690_s22 + $0x48] ss:$16 sps:$4 sm:$0xff]  }
 0xa8b   : > { %v5905_v53 = vadd.f32 %v16843_v19, %v5904_v20  ;;  %v6000_v57 = vmax.f32 %v5902_v15, 0.0  ;;  %v14376_v15 = vld [vmem:[%s14690_s22 + $0x4c] ss:$16 sps:$4 sm:$0xff]   ;;  %v14379_v20 = vld [vmem:[%s14690_s22 + $0x68] ss:$16 sps:$4 sm:$0xff]  }
 0xa8c   : > { %6614 = vmatmul.mubr.bf16.gmra.mrb[208].mxu0 %v14353_v21  ;;  %v6003_v9 = vmax.f32 %v5913_v47, 0.0  ;;  %v14378_v47 = vld [vmem:[%s14690_s22 + $0x6c] ss:$16 sps:$4 sm:$0xff]   ;;  %v14381_v21 = vld [vmem:[%s14690_s22 + $0x88] ss:$16 sps:$4 sm:$0xff]  }
 0xa8d   : > { %v6001_v43 = vmax.f32 %v5905_v53, 0.0  ;;  %6621 = vmatprep.mubr.bf16.mxu0 %v14354_v42  ;;  %v14380_v53 = vld [vmem:[%s14690_s22 + $0x8c] ss:$16 sps:$4 sm:$0xff]  }
 0xa8e   : > { %v6039_v8 = vpack.c.bf16 %v6003_v9, %v6002_v24  ;;  %v14382_v24 = vld [vmem:[%s14690_s22 + $0xac] ss:$16 sps:$4 sm:$0xff]   ;;  %v14383_v9 = vld [vmem:[%s14690_s22 + $0xa8] ss:$16 sps:$4 sm:$0xff]  }
 0xa8f   : > { %v6038_v13 = vpack.c.bf16 %v6001_v43, %v6000_v57  ;;  %v14384_v57 = vld [vmem:[%s14690_s22 + $0xcc] ss:$16 sps:$4 sm:$0xff]   ;;  %v14385_v43 = vld [vmem:[%s14690_s22 + $0xc8] ss:$16 sps:$4 sm:$0xff]  }
 0xa90   : > { %v14386_v42 = vld [vmem:[%s14690_s22 + $0xec] ss:$16 sps:$4 sm:$0xff]  }
 0xa91   : > { %11867 = vmatprep.mubr.bf16.mxu1 %v6038_v13  ;;  %v14388_v13 = vld [vmem:[%s14690_s22 + $0x10c] ss:$16 sps:$4 sm:$0xff]  }
 0xa92   : > { %11868 = vmatmul.mubr.bf16.gmra.mrb[188].mxu1 %v6039_v8  ;;  %v14387_v8 = vld [vmem:[%s14690_s22 + $0xe8] ss:$16 sps:$4 sm:$0xff]  }
 0xa94   : > { %6622 = vmatmul.mubr.bf16.gmra.mrb[212].mxu0 %v14355_v55  ;;  %v14389_v55 = vld [vmem:[%s14690_s22 + $0x108] ss:$16 sps:$4 sm:$0xff]  }
 0xa95   : > { %6629 = vmatprep.mubr.bf16.mxu0 %v14356_v41  ;;  %v14390_v41 = vld [vmem:[%s14690_s22 + $0x12c] ss:$16 sps:$4 sm:$0xff]  }
 0xa97   : > { %v11793_v11 = vpop.f32.mrb[112].mxu0 }
 0xa98   : > { %v5926_v27 = vadd.f32 %v16843_v19, %v11793_v11  ;;  %v5917_v50 = vpop.f32.mrb[113].mxu0  ;;  %v14391_v11 = vld [vmem:[%s14690_s22 + $0x128] ss:$16 sps:$4 sm:$0xff]  }
 0xa99   : > { %v5918_v2 = vadd.f32 %v16843_v19, %v5917_v50  ;;  %v11794_v30 = vpop.f32.mrb[114].mxu0  ;;  %v14393_v50 = vld [vmem:[%s14690_s22 + $0x148] ss:$16 sps:$4 sm:$0xff]  }
 0xa9a   : > { %v5929_v18 = vadd.f32 %v16843_v19, %v11794_v30  ;;  %v5920_v49 = vpop.f32.mrb[115].mxu0  ;;  %v6006_v17 = vmax.f32 %v5926_v27, 0.0  ;;  %v14392_v27 = vld [vmem:[%s14690_s22 + $0x14c] ss:$16 sps:$4 sm:$0xff]   ;;  %v14395_v30 = vld [vmem:[%s14690_s22 + $0x168] ss:$16 sps:$4 sm:$0xff]  }
 0xa9b   : > { %v5921_v31 = vadd.f32 %v16843_v19, %v5920_v49  ;;  %v6004_v23 = vmax.f32 %v5918_v2, 0.0  ;;  %v14394_v2 = vld [vmem:[%s14690_s22 + $0x16c] ss:$16 sps:$4 sm:$0xff]   ;;  %v14397_v49 = vld [vmem:[%s14690_s22 + $0x188] ss:$16 sps:$4 sm:$0xff]  }
 0xa9c   : > { %6630 = vmatmul.mubr.bf16.gmra.mrb[216].mxu0 %v14357_v5  ;;  %v6007_v44 = vmax.f32 %v5929_v18, 0.0  ;;  %v14396_v18 = vld [vmem:[%s14690_s22 + $0x18c] ss:$16 sps:$4 sm:$0xff]   ;;  %v14399_v5 = vld [vmem:[%s14690_s22 + $0x1a8] ss:$16 sps:$4 sm:$0xff]  }
 0xa9d   : > { %v6005_v10 = vmax.f32 %v5921_v31, 0.0  ;;  %6637 = vmatprep.mubr.bf16.mxu0 %v14358_v60  ;;  %v14398_v31 = vld [vmem:[%s14690_s22 + $0x1ac] ss:$16 sps:$4 sm:$0xff]  }
 0xa9e   : > { %v6041_v58 = vpack.c.bf16 %v6007_v44, %v6006_v17  ;;  %v14400_v17 = vld [vmem:[%s14690_s22 + $0x1cc] ss:$16 sps:$4 sm:$0xff]   ;;  %v14401_v44 = vld [vmem:[%s14690_s22 + $0x1c8] ss:$16 sps:$4 sm:$0xff]  }
 0xa9f   : > { %v6040_v38 = vpack.c.bf16 %v6005_v10, %v6004_v23  ;;  %v14402_v23 = vld [vmem:[%s14690_s22 + $0x1ec] ss:$16 sps:$4 sm:$0xff]   ;;  %v14403_v10 = vld [vmem:[%s14690_s22 + $0x1e8] ss:$16 sps:$4 sm:$0xff]  }
 0xaa0   : > { %v14404_v60 = vld [vmem:[%s14690_s22 + $0x20c] ss:$16 sps:$4 sm:$0xff]  }
 0xaa1   : > { %11871 = vmatprep.mubr.bf16.mxu1 %v6040_v38  ;;  %v14406_v38 = vld [vmem:[%s14690_s22 + $0x22c] ss:$16 sps:$4 sm:$0xff]  }
 0xaa2   : > { %11872 = vmatmul.mubr.bf16.gmra.mrb[192].mxu1 %v6041_v58  ;;  %v14405_v58 = vld [vmem:[%s14690_s22 + $0x208] ss:$16 sps:$4 sm:$0xff]  }
 0xaa4   : > { %6638 = vmatmul.mubr.bf16.gmra.mrb[220].mxu0 %v14359_v35  ;;  %v14407_v35 = vld [vmem:[%s14690_s22 + $0x228] ss:$16 sps:$4 sm:$0xff]  }
 0xaa5   : > { %6645 = vmatprep.mubr.bf16.mxu0 %v14360_v6  ;;  %v14408_v6 = vld [vmem:[%s14690_s22 + $0x24c] ss:$16 sps:$4 sm:$0xff]  }
 0xaa7   : > { %v11797_v29 = vpop.f32.mrb[116].mxu0 }
 0xaa8   : > { %v5942_v39 = vadd.f32 %v16843_v19, %v11797_v29  ;;  %v5933_v51 = vpop.f32.mrb[117].mxu0  ;;  %v14409_v29 = vld [vmem:[%s14690_s22 + $0x248] ss:$16 sps:$4 sm:$0xff]  }
 0xaa9   : > { %v5934_v63 = vadd.f32 %v16843_v19, %v5933_v51  ;;  %v11798_v59 = vpop.f32.mrb[118].mxu0  ;;  %v14411_v51 = vld [vmem:[%s14690_s22 + $0x268] ss:$16 sps:$4 sm:$0xff]  }
 0xaaa   : > { %v5945_v40 = vadd.f32 %v16843_v19, %v11798_v59  ;;  %v5936_v45 = vpop.f32.mrb[119].mxu0  ;;  %v6010_v48 = vmax.f32 %v5942_v39, 0.0  ;;  %v14410_v39 = vld [vmem:[%s14690_s22 + $0x26c] ss:$16 sps:$4 sm:$0xff]   ;;  %v14413_v59 = vld [vmem:[%s14690_s22 + $0x288] ss:$16 sps:$4 sm:$0xff]  }
 0xaab   : > { %v5937_v52 = vadd.f32 %v16843_v19, %v5936_v45  ;;  %v6008_v32 = vmax.f32 %v5934_v63, 0.0  ;;  %v14363_v19 = vld [vmem:[%s14690_s22 + $0x360] ss:$16 sps:$4 sm:$0xff]   ;;  %v14412_v63 = vld [vmem:[%s14690_s22 + $0x28c] ss:$16 sps:$4 sm:$0xff]  }
 0xaac   : > { %6646 = vmatmul.mubr.bf16.gmra.mrb[224].mxu0 %v14361_v1  ;;  %v6011_v7 = vmax.f32 %v5945_v40, 0.0  ;;  %v14414_v40 = vld [vmem:[%s14690_s22 + $0x2ac] ss:$16 sps:$4 sm:$0xff]   ;;  %v14415_v45 = vld [vmem:[%s14690_s22 + $0x2a8] ss:$16 sps:$4 sm:$0xff]  }
 0xaad   : > { %v6009_v34 = vmax.f32 %v5937_v52, 0.0  ;;  %6653 = vmatprep.mubr.bf16.mxu0 %v14362_v28  ;;  %v14416_v52 = vld [vmem:[%s14690_s22 + $0x2cc] ss:$16 sps:$4 sm:$0xff]   ;;  %v14417_v1 = vld [vmem:[%s14690_s22 + $0x2c8] ss:$16 sps:$4 sm:$0xff]  }
 0xaae   : > { %v6043_v16 = vpack.c.bf16 %v6011_v7, %v6010_v48  ;;  %v14418_v48 = vld [vmem:[%s14690_s22 + $0x2ec] ss:$16 sps:$4 sm:$0xff]   ;;  %v14419_v7 = vld [vmem:[%s14690_s22 + $0x2e8] ss:$16 sps:$4 sm:$0xff]  }
 0xaaf   : > { %v6042_v62 = vpack.c.bf16 %v6009_v34, %v6008_v32  ;;  %v14420_v32 = vld [vmem:[%s14690_s22 + $0x30c] ss:$16 sps:$4 sm:$0xff]   ;;  %v14421_v34 = vld [vmem:[%s14690_s22 + $0x308] ss:$16 sps:$4 sm:$0xff]  }
 0xab0   : > { %v14422_v28 = vld [vmem:[%s14690_s22 + $0x32c] ss:$16 sps:$4 sm:$0xff]  }
 0xab1   : > { %11875 = vmatprep.mubr.bf16.mxu1 %v6042_v62  ;;  %v14424_v62 = vld [vmem:[%s14690_s22 + $0x34c] ss:$16 sps:$4 sm:$0xff]  }
 0xab2   : > { %11876 = vmatmul.mubr.bf16.gmra.mrb[196].mxu1 %v6043_v16  ;;  %v14423_v16 = vld [vmem:[%s14690_s22 + $0x328] ss:$16 sps:$4 sm:$0xff]  }
 0xab3   : > { %7592 = vmatprep.mubr.bf16.mxu1 %v18467_v54 }
 0xab4   : > { %6654 = vmatmul.mubr.bf16.gmra.mrb[228].mxu0 %v14363_v19  ;;  %v14425_v19 = vld [vmem:[%s14690_s22 + $0x348] ss:$16 sps:$4 sm:$0xff]  }
 0xab5   : > { %6661 = vmatprep.mubr.bf16.mxu0 %v14364_v22  ;;  %v17098_v22 = vld [vmem:[%s18428_s3 + $0x2] ss:$0 sm:$0xff] }
 0xabc   : > { %6662 = vmatmul.mubr.bf16.gmra.mrb[232].mxu0 %v14365_v14  ;;  %v14426_v14 = vld [vmem:[%s14690_s22 + $0x36c] ss:$16 sps:$4 sm:$0xff]  }
 0xabd   : > { %6669 = vmatprep.mubr.bf16.mxu0 %v14366_v36 }
 0xac4   : > { %6670 = vmatmul.mubr.bf16.gmra.mrb[236].mxu0 %v14367_v3 }
 0xac5   : > { %6677 = vmatprep.mubr.bf16.mxu0 %v14368_v56 }
 0xacc   : > { %6678 = vmatmul.mubr.bf16.gmra.mrb[240].mxu0 %v14369_v25 }
 0xacd   : > { %6685 = vmatprep.mubr.bf16.mxu0 %v14370_v61 }
 0xad4   : > { %6686 = vmatmul.mubr.bf16.gmra.mrb[244].mxu0 %v14371_v4 }
 0xad5   : > { %6726 = vmatprep.mubr.bf16.mxu0 %v14372_v33 }
 0xadc   : > { %6727 = vmatmul.mubr.bf16.vlgmr.msra.gmra.mrb[120].mxu0 %v14373_v37 }
 0xadd   : > { %6734 = vmatprep.mubr.bf16.mxu0 %v14374_v26 }
 0xae4   : > { %6735 = vmatmul.mubr.bf16.gmra.mrb[124].mxu0 %v14375_v12  ;;  %v14427_v12 = vld [vmem:[%s14690_s22 + $0x368] ss:$16 sps:$4 sm:$0xff]  }
 0xae5   : > { %6742 = vmatprep.mubr.bf16.mxu0 %v14376_v15  ;;  %v14428_v15 = vld [vmem:[%s14690_s22 + $0x38c] ss:$16 sps:$4 sm:$0xff]  }
 0xaec   : > { %6743 = vmatmul.mubr.bf16.gmra.mrb[128].mxu0 %v14377_v0 }
 0xaed   : > { %6750 = vmatprep.mubr.bf16.mxu0 %v14378_v47  ;;  %v13730_v47 = vld [vmem:[%s18427_s2 + $0x104] ss:$8 sps:$4 sm:$0xff]  }
 0xaee   : > { %7560 = vmatprep.subr.bf16.mxu1 %v13730_v47 }
 0xaf4   : > { %6751 = vmatmul.mubr.bf16.gmra.mrb[132].mxu0 %v14379_v20 }
 0xaf5   : > { %6758 = vmatprep.mubr.bf16.mxu0 %v14380_v53  ;;  %v13728_v53 = vld [vmem:[%s18427_s2 + $0x100] ss:$8 sps:$4 sm:$0xff]  }
 0xaf6   : > { %7561 = vmatpush1.bf16.msra.mxu1 %v13728_v53  ;;  %v14435_v53 = vld [vmem:[%s14690_s22 + $0x3e8] ss:$16 sps:$4 sm:$0xff]  }
 0xafc   : > { %6759 = vmatmul.mubr.bf16.gmra.mrb[136].mxu0 %v14381_v21 }
 0xafd   : > { %6766 = vmatprep.mubr.bf16.mxu0 %v14382_v24 }
 0xb04   : > { %6767 = vmatmul.mubr.bf16.gmra.mrb[140].mxu0 %v14383_v9 }
 0xb05   : > { %6774 = vmatprep.mubr.bf16.mxu0 %v14384_v57 }
 0xb0c   : > { %6775 = vmatmul.mubr.bf16.gmra.mrb[144].mxu0 %v14385_v43 }
 0xb0d   : > { %6782 = vmatprep.mubr.bf16.mxu0 %v14386_v42 }
 0xb14   : > { %6783 = vmatmul.mubr.bf16.gmra.mrb[148].mxu0 %v14387_v8  ;;  %v13733_v8 = vld [vmem:[%s18427_s2 + $0x114] ss:$8 sps:$4 sm:$0xff]  }
 0xb15   : > { %6790 = vmatprep.mubr.bf16.mxu0 %v14388_v13  ;;  %v13731_v13 = vld [vmem:[%s18427_s2 + $0x110] ss:$8 sps:$4 sm:$0xff]   ;;  %7562 = vmatprep.subr.bf16.mxu1 %v13733_v8 }
 0xb16   : > { %7563 = vmatpush1.bf16.msra.mxu1 %v13731_v13 }
 0xb1c   : > { %6791 = vmatmul.mubr.bf16.gmra.mrb[152].mxu0 %v14389_v55 }
 0xb1d   : > { %6798 = vmatprep.mubr.bf16.mxu0 %v14390_v41 }
 0xb24   : > { %6799 = vmatmul.mubr.bf16.gmra.mrb[156].mxu0 %v14391_v11  ;;  %v14429_v11 = vld [vmem:[%s14690_s22 + $0x388] ss:$16 sps:$4 sm:$0xff]  }
 0xb25   : > { %6806 = vmatprep.mubr.bf16.mxu0 %v14392_v27  ;;  %v14430_v27 = vld [vmem:[%s14690_s22 + $0x3ac] ss:$16 sps:$4 sm:$0xff]  }
 0xb2c   : > { %6807 = vmatmul.mubr.bf16.gmra.mrb[160].mxu0 %v14393_v50 }
 0xb2d   : > { %6814 = vmatprep.mubr.bf16.mxu0 %v14394_v2  ;;  %v13736_v2 = vld [vmem:[%s18427_s2 + $0x124] ss:$8 sps:$4 sm:$0xff]  }
 0xb2e   : > { %7564 = vmatprep.subr.bf16.mxu1 %v13736_v2 }
 0xb34   : > { %6815 = vmatmul.mubr.bf16.gmra.mrb[164].mxu0 %v14395_v30 }
 0xb35   : > { %6822 = vmatprep.mubr.bf16.mxu0 %v14396_v18  ;;  %v13734_v18 = vld [vmem:[%s18427_s2 + $0x120] ss:$8 sps:$4 sm:$0xff]  }
 0xb36   : > { %7565 = vmatpush1.bf16.msra.mxu1 %v13734_v18 }
 0xb3c   : > { %6823 = vmatmul.mubr.bf16.gmra.mrb[168].mxu0 %v14397_v49 }
 0xb3d   : > { %6830 = vmatprep.mubr.bf16.mxu0 %v14398_v31 }
 0xb44   : > { %6831 = vmatmul.mubr.bf16.gmra.mrb[172].mxu0 %v14399_v5 }
 0xb45   : > { %6838 = vmatprep.mubr.bf16.mxu0 %v14400_v17 }
 0xb4c   : > { %6839 = vmatmul.mubr.bf16.gmra.mrb[176].mxu0 %v14401_v44 }
 0xb4d   : > { %6846 = vmatprep.mubr.bf16.mxu0 %v14402_v23 }
 0xb54   : > { %6847 = vmatmul.mubr.bf16.gmra.mrb[180].mxu0 %v14403_v10  ;;  %v13739_v10 = vld [vmem:[%s18427_s2 + $0x134] ss:$8 sps:$4 sm:$0xff]  }
 0xb55   : > { %6854 = vmatprep.mubr.bf16.mxu0 %v14404_v60  ;;  %v13737_v60 = vld [vmem:[%s18427_s2 + $0x130] ss:$8 sps:$4 sm:$0xff]   ;;  %7566 = vmatprep.subr.bf16.mxu1 %v13739_v10 }
 0xb56   : > { %7567 = vmatpush1.bf16.msra.mxu1 %v13737_v60 }
 0xb5c   : > { %6855 = vmatmul.mubr.bf16.gmra.mrb[184].mxu0 %v14405_v58 }
 0xb5d   : > { %6862 = vmatprep.mubr.bf16.mxu0 %v14406_v38 }
 0xb64   : > { %6863 = vmatmul.mubr.bf16.gmra.mrb[188].mxu0 %v14407_v35  ;;  %v14431_v35 = vld [vmem:[%s14690_s22 + $0x3a8] ss:$16 sps:$4 sm:$0xff]  }
 0xb65   : > { %6870 = vmatprep.mubr.bf16.mxu0 %v14408_v6  ;;  %v14432_v6 = vld [vmem:[%s14690_s22 + $0x3cc] ss:$16 sps:$4 sm:$0xff]  }
 0xb6c   : > { %6871 = vmatmul.mubr.bf16.gmra.mrb[192].mxu0 %v14409_v29 }
 0xb6d   : > { %6878 = vmatprep.mubr.bf16.mxu0 %v14410_v39  ;;  %v13742_v39 = vld [vmem:[%s18427_s2 + $0x144] ss:$8 sps:$4 sm:$0xff]  }
 0xb6e   : > { %7568 = vmatprep.subr.bf16.mxu1 %v13742_v39 }
 0xb74   : > { %6879 = vmatmul.mubr.bf16.gmra.mrb[196].mxu0 %v14411_v51 }
 0xb75   : > { %6886 = vmatprep.mubr.bf16.mxu0 %v14412_v63  ;;  %v13740_v63 = vld [vmem:[%s18427_s2 + $0x140] ss:$8 sps:$4 sm:$0xff]  }
 0xb76   : > { %7569 = vmatpush1.bf16.msra.mxu1 %v13740_v63 }
 0xb7c   : > { %6887 = vmatmul.mubr.bf16.gmra.mrb[200].mxu0 %v14413_v59 }
 0xb7d   : > { %6894 = vmatprep.mubr.bf16.mxu0 %v14414_v40 }
 0xb84   : > { %6895 = vmatmul.mubr.bf16.gmra.mrb[204].mxu0 %v14415_v45 }
 0xb85   : > { %6902 = vmatprep.mubr.bf16.mxu0 %v14416_v52 }
 0xb8c   : > { %6903 = vmatmul.mubr.bf16.gmra.mrb[208].mxu0 %v14417_v1 }
 0xb8d   : > { %6910 = vmatprep.mubr.bf16.mxu0 %v14418_v48 }
 0xb94   : > { %6911 = vmatmul.mubr.bf16.gmra.mrb[212].mxu0 %v14419_v7  ;;  %v13745_v7 = vld [vmem:[%s18427_s2 + $0x154] ss:$8 sps:$4 sm:$0xff]  }
 0xb95   : > { %6918 = vmatprep.mubr.bf16.mxu0 %v14420_v32  ;;  %v13743_v32 = vld [vmem:[%s18427_s2 + $0x150] ss:$8 sps:$4 sm:$0xff]   ;;  %7570 = vmatprep.subr.bf16.mxu1 %v13745_v7 }
 0xb96   : > { %7571 = vmatpush1.bf16.msra.mxu1 %v13743_v32 }
 0xb9c   : > { %6919 = vmatmul.mubr.bf16.gmra.mrb[216].mxu0 %v14421_v34 }
 0xb9d   : > { %6926 = vmatprep.mubr.bf16.mxu0 %v14422_v28 }
 0xba4   : > { %6927 = vmatmul.mubr.bf16.gmra.mrb[220].mxu0 %v14423_v16  ;;  %v14433_v16 = vld [vmem:[%s14690_s22 + $0x3c8] ss:$16 sps:$4 sm:$0xff]  }
 0xba5   : > { %6934 = vmatprep.mubr.bf16.mxu0 %v14424_v62  ;;  %v14434_v62 = vld [vmem:[%s14690_s22 + $0x3ec] ss:$16 sps:$4 sm:$0xff]  }
 0xbac   : > { %6935 = vmatmul.mubr.bf16.gmra.mrb[224].mxu0 %v14425_v19 }
 0xbad   : > { %6942 = vmatprep.mubr.bf16.mxu0 %v14426_v14  ;;  %v13748_v14 = vld [vmem:[%s18427_s2 + $0x164] ss:$8 sps:$4 sm:$0xff]  }
 0xbae   : > { %7572 = vmatprep.subr.bf16.mxu1 %v13748_v14 }
 0xbaf   : > { %v6728_v36 = vpop.f32.mrb[120].mxu0 }
 0xbb0   : > { %v12599_v3 = vadd.f32 %v17098_v22, %v6728_v36  ;;  %v6730_v56 = vpop.f32.mrb[121].mxu0 }
 0xbb1   : > { %v6731_v25 = vpop.f32.mrb[122].mxu0 }
 0xbb2   : > { %v17102_v61 = vmax.f32 %v12599_v3, 0.0  ;;  %v12600_v4 = vadd.f32 %v17098_v22, %v6731_v25  ;;  %v6733_v33 = vpop.f32.mrb[123].mxu0  ;;  %v13746_v3 = vld [vmem:[%s18427_s2 + $0x160] ss:$8 sps:$4 sm:$0xff]  }
 0xbb3   : > { %7573 = vmatpush1.bf16.msra.mxu1 %v13746_v3 }
 0xbb4   : > { %v7047_v37 = vmul.f32 %v17102_v61, %v17102_v61  ;;  %v17107_v26 = vmax.f32 %v12600_v4, 0.0  ;;  %6943 = vmatmul.mubr.bf16.gmra.mrb[228].mxu0 %v14427_v12 }
 0xbb5   : > { %6950 = vmatprep.mubr.bf16.mxu0 %v14428_v15  ;;  %v13751_v15 = vld [vmem:[%s18427_s2 + $0x174] ss:$8 sps:$4 sm:$0xff]  }
 0xbb6   : > { %v7048_v0 = vmul.f32 %v17107_v26, %v17107_v26  ;;  %7111 = vadd.xlane.f32.xlu0 %v7047_v37  ;;  %7574 = vmatprep.subr.bf16.mxu1 %v13751_v15 }
 0xbb7   : > { %v6736_v20 = vpop.f32.mrb[124].mxu0 }
 0xbb8   : > { %v12601_v21 = vadd.f32 %v17098_v22, %v6736_v20  ;;  %v6738_v24 = vpop.f32.mrb[125].mxu0  ;;  %7113 = vadd.xlane.f32.xlu1 %v7048_v0  ;;  %v13749_v0 = vld [vmem:[%s18427_s2 + $0x170] ss:$8 sps:$4 sm:$0xff]  }
 0xbb9   : > { %v6739_v9 = vpop.f32.mrb[126].mxu0  ;;  %7575 = vmatpush1.bf16.msra.mxu1 %v13749_v0  ;;  %v17212_v24 = vld [vmem:[%s18430_s5] sm:$0xff]  }
 0xbba   : > { %v17120_v57 = vmax.f32 %v12601_v21, 0.0  ;;  %v12602_v43 = vadd.f32 %v17098_v22, %v6739_v9  ;;  %v6741_v42 = vpop.f32.mrb[127].mxu0  ;;  %11879 = vmatprep.subr.bf16.mxu1 %v17212_v24 }
 0xbbc   : > { %v7049_v55 = vmul.f32 %v17120_v57, %v17120_v57  ;;  %v17131_v41 = vmax.f32 %v12602_v43, 0.0  ;;  %6951 = vmatmul.mubr.bf16.gmra.mrb[232].mxu0 %v14429_v11 }
 0xbbd   : > { %6958 = vmatprep.mubr.bf16.mxu0 %v14430_v27 }
 0xbbe   : > { %v7050_v50 = vmul.f32 %v17131_v41, %v17131_v41  ;;  %7115 = vadd.xlane.f32.xlu0 %v7049_v55 }
 0xbbf   : > { %v6744_v30 = vpop.f32.mrb[128].mxu0 }
 0xbc0   : > { %v12603_v49 = vadd.f32 %v17098_v22, %v6744_v30  ;;  %v6746_v31 = vpop.f32.mrb[129].mxu0  ;;  %7117 = vadd.xlane.f32.xlu1 %v7050_v50 }
 0xbc1   : > { %v6747_v5 = vpop.f32.mrb[130].mxu0 }
 0xbc2   : > { %v17144_v17 = vmax.f32 %v12603_v49, 0.0  ;;  %v12604_v44 = vadd.f32 %v17098_v22, %v6747_v5  ;;  %v6749_v23 = vpop.f32.mrb[131].mxu0 }
 0xbc4   : > { %v7051_v58 = vmul.f32 %v17144_v17, %v17144_v17  ;;  %v17155_v38 = vmax.f32 %v12604_v44, 0.0  ;;  %6959 = vmatmul.mubr.bf16.gmra.mrb[236].mxu0 %v14431_v35 }
 0xbc5   : > { %6966 = vmatprep.mubr.bf16.mxu0 %v14432_v6 }
 0xbc6   : > { %v7052_v29 = vmul.f32 %v17155_v38, %v17155_v38  ;;  %7119 = vadd.xlane.f32.xlu0 %v7051_v58 }
 0xbc7   : > { %v6752_v51 = vpop.f32.mrb[132].mxu0 }
 0xbc8   : > { %v12605_v59 = vadd.f32 %v17098_v22, %v6752_v51  ;;  %v6754_v40 = vpop.f32.mrb[133].mxu0  ;;  %7121 = vadd.xlane.f32.xlu1 %v7052_v29 }
 0xbc9   : > { %v6755_v45 = vpop.f32.mrb[134].mxu0 }
 0xbca   : > { %v17168_v52 = vmax.f32 %v12605_v59, 0.0  ;;  %v12606_v1 = vadd.f32 %v17098_v22, %v6755_v45  ;;  %v6757_v48 = vpop.f32.mrb[135].mxu0 }
 0xbcc   : > { %v7053_v34 = vmul.f32 %v17168_v52, %v17168_v52  ;;  %v17179_v28 = vmax.f32 %v12606_v1, 0.0  ;;  %6967 = vmatmul.mubr.bf16.gmra.mrb[240].mxu0 %v14433_v16 }
 0xbcd   : > { %6974 = vmatprep.mubr.bf16.mxu0 %v14434_v62 }
 0xbce   : > { %v7054_v19 = vmul.f32 %v17179_v28, %v17179_v28  ;;  %7123 = vadd.xlane.f32.xlu0 %v7053_v34 }
 0xbcf   : > { %v6760_v36 = vpop.f32.mrb[136].mxu0 }
 0xbd0   : > { %v12607_v56 = vadd.f32 %v17098_v22, %v6760_v36  ;;  %v6762_v25 = vpop.f32.mrb[137].mxu0  ;;  %7125 = vadd.xlane.f32.xlu1 %v7054_v19 }
 0xbd1   : > { %v6763_v4 = vpop.f32.mrb[138].mxu0 }
 0xbd2   : > { %v17192_v33 = vmax.f32 %v12607_v56, 0.0  ;;  %v12608_v37 = vadd.f32 %v17098_v22, %v6763_v4  ;;  %v6765_v12 = vpop.f32.mrb[139].mxu0 }
 0xbd4   : > { %v7055_v47 = vmul.f32 %v17192_v33, %v17192_v33  ;;  %v17203_v20 = vmax.f32 %v12608_v37, 0.0  ;;  %6975 = vmatmul.mubr.bf16.gmra.mrb[244].mxu0 %v14435_v53 }
 0xbd5   : > { %8883 = vmatprep.mubr.bf16.mxu0 %v16849_v46 }
 0xbd6   : > { %v7056_v21 = vmul.f32 %v17203_v20, %v17203_v20  ;;  %7127 = vadd.xlane.f32.xlu0 %v7055_v47 }
 0xbd7   : > { %v6768_v9 = vpop.f32.mrb[140].mxu0 }
 0xbd8   : > { %v12609_v43 = vadd.f32 %v17098_v22, %v6768_v9  ;;  %v6770_v42 = vpop.f32.mrb[141].mxu0  ;;  %7129 = vadd.xlane.f32.xlu1 %v7056_v21 }
 0xbd9   : > { %v6771_v8 = vpop.f32.mrb[142].mxu0 }
 0xbda   : > { %v17216_v13 = vmax.f32 %v12609_v43, 0.0  ;;  %v12610_v46 = vadd.f32 %v17098_v22, %v6771_v8  ;;  %v6773_v55 = vpop.f32.mrb[143].mxu0 }
 0xbdc   : > { %v7057_v11 = vmul.f32 %v17216_v13, %v17216_v13  ;;  %v17221_v27 = vmax.f32 %v12610_v46, 0.0 }
 0xbde   : > { %v7058_v50 = vmul.f32 %v17221_v27, %v17221_v27  ;;  %7131 = vadd.xlane.f32.xlu0 %v7057_v11 }
 0xbdf   : > { %v6776_v2 = vpop.f32.mrb[144].mxu0 }
 0xbe0   : > { %v12611_v30 = vadd.f32 %v17098_v22, %v6776_v2  ;;  %v6778_v18 = vpop.f32.mrb[145].mxu0  ;;  %7133 = vadd.xlane.f32.xlu1 %v7058_v50 }
 0xbe1   : > { %v6779_v49 = vpop.f32.mrb[146].mxu0 }
 0xbe2   : > { %v17226_v31 = vmax.f32 %v12611_v30, 0.0  ;;  %v12612_v5 = vadd.f32 %v17098_v22, %v6779_v49  ;;  %v6781_v44 = vpop.f32.mrb[147].mxu0 }
 0xbe4   : > { %v7059_v23 = vmul.f32 %v17226_v31, %v17226_v31  ;;  %v17231_v10 = vmax.f32 %v12612_v5, 0.0 }
 0xbe6   : > { %v7060_v60 = vmul.f32 %v17231_v10, %v17231_v10  ;;  %7135 = vadd.xlane.f32.xlu0 %v7059_v23 }
 0xbe7   : > { %v6784_v58 = vpop.f32.mrb[148].mxu0 }
 0xbe8   : > { %v12613_v35 = vadd.f32 %v17098_v22, %v6784_v58  ;;  %v6786_v6 = vpop.f32.mrb[149].mxu0  ;;  %7137 = vadd.xlane.f32.xlu1 %v7060_v60 }
 0xbe9   : > { %v6787_v29 = vpop.f32.mrb[150].mxu0 }
 0xbea   : > { %v17236_v39 = vmax.f32 %v12613_v35, 0.0  ;;  %v12614_v51 = vadd.f32 %v17098_v22, %v6787_v29  ;;  %v6789_v63 = vpop.f32.mrb[151].mxu0 }
 0xbec   : > { %v7061_v59 = vmul.f32 %v17236_v39, %v17236_v39  ;;  %v17241_v40 = vmax.f32 %v12614_v51, 0.0 }
 0xbee   : > { %v7062_v45 = vmul.f32 %v17241_v40, %v17241_v40  ;;  %7139 = vadd.xlane.f32.xlu0 %v7061_v59 }
 0xbef   : > { %v6792_v1 = vpop.f32.mrb[152].mxu0 }
 0xbf0   : > { %v12615_v48 = vadd.f32 %v17098_v22, %v6792_v1  ;;  %v6794_v7 = vpop.f32.mrb[153].mxu0  ;;  %7141 = vadd.xlane.f32.xlu1 %v7062_v45 }
 0xbf1   : > { %v6795_v32 = vpop.f32.mrb[154].mxu0 }
 0xbf2   : > { %v17246_v34 = vmax.f32 %v12615_v48, 0.0  ;;  %v12616_v16 = vadd.f32 %v17098_v22, %v6795_v32  ;;  %v6797_v62 = vpop.f32.mrb[155].mxu0 }
 0xbf4   : > { %v7063_v19 = vmul.f32 %v17246_v34, %v17246_v34  ;;  %v17251_v14 = vmax.f32 %v12616_v16, 0.0 }
 0xbf6   : > { %v7064_v36 = vmul.f32 %v17251_v14, %v17251_v14  ;;  %7143 = vadd.xlane.f32.xlu0 %v7063_v19 }
 0xbf7   : > { %v6800_v3 = vpop.f32.mrb[156].mxu0 }
 0xbf8   : > { %v12617_v56 = vadd.f32 %v17098_v22, %v6800_v3  ;;  %v6802_v25 = vpop.f32.mrb[157].mxu0  ;;  %7145 = vadd.xlane.f32.xlu1 %v7064_v36 }
 0xbf9   : > { %v6803_v4 = vpop.f32.mrb[158].mxu0 }
 0xbfa   : > { %v17256_v37 = vmax.f32 %v12617_v56, 0.0  ;;  %v12618_v12 = vadd.f32 %v17098_v22, %v6803_v4  ;;  %v6805_v15 = vpop.f32.mrb[159].mxu0 }
 0xbfc   : > { %v7065_v0 = vmul.f32 %v17256_v37, %v17256_v37  ;;  %v17261_v47 = vmax.f32 %v12618_v12, 0.0 }
 0xbfe   : > { %v7066_v53 = vmul.f32 %v17261_v47, %v17261_v47  ;;  %7147 = vadd.xlane.f32.xlu0 %v7065_v0 }
 0xbff   : > { %v6808_v21 = vpop.f32.mrb[160].mxu0 }
 0xc00   : > { %v12619_v9 = vadd.f32 %v17098_v22, %v6808_v21  ;;  %v6810_v43 = vpop.f32.mrb[161].mxu0  ;;  %7149 = vadd.xlane.f32.xlu1 %v7066_v53 }
 0xc01   : > { %v6811_v42 = vpop.f32.mrb[162].mxu0 }
 0xc02   : > { %v17266_v8 = vmax.f32 %v12619_v9, 0.0  ;;  %v12620_v46 = vadd.f32 %v17098_v22, %v6811_v42  ;;  %v6813_v55 = vpop.f32.mrb[163].mxu0 }
 0xc04   : > { %v7067_v11 = vmul.f32 %v17266_v8, %v17266_v8  ;;  %v17271_v50 = vmax.f32 %v12620_v46, 0.0 }
 0xc06   : > { %v7068_v2 = vmul.f32 %v17271_v50, %v17271_v50  ;;  %7151 = vadd.xlane.f32.xlu0 %v7067_v11 }
 0xc07   : > { %v6816_v30 = vpop.f32.mrb[164].mxu0 }
 0xc08   : > { %v12621_v18 = vadd.f32 %v17098_v22, %v6816_v30  ;;  %v6818_v49 = vpop.f32.mrb[165].mxu0  ;;  %7153 = vadd.xlane.f32.xlu1 %v7068_v2 }
 0xc09   : > { %v6819_v5 = vpop.f32.mrb[166].mxu0 }
 0xc0a   : > { %v17276_v44 = vmax.f32 %v12621_v18, 0.0  ;;  %v12622_v23 = vadd.f32 %v17098_v22, %v6819_v5  ;;  %v6821_v60 = vpop.f32.mrb[167].mxu0 }
 0xc0c   : > { %v7069_v58 = vmul.f32 %v17276_v44, %v17276_v44  ;;  %v17281_v35 = vmax.f32 %v12622_v23, 0.0 }
 0xc0e   : > { %v7070_v6 = vmul.f32 %v17281_v35, %v17281_v35  ;;  %7155 = vadd.xlane.f32.xlu0 %v7069_v58 }
 0xc0f   : > { %v6824_v29 = vpop.f32.mrb[168].mxu0 }
 0xc10   : > { %v12623_v51 = vadd.f32 %v17098_v22, %v6824_v29  ;;  %v6826_v63 = vpop.f32.mrb[169].mxu0  ;;  %7157 = vadd.xlane.f32.xlu1 %v7070_v6 }
 0xc11   : > { %v6827_v59 = vpop.f32.mrb[170].mxu0 }
 0xc12   : > { %v17286_v45 = vmax.f32 %v12623_v51, 0.0  ;;  %v12624_v1 = vadd.f32 %v17098_v22, %v6827_v59  ;;  %v6829_v48 = vpop.f32.mrb[171].mxu0 }
 0xc14   : > { %v7071_v7 = vmul.f32 %v17286_v45, %v17286_v45  ;;  %v17291_v32 = vmax.f32 %v12624_v1, 0.0 }
 0xc16   : > { %v7072_v16 = vmul.f32 %v17291_v32, %v17291_v32  ;;  %7159 = vadd.xlane.f32.xlu0 %v7071_v7 }
 0xc17   : > { %v6832_v62 = vpop.f32.mrb[172].mxu0 }
 0xc18   : > { %v12625_v19 = vadd.f32 %v17098_v22, %v6832_v62  ;;  %v6834_v36 = vpop.f32.mrb[173].mxu0  ;;  %7161 = vadd.xlane.f32.xlu1 %v7072_v16 }
 0xc19   : > { %v6835_v3 = vpop.f32.mrb[174].mxu0 }
 0xc1a   : > { %v17296_v56 = vmax.f32 %v12625_v19, 0.0  ;;  %v12626_v25 = vadd.f32 %v17098_v22, %v6835_v3  ;;  %v6837_v4 = vpop.f32.mrb[175].mxu0 }
 0xc1c   : > { %v7073_v12 = vmul.f32 %v17296_v56, %v17296_v56  ;;  %v17301_v15 = vmax.f32 %v12626_v25, 0.0 }
 0xc1e   : > { %v7074_v0 = vmul.f32 %v17301_v15, %v17301_v15  ;;  %7163 = vadd.xlane.f32.xlu0 %v7073_v12 }
 0xc1f   : > { %v6840_v53 = vpop.f32.mrb[176].mxu0 }
 0xc20   : > { %v12627_v21 = vadd.f32 %v17098_v22, %v6840_v53  ;;  %v6842_v9 = vpop.f32.mrb[177].mxu0  ;;  %7165 = vadd.xlane.f32.xlu1 %v7074_v0 }
 0xc21   : > { %v6843_v43 = vpop.f32.mrb[178].mxu0 }
 0xc22   : > { %v17306_v42 = vmax.f32 %v12627_v21, 0.0  ;;  %v12628_v46 = vadd.f32 %v17098_v22, %v6843_v43  ;;  %v6845_v55 = vpop.f32.mrb[179].mxu0 }
 0xc24   : > { %v7075_v11 = vmul.f32 %v17306_v42, %v17306_v42  ;;  %v17311_v2 = vmax.f32 %v12628_v46, 0.0 }
 0xc26   : > { %v7076_v30 = vmul.f32 %v17311_v2, %v17311_v2  ;;  %7167 = vadd.xlane.f32.xlu0 %v7075_v11 }
 0xc27   : > { %v6848_v18 = vpop.f32.mrb[180].mxu0 }
 0xc28   : > { %v12629_v49 = vadd.f32 %v17098_v22, %v6848_v18  ;;  %v6850_v5 = vpop.f32.mrb[181].mxu0  ;;  %7169 = vadd.xlane.f32.xlu1 %v7076_v30 }
 0xc29   : > { %v6851_v23 = vpop.f32.mrb[182].mxu0 }
 0xc2a   : > { %v17316_v60 = vmax.f32 %v12629_v49, 0.0  ;;  %v12630_v58 = vadd.f32 %v17098_v22, %v6851_v23  ;;  %v6853_v6 = vpop.f32.mrb[183].mxu0 }
 0xc2c   : > { %v7077_v29 = vmul.f32 %v17316_v60, %v17316_v60  ;;  %v17321_v51 = vmax.f32 %v12630_v58, 0.0 }
 0xc2e   : > { %v7078_v63 = vmul.f32 %v17321_v51, %v17321_v51  ;;  %7171 = vadd.xlane.f32.xlu0 %v7077_v29 }
 0xc2f   : > { %v6856_v59 = vpop.f32.mrb[184].mxu0 }
 0xc30   : > { %v12631_v1 = vadd.f32 %v17098_v22, %v6856_v59  ;;  %v6858_v48 = vpop.f32.mrb[185].mxu0  ;;  %7173 = vadd.xlane.f32.xlu1 %v7078_v63 }
 0xc31   : > { %v6859_v7 = vpop.f32.mrb[186].mxu0 }
 0xc32   : > { %v17326_v16 = vmax.f32 %v12631_v1, 0.0  ;;  %v12632_v62 = vadd.f32 %v17098_v22, %v6859_v7  ;;  %v6861_v19 = vpop.f32.mrb[187].mxu0 }
 0xc34   : > { %v7079_v36 = vmul.f32 %v17326_v16, %v17326_v16  ;;  %v17331_v3 = vmax.f32 %v12632_v62, 0.0 }
 0xc36   : > { %v7080_v25 = vmul.f32 %v17331_v3, %v17331_v3  ;;  %7175 = vadd.xlane.f32.xlu0 %v7079_v36 }
 0xc37   : > { %v6864_v4 = vpop.f32.mrb[188].mxu0 }
 0xc38   : > { %v12633_v12 = vadd.f32 %v17098_v22, %v6864_v4  ;;  %v6866_v0 = vpop.f32.mrb[189].mxu0  ;;  %7177 = vadd.xlane.f32.xlu1 %v7080_v25 }
 0xc39   : > { %v6867_v53 = vpop.f32.mrb[190].mxu0 }
 0xc3a   : > { %v17336_v21 = vmax.f32 %v12633_v12, 0.0  ;;  %v12634_v9 = vadd.f32 %v17098_v22, %v6867_v53  ;;  %v6869_v43 = vpop.f32.mrb[191].mxu0 }
 0xc3c   : > { %v7081_v46 = vmul.f32 %v17336_v21, %v17336_v21  ;;  %v17341_v55 = vmax.f32 %v12634_v9, 0.0 }
 0xc3e   : > { %v7082_v11 = vmul.f32 %v17341_v55, %v17341_v55  ;;  %7179 = vadd.xlane.f32.xlu0 %v7081_v46 }
 0xc3f   : > { %v6872_v30 = vpop.f32.mrb[192].mxu0 }
 0xc40   : > { %v12635_v18 = vadd.f32 %v17098_v22, %v6872_v30  ;;  %v6874_v49 = vpop.f32.mrb[193].mxu0  ;;  %7181 = vadd.xlane.f32.xlu1 %v7082_v11 }
 0xc41   : > { %v6875_v5 = vpop.f32.mrb[194].mxu0 }
 0xc42   : > { %v17346_v23 = vmax.f32 %v12635_v18, 0.0  ;;  %v12636_v58 = vadd.f32 %v17098_v22, %v6875_v5  ;;  %v6877_v6 = vpop.f32.mrb[195].mxu0 }
 0xc43   : > { %v7112_v29 = vpop.xlane.xlu0 %7111 }
 0xc44   : > { %v7083_v63 = vmul.f32 %v17346_v23, %v17346_v23  ;;  %v17351_v59 = vmax.f32 %v12636_v58, 0.0  ;;  %v7239_v1 = vmax.f32 %v7112_v29, 1e-24 }
 0xc45   : > { %v7114_v48 = vpop.xlane.xlu1 %7113 }
 0xc46   : > { %v7084_v7 = vmul.f32 %v17351_v59, %v17351_v59  ;;  %14032 = vrsqrt.f32 %v7239_v1  ;;  %v7240_v62 = vmax.f32 %v7114_v48, 1e-24  ;;  %7183 = vadd.xlane.f32.xlu0 %v7083_v63 }
 0xc47   : > { %v6880_v19 = vpop.f32.mrb[196].mxu0 }
 0xc48   : > { %14034 = vrsqrt.f32 %v7240_v62  ;;  %v12637_v36 = vadd.f32 %v17098_v22, %v6880_v19  ;;  %v6882_v25 = vpop.f32.mrb[197].mxu0  ;;  %7185 = vadd.xlane.f32.xlu1 %v7084_v7 }
 0xc49   : > { %v6883_v4 = vpop.f32.mrb[198].mxu0 }
 0xc4a   : > { %v17356_v12 = vmax.f32 %v12637_v36, 0.0  ;;  %v12638_v0 = vadd.f32 %v17098_v22, %v6883_v4  ;;  %v6885_v53 = vpop.f32.mrb[199].mxu0 }
 0xc4b   : > { %v7116_v9 = vpop.xlane.xlu0 %7115 }
 0xc4c   : > { %v7085_v43 = vmul.f32 %v17356_v12, %v17356_v12  ;;  %v17361_v46 = vmax.f32 %v12638_v0, 0.0  ;;  %v7241_v11 = vmax.f32 %v7116_v9, 1e-24 }
 0xc4d   : > { %v7118_v30 = vpop.xlane.xlu1 %7117 }
 0xc4e   : > { %v7086_v18 = vmul.f32 %v17361_v46, %v17361_v46  ;;  %14036 = vrsqrt.f32 %v7241_v11  ;;  %v7242_v49 = vmax.f32 %v7118_v30, 1e-24  ;;  %7187 = vadd.xlane.f32.xlu0 %v7085_v43 }
 0xc4f   : > { %v6888_v5 = vpop.f32.mrb[200].mxu0 }
 0xc50   : > { %v14033_v58 = vpop.eup %14032  ;;  %14038 = vrsqrt.f32 %v7242_v49  ;;  %v12639_v6 = vadd.f32 %v17098_v22, %v6888_v5  ;;  %v6890_v29 = vpop.f32.mrb[201].mxu0  ;;  %7189 = vadd.xlane.f32.xlu1 %v7086_v18 }
 0xc51   : > { %v6891_v63 = vpop.f32.mrb[202].mxu0  ;;  %v7367_v19 = vmul.f32 %v14033_v58, %v17102_v61 }
 0xc52   : > { %v14035_v1 = vpop.eup %14034  ;;  %v17366_v48 = vmax.f32 %v12639_v6, 0.0  ;;  %v12640_v7 = vadd.f32 %v17098_v22, %v6891_v63  ;;  %v6893_v62 = vpop.f32.mrb[203].mxu0 }
 0xc53   : > { %v7368_v36 = vmul.f32 %v14035_v1, %v17107_v26  ;;  %v7120_v25 = vpop.xlane.xlu0 %7119  ;;  %v14437_v1 = vld [vmem:[%s18430_s5 + $0x8] sm:$0xff]  }
 0xc54   : > { %v7087_v4 = vmul.f32 %v17366_v48, %v17366_v48  ;;  %v17373_v0 = vmax.f32 %v12640_v7, 0.0  ;;  %v7243_v53 = vmax.f32 %v7120_v25, 1e-24 }
 0xc55   : > { %v7431_v9 = vpack.c.bf16 %v7368_v36, %v7367_v19  ;;  %v7122_v43 = vpop.xlane.xlu1 %7121 }
 0xc56   : > { %v7088_v11 = vmul.f32 %v17373_v0, %v17373_v0  ;;  %14040 = vrsqrt.f32 %v7243_v53  ;;  %v7244_v30 = vmax.f32 %v7122_v43, 1e-24  ;;  %7191 = vadd.xlane.f32.xlu0 %v7087_v4 }
 0xc57   : > { %v6896_v18 = vpop.f32.mrb[204].mxu0  ;;  %7593 = vmatmul.mubr.bf16.vlgmr.msra.gmra.mrb[72].mxu1 %v7431_v9 }
 0xc58   : > { %v14037_v61 = vpop.eup %14036  ;;  %14042 = vrsqrt.f32 %v7244_v30  ;;  %v12641_v26 = vadd.f32 %v17098_v22, %v6896_v18  ;;  %v6898_v49 = vpop.f32.mrb[205].mxu0  ;;  %7193 = vadd.xlane.f32.xlu1 %v7088_v11  ;;  %7602 = vmatprep.mubr.bf16.mxu1 %v18467_v54 }
 0xc59   : > { %v6899_v5 = vpop.f32.mrb[206].mxu0  ;;  %11880 = vmatpush3.bf16.msra.mxu1 %v17212_v24  ;;  %v7369_v7 = vmul.f32 %v14037_v61, %v17120_v57  ;;  %v14438_v57 = vld [vmem:[%s18430_s5 + $0x10] sm:$0xff]  }
 0xc5a   : > { %v14039_v58 = vpop.eup %14038  ;;  %v17380_v6 = vmax.f32 %v12641_v26, 0.0  ;;  %v12642_v29 = vadd.f32 %v17098_v22, %v6899_v5  ;;  %v6901_v63 = vpop.f32.mrb[207].mxu0  ;;  %11881 = vmatprep.subr.bf16.mxu1 %v14437_v1 }
 0xc5b   : > { %v7370_v62 = vmul.f32 %v14039_v58, %v17131_v41  ;;  %v7124_v19 = vpop.xlane.xlu0 %7123 }
 0xc5c   : > { %v7089_v36 = vmul.f32 %v17380_v6, %v17380_v6  ;;  %v17390_v24 = vmax.f32 %v12642_v29, 0.0  ;;  %v7245_v25 = vmax.f32 %v7124_v19, 1e-24  ;;  %v14439_v29 = vld [vmem:[%s18430_s5 + $0x18] sm:$0xff]  }
 0xc5d   : > { %v7432_v4 = vpack.c.bf16 %v7370_v62, %v7369_v7  ;;  %v7126_v53 = vpop.xlane.xlu1 %7125  ;;  %11882 = vmatpush3.bf16.msra.mxu1 %v14437_v1 }
 0xc5e   : > { %v7090_v9 = vmul.f32 %v17390_v24, %v17390_v24  ;;  %14044 = vrsqrt.f32 %v7245_v25  ;;  %v7246_v43 = vmax.f32 %v7126_v53, 1e-24  ;;  %7195 = vadd.xlane.f32.xlu0 %v7089_v36  ;;  %11883 = vmatprep.subr.bf16.mxu1 %v14438_v57 }
 0xc5f   : > { %v6904_v41 = vpop.f32.mrb[208].mxu0  ;;  %7603 = vmatmul.mubr.bf16.gmra.mrb[76].mxu1 %v7432_v4 }
 0xc60   : > { %v14041_v11 = vpop.eup %14040  ;;  %14046 = vrsqrt.f32 %v7246_v43  ;;  %v12643_v30 = vadd.f32 %v17098_v22, %v6904_v41  ;;  %v6906_v18 = vpop.f32.mrb[209].mxu0  ;;  %7197 = vadd.xlane.f32.xlu1 %v7090_v9  ;;  %7612 = vmatprep.mubr.bf16.mxu1 %v18467_v54 }
 0xc61   : > { %v6907_v61 = vpop.f32.mrb[210].mxu0  ;;  %11884 = vmatpush3.bf16.msra.mxu1 %v14438_v57  ;;  %v7371_v63 = vmul.f32 %v14041_v11, %v17144_v17  ;;  %v14440_v17 = vld [vmem:[%s18430_s5 + $0x20] sm:$0xff]  }
 0xc62   : > { %v14043_v26 = vpop.eup %14042  ;;  %v17399_v49 = vmax.f32 %v12643_v30, 0.0  ;;  %v12644_v5 = vadd.f32 %v17098_v22, %v6907_v61  ;;  %v6909_v58 = vpop.f32.mrb[211].mxu0  ;;  %11885 = vmatprep.subr.bf16.mxu1 %v14439_v29 }
 0xc63   : > { %v7372_v1 = vmul.f32 %v14043_v26, %v17155_v38  ;;  %v7128_v7 = vpop.xlane.xlu0 %7127 }
 0xc64   : > { %v7091_v62 = vmul.f32 %v17399_v49, %v17399_v49  ;;  %v17409_v19 = vmax.f32 %v12644_v5, 0.0  ;;  %v7247_v36 = vmax.f32 %v7128_v7, 1e-24  ;;  %v14441_v5 = vld [vmem:[%s18430_s5 + $0x28] sm:$0xff]  }
 0xc65   : > { %v7433_v25 = vpack.c.bf16 %v7372_v1, %v7371_v63  ;;  %v7130_v4 = vpop.xlane.xlu1 %7129  ;;  %11886 = vmatpush3.bf16.msra.mxu1 %v14439_v29 }
 0xc66   : > { %v7092_v53 = vmul.f32 %v17409_v19, %v17409_v19  ;;  %14048 = vrsqrt.f32 %v7247_v36  ;;  %v7248_v9 = vmax.f32 %v7130_v4, 1e-24  ;;  %7199 = vadd.xlane.f32.xlu0 %v7091_v62  ;;  %11887 = vmatprep.subr.bf16.mxu1 %v14440_v17 }
 0xc67   : > { %v6912_v38 = vpop.f32.mrb[212].mxu0  ;;  %7613 = vmatmul.mubr.bf16.gmra.mrb[80].mxu1 %v7433_v25 }
 0xc68   : > { %v14045_v43 = vpop.eup %14044  ;;  %14050 = vrsqrt.f32 %v7248_v9  ;;  %v12645_v57 = vadd.f32 %v17098_v22, %v6912_v38  ;;  %v6914_v41 = vpop.f32.mrb[213].mxu0  ;;  %7201 = vadd.xlane.f32.xlu1 %v7092_v53  ;;  %7622 = vmatprep.mubr.bf16.mxu1 %v18467_v54 }
 0xc69   : > { %v6915_v11 = vpop.f32.mrb[214].mxu0  ;;  %11888 = vmatpush3.bf16.msra.mxu1 %v14440_v17  ;;  %v7373_v58 = vmul.f32 %v14045_v43, %v17168_v52  ;;  %v14442_v52 = vld [vmem:[%s18430_s5 + $0x30] sm:$0xff]  }
 0xc6a   : > { %v14047_v30 = vpop.eup %14046  ;;  %v17418_v18 = vmax.f32 %v12645_v57, 0.0  ;;  %v12646_v61 = vadd.f32 %v17098_v22, %v6915_v11  ;;  %v6917_v26 = vpop.f32.mrb[215].mxu0  ;;  %11889 = vmatprep.subr.bf16.mxu1 %v14441_v5 }
 0xc6b   : > { %v7374_v29 = vmul.f32 %v14047_v30, %v17179_v28  ;;  %v7132_v63 = vpop.xlane.xlu0 %7131 }
 0xc6c   : > { %v7093_v1 = vmul.f32 %v17418_v18, %v17418_v18  ;;  %v17428_v7 = vmax.f32 %v12646_v61, 0.0  ;;  %v7249_v62 = vmax.f32 %v7132_v63, 1e-24  ;;  %v14443_v61 = vld [vmem:[%s18430_s5 + $0x38] sm:$0xff]  }
 0xc6d   : > { %v7434_v36 = vpack.c.bf16 %v7374_v29, %v7373_v58  ;;  %v7134_v25 = vpop.xlane.xlu1 %7133  ;;  %11890 = vmatpush3.bf16.msra.mxu1 %v14441_v5 }
 0xc6e   : > { %v7094_v4 = vmul.f32 %v17428_v7, %v17428_v7  ;;  %14052 = vrsqrt.f32 %v7249_v62  ;;  %v7250_v53 = vmax.f32 %v7134_v25, 1e-24  ;;  %7203 = vadd.xlane.f32.xlu0 %v7093_v1  ;;  %11891 = vmatprep.subr.bf16.mxu1 %v14442_v52 }
 0xc6f   : > { %v6920_v28 = vpop.f32.mrb[216].mxu0  ;;  %7623 = vmatmul.mubr.bf16.gmra.mrb[84].mxu1 %v7434_v36 }
 0xc70   : > { %v14049_v9 = vpop.eup %14048  ;;  %14054 = vrsqrt.f32 %v7250_v53  ;;  %v12647_v17 = vadd.f32 %v17098_v22, %v6920_v28  ;;  %v6922_v38 = vpop.f32.mrb[217].mxu0  ;;  %7205 = vadd.xlane.f32.xlu1 %v7094_v4  ;;  %7632 = vmatprep.mubr.bf16.mxu1 %v18467_v54 }
 0xc71   : > { %v6923_v43 = vpop.f32.mrb[218].mxu0  ;;  %11892 = vmatpush3.bf16.msra.mxu1 %v14442_v52  ;;  %v7375_v26 = vmul.f32 %v14049_v9, %v17192_v33  ;;  %v17454_v33 = vld [vmem:[%s18432_s7] sm:$0xff]  }
 0xc72   : > { %v14051_v57 = vpop.eup %14050  ;;  %v17437_v41 = vmax.f32 %v12647_v17, 0.0  ;;  %v12648_v11 = vadd.f32 %v17098_v22, %v6923_v43  ;;  %v6925_v30 = vpop.f32.mrb[219].mxu0  ;;  %11893 = vmatprep.subr.bf16.mxu1 %v14443_v61 }
 0xc73   : > { %v7376_v5 = vmul.f32 %v14051_v57, %v17203_v20  ;;  %v7136_v58 = vpop.xlane.xlu0 %7135 }
 0xc74   : > { %v7095_v29 = vmul.f32 %v17437_v41, %v17437_v41  ;;  %v17447_v63 = vmax.f32 %v12648_v11, 0.0  ;;  %v7251_v1 = vmax.f32 %v7136_v58, 1e-24 }
 0xc75   : > { %v7435_v62 = vpack.c.bf16 %v7376_v5, %v7375_v26  ;;  %v7138_v36 = vpop.xlane.xlu1 %7137  ;;  %11894 = vmatpush3.bf16.msra.mxu1 %v14443_v61 }
 0xc76   : > { %v7096_v25 = vmul.f32 %v17447_v63, %v17447_v63  ;;  %14056 = vrsqrt.f32 %v7251_v1  ;;  %v7252_v4 = vmax.f32 %v7138_v36, 1e-24  ;;  %7207 = vadd.xlane.f32.xlu0 %v7095_v29  ;;  %11959 = vmatprep.subr.bf16.mxu1 %v17454_v33 }
 0xc77   : > { %v6928_v20 = vpop.f32.mrb[220].mxu0  ;;  %7633 = vmatmul.mubr.bf16.gmra.mrb[88].mxu1 %v7435_v62 }
 0xc78   : > { %v14053_v53 = vpop.eup %14052  ;;  %14058 = vrsqrt.f32 %v7252_v4  ;;  %v12649_v52 = vadd.f32 %v17098_v22, %v6928_v20  ;;  %v6930_v28 = vpop.f32.mrb[221].mxu0  ;;  %7209 = vadd.xlane.f32.xlu1 %v7096_v25  ;;  %7642 = vmatprep.mubr.bf16.mxu1 %v18467_v54 }
 0xc79   : > { %v6931_v9 = vpop.f32.mrb[222].mxu0  ;;  %v7377_v11 = vmul.f32 %v14053_v53, %v17216_v13 }
 0xc7a   : > { %v14055_v17 = vpop.eup %14054  ;;  %v17459_v38 = vmax.f32 %v12649_v52, 0.0  ;;  %v12650_v43 = vadd.f32 %v17098_v22, %v6931_v9  ;;  %v6933_v57 = vpop.f32.mrb[223].mxu0 }
 0xc7b   : > { %v7378_v30 = vmul.f32 %v14055_v17, %v17221_v27  ;;  %v7140_v61 = vpop.xlane.xlu0 %7139 }
 0xc7c   : > { %v7097_v26 = vmul.f32 %v17459_v38, %v17459_v38  ;;  %v17466_v5 = vmax.f32 %v12650_v43, 0.0  ;;  %v7253_v58 = vmax.f32 %v7140_v61, 1e-24 }
 0xc7d   : > { %v7436_v29 = vpack.c.bf16 %v7378_v30, %v7377_v11  ;;  %v7142_v1 = vpop.xlane.xlu1 %7141 }
 0xc7e   : > { %v7098_v62 = vmul.f32 %v17466_v5, %v17466_v5  ;;  %14060 = vrsqrt.f32 %v7253_v58  ;;  %v7254_v36 = vmax.f32 %v7142_v1, 1e-24  ;;  %7211 = vadd.xlane.f32.xlu0 %v7097_v26 }
 0xc7f   : > { %v6936_v25 = vpop.f32.mrb[224].mxu0  ;;  %7643 = vmatmul.mubr.bf16.gmra.mrb[92].mxu1 %v7436_v29 }
 0xc80   : > { %v14057_v13 = vpop.eup %14056  ;;  %14062 = vrsqrt.f32 %v7254_v36  ;;  %v12651_v27 = vadd.f32 %v17098_v22, %v6936_v25  ;;  %v6938_v4 = vpop.f32.mrb[225].mxu0  ;;  %7213 = vadd.xlane.f32.xlu1 %v7098_v62  ;;  %7652 = vmatprep.mubr.bf16.mxu1 %v18467_v54 }
 0xc81   : > { %v6939_v20 = vpop.f32.mrb[226].mxu0  ;;  %v7379_v17 = vmul.f32 %v14057_v13, %v17226_v31 }
 0xc82   : > { %v14059_v53 = vpop.eup %14058  ;;  %v17472_v52 = vmax.f32 %v12651_v27, 0.0  ;;  %v12652_v28 = vadd.f32 %v17098_v22, %v6939_v20  ;;  %v6941_v9 = vpop.f32.mrb[227].mxu0 }
 0xc83   : > { %v7380_v43 = vmul.f32 %v14059_v53, %v17231_v10  ;;  %v7144_v57 = vpop.xlane.xlu0 %7143 }
 0xc84   : > { %v7099_v11 = vmul.f32 %v17472_v52, %v17472_v52  ;;  %v17479_v30 = vmax.f32 %v12652_v28, 0.0  ;;  %v7255_v61 = vmax.f32 %v7144_v57, 1e-24 }
 0xc85   : > { %v7437_v26 = vpack.c.bf16 %v7380_v43, %v7379_v17  ;;  %v7146_v58 = vpop.xlane.xlu1 %7145 }
 0xc86   : > { %v7100_v29 = vmul.f32 %v17479_v30, %v17479_v30  ;;  %14064 = vrsqrt.f32 %v7255_v61  ;;  %v7256_v1 = vmax.f32 %v7146_v58, 1e-24  ;;  %7215 = vadd.xlane.f32.xlu0 %v7099_v11 }
 0xc87   : > { %v6944_v62 = vpop.f32.mrb[228].mxu0  ;;  %7653 = vmatmul.mubr.bf16.gmra.mrb[96].mxu1 %v7437_v26 }
 0xc88   : > { %v14061_v31 = vpop.eup %14060  ;;  %14066 = vrsqrt.f32 %v7256_v1  ;;  %v12653_v10 = vadd.f32 %v17098_v22, %v6944_v62  ;;  %v6946_v36 = vpop.f32.mrb[229].mxu0  ;;  %7217 = vadd.xlane.f32.xlu1 %v7100_v29  ;;  %7662 = vmatprep.mubr.bf16.mxu1 %v18467_v54 }
 0xc89   : > { %v6947_v25 = vpop.f32.mrb[230].mxu0  ;;  %v7381_v53 = vmul.f32 %v14061_v31, %v17236_v39 }
 0xc8a   : > { %v14063_v13 = vpop.eup %14062  ;;  %v17485_v27 = vmax.f32 %v12653_v10, 0.0  ;;  %v12654_v4 = vadd.f32 %v17098_v22, %v6947_v25  ;;  %v6949_v20 = vpop.f32.mrb[231].mxu0 }
 0xc8b   : > { %v7382_v28 = vmul.f32 %v14063_v13, %v17241_v40  ;;  %v7148_v9 = vpop.xlane.xlu0 %7147  ;;  %v17499_v40 = vld [vmem:[%s18428_s3 + $0x2] ss:$0 sm:$0xff] }
 0xc8c   : > { %v7101_v17 = vmul.f32 %v17485_v27, %v17485_v27  ;;  %v17492_v43 = vmax.f32 %v12654_v4, 0.0  ;;  %v7257_v57 = vmax.f32 %v7148_v9, 1e-24 }
 0xc8d   : > { %v7438_v11 = vpack.c.bf16 %v7382_v28, %v7381_v53  ;;  %v7150_v61 = vpop.xlane.xlu1 %7149 }
 0xc8e   : > { %v7102_v26 = vmul.f32 %v17492_v43, %v17492_v43  ;;  %14068 = vrsqrt.f32 %v7257_v57  ;;  %v7258_v58 = vmax.f32 %v7150_v61, 1e-24  ;;  %7219 = vadd.xlane.f32.xlu0 %v7101_v17 }
 0xc8f   : > { %v6952_v22 = vpop.f32.mrb[232].mxu0  ;;  %7663 = vmatmul.mubr.bf16.gmra.mrb[100].mxu1 %v7438_v11 }
 0xc90   : > { %v14065_v39 = vpop.eup %14064  ;;  %14070 = vrsqrt.f32 %v7258_v58  ;;  %v12655_v29 = vadd.f32 %v17499_v40, %v6952_v22  ;;  %v6954_v1 = vpop.f32.mrb[233].mxu0  ;;  %7221 = vadd.xlane.f32.xlu1 %v7102_v26  ;;  %7672 = vmatprep.mubr.bf16.mxu1 %v18467_v54 }
 0xc91   : > { %v6955_v62 = vpop.f32.mrb[234].mxu0  ;;  %v7383_v13 = vmul.f32 %v14065_v39, %v17246_v34 }
 0xc92   : > { %v14067_v31 = vpop.eup %14066  ;;  %v17503_v10 = vmax.f32 %v12655_v29, 0.0  ;;  %v12656_v36 = vadd.f32 %v17499_v40, %v6955_v62  ;;  %v6957_v25 = vpop.f32.mrb[235].mxu0 }
 0xc93   : > { %v7384_v4 = vmul.f32 %v14067_v31, %v17251_v14  ;;  %v7152_v20 = vpop.xlane.xlu0 %7151 }
 0xc94   : > { %v7103_v53 = vmul.f32 %v17503_v10, %v17503_v10  ;;  %v17510_v28 = vmax.f32 %v12656_v36, 0.0  ;;  %v7259_v9 = vmax.f32 %v7152_v20, 1e-24 }
 0xc95   : > { %v7439_v17 = vpack.c.bf16 %v7384_v4, %v7383_v13  ;;  %v7154_v57 = vpop.xlane.xlu1 %7153 }
 0xc96   : > { %v7104_v11 = vmul.f32 %v17510_v28, %v17510_v28  ;;  %14072 = vrsqrt.f32 %v7259_v9  ;;  %v7260_v61 = vmax.f32 %v7154_v57, 1e-24  ;;  %7223 = vadd.xlane.f32.xlu0 %v7103_v53 }
 0xc97   : > { %v6960_v26 = vpop.f32.mrb[236].mxu0  ;;  %7673 = vmatmul.mubr.bf16.gmra.mrb[104].mxu1 %v7439_v17 }
 0xc98   : > { %v14069_v34 = vpop.eup %14068  ;;  %14074 = vrsqrt.f32 %v7260_v61  ;;  %v12657_v14 = vadd.f32 %v17499_v40, %v6960_v26  ;;  %v6962_v58 = vpop.f32.mrb[237].mxu0  ;;  %7225 = vadd.xlane.f32.xlu1 %v7104_v11  ;;  %7682 = vmatprep.mubr.bf16.mxu1 %v18467_v54 }
 0xc99   : > { %v6963_v22 = vpop.f32.mrb[238].mxu0  ;;  %v7385_v31 = vmul.f32 %v14069_v34, %v17256_v37 }
 0xc9a   : > { %v14071_v39 = vpop.eup %14070  ;;  %v17516_v29 = vmax.f32 %v12657_v14, 0.0  ;;  %v12658_v1 = vadd.f32 %v17499_v40, %v6963_v22  ;;  %v6965_v62 = vpop.f32.mrb[239].mxu0 }
 0xc9b   : > { %v7386_v36 = vmul.f32 %v14071_v39, %v17261_v47  ;;  %v7156_v25 = vpop.xlane.xlu0 %7155 }
 0xc9c   : > { %v7105_v13 = vmul.f32 %v17516_v29, %v17516_v29  ;;  %v17523_v4 = vmax.f32 %v12658_v1, 0.0  ;;  %v7261_v20 = vmax.f32 %v7156_v25, 1e-24 }
 0xc9d   : > { %v7440_v53 = vpack.c.bf16 %v7386_v36, %v7385_v31  ;;  %v7158_v9 = vpop.xlane.xlu1 %7157 }
 0xc9e   : > { %v7106_v17 = vmul.f32 %v17523_v4, %v17523_v4  ;;  %14076 = vrsqrt.f32 %v7261_v20  ;;  %v7262_v57 = vmax.f32 %v7158_v9, 1e-24  ;;  %7227 = vadd.xlane.f32.xlu0 %v7105_v13 }
 0xc9f   : > { %v6968_v11 = vpop.f32.mrb[240].mxu0  ;;  %7683 = vmatmul.mubr.bf16.gmra.mrb[108].mxu1 %v7440_v53 }
 0xca0   : > { %v14073_v37 = vpop.eup %14072  ;;  %14078 = vrsqrt.f32 %v7262_v57  ;;  %v12659_v47 = vadd.f32 %v17499_v40, %v6968_v11  ;;  %v6970_v61 = vpop.f32.mrb[241].mxu0  ;;  %7229 = vadd.xlane.f32.xlu1 %v7106_v17  ;;  %7692 = vmatprep.mubr.bf16.mxu1 %v18467_v54 }
 0xca1   : > { %v6971_v26 = vpop.f32.mrb[242].mxu0  ;;  %v7387_v39 = vmul.f32 %v14073_v37, %v17266_v8 }
 0xca2   : > { %v14075_v34 = vpop.eup %14074  ;;  %v17529_v14 = vmax.f32 %v12659_v47, 0.0  ;;  %v12660_v58 = vadd.f32 %v17499_v40, %v6971_v26  ;;  %v6973_v22 = vpop.f32.mrb[243].mxu0 }
 0xca3   : > { %v7388_v1 = vmul.f32 %v14075_v34, %v17271_v50  ;;  %v7160_v62 = vpop.xlane.xlu0 %7159 }
 0xca4   : > { %v7107_v31 = vmul.f32 %v17529_v14, %v17529_v14  ;;  %v17536_v36 = vmax.f32 %v12660_v58, 0.0  ;;  %v7263_v25 = vmax.f32 %v7160_v62, 1e-24 }
 0xca5   : > { %v7441_v13 = vpack.c.bf16 %v7388_v1, %v7387_v39  ;;  %v7162_v20 = vpop.xlane.xlu1 %7161 }
 0xca6   : > { %v7108_v53 = vmul.f32 %v17536_v36, %v17536_v36  ;;  %14080 = vrsqrt.f32 %v7263_v25  ;;  %v7264_v9 = vmax.f32 %v7162_v20, 1e-24  ;;  %7231 = vadd.xlane.f32.xlu0 %v7107_v31 }
 0xca7   : > { %v6976_v17 = vpop.f32.mrb[244].mxu0  ;;  %7693 = vmatmul.mubr.bf16.gmra.mrb[112].mxu1 %v7441_v13 }
 0xca8   : > { %v14077_v8 = vpop.eup %14076  ;;  %14082 = vrsqrt.f32 %v7264_v9  ;;  %v12661_v50 = vadd.f32 %v17499_v40, %v6976_v17  ;;  %v6978_v57 = vpop.f32.mrb[245].mxu0  ;;  %7233 = vadd.xlane.f32.xlu1 %v7108_v53  ;;  %7702 = vmatprep.mubr.bf16.mxu1 %v18467_v54 }
 0xca9   : > { %v6979_v11 = vpop.f32.mrb[246].mxu0  ;;  %v7389_v34 = vmul.f32 %v14077_v8, %v17276_v44 }
 0xcaa   : > { %v14079_v37 = vpop.eup %14078  ;;  %v17542_v47 = vmax.f32 %v12661_v50, 0.0  ;;  %v12662_v61 = vadd.f32 %v17499_v40, %v6979_v11  ;;  %v6981_v26 = vpop.f32.mrb[247].mxu0 }
 0xcab   : > { %v7390_v58 = vmul.f32 %v14079_v37, %v17281_v35  ;;  %v7164_v22 = vpop.xlane.xlu0 %7163 }
 0xcac   : > { %v7109_v39 = vmul.f32 %v17542_v47, %v17542_v47  ;;  %v17549_v1 = vmax.f32 %v12662_v61, 0.0  ;;  %v7265_v62 = vmax.f32 %v7164_v22, 1e-24 }
 0xcad   : > { %v7442_v31 = vpack.c.bf16 %v7390_v58, %v7389_v34  ;;  %v7166_v25 = vpop.xlane.xlu1 %7165 }
 0xcae   : > { %v7110_v13 = vmul.f32 %v17549_v1, %v17549_v1  ;;  %14084 = vrsqrt.f32 %v7265_v62  ;;  %v7266_v20 = vmax.f32 %v7166_v25, 1e-24  ;;  %7235 = vadd.xlane.f32.xlu0 %v7109_v39 }
 0xcaf   : > { %7703 = vmatmul.mubr.bf16.gmra.mrb[116].mxu1 %v7442_v31 }
 0xcb0   : > { %v14081_v40 = vpop.eup %14080  ;;  %14086 = vrsqrt.f32 %v7266_v20  ;;  %7237 = vadd.xlane.f32.xlu1 %v7110_v13  ;;  %7712 = vmatprep.mubr.bf16.mxu1 %v18467_v54 }
 0xcb1   : > { %v7391_v35 = vmul.f32 %v14081_v40, %v17286_v45 }
 0xcb2   : > { %v14083_v44 = vpop.eup %14082 }
 0xcb3   : > { %v7392_v53 = vmul.f32 %v14083_v44, %v17291_v32  ;;  %v7168_v9 = vpop.xlane.xlu0 %7167 }
 0xcb4   : > { %v7267_v17 = vmax.f32 %v7168_v9, 1e-24 }
 0xcb5   : > { %v7443_v8 = vpack.c.bf16 %v7392_v53, %v7391_v35  ;;  %v7170_v50 = vpop.xlane.xlu1 %7169 }
 0xcb6   : > { %14088 = vrsqrt.f32 %v7267_v17  ;;  %v7268_v57 = vmax.f32 %v7170_v50, 1e-24 }
 0xcb7   : > { %7713 = vmatmul.mubr.bf16.gmra.mrb[120].mxu1 %v7443_v8 }
 0xcb8   : > { %v14085_v11 = vpop.eup %14084  ;;  %14090 = vrsqrt.f32 %v7268_v57  ;;  %7722 = vmatprep.mubr.bf16.mxu1 %v18467_v54 }
 0xcb9   : > { %v7393_v61 = vmul.f32 %v14085_v11, %v17296_v56 }
 0xcba   : > { %v14087_v37 = vpop.eup %14086 }
 0xcbb   : > { %v7394_v26 = vmul.f32 %v14087_v37, %v17301_v15  ;;  %v7172_v34 = vpop.xlane.xlu0 %7171 }
 0xcbc   : > { %v7269_v45 = vmax.f32 %v7172_v34, 1e-24 }
 0xcbd   : > { %v7444_v58 = vpack.c.bf16 %v7394_v26, %v7393_v61  ;;  %v7174_v32 = vpop.xlane.xlu1 %7173 }
 0xcbe   : > { %14092 = vrsqrt.f32 %v7269_v45  ;;  %v7270_v22 = vmax.f32 %v7174_v32, 1e-24 }
 0xcbf   : > { %7723 = vmatmul.mubr.bf16.gmra.mrb[124].mxu1 %v7444_v58 }
 0xcc0   : > { %v14089_v39 = vpop.eup %14088  ;;  %14094 = vrsqrt.f32 %v7270_v22  ;;  %7732 = vmatprep.mubr.bf16.mxu1 %v18467_v54 }
 0xcc1   : > { %v7395_v31 = vmul.f32 %v14089_v39, %v17306_v42 }
 0xcc2   : > { %v14091_v62 = vpop.eup %14090 }
 0xcc3   : > { %v7396_v25 = vmul.f32 %v14091_v62, %v17311_v2  ;;  %v7176_v13 = vpop.xlane.xlu0 %7175 }
 0xcc4   : > { %v7271_v56 = vmax.f32 %v7176_v13, 1e-24 }
 0xcc5   : > { %v7445_v20 = vpack.c.bf16 %v7396_v25, %v7395_v31  ;;  %v7178_v15 = vpop.xlane.xlu1 %7177 }
 0xcc6   : > { %14096 = vrsqrt.f32 %v7271_v56  ;;  %v7272_v40 = vmax.f32 %v7178_v15, 1e-24 }
 0xcc7   : > { %7733 = vmatmul.mubr.bf16.gmra.mrb[128].mxu1 %v7445_v20 }
 0xcc8   : > { %v14093_v44 = vpop.eup %14092  ;;  %14098 = vrsqrt.f32 %v7272_v40  ;;  %7742 = vmatprep.mubr.bf16.mxu1 %v18467_v54 }
 0xcc9   : > { %v7397_v53 = vmul.f32 %v14093_v44, %v17316_v60 }
 0xcca   : > { %v14095_v35 = vpop.eup %14094 }
 0xccb   : > { %v7398_v9 = vmul.f32 %v14095_v35, %v17321_v51  ;;  %v7180_v17 = vpop.xlane.xlu0 %7179 }
 0xccc   : > { %v7273_v42 = vmax.f32 %v7180_v17, 1e-24 }
 0xccd   : > { %v7446_v8 = vpack.c.bf16 %v7398_v9, %v7397_v53  ;;  %v7182_v2 = vpop.xlane.xlu1 %7181 }
 0xcce   : > { %14100 = vrsqrt.f32 %v7273_v42  ;;  %v7274_v50 = vmax.f32 %v7182_v2, 1e-24 }
 0xccf   : > { %7743 = vmatmul.mubr.bf16.gmra.mrb[132].mxu1 %v7446_v8 }
 0xcd0   : > { %v14097_v57 = vpop.eup %14096  ;;  %14102 = vrsqrt.f32 %v7274_v50  ;;  %7752 = vmatprep.mubr.bf16.mxu1 %v18467_v54 }
 0xcd1   : > { %v7399_v37 = vmul.f32 %v14097_v57, %v17326_v16 }
 0xcd2   : > { %v14099_v11 = vpop.eup %14098 }
 0xcd3   : > { %v7400_v61 = vmul.f32 %v14099_v11, %v17331_v3  ;;  %v7184_v26 = vpop.xlane.xlu0 %7183 }
 0xcd4   : > { %v7275_v60 = vmax.f32 %v7184_v26, 1e-24 }
 0xcd5   : > { %v7447_v34 = vpack.c.bf16 %v7400_v61, %v7399_v37  ;;  %v7186_v51 = vpop.xlane.xlu1 %7185 }
 0xcd6   : > { %14104 = vrsqrt.f32 %v7275_v60  ;;  %v7276_v45 = vmax.f32 %v7186_v51, 1e-24 }
 0xcd7   : > { %7753 = vmatmul.mubr.bf16.gmra.mrb[200].mxu1 %v7447_v34 }
 0xcd8   : > { %v14101_v58 = vpop.eup %14100  ;;  %14106 = vrsqrt.f32 %v7276_v45  ;;  %7762 = vmatprep.mubr.bf16.mxu1 %v18467_v54 }
 0xcd9   : > { %v7401_v22 = vmul.f32 %v14101_v58, %v17336_v21 }
 0xcda   : > { %v14103_v32 = vpop.eup %14102 }
 0xcdb   : > { %v7402_v39 = vmul.f32 %v14103_v32, %v17341_v55  ;;  %v7188_v62 = vpop.xlane.xlu0 %7187 }
 0xcdc   : > { %v7277_v16 = vmax.f32 %v7188_v62, 1e-24 }
 0xcdd   : > { %v7448_v31 = vpack.c.bf16 %v7402_v39, %v7401_v22  ;;  %v7190_v3 = vpop.xlane.xlu1 %7189 }
 0xcde   : > { %14108 = vrsqrt.f32 %v7277_v16  ;;  %v7278_v25 = vmax.f32 %v7190_v3, 1e-24 }
 0xcdf   : > { %7763 = vmatmul.mubr.bf16.gmra.mrb[204].mxu1 %v7448_v31 }
 0xce0   : > { %v14105_v13 = vpop.eup %14104  ;;  %14110 = vrsqrt.f32 %v7278_v25  ;;  %7772 = vmatprep.mubr.bf16.mxu1 %v18467_v54 }
 0xce1   : > { %v7403_v20 = vmul.f32 %v14105_v13, %v17346_v23 }
 0xce2   : > { %v14107_v56 = vpop.eup %14106 }
 0xce3   : > { %v7404_v15 = vmul.f32 %v14107_v56, %v17351_v59  ;;  %v7192_v40 = vpop.xlane.xlu0 %7191 }
 0xce4   : > { %v7279_v21 = vmax.f32 %v7192_v40, 1e-24 }
 0xce5   : > { %v7449_v44 = vpack.c.bf16 %v7404_v15, %v7403_v20  ;;  %v7194_v55 = vpop.xlane.xlu1 %7193 }
 0xce6   : > { %14112 = vrsqrt.f32 %v7279_v21  ;;  %v7280_v35 = vmax.f32 %v7194_v55, 1e-24 }
 0xce7   : > { %7773 = vmatmul.mubr.bf16.gmra.mrb[208].mxu1 %v7449_v44 }
 0xce8   : > { %v14109_v53 = vpop.eup %14108  ;;  %14114 = vrsqrt.f32 %v7280_v35  ;;  %7782 = vmatprep.mubr.bf16.mxu1 %v18467_v54 }
 0xce9   : > { %v7405_v17 = vmul.f32 %v14109_v53, %v17356_v12 }
 0xcea   : > { %v14111_v9 = vpop.eup %14110 }
 0xceb   : > { %v7406_v42 = vmul.f32 %v14111_v9, %v17361_v46  ;;  %v7196_v8 = vpop.xlane.xlu0 %7195 }
 0xcec   : > { %v7281_v23 = vmax.f32 %v7196_v8, 1e-24 }
 0xced   : > { %v7450_v2 = vpack.c.bf16 %v7406_v42, %v7405_v17  ;;  %v7198_v59 = vpop.xlane.xlu1 %7197 }
 0xcee   : > { %14116 = vrsqrt.f32 %v7281_v23  ;;  %v7282_v50 = vmax.f32 %v7198_v59, 1e-24 }
 0xcef   : > { %7783 = vmatmul.mubr.bf16.gmra.mrb[212].mxu1 %v7450_v2 }
 0xcf0   : > { %v14113_v57 = vpop.eup %14112  ;;  %14118 = vrsqrt.f32 %v7282_v50  ;;  %7792 = vmatprep.mubr.bf16.mxu1 %v18467_v54 }
 0xcf1   : > { %v7407_v37 = vmul.f32 %v14113_v57, %v17366_v48 }
 0xcf2   : > { %v14115_v11 = vpop.eup %14114 }
 0xcf3   : > { %v7408_v61 = vmul.f32 %v14115_v11, %v17373_v0  ;;  %v7200_v26 = vpop.xlane.xlu0 %7199 }
 0xcf4   : > { %v7283_v12 = vmax.f32 %v7200_v26, 1e-24 }
 0xcf5   : > { %v7451_v60 = vpack.c.bf16 %v7408_v61, %v7407_v37  ;;  %v7202_v46 = vpop.xlane.xlu1 %7201 }
 0xcf6   : > { %14120 = vrsqrt.f32 %v7283_v12  ;;  %v7284_v34 = vmax.f32 %v7202_v46, 1e-24 }
 0xcf7   : > { %7793 = vmatmul.mubr.bf16.gmra.mrb[216].mxu1 %v7451_v60 }
 0xcf8   : > { %v14117_v51 = vpop.eup %14116  ;;  %14122 = vrsqrt.f32 %v7284_v34  ;;  %7802 = vmatprep.mubr.bf16.mxu1 %v18467_v54 }
 0xcf9   : > { %v7409_v58 = vmul.f32 %v14117_v51, %v17380_v6 }
 0xcfa   : > { %v14119_v45 = vpop.eup %14118 }
 0xcfb   : > { %v7410_v32 = vmul.f32 %v14119_v45, %v17390_v24  ;;  %v7204_v22 = vpop.xlane.xlu0 %7203 }
 0xcfc   : > { %v7285_v48 = vmax.f32 %v7204_v22, 1e-24 }
 0xcfd   : > { %v7452_v39 = vpack.c.bf16 %v7410_v32, %v7409_v58  ;;  %v7206_v0 = vpop.xlane.xlu1 %7205 }
 0xcfe   : > { %14124 = vrsqrt.f32 %v7285_v48  ;;  %v7286_v62 = vmax.f32 %v7206_v0, 1e-24 }
 0xcff   : > { %7803 = vmatmul.mubr.bf16.gmra.mrb[220].mxu1 %v7452_v39 }
 0xd00   : > { %v14121_v16 = vpop.eup %14120  ;;  %14126 = vrsqrt.f32 %v7286_v62  ;;  %7812 = vmatprep.mubr.bf16.mxu1 %v18467_v54 }
 0xd01   : > { %v7411_v3 = vmul.f32 %v14121_v16, %v17399_v49 }
 0xd02   : > { %v14123_v31 = vpop.eup %14122 }
 0xd03   : > { %v7412_v25 = vmul.f32 %v14123_v31, %v17409_v19  ;;  %v7208_v13 = vpop.xlane.xlu0 %7207  ;;  %v17604_v31 = vld [vmem:[%s18429_s4] ss:$0 sm:$0xff] }
 0xd04   : > { %v7287_v6 = vmax.f32 %v7208_v13, 1e-24 }
 0xd05   : > { %v7453_v56 = vpack.c.bf16 %v7412_v25, %v7411_v3  ;;  %v7210_v24 = vpop.xlane.xlu1 %7209 }
 0xd06   : > { %14128 = vrsqrt.f32 %v7287_v6  ;;  %v7288_v20 = vmax.f32 %v7210_v24, 1e-24 }
 0xd07   : > { %7813 = vmatmul.mubr.bf16.gmra.mrb[224].mxu1 %v7453_v56 }
 0xd08   : > { %v14125_v15 = vpop.eup %14124  ;;  %14130 = vrsqrt.f32 %v7288_v20  ;;  %7822 = vmatprep.mubr.bf16.mxu1 %v18467_v54 }
 0xd09   : > { %v7413_v21 = vmul.f32 %v14125_v15, %v17418_v18 }
 0xd0a   : > { %v14127_v40 = vpop.eup %14126 }
 0xd0b   : > { %v7414_v44 = vmul.f32 %v14127_v40, %v17428_v7  ;;  %v7212_v55 = vpop.xlane.xlu0 %7211 }
 0xd0c   : > { %v7289_v49 = vmax.f32 %v7212_v55, 1e-24 }
 0xd0d   : > { %v7454_v35 = vpack.c.bf16 %v7414_v44, %v7413_v21  ;;  %v7214_v19 = vpop.xlane.xlu1 %7213 }
 0xd0e   : > { %14132 = vrsqrt.f32 %v7289_v49  ;;  %v7290_v53 = vmax.f32 %v7214_v19, 1e-24 }
 0xd0f   : > { %7823 = vmatmul.mubr.bf16.gmra.mrb[228].mxu1 %v7454_v35 }
 0xd10   : > { %v14129_v9 = vpop.eup %14128  ;;  %14134 = vrsqrt.f32 %v7290_v53  ;;  %7832 = vmatprep.mubr.bf16.mxu1 %v18467_v54 }
 0xd11   : > { %v7415_v42 = vmul.f32 %v14129_v9, %v17437_v41 }
 0xd12   : > { %v14131_v17 = vpop.eup %14130 }
 0xd13   : > { %v7416_v8 = vmul.f32 %v14131_v17, %v17447_v63  ;;  %v7216_v23 = vpop.xlane.xlu0 %7215 }
 0xd14   : > { %v7291_v18 = vmax.f32 %v7216_v23, 1e-24 }
 0xd15   : > { %v7455_v2 = vpack.c.bf16 %v7416_v8, %v7415_v42  ;;  %v7218_v7 = vpop.xlane.xlu1 %7217 }
 0xd16   : > { %14136 = vrsqrt.f32 %v7291_v18  ;;  %v7292_v59 = vmax.f32 %v7218_v7, 1e-24 }
 0xd17   : > { %7833 = vmatmul.mubr.bf16.gmra.mrb[232].mxu1 %v7455_v2 }
 0xd18   : > { %v14133_v50 = vpop.eup %14132  ;;  %14138 = vrsqrt.f32 %v7292_v59  ;;  %7842 = vmatprep.mubr.bf16.mxu1 %v18467_v54 }
 0xd19   : > { %v7417_v11 = vmul.f32 %v14133_v50, %v17459_v38 }
 0xd1a   : > { %v14135_v57 = vpop.eup %14134 }
 0xd1b   : > { %v7418_v37 = vmul.f32 %v14135_v57, %v17466_v5  ;;  %v7220_v61 = vpop.xlane.xlu0 %7219 }
 0xd1c   : > { %v7293_v41 = vmax.f32 %v7220_v61, 1e-24 }
 0xd1d   : > { %v7456_v26 = vpack.c.bf16 %v7418_v37, %v7417_v11  ;;  %v7222_v63 = vpop.xlane.xlu1 %7221 }
 0xd1e   : > { %14140 = vrsqrt.f32 %v7293_v41  ;;  %v7294_v12 = vmax.f32 %v7222_v63, 1e-24 }
 0xd1f   : > { %7843 = vmatmul.mubr.bf16.gmra.mrb[236].mxu1 %v7456_v26 }
 0xd20   : > { %v14137_v60 = vpop.eup %14136  ;;  %14142 = vrsqrt.f32 %v7294_v12  ;;  %7852 = vmatprep.mubr.bf16.mxu1 %v18467_v54 }
 0xd21   : > { %v7419_v34 = vmul.f32 %v14137_v60, %v17472_v52 }
 0xd22   : > { %v14139_v46 = vpop.eup %14138 }
 0xd23   : > { %v7420_v51 = vmul.f32 %v14139_v46, %v17479_v30  ;;  %v7224_v45 = vpop.xlane.xlu0 %7223 }
 0xd24   : > { %v7295_v38 = vmax.f32 %v7224_v45, 1e-24 }
 0xd25   : > { %v7457_v58 = vpack.c.bf16 %v7420_v51, %v7419_v34  ;;  %v7226_v5 = vpop.xlane.xlu1 %7225 }
 0xd26   : > { %14144 = vrsqrt.f32 %v7295_v38  ;;  %v7296_v32 = vmax.f32 %v7226_v5, 1e-24 }
 0xd27   : > { %7853 = vmatmul.mubr.bf16.gmra.mrb[240].mxu1 %v7457_v58 }
 0xd28   : > { %v14141_v22 = vpop.eup %14140  ;;  %14146 = vrsqrt.f32 %v7296_v32  ;;  %7862 = vmatprep.mubr.bf16.mxu1 %v18467_v54 }
 0xd29   : > { %v7421_v0 = vmul.f32 %v14141_v22, %v17485_v27 }
 0xd2a   : > { %v14143_v48 = vpop.eup %14142  ;;  %v7594_v39 = vpop.f32.mrb[72].mxu1 }
 0xd2b   : > { %v7422_v62 = vmul.f32 %v14143_v48, %v17492_v43  ;;  %v7228_v52 = vpop.xlane.xlu0 %7227  ;;  %v7596_v16 = vpop.f32.mrb[73].mxu1 }
 0xd2c   : > { %v7297_v30 = vmax.f32 %v7228_v52, 1e-24  ;;  %v7945_v3 = vadd.f32 %v17604_v31, %v7596_v16  ;;  %v7598_v25 = vpop.f32.mrb[74].mxu1 }
 0xd2d   : > { %v7458_v13 = vpack.c.bf16 %v7422_v62, %v7421_v0  ;;  %v7913_v6 = vpack.c.bf16 %v7598_v25, %v7594_v39  ;;  %v7230_v56 = vpop.xlane.xlu1 %7229  ;;  %v7600_v24 = vpop.f32.mrb[75].mxu1 }
 0xd2e   : > { %14148 = vrsqrt.f32 %v7297_v30  ;;  %v7298_v20 = vmax.f32 %v7230_v56, 1e-24  ;;  %v7946_v27 = vadd.f32 %v17604_v31, %v7600_v24  ;;  %v8009_v15 = vmax.f32 %v7945_v3, 0.0 }
 0xd2f   : > { %7863 = vmatmul.mubr.bf16.gmra.mrb[244].mxu1 %v7458_v13  ;;  %8852 = vmatpush1.bf16.msra.mxu0 %v7913_v6 }
 0xd30   : > { %v14145_v43 = vpop.eup %14144  ;;  %14150 = vrsqrt.f32 %v7298_v20  ;;  %v8010_v40 = vmax.f32 %v7946_v27, 0.0  ;;  %7872 = vmatprep.mubr.bf16.mxu1 %v18467_v54  ;;  %8853 = vmatprep.subr.bf16.mxu0 %v18467_v54 }
 0xd31   : > { %v7423_v49 = vmul.f32 %v14145_v43, %v17503_v10 }
 0xd32   : > { %v14147_v21 = vpop.eup %14146  ;;  %v7604_v44 = vpop.f32.mrb[76].mxu1  ;;  %v17610_v55 = vpack.c.bf16 %v8010_v40, %v8009_v15 }
 0xd33   : > { %v7424_v35 = vmul.f32 %v14147_v21, %v17510_v28  ;;  %v7232_v19 = vpop.xlane.xlu0 %7231  ;;  %v7606_v53 = vpop.f32.mrb[77].mxu1 }
 0xd34   : > { %v7299_v9 = vmax.f32 %v7232_v19, 1e-24  ;;  %v7947_v17 = vadd.f32 %v17604_v31, %v7606_v53  ;;  %v7608_v42 = vpop.f32.mrb[78].mxu1 }
 0xd35   : > { %v7459_v8 = vpack.c.bf16 %v7424_v35, %v7423_v49  ;;  %v7914_v23 = vpack.c.bf16 %v7608_v42, %v7604_v44  ;;  %v7234_v18 = vpop.xlane.xlu1 %7233  ;;  %v7610_v2 = vpop.f32.mrb[79].mxu1 }
 0xd36   : > { %14152 = vrsqrt.f32 %v7299_v9  ;;  %v7300_v7 = vmax.f32 %v7234_v18, 1e-24  ;;  %v7948_v59 = vadd.f32 %v17604_v31, %v7610_v2  ;;  %v8011_v10 = vmax.f32 %v7947_v17, 0.0 }
 0xd37   : > { %7873 = vmatmul.mubr.bf16.gmra.mrb[248].mxu1 %v7459_v8  ;;  %8854 = vmatpush1.bf16.msra.mxu0 %v7914_v23 }
 0xd38   : > { %v14149_v50 = vpop.eup %14148  ;;  %14154 = vrsqrt.f32 %v7300_v7  ;;  %v8012_v28 = vmax.f32 %v7948_v59, 0.0  ;;  %7882 = vmatprep.mubr.bf16.mxu1 %v18467_v54  ;;  %8855 = vmatprep.subr.bf16.mxu0 %v18467_v54 }
 0xd39   : > { %v7425_v61 = vmul.f32 %v14149_v50, %v17516_v29 }
 0xd3a   : > { %v14151_v57 = vpop.eup %14150  ;;  %v17618_v11 = vpack.c.bf16 %v8012_v28, %v8011_v10  ;;  %v7614_v37 = vpop.f32.mrb[80].mxu1  ;;  %v14447_v28 = vld [vmem:[%s18432_s7 + $0x8] sm:$0xff]  }
 0xd3b   : > { %v7426_v41 = vmul.f32 %v14151_v57, %v17523_v4  ;;  %v7236_v26 = vpop.xlane.xlu0 %7235  ;;  %v7616_v63 = vpop.f32.mrb[81].mxu1 }
 0xd3c   : > { %v7301_v12 = vmax.f32 %v7236_v26, 1e-24  ;;  %v7949_v60 = vadd.f32 %v17604_v31, %v7616_v63  ;;  %v7618_v46 = vpop.f32.mrb[82].mxu1 }
 0xd3d   : > { %v7460_v34 = vpack.c.bf16 %v7426_v41, %v7425_v61  ;;  %v7915_v51 = vpack.c.bf16 %v7618_v46, %v7614_v37  ;;  %v7238_v45 = vpop.xlane.xlu1 %7237  ;;  %v7620_v38 = vpop.f32.mrb[83].mxu1 }
 0xd3e   : > { %14156 = vrsqrt.f32 %v7301_v12  ;;  %v7302_v58 = vmax.f32 %v7238_v45, 1e-24  ;;  %v7950_v5 = vadd.f32 %v17604_v31, %v7620_v38  ;;  %v8013_v29 = vmax.f32 %v7949_v60, 0.0 }
 0xd3f   : > { %7883 = vmatmul.mubr.bf16.gmra.mrb[252].mxu1 %v7460_v34  ;;  %8856 = vmatpush1.bf16.msra.mxu0 %v7915_v51  ;;  %v14449_v34 = vld [vmem:[%s18432_s7 + $0x18] sm:$0xff]  }
 0xd40   : > { %v14153_v32 = vpop.eup %14152  ;;  %14158 = vrsqrt.f32 %v7302_v58  ;;  %v8014_v4 = vmax.f32 %v7950_v5, 0.0  ;;  %7892 = vmatprep.mubr.bf16.mxu1 %v18467_v54  ;;  %8857 = vmatprep.subr.bf16.mxu0 %v18467_v54 }
 0xd41   : > { %v7427_v0 = vmul.f32 %v14153_v32, %v17529_v14 }
 0xd42   : > { %v14155_v22 = vpop.eup %14154  ;;  %v7624_v48 = vpop.f32.mrb[84].mxu1  ;;  %v8075_v39 = vpack.c.bf16 %v8014_v4, %v8013_v29  ;;  %v14450_v29 = vld [vmem:[%s18432_s7 + $0x20] sm:$0xff]  }
 0xd43   : > { %v7428_v62 = vmul.f32 %v14155_v22, %v17536_v36  ;;  %v7626_v52 = vpop.f32.mrb[85].mxu1 }
 0xd44   : > { %v7951_v16 = vadd.f32 %v17604_v31, %v7626_v52  ;;  %v7628_v30 = vpop.f32.mrb[86].mxu1 }
 0xd45   : > { %v7461_v3 = vpack.c.bf16 %v7428_v62, %v7427_v0  ;;  %v7916_v25 = vpack.c.bf16 %v7628_v30, %v7624_v48  ;;  %v7630_v13 = vpop.f32.mrb[87].mxu1  ;;  %v14451_v0 = vld [vmem:[%s18432_s7 + $0x28] sm:$0xff]  }
 0xd46   : > { %v7952_v6 = vadd.f32 %v17604_v31, %v7630_v13  ;;  %v8015_v24 = vmax.f32 %v7951_v16, 0.0  ;;  %v14452_v13 = vld [vmem:[%s18432_s7 + $0x30] sm:$0xff]  }
 0xd47   : > { %7893 = vmatmul.mubr.bf16.gmra.mrb[0].mxu1 %v7461_v3  ;;  %8858 = vmatpush1.bf16.msra.mxu0 %v7916_v25 }
 0xd48   : > { %v14157_v56 = vpop.eup %14156  ;;  %v8016_v20 = vmax.f32 %v7952_v6, 0.0  ;;  %7902 = vmatprep.mubr.bf16.mxu1 %v18467_v54  ;;  %8859 = vmatprep.subr.bf16.mxu0 %v18467_v54 }
 0xd49   : > { %v7429_v43 = vmul.f32 %v14157_v56, %v17542_v47 }
 0xd4a   : > { %v14159_v14 = vpop.eup %14158  ;;  %v8076_v36 = vpack.c.bf16 %v8016_v20, %v8015_v24  ;;  %v7634_v27 = vpop.f32.mrb[88].mxu1 }
 0xd4b   : > { %v7430_v15 = vmul.f32 %v14159_v14, %v17549_v1  ;;  %v7636_v40 = vpop.f32.mrb[89].mxu1  ;;  %v14453_v14 = vld [vmem:[%s18432_s7 + $0x38] sm:$0xff]  }
 0xd4c   : > { %v7953_v21 = vadd.f32 %v17604_v31, %v7636_v40  ;;  %v7638_v44 = vpop.f32.mrb[90].mxu1 }
 0xd4d   : > { %v7462_v49 = vpack.c.bf16 %v7430_v15, %v7429_v43  ;;  %v7917_v35 = vpack.c.bf16 %v7638_v44, %v7634_v27  ;;  %v7640_v19 = vpop.f32.mrb[91].mxu1 }
 0xd4e   : > { %v7954_v53 = vadd.f32 %v17604_v31, %v7640_v19  ;;  %v8017_v9 = vmax.f32 %v7953_v21, 0.0 }
 0xd4f   : > { %7903 = vmatmul.mubr.bf16.gmra.mrb[4].mxu1 %v7462_v49  ;;  %8860 = vmatpush1.bf16.msra.mxu0 %v7917_v35 }
 0xd50   : > { %v8018_v17 = vmax.f32 %v7954_v53, 0.0  ;;  %11895 = vmatprep.mubr.bf16.mxu1 %v17610_v55  ;;  %8861 = vmatprep.subr.bf16.mxu0 %v18467_v54 }
 0xd52   : > { %v7644_v47 = vpop.f32.mrb[92].mxu1  ;;  %v8077_v42 = vpack.c.bf16 %v8018_v17, %v8017_v9 }
 0xd53   : > { %v7646_v1 = vpop.f32.mrb[93].mxu1 }
 0xd54   : > { %v7955_v8 = vadd.f32 %v17604_v31, %v7646_v1  ;;  %v7648_v23 = vpop.f32.mrb[94].mxu1 }
 0xd55   : > { %v7918_v18 = vpack.c.bf16 %v7648_v23, %v7644_v47  ;;  %v7650_v2 = vpop.f32.mrb[95].mxu1 }
 0xd56   : > { %v7956_v7 = vadd.f32 %v17604_v31, %v7650_v2  ;;  %v8019_v59 = vmax.f32 %v7955_v8, 0.0 }
 0xd57   : > { %11896 = vmatmul.mubr.bf16.vlgmr.msra.gmra.mrb[8].mxu1 %v17618_v11  ;;  %8862 = vmatpush1.bf16.msra.mxu0 %v7918_v18 }
 0xd58   : > { %v8020_v50 = vmax.f32 %v7956_v7, 0.0  ;;  %11899 = vmatprep.mubr.bf16.mxu1 %v8075_v39  ;;  %8863 = vmatprep.subr.bf16.mxu0 %v18467_v54 }
 0xd59   : > { %11960 = vmatpush3.bf16.msra.mxu1 %v17454_v33  ;;  %v14448_v33 = vld [vmem:[%s18432_s7 + $0x10] sm:$0xff]  }
 0xd5a   : > { %v8078_v55 = vpack.c.bf16 %v8020_v50, %v8019_v59  ;;  %v7654_v10 = vpop.f32.mrb[96].mxu1  ;;  %11961 = vmatprep.subr.bf16.mxu1 %v14447_v28 }
 0xd5b   : > { %v7656_v57 = vpop.f32.mrb[97].mxu1 }
 0xd5c   : > { %v7957_v37 = vadd.f32 %v17604_v31, %v7656_v57  ;;  %v7658_v61 = vpop.f32.mrb[98].mxu1 }
 0xd5d   : > { %v7919_v11 = vpack.c.bf16 %v7658_v61, %v7654_v10  ;;  %v7660_v41 = vpop.f32.mrb[99].mxu1  ;;  %11962 = vmatpush3.bf16.msra.mxu1 %v14447_v28 }
 0xd5e   : > { %v7958_v26 = vadd.f32 %v17604_v31, %v7660_v41  ;;  %11963 = vmatprep.subr.bf16.mxu1 %v14448_v33  ;;  %v8021_v63 = vmax.f32 %v7957_v37, 0.0 }
 0xd5f   : > { %11900 = vmatmul.mubr.bf16.gmra.mrb[12].mxu1 %v8076_v36  ;;  %8864 = vmatpush1.bf16.msra.mxu0 %v7919_v11 }
 0xd60   : > { %v8022_v12 = vmax.f32 %v7958_v26, 0.0  ;;  %11903 = vmatprep.mubr.bf16.mxu1 %v8077_v42  ;;  %8865 = vmatprep.subr.bf16.mxu0 %v18467_v54 }
 0xd61   : > { %11964 = vmatpush3.bf16.msra.mxu1 %v14448_v33 }
 0xd62   : > { %v7664_v60 = vpop.f32.mrb[100].mxu1  ;;  %v8079_v46 = vpack.c.bf16 %v8022_v12, %v8021_v63  ;;  %11965 = vmatprep.subr.bf16.mxu1 %v14449_v34 }
 0xd63   : > { %v7666_v51 = vpop.f32.mrb[101].mxu1 }
 0xd64   : > { %v7959_v45 = vadd.f32 %v17604_v31, %v7666_v51  ;;  %v7668_v38 = vpop.f32.mrb[102].mxu1 }
 0xd65   : > { %v7920_v58 = vpack.c.bf16 %v7668_v38, %v7664_v60  ;;  %v7670_v5 = vpop.f32.mrb[103].mxu1  ;;  %11966 = vmatpush3.bf16.msra.mxu1 %v14449_v34 }
 0xd66   : > { %v7960_v32 = vadd.f32 %v17604_v31, %v7670_v5  ;;  %11967 = vmatprep.subr.bf16.mxu1 %v14450_v29  ;;  %v8023_v4 = vmax.f32 %v7959_v45, 0.0 }
 0xd67   : > { %11904 = vmatmul.mubr.bf16.gmra.mrb[16].mxu1 %v8078_v55  ;;  %8866 = vmatpush1.bf16.msra.mxu0 %v7920_v58 }
 0xd68   : > { %v8024_v22 = vmax.f32 %v7960_v32, 0.0  ;;  %11907 = vmatprep.mubr.bf16.mxu1 %v8079_v46  ;;  %8867 = vmatprep.subr.bf16.mxu0 %v18467_v54 }
 0xd69   : > { %11968 = vmatpush3.bf16.msra.mxu1 %v14450_v29 }
 0xd6a   : > { %v8080_v48 = vpack.c.bf16 %v8024_v22, %v8023_v4  ;;  %v7674_v39 = vpop.f32.mrb[104].mxu1  ;;  %11969 = vmatprep.subr.bf16.mxu1 %v14451_v0 }
 0xd6b   : > { %v7676_v62 = vpop.f32.mrb[105].mxu1 }
 0xd6c   : > { %v7961_v52 = vadd.f32 %v17604_v31, %v7676_v62  ;;  %v7678_v16 = vpop.f32.mrb[106].mxu1 }
 0xd6d   : > { %v7921_v30 = vpack.c.bf16 %v7678_v16, %v7674_v39  ;;  %v7680_v3 = vpop.f32.mrb[107].mxu1  ;;  %11970 = vmatpush3.bf16.msra.mxu1 %v14451_v0 }
 0xd6e   : > { %v7962_v25 = vadd.f32 %v17604_v31, %v7680_v3  ;;  %11971 = vmatprep.subr.bf16.mxu1 %v14452_v13  ;;  %v8025_v6 = vmax.f32 %v7961_v52, 0.0 }
 0xd6f   : > { %11908 = vmatmul.mubr.bf16.gmra.mrb[20].mxu1 %v8080_v48  ;;  %8868 = vmatpush1.bf16.msra.mxu0 %v7921_v30 }
 0xd70   : > { %v8026_v56 = vmax.f32 %v7962_v25, 0.0  ;;  %8869 = vmatprep.subr.bf16.mxu0 %v18467_v54 }
 0xd71   : > { %11972 = vmatpush3.bf16.msra.mxu1 %v14452_v13 }
 0xd72   : > { %v7684_v24 = vpop.f32.mrb[108].mxu1  ;;  %v8081_v20 = vpack.c.bf16 %v8026_v56, %v8025_v6  ;;  %11973 = vmatprep.subr.bf16.mxu1 %v14453_v14 }
 0xd73   : > { %v7686_v36 = vpop.f32.mrb[109].mxu1 }
 0xd74   : > { %v7963_v27 = vadd.f32 %v17604_v31, %v7686_v36  ;;  %v7688_v43 = vpop.f32.mrb[110].mxu1  ;;  %11911 = vmatprep.mubr.bf16.mxu1 %v8081_v20 }
 0xd75   : > { %v7922_v15 = vpack.c.bf16 %v7688_v43, %v7684_v24  ;;  %v7690_v40 = vpop.f32.mrb[111].mxu1  ;;  %11974 = vmatpush3.bf16.msra.mxu1 %v14453_v14 }
 0xd76   : > { %v7964_v21 = vadd.f32 %v17604_v31, %v7690_v40  ;;  %v8027_v44 = vmax.f32 %v7963_v27, 0.0 }
 0xd77   : > { %8870 = vmatpush1.bf16.msra.mxu0 %v7922_v15 }
 0xd78   : > { %v8028_v49 = vmax.f32 %v7964_v21, 0.0  ;;  %8871 = vmatprep.subr.bf16.mxu0 %v18467_v54 }
 0xd7a   : > { %v8082_v35 = vpack.c.bf16 %v8028_v49, %v8027_v44  ;;  %v7694_v19 = vpop.f32.mrb[112].mxu1 }
 0xd7b   : > { %v7696_v53 = vpop.f32.mrb[113].mxu1 }
 0xd7c   : > { %v7965_v9 = vadd.f32 %v17604_v31, %v7696_v53  ;;  %v7698_v17 = vpop.f32.mrb[114].mxu1  ;;  %11912 = vmatmul.mubr.bf16.gmra.mrb[24].mxu1 %v8082_v35  ;;  %v14454_v35 = vld [vmem:[%s14690_s22] ss:$16 sps:$4 sm:$0xff]   ;;  %v14455_v53 = vld [vmem:[%s14690_s22 + $0x24] ss:$16 sps:$4 sm:$0xff]  }
 0xd7d   : > { %v7923_v47 = vpack.c.bf16 %v7698_v17, %v7694_v19  ;;  %v7700_v42 = vpop.f32.mrb[115].mxu1 }
 0xd7e   : > { %v7966_v1 = vadd.f32 %v17604_v31, %v7700_v42  ;;  %v8029_v8 = vmax.f32 %v7965_v9, 0.0 }
 0xd7f   : > { %8872 = vmatpush1.bf16.msra.mxu0 %v7923_v47 }
 0xd80   : > { %v8030_v23 = vmax.f32 %v7966_v1, 0.0  ;;  %8873 = vmatprep.subr.bf16.mxu0 %v18467_v54 }
 0xd82   : > { %v7704_v18 = vpop.f32.mrb[116].mxu1  ;;  %v8083_v2 = vpack.c.bf16 %v8030_v23, %v8029_v8 }
 0xd83   : > { %v7706_v7 = vpop.f32.mrb[117].mxu1 }
 0xd84   : > { %v7967_v59 = vadd.f32 %v17604_v31, %v7706_v7  ;;  %v7708_v50 = vpop.f32.mrb[118].mxu1  ;;  %11915 = vmatprep.mubr.bf16.mxu1 %v8083_v2  ;;  %v14456_v2 = vld [vmem:[%s14690_s22 + $0x20] ss:$16 sps:$4 sm:$0xff]  }
 0xd85   : > { %v7924_v55 = vpack.c.bf16 %v7708_v50, %v7704_v18  ;;  %v7710_v10 = vpop.f32.mrb[119].mxu1  ;;  %v14457_v50 = vld [vmem:[%s14690_s22 + $0x44] ss:$16 sps:$4 sm:$0xff]  }
 0xd86   : > { %v7968_v28 = vadd.f32 %v17604_v31, %v7710_v10  ;;  %v8031_v57 = vmax.f32 %v7967_v59, 0.0 }
 0xd87   : > { %8874 = vmatpush1.bf16.msra.mxu0 %v7924_v55 }
 0xd88   : > { %v8032_v37 = vmax.f32 %v7968_v28, 0.0  ;;  %8875 = vmatprep.subr.bf16.mxu0 %v18467_v54 }
 0xd8a   : > { %v8084_v61 = vpack.c.bf16 %v8032_v37, %v8031_v57  ;;  %v7714_v11 = vpop.f32.mrb[120].mxu1 }
 0xd8b   : > { %v7716_v41 = vpop.f32.mrb[121].mxu1 }
 0xd8c   : > { %v7969_v26 = vadd.f32 %v17604_v31, %v7716_v41  ;;  %v7718_v33 = vpop.f32.mrb[122].mxu1  ;;  %11916 = vmatmul.mubr.bf16.gmra.mrb[28].mxu1 %v8084_v61 }
 0xd8d   : > { %v7925_v63 = vpack.c.bf16 %v7718_v33, %v7714_v11  ;;  %v7720_v12 = vpop.f32.mrb[123].mxu1  ;;  %v14458_v33 = vld [vmem:[%s14690_s22 + $0x40] ss:$16 sps:$4 sm:$0xff]  }
 0xd8e   : > { %v7970_v60 = vadd.f32 %v17604_v31, %v7720_v12  ;;  %v8033_v46 = vmax.f32 %v7969_v26, 0.0  ;;  %v14459_v12 = vld [vmem:[%s14690_s22 + $0x64] ss:$16 sps:$4 sm:$0xff]  }
 0xd8f   : > { %8876 = vmatpush1.bf16.msra.mxu0 %v7925_v63 }
 0xd90   : > { %v8034_v34 = vmax.f32 %v7970_v60, 0.0  ;;  %8877 = vmatprep.subr.bf16.mxu0 %v18467_v54 }
 0xd92   : > { %v7724_v51 = vpop.f32.mrb[124].mxu1  ;;  %v8085_v45 = vpack.c.bf16 %v8034_v34, %v8033_v46 }
 0xd93   : > { %v7726_v38 = vpop.f32.mrb[125].mxu1 }
 0xd94   : > { %v7971_v58 = vadd.f32 %v17604_v31, %v7726_v38  ;;  %v7728_v5 = vpop.f32.mrb[126].mxu1  ;;  %11919 = vmatprep.mubr.bf16.mxu1 %v8085_v45 }
 0xd95   : > { %v7926_v32 = vpack.c.bf16 %v7728_v5, %v7724_v51  ;;  %v7730_v29 = vpop.f32.mrb[127].mxu1 }
 0xd96   : > { %v7972_v4 = vadd.f32 %v17604_v31, %v7730_v29  ;;  %v8035_v22 = vmax.f32 %v7971_v58, 0.0 }
 0xd97   : > { %8878 = vmatpush1.bf16.msra.mxu0 %v7926_v32  ;;  %v14460_v32 = vld [vmem:[%s14690_s22 + $0x60] ss:$16 sps:$4 sm:$0xff]  }
 0xd98   : > { %v8036_v48 = vmax.f32 %v7972_v4, 0.0  ;;  %8879 = vmatprep.subr.bf16.mxu0 %v18467_v54 }
 0xd9a   : > { %v8086_v39 = vpack.c.bf16 %v8036_v48, %v8035_v22  ;;  %v7734_v0 = vpop.f32.mrb[128].mxu1  ;;  %v14461_v22 = vld [vmem:[%s14690_s22 + $0x84] ss:$16 sps:$4 sm:$0xff]  }
 0xd9b   : > { %v7736_v62 = vpop.f32.mrb[129].mxu1 }
 0xd9c   : > { %v7973_v52 = vadd.f32 %v17604_v31, %v7736_v62  ;;  %v7738_v16 = vpop.f32.mrb[130].mxu1  ;;  %11920 = vmatmul.mubr.bf16.gmra.mrb[32].mxu1 %v8086_v39 }
 0xd9d   : > { %v7927_v30 = vpack.c.bf16 %v7738_v16, %v7734_v0  ;;  %v7740_v3 = vpop.f32.mrb[131].mxu1 }
 0xd9e   : > { %v7974_v25 = vadd.f32 %v17604_v31, %v7740_v3  ;;  %v8037_v13 = vmax.f32 %v7973_v52, 0.0 }
 0xd9f   : > { %8880 = vmatpush1.bf16.msra.mxu0 %v7927_v30 }
 0xda0   : > { %v8038_v6 = vmax.f32 %v7974_v25, 0.0  ;;  %8881 = vmatprep.subr.bf16.mxu0 %v18467_v54 }
 0xda2   : > { %v7744_v56 = vpop.f32.mrb[132].mxu1  ;;  %v8087_v24 = vpack.c.bf16 %v8038_v6, %v8037_v13  ;;  %v14462_v13 = vld [vmem:[%s14690_s22 + $0x80] ss:$16 sps:$4 sm:$0xff]  }
 0xda3   : > { %v7746_v20 = vpop.f32.mrb[133].mxu1 }
 0xda4   : > { %v7975_v14 = vadd.f32 %v17604_v31, %v7746_v20  ;;  %v7748_v36 = vpop.f32.mrb[134].mxu1  ;;  %11923 = vmatprep.mubr.bf16.mxu1 %v8087_v24 }
 0xda5   : > { %v7928_v27 = vpack.c.bf16 %v7748_v36, %v7744_v56  ;;  %v7750_v43 = vpop.f32.mrb[135].mxu1  ;;  %v14463_v56 = vld [vmem:[%s14690_s22 + $0xa4] ss:$16 sps:$4 sm:$0xff]  }
 0xda6   : > { %v7976_v15 = vadd.f32 %v17604_v31, %v7750_v43  ;;  %v8039_v40 = vmax.f32 %v7975_v14, 0.0 }
 0xda7   : > { %8882 = vmatpush1.bf16.msra.mxu0 %v7928_v27 }
 0xda8   : > { %v8040_v21 = vmax.f32 %v7976_v15, 0.0  ;;  %9140 = vmatprep.subr.bf16.mxu0 %v18467_v54 }
 0xdaa   : > { %v8088_v44 = vpack.c.bf16 %v8040_v21, %v8039_v40  ;;  %v7754_v49 = vpop.f32.mrb[200].mxu1  ;;  %8884 = vmatmul.mubr.bf16.vlgmr.msra.gmra.mrb[248].mxu0 %v14454_v35  ;;  %v14464_v21 = vld [vmem:[%s14690_s22 + $0xa0] ss:$16 sps:$4 sm:$0xff]   ;;  %v14465_v35 = vld [vmem:[%s14690_s22 + $0xc4] ss:$16 sps:$4 sm:$0xff]  }
 0xdab   : > { %v7756_v19 = vpop.f32.mrb[201].mxu1  ;;  %8891 = vmatprep.mubr.bf16.mxu0 %v14455_v53 }
 0xdac   : > { %v7977_v9 = vadd.f32 %v17604_v31, %v7756_v19  ;;  %v7758_v17 = vpop.f32.mrb[202].mxu1  ;;  %11924 = vmatmul.mubr.bf16.gmra.mrb[36].mxu1 %v8088_v44 }
 0xdad   : > { %v7929_v47 = vpack.c.bf16 %v7758_v17, %v7754_v49  ;;  %v7760_v42 = vpop.f32.mrb[203].mxu1 }
 0xdae   : > { %v7978_v1 = vadd.f32 %v17604_v31, %v7760_v42  ;;  %v8041_v8 = vmax.f32 %v7977_v9, 0.0 }
 0xdaf   : > { %9141 = vmatpush1.bf16.msra.mxu0 %v7929_v47 }
 0xdb0   : > { %v8042_v23 = vmax.f32 %v7978_v1, 0.0  ;;  %9142 = vmatprep.subr.bf16.mxu0 %v18467_v54 }
 0xdb2   : > { %v7764_v18 = vpop.f32.mrb[204].mxu1  ;;  %8892 = vmatmul.mubr.bf16.gmra.mrb[252].mxu0 %v14456_v2  ;;  %v8089_v7 = vpack.c.bf16 %v8042_v23, %v8041_v8 }
 0xdb3   : > { %v7766_v59 = vpop.f32.mrb[205].mxu1  ;;  %8899 = vmatprep.mubr.bf16.mxu0 %v14457_v50 }
 0xdb4   : > { %v7979_v55 = vadd.f32 %v17604_v31, %v7766_v59  ;;  %v7768_v10 = vpop.f32.mrb[206].mxu1  ;;  %11927 = vmatprep.mubr.bf16.mxu1 %v8089_v7  ;;  %v14467_v7 = vld [vmem:[%s14690_s22 + $0xe4] ss:$16 sps:$4 sm:$0xff]  }
 0xdb5   : > { %v7930_v28 = vpack.c.bf16 %v7768_v10, %v7764_v18  ;;  %v7770_v57 = vpop.f32.mrb[207].mxu1  ;;  %v14466_v18 = vld [vmem:[%s14690_s22 + $0xc0] ss:$16 sps:$4 sm:$0xff]  }
 0xdb6   : > { %v7980_v37 = vadd.f32 %v17604_v31, %v7770_v57  ;;  %v8043_v61 = vmax.f32 %v7979_v55, 0.0 }
 0xdb7   : > { %9143 = vmatpush1.bf16.msra.mxu0 %v7930_v28 }
 0xdb8   : > { %v8044_v11 = vmax.f32 %v7980_v37, 0.0  ;;  %9144 = vmatprep.subr.bf16.mxu0 %v18467_v54 }
 0xdba   : > { %v8090_v41 = vpack.c.bf16 %v8044_v11, %v8043_v61  ;;  %v7774_v26 = vpop.f32.mrb[208].mxu1  ;;  %8900 = vmatmul.mubr.bf16.gmra.mrb[0].mxu0 %v14458_v33  ;;  %v14468_v11 = vld [vmem:[%s14690_s22 + $0xe0] ss:$16 sps:$4 sm:$0xff]   ;;  %v14469_v33 = vld [vmem:[%s14690_s22 + $0x104] ss:$16 sps:$4 sm:$0xff]  }
 0xdbb   : > { %v7776_v63 = vpop.f32.mrb[209].mxu1  ;;  %8907 = vmatprep.mubr.bf16.mxu0 %v14459_v12 }
 0xdbc   : > { %v7981_v60 = vadd.f32 %v17604_v31, %v7776_v63  ;;  %v7778_v46 = vpop.f32.mrb[210].mxu1  ;;  %11928 = vmatmul.mubr.bf16.gmra.mrb[40].mxu1 %v8090_v41 }
 0xdbd   : > { %v7931_v34 = vpack.c.bf16 %v7778_v46, %v7774_v26  ;;  %v7780_v51 = vpop.f32.mrb[211].mxu1 }
 0xdbe   : > { %v7982_v45 = vadd.f32 %v17604_v31, %v7780_v51  ;;  %v8045_v38 = vmax.f32 %v7981_v60, 0.0 }
 0xdbf   : > { %9145 = vmatpush1.bf16.msra.mxu0 %v7931_v34 }
 0xdc0   : > { %v8046_v58 = vmax.f32 %v7982_v45, 0.0  ;;  %9146 = vmatprep.subr.bf16.mxu0 %v18467_v54 }
 0xdc2   : > { %v7784_v5 = vpop.f32.mrb[212].mxu1  ;;  %8908 = vmatmul.mubr.bf16.gmra.mrb[4].mxu0 %v14460_v32  ;;  %v8091_v29 = vpack.c.bf16 %v8046_v58, %v8045_v38 }
 0xdc3   : > { %v7786_v4 = vpop.f32.mrb[213].mxu1  ;;  %8915 = vmatprep.mubr.bf16.mxu0 %v14461_v22 }
 0xdc4   : > { %v7983_v48 = vadd.f32 %v17604_v31, %v7786_v4  ;;  %v7788_v39 = vpop.f32.mrb[214].mxu1  ;;  %11931 = vmatprep.mubr.bf16.mxu1 %v8091_v29  ;;  %v14471_v29 = vld [vmem:[%s14690_s22 + $0x124] ss:$16 sps:$4 sm:$0xff]  }
 0xdc5   : > { %v7932_v0 = vpack.c.bf16 %v7788_v39, %v7784_v5  ;;  %v7790_v62 = vpop.f32.mrb[215].mxu1  ;;  %v14470_v5 = vld [vmem:[%s14690_s22 + $0x100] ss:$16 sps:$4 sm:$0xff]  }
 0xdc6   : > { %v7984_v52 = vadd.f32 %v17604_v31, %v7790_v62  ;;  %v8047_v16 = vmax.f32 %v7983_v48, 0.0 }
 0xdc7   : > { %9147 = vmatpush1.bf16.msra.mxu0 %v7932_v0 }
 0xdc8   : > { %v8048_v30 = vmax.f32 %v7984_v52, 0.0  ;;  %9148 = vmatprep.subr.bf16.mxu0 %v18467_v54 }
 0xdca   : > { %v8092_v3 = vpack.c.bf16 %v8048_v30, %v8047_v16  ;;  %v7794_v25 = vpop.f32.mrb[216].mxu1  ;;  %8916 = vmatmul.mubr.bf16.gmra.mrb[8].mxu0 %v14462_v13  ;;  %v14472_v30 = vld [vmem:[%s14690_s22 + $0x120] ss:$16 sps:$4 sm:$0xff]   ;;  %v14473_v13 = vld [vmem:[%s14690_s22 + $0x144] ss:$16 sps:$4 sm:$0xff]  }
 0xdcb   : > { %v7796_v6 = vpop.f32.mrb[217].mxu1  ;;  %8923 = vmatprep.mubr.bf16.mxu0 %v14463_v56 }
 0xdcc   : > { %v7985_v24 = vadd.f32 %v17604_v31, %v7796_v6  ;;  %v7798_v20 = vpop.f32.mrb[218].mxu1  ;;  %11932 = vmatmul.mubr.bf16.gmra.mrb[44].mxu1 %v8092_v3 }
 0xdcd   : > { %v7933_v14 = vpack.c.bf16 %v7798_v20, %v7794_v25  ;;  %v7800_v36 = vpop.f32.mrb[219].mxu1 }
 0xdce   : > { %v7986_v27 = vadd.f32 %v17604_v31, %v7800_v36  ;;  %v8049_v43 = vmax.f32 %v7985_v24, 0.0 }
 0xdcf   : > { %9149 = vmatpush1.bf16.msra.mxu0 %v7933_v14 }
 0xdd0   : > { %v8050_v15 = vmax.f32 %v7986_v27, 0.0  ;;  %9150 = vmatprep.subr.bf16.mxu0 %v18467_v54 }
 0xdd2   : > { %v7804_v40 = vpop.f32.mrb[220].mxu1  ;;  %8924 = vmatmul.mubr.bf16.gmra.mrb[12].mxu0 %v14464_v21  ;;  %v8093_v44 = vpack.c.bf16 %v8050_v15, %v8049_v43 }
 0xdd3   : > { %v7806_v49 = vpop.f32.mrb[221].mxu1  ;;  %8931 = vmatprep.mubr.bf16.mxu0 %v14465_v35 }
 0xdd4   : > { %v7987_v19 = vadd.f32 %v17604_v31, %v7806_v49  ;;  %v7808_v53 = vpop.f32.mrb[222].mxu1  ;;  %11935 = vmatprep.mubr.bf16.mxu1 %v8093_v44  ;;  %v14475_v44 = vld [vmem:[%s14690_s22 + $0x164] ss:$16 sps:$4 sm:$0xff]  }
 0xdd5   : > { %v7934_v9 = vpack.c.bf16 %v7808_v53, %v7804_v40  ;;  %v7810_v17 = vpop.f32.mrb[223].mxu1  ;;  %v14474_v40 = vld [vmem:[%s14690_s22 + $0x140] ss:$16 sps:$4 sm:$0xff]  }
 0xdd6   : > { %v7988_v47 = vadd.f32 %v17604_v31, %v7810_v17  ;;  %v8051_v42 = vmax.f32 %v7987_v19, 0.0 }
 0xdd7   : > { %9151 = vmatpush1.bf16.msra.mxu0 %v7934_v9 }
 0xdd8   : > { %v8052_v1 = vmax.f32 %v7988_v47, 0.0  ;;  %9152 = vmatprep.subr.bf16.mxu0 %v18467_v54 }
 0xdda   : > { %v8094_v8 = vpack.c.bf16 %v8052_v1, %v8051_v42  ;;  %v7814_v23 = vpop.f32.mrb[224].mxu1  ;;  %8932 = vmatmul.mubr.bf16.gmra.mrb[16].mxu0 %v14466_v18  ;;  %v14476_v1 = vld [vmem:[%s14690_s22 + $0x160] ss:$16 sps:$4 sm:$0xff]   ;;  %v14477_v18 = vld [vmem:[%s14690_s22 + $0x184] ss:$16 sps:$4 sm:$0xff]  }
 0xddb   : > { %v7816_v2 = vpop.f32.mrb[225].mxu1  ;;  %8939 = vmatprep.mubr.bf16.mxu0 %v14467_v7 }
 0xddc   : > { %v7989_v59 = vadd.f32 %v17604_v31, %v7816_v2  ;;  %v7818_v50 = vpop.f32.mrb[226].mxu1  ;;  %11936 = vmatmul.mubr.bf16.gmra.mrb[48].mxu1 %v8094_v8 }
 0xddd   : > { %v7935_v55 = vpack.c.bf16 %v7818_v50, %v7814_v23  ;;  %v7820_v10 = vpop.f32.mrb[227].mxu1 }
 0xdde   : > { %v7990_v28 = vadd.f32 %v17604_v31, %v7820_v10  ;;  %v8053_v57 = vmax.f32 %v7989_v59, 0.0 }
 0xddf   : > { %9153 = vmatpush1.bf16.msra.mxu0 %v7935_v55 }
 0xde0   : > { %v8054_v37 = vmax.f32 %v7990_v28, 0.0  ;;  %9154 = vmatprep.subr.bf16.mxu0 %v18467_v54 }
 0xde2   : > { %v7824_v61 = vpop.f32.mrb[228].mxu1  ;;  %8940 = vmatmul.mubr.bf16.gmra.mrb[20].mxu0 %v14468_v11  ;;  %v8095_v41 = vpack.c.bf16 %v8054_v37, %v8053_v57 }
 0xde3   : > { %v7826_v26 = vpop.f32.mrb[229].mxu1  ;;  %8947 = vmatprep.mubr.bf16.mxu0 %v14469_v33 }
 0xde4   : > { %v7991_v63 = vadd.f32 %v17604_v31, %v7826_v26  ;;  %v7828_v12 = vpop.f32.mrb[230].mxu1  ;;  %11939 = vmatprep.mubr.bf16.mxu1 %v8095_v41  ;;  %v14479_v41 = vld [vmem:[%s14690_s22 + $0x1a4] ss:$16 sps:$4 sm:$0xff]  }
 0xde5   : > { %v7936_v60 = vpack.c.bf16 %v7828_v12, %v7824_v61  ;;  %v7830_v46 = vpop.f32.mrb[231].mxu1  ;;  %v14478_v61 = vld [vmem:[%s14690_s22 + $0x180] ss:$16 sps:$4 sm:$0xff]  }
 0xde6   : > { %v7992_v34 = vadd.f32 %v17604_v31, %v7830_v46  ;;  %v8055_v51 = vmax.f32 %v7991_v63, 0.0 }
 0xde7   : > { %9155 = vmatpush1.bf16.msra.mxu0 %v7936_v60 }
 0xde8   : > { %v8056_v45 = vmax.f32 %v7992_v34, 0.0  ;;  %9156 = vmatprep.subr.bf16.mxu0 %v18467_v54 }
 0xdea   : > { %v8096_v38 = vpack.c.bf16 %v8056_v45, %v8055_v51  ;;  %v7834_v58 = vpop.f32.mrb[232].mxu1  ;;  %8948 = vmatmul.mubr.bf16.gmra.mrb[24].mxu0 %v14470_v5  ;;  %v14480_v45 = vld [vmem:[%s14690_s22 + $0x1a0] ss:$16 sps:$4 sm:$0xff]   ;;  %v14481_v5 = vld [vmem:[%s14690_s22 + $0x1c4] ss:$16 sps:$4 sm:$0xff]  }
 0xdeb   : > { %v7836_v32 = vpop.f32.mrb[233].mxu1  ;;  %8955 = vmatprep.mubr.bf16.mxu0 %v14471_v29 }
 0xdec   : > { %v7993_v4 = vadd.f32 %v17604_v31, %v7836_v32  ;;  %v7838_v22 = vpop.f32.mrb[234].mxu1  ;;  %11940 = vmatmul.mubr.bf16.gmra.mrb[52].mxu1 %v8096_v38 }
 0xded   : > { %v7937_v48 = vpack.c.bf16 %v7838_v22, %v7834_v58  ;;  %v7840_v39 = vpop.f32.mrb[235].mxu1 }
 0xdee   : > { %v7994_v0 = vadd.f32 %v17604_v31, %v7840_v39  ;;  %v8057_v62 = vmax.f32 %v7993_v4, 0.0 }
 0xdef   : > { %9157 = vmatpush1.bf16.msra.mxu0 %v7937_v48 }
 0xdf0   : > { %v8058_v52 = vmax.f32 %v7994_v0, 0.0  ;;  %9158 = vmatprep.subr.bf16.mxu0 %v18467_v54 }
 0xdf2   : > { %v7844_v16 = vpop.f32.mrb[236].mxu1  ;;  %8956 = vmatmul.mubr.bf16.gmra.mrb[28].mxu0 %v14472_v30  ;;  %v8097_v3 = vpack.c.bf16 %v8058_v52, %v8057_v62 }
 0xdf3   : > { %v7846_v25 = vpop.f32.mrb[237].mxu1  ;;  %8963 = vmatprep.mubr.bf16.mxu0 %v14473_v13 }
 0xdf4   : > { %v7995_v6 = vadd.f32 %v17604_v31, %v7846_v25  ;;  %v7848_v56 = vpop.f32.mrb[238].mxu1  ;;  %11943 = vmatprep.mubr.bf16.mxu1 %v8097_v3  ;;  %v14483_v3 = vld [vmem:[%s14690_s22 + $0x1e4] ss:$16 sps:$4 sm:$0xff]  }
 0xdf5   : > { %v7938_v24 = vpack.c.bf16 %v7848_v56, %v7844_v16  ;;  %v7850_v20 = vpop.f32.mrb[239].mxu1  ;;  %v14482_v16 = vld [vmem:[%s14690_s22 + $0x1c0] ss:$16 sps:$4 sm:$0xff]  }
 0xdf6   : > { %v7996_v14 = vadd.f32 %v17604_v31, %v7850_v20  ;;  %v8059_v36 = vmax.f32 %v7995_v6, 0.0 }
 0xdf7   : > { %9159 = vmatpush1.bf16.msra.mxu0 %v7938_v24 }
 0xdf8   : > { %v8060_v27 = vmax.f32 %v7996_v14, 0.0  ;;  %9160 = vmatprep.subr.bf16.mxu0 %v18467_v54 }
 0xdfa   : > { %v8098_v43 = vpack.c.bf16 %v8060_v27, %v8059_v36  ;;  %v7854_v15 = vpop.f32.mrb[240].mxu1  ;;  %8964 = vmatmul.mubr.bf16.gmra.mrb[32].mxu0 %v14474_v40  ;;  %v14484_v27 = vld [vmem:[%s14690_s22 + $0x1e0] ss:$16 sps:$4 sm:$0xff]   ;;  %v14485_v40 = vld [vmem:[%s14690_s22 + $0x204] ss:$16 sps:$4 sm:$0xff]  }
 0xdfb   : > { %v7856_v21 = vpop.f32.mrb[241].mxu1  ;;  %8971 = vmatprep.mubr.bf16.mxu0 %v14475_v44 }
 0xdfc   : > { %v7997_v49 = vadd.f32 %v17604_v31, %v7856_v21  ;;  %v7858_v35 = vpop.f32.mrb[242].mxu1  ;;  %11944 = vmatmul.mubr.bf16.gmra.mrb[56].mxu1 %v8098_v43 }
 0xdfd   : > { %v7939_v19 = vpack.c.bf16 %v7858_v35, %v7854_v15  ;;  %v7860_v53 = vpop.f32.mrb[243].mxu1 }
 0xdfe   : > { %v7998_v9 = vadd.f32 %v17604_v31, %v7860_v53  ;;  %v8061_v17 = vmax.f32 %v7997_v49, 0.0 }
 0xdff   : > { %9161 = vmatpush1.bf16.msra.mxu0 %v7939_v19 }
 0xe00   : > { %v8062_v47 = vmax.f32 %v7998_v9, 0.0  ;;  %9162 = vmatprep.subr.bf16.mxu0 %v18467_v54 }
 0xe02   : > { %v7864_v42 = vpop.f32.mrb[244].mxu1  ;;  %8972 = vmatmul.mubr.bf16.gmra.mrb[36].mxu0 %v14476_v1  ;;  %v8099_v8 = vpack.c.bf16 %v8062_v47, %v8061_v17  ;;  %v17777_v1 = vld [vmem:[%s18431_s6] ss:$0 sm:$0xff] }
 0xe03   : > { %v7866_v23 = vpop.f32.mrb[245].mxu1  ;;  %8979 = vmatprep.mubr.bf16.mxu0 %v14477_v18  ;;  %v14488_v18 = vld [vmem:[%s14690_s22 + $0x224] ss:$16 sps:$4 sm:$0xff]  }
 0xe04   : > { %v7999_v2 = vadd.f32 %v17604_v31, %v7866_v23  ;;  %v7868_v7 = vpop.f32.mrb[246].mxu1  ;;  %11947 = vmatprep.mubr.bf16.mxu1 %v8099_v8 }
 0xe05   : > { %v7940_v59 = vpack.c.bf16 %v7868_v7, %v7864_v42  ;;  %v7870_v50 = vpop.f32.mrb[247].mxu1  ;;  %v14486_v42 = vld [vmem:[%s14690_s22 + $0x200] ss:$16 sps:$4 sm:$0xff]  }
 0xe06   : > { %v8000_v55 = vadd.f32 %v17604_v31, %v7870_v50  ;;  %v8063_v10 = vmax.f32 %v7999_v2, 0.0 }
 0xe07   : > { %9163 = vmatpush1.bf16.msra.mxu0 %v7940_v59 }
 0xe08   : > { %v8064_v28 = vmax.f32 %v8000_v55, 0.0  ;;  %9164 = vmatprep.subr.bf16.mxu0 %v18467_v54 }
 0xe0a   : > { %v8100_v57 = vpack.c.bf16 %v8064_v28, %v8063_v10  ;;  %v7874_v37 = vpop.f32.mrb[248].mxu1  ;;  %8980 = vmatmul.mubr.bf16.gmra.mrb[40].mxu0 %v14478_v61 }
 0xe0b   : > { %v7876_v11 = vpop.f32.mrb[249].mxu1  ;;  %8987 = vmatprep.mubr.bf16.mxu0 %v14479_v41 }
 0xe0c   : > { %v8001_v26 = vadd.f32 %v17604_v31, %v7876_v11  ;;  %v7878_v33 = vpop.f32.mrb[250].mxu1  ;;  %11948 = vmatmul.mubr.bf16.gmra.mrb[60].mxu1 %v8100_v57  ;;  %v14489_v11 = vld [vmem:[%s14690_s22 + $0x220] ss:$16 sps:$4 sm:$0xff]  }
 0xe0d   : > { %v7941_v63 = vpack.c.bf16 %v7878_v33, %v7874_v37  ;;  %v7880_v12 = vpop.f32.mrb[251].mxu1 }
 0xe0e   : > { %v8002_v60 = vadd.f32 %v17604_v31, %v7880_v12  ;;  %v8065_v46 = vmax.f32 %v8001_v26, 0.0 }
 0xe0f   : > { %9165 = vmatpush1.bf16.msra.mxu0 %v7941_v63  ;;  %v14490_v63 = vld [vmem:[%s14690_s22 + $0x244] ss:$16 sps:$4 sm:$0xff]  }
 0xe10   : > { %v8066_v34 = vmax.f32 %v8002_v60, 0.0  ;;  %9166 = vmatprep.subr.bf16.mxu0 %v18467_v54 }
 0xe12   : > { %v7884_v51 = vpop.f32.mrb[252].mxu1  ;;  %8988 = vmatmul.mubr.bf16.gmra.mrb[44].mxu0 %v14480_v45  ;;  %v8101_v38 = vpack.c.bf16 %v8066_v34, %v8065_v46 }
 0xe13   : > { %v7886_v58 = vpop.f32.mrb[253].mxu1  ;;  %8995 = vmatprep.mubr.bf16.mxu0 %v14481_v5 }
 0xe14   : > { %v8003_v32 = vadd.f32 %v17604_v31, %v7886_v58  ;;  %v7888_v29 = vpop.f32.mrb[254].mxu1  ;;  %11951 = vmatprep.mubr.bf16.mxu1 %v8101_v38 }
 0xe15   : > { %v7942_v4 = vpack.c.bf16 %v7888_v29, %v7884_v51  ;;  %v7890_v22 = vpop.f32.mrb[255].mxu1 }
 0xe16   : > { %v8004_v48 = vadd.f32 %v17604_v31, %v7890_v22  ;;  %v8067_v39 = vmax.f32 %v8003_v32, 0.0 }
 0xe17   : > { %9167 = vmatpush1.bf16.msra.mxu0 %v7942_v4  ;;  %v14491_v4 = vld [vmem:[%s14690_s22 + $0x240] ss:$16 sps:$4 sm:$0xff]  }
 0xe18   : > { %v8068_v0 = vmax.f32 %v8004_v48, 0.0  ;;  %9168 = vmatprep.subr.bf16.mxu0 %v18467_v54 }
 0xe1a   : > { %v8102_v62 = vpack.c.bf16 %v8068_v0, %v8067_v39  ;;  %v7894_v52 = vpop.f32.mrb[0].mxu1  ;;  %8996 = vmatmul.mubr.bf16.gmra.mrb[48].mxu0 %v14482_v16  ;;  %v14492_v0 = vld [vmem:[%s14690_s22 + $0x264] ss:$16 sps:$4 sm:$0xff]  }
 0xe1b   : > { %v7896_v30 = vpop.f32.mrb[1].mxu1  ;;  %9003 = vmatprep.mubr.bf16.mxu0 %v14483_v3 }
 0xe1c   : > { %v8005_v25 = vadd.f32 %v17604_v31, %v7896_v30  ;;  %v7898_v13 = vpop.f32.mrb[2].mxu1  ;;  %11952 = vmatmul.mubr.bf16.gmra.mrb[64].mxu1 %v8102_v62 }
 0xe1d   : > { %v7943_v6 = vpack.c.bf16 %v7898_v13, %v7894_v52  ;;  %v7900_v56 = vpop.f32.mrb[3].mxu1 }
 0xe1e   : > { %v8006_v24 = vadd.f32 %v17604_v31, %v7900_v56  ;;  %v8069_v20 = vmax.f32 %v8005_v25, 0.0 }
 0xe1f   : > { %9169 = vmatpush1.bf16.msra.mxu0 %v7943_v6 }
 0xe20   : > { %v8070_v14 = vmax.f32 %v8006_v24, 0.0  ;;  %9170 = vmatprep.subr.bf16.mxu0 %v18467_v54 }
 0xe22   : > { %v7904_v36 = vpop.f32.mrb[4].mxu1  ;;  %9004 = vmatmul.mubr.bf16.gmra.mrb[52].mxu0 %v14484_v27  ;;  %v8103_v43 = vpack.c.bf16 %v8070_v14, %v8069_v20  ;;  %v14493_v14 = vld [vmem:[%s14690_s22 + $0x260] ss:$16 sps:$4 sm:$0xff]  }
 0xe23   : > { %v7906_v15 = vpop.f32.mrb[5].mxu1  ;;  %9011 = vmatprep.mubr.bf16.mxu0 %v14485_v40 }
 0xe24   : > { %v8007_v21 = vadd.f32 %v17604_v31, %v7906_v15  ;;  %v7908_v44 = vpop.f32.mrb[6].mxu1  ;;  %11955 = vmatprep.mubr.bf16.mxu1 %v8103_v43  ;;  %v14494_v15 = vld [vmem:[%s14690_s22 + $0x284] ss:$16 sps:$4 sm:$0xff]  }
 0xe25   : > { %v7944_v49 = vpack.c.bf16 %v7908_v44, %v7904_v36  ;;  %v7910_v35 = vpop.f32.mrb[7].mxu1 }
 0xe26   : > { %v8008_v19 = vadd.f32 %v17604_v31, %v7910_v35  ;;  %v8071_v53 = vmax.f32 %v8007_v21, 0.0 }
 0xe27   : > { %9171 = vmatpush1.bf16.msra.mxu0 %v7944_v49 }
 0xe28   : > { %v8072_v9 = vmax.f32 %v8008_v19, 0.0 }
 0xe2a   : > { %v8104_v17 = vpack.c.bf16 %v8072_v9, %v8071_v53  ;;  %v11897_v47 = vpop.f32.mrb[8].mxu1  ;;  %9012 = vmatmul.mubr.bf16.gmra.mrb[56].mxu0 %v14486_v42  ;;  %v14495_v42 = vld [vmem:[%s14690_s22 + $0x280] ss:$16 sps:$4 sm:$0xff]  }
 0xe2b   : > { %v8148_v8 = vadd.f32 %v17777_v1, %v11897_v47  ;;  %v8139_v23 = vpop.f32.mrb[9].mxu1  ;;  %9019 = vmatprep.mubr.bf16.mxu0 %v14488_v18 }
 0xe2c   : > { %v8140_v31 = vadd.f32 %v17777_v1, %v8139_v23  ;;  %v11898_v2 = vpop.f32.mrb[10].mxu1  ;;  %11956 = vmatmul.mubr.bf16.gmra.mrb[68].mxu1 %v8104_v17  ;;  %v14496_v23 = vld [vmem:[%s14690_s22 + $0x2a4] ss:$16 sps:$4 sm:$0xff]  }
 0xe2d   : > { %v8151_v7 = vadd.f32 %v17777_v1, %v11898_v2  ;;  %v8142_v59 = vpop.f32.mrb[11].mxu1  ;;  %v8396_v55 = vmax.f32 %v8148_v8, 0.0 }
 0xe2e   : > { %v8143_v50 = vadd.f32 %v17777_v1, %v8142_v59  ;;  %v8394_v28 = vmax.f32 %v8140_v31, 0.0 }
 0xe2f   : > { %v8397_v10 = vmax.f32 %v8151_v7, 0.0 }
 0xe30   : > { %v8395_v57 = vmax.f32 %v8143_v50, 0.0 }
 0xe31   : > { %v8459_v37 = vpack.c.bf16 %v8397_v10, %v8396_v55  ;;  %v14497_v10 = vld [vmem:[%s14690_s22 + $0x2a0] ss:$16 sps:$4 sm:$0xff]  }
 0xe32   : > { %v11901_v61 = vpop.f32.mrb[12].mxu1  ;;  %9020 = vmatmul.mubr.bf16.gmra.mrb[60].mxu0 %v14489_v11  ;;  %v8458_v41 = vpack.c.bf16 %v8395_v57, %v8394_v28  ;;  %v14498_v57 = vld [vmem:[%s14690_s22 + $0x2c4] ss:$16 sps:$4 sm:$0xff]  }
 0xe33   : > { %v8164_v26 = vadd.f32 %v17777_v1, %v11901_v61  ;;  %v8155_v33 = vpop.f32.mrb[13].mxu1  ;;  %9027 = vmatprep.mubr.bf16.mxu0 %v14490_v63  ;;  %v14499_v63 = vld [vmem:[%s14690_s22 + $0x2c0] ss:$16 sps:$4 sm:$0xff]  }
 0xe34   : > { %v8156_v12 = vadd.f32 %v17777_v1, %v8155_v33  ;;  %v11902_v60 = vpop.f32.mrb[14].mxu1  ;;  %11975 = vmatprep.mubr.bf16.mxu1 %v8458_v41 }
 0xe35   : > { %v8167_v46 = vadd.f32 %v17777_v1, %v11902_v60  ;;  %v8158_v34 = vpop.f32.mrb[15].mxu1  ;;  %11976 = vmatmul.mubr.bf16.vlgmr.msra.gmra.mrb[136].mxu1 %v8459_v37  ;;  %v8400_v45 = vmax.f32 %v8164_v26, 0.0 }
 0xe36   : > { %v8159_v51 = vadd.f32 %v17777_v1, %v8158_v34  ;;  %v8398_v58 = vmax.f32 %v8156_v12, 0.0  ;;  %v14500_v12 = vld [vmem:[%s14690_s22 + $0x2e4] ss:$16 sps:$4 sm:$0xff]  }
 0xe37   : > { %v8401_v38 = vmax.f32 %v8167_v46, 0.0 }
 0xe38   : > { %v8399_v5 = vmax.f32 %v8159_v51, 0.0 }
 0xe39   : > { %v8461_v32 = vpack.c.bf16 %v8401_v38, %v8400_v45 }
 0xe3a   : > { %v11905_v29 = vpop.f32.mrb[16].mxu1  ;;  %9028 = vmatmul.mubr.bf16.gmra.mrb[64].mxu0 %v14491_v4  ;;  %v8460_v22 = vpack.c.bf16 %v8399_v5, %v8398_v58  ;;  %v14501_v5 = vld [vmem:[%s14690_s22 + $0x2e0] ss:$16 sps:$4 sm:$0xff]  }
 0xe3b   : > { %v8180_v48 = vadd.f32 %v17777_v1, %v11905_v29  ;;  %v8171_v39 = vpop.f32.mrb[17].mxu1  ;;  %9035 = vmatprep.mubr.bf16.mxu0 %v14492_v0  ;;  %v14502_v29 = vld [vmem:[%s14690_s22 + $0x304] ss:$16 sps:$4 sm:$0xff]  }
 0xe3c   : > { %v8172_v62 = vadd.f32 %v17777_v1, %v8171_v39  ;;  %v11906_v52 = vpop.f32.mrb[18].mxu1  ;;  %11979 = vmatprep.mubr.bf16.mxu1 %v8460_v22 }
 0xe3d   : > { %v8183_v16 = vadd.f32 %v17777_v1, %v11906_v52  ;;  %v8174_v30 = vpop.f32.mrb[19].mxu1  ;;  %11980 = vmatmul.mubr.bf16.gmra.mrb[140].mxu1 %v8461_v32  ;;  %v8404_v25 = vmax.f32 %v8180_v48, 0.0  ;;  %v14503_v52 = vld [vmem:[%s14690_s22 + $0x300] ss:$16 sps:$4 sm:$0xff]  }
 0xe3e   : > { %v8175_v3 = vadd.f32 %v17777_v1, %v8174_v30  ;;  %v8402_v6 = vmax.f32 %v8172_v62, 0.0 }
 0xe3f   : > { %v8405_v13 = vmax.f32 %v8183_v16, 0.0  ;;  %v14504_v16 = vld [vmem:[%s14690_s22 + $0x324] ss:$16 sps:$4 sm:$0xff]  }
 0xe40   : > { %v8403_v56 = vmax.f32 %v8175_v3, 0.0 }
 0xe41   : > { %v8463_v24 = vpack.c.bf16 %v8405_v13, %v8404_v25 }
 0xe42   : > { %v11909_v20 = vpop.f32.mrb[20].mxu1  ;;  %9036 = vmatmul.mubr.bf16.gmra.mrb[68].mxu0 %v14493_v14  ;;  %v8462_v36 = vpack.c.bf16 %v8403_v56, %v8402_v6 }
 0xe43   : > { %v8196_v27 = vadd.f32 %v17777_v1, %v11909_v20  ;;  %v8187_v43 = vpop.f32.mrb[21].mxu1  ;;  %9043 = vmatprep.mubr.bf16.mxu0 %v14494_v15  ;;  %v14505_v20 = vld [vmem:[%s14690_s22 + $0x320] ss:$16 sps:$4 sm:$0xff]  }
 0xe44   : > { %v8188_v40 = vadd.f32 %v17777_v1, %v8187_v43  ;;  %v11910_v21 = vpop.f32.mrb[22].mxu1  ;;  %11983 = vmatprep.mubr.bf16.mxu1 %v8462_v36  ;;  %v14506_v36 = vld [vmem:[%s14690_s22 + $0x344] ss:$16 sps:$4 sm:$0xff]  }
 0xe45   : > { %v8199_v44 = vadd.f32 %v17777_v1, %v11910_v21  ;;  %v8190_v49 = vpop.f32.mrb[23].mxu1  ;;  %11984 = vmatmul.mubr.bf16.gmra.mrb[144].mxu1 %v8463_v24  ;;  %v8408_v19 = vmax.f32 %v8196_v27, 0.0 }
 0xe46   : > { %v8191_v35 = vadd.f32 %v17777_v1, %v8190_v49  ;;  %v8406_v9 = vmax.f32 %v8188_v40, 0.0  ;;  %v14507_v49 = vld [vmem:[%s14690_s22 + $0x340] ss:$16 sps:$4 sm:$0xff]  }
 0xe47   : > { %v8409_v53 = vmax.f32 %v8199_v44, 0.0 }
 0xe48   : > { %v8407_v17 = vmax.f32 %v8191_v35, 0.0  ;;  %v14508_v35 = vld [vmem:[%s14690_s22 + $0x364] ss:$16 sps:$4 sm:$0xff]  }
 0xe49   : > { %v8465_v47 = vpack.c.bf16 %v8409_v53, %v8408_v19 }
 0xe4a   : > { %9044 = vmatmul.mubr.bf16.gmra.mrb[72].mxu0 %v14495_v42  ;;  %v8464_v8 = vpack.c.bf16 %v8407_v17, %v8406_v9 }
 0xe4b   : > { %9051 = vmatprep.mubr.bf16.mxu0 %v14496_v23  ;;  %v14509_v23 = vld [vmem:[%s14690_s22 + $0x360] ss:$16 sps:$4 sm:$0xff]  }
 0xe4c   : > { %11987 = vmatprep.mubr.bf16.mxu1 %v8464_v8 }
 0xe4d   : > { %11988 = vmatmul.mubr.bf16.gmra.mrb[148].mxu1 %v8465_v47 }
 0xe4f   : > { %v11913_v18 = vpop.f32.mrb[24].mxu1 }
 0xe50   : > { %v8212_v31 = vadd.f32 %v17777_v1, %v11913_v18  ;;  %v8203_v2 = vpop.f32.mrb[25].mxu1 }
 0xe51   : > { %v8204_v7 = vadd.f32 %v17777_v1, %v8203_v2  ;;  %v11914_v59 = vpop.f32.mrb[26].mxu1 }
 0xe52   : > { %v8215_v50 = vadd.f32 %v17777_v1, %v11914_v59  ;;  %v8206_v55 = vpop.f32.mrb[27].mxu1  ;;  %9052 = vmatmul.mubr.bf16.gmra.mrb[76].mxu0 %v14497_v10  ;;  %v8412_v37 = vmax.f32 %v8212_v31, 0.0  ;;  %v14510_v31 = vld [vmem:[%s14690_s22 + $0x384] ss:$16 sps:$4 sm:$0xff]  }
 0xe53   : > { %v8207_v28 = vadd.f32 %v17777_v1, %v8206_v55  ;;  %9059 = vmatprep.mubr.bf16.mxu0 %v14498_v57  ;;  %v8410_v11 = vmax.f32 %v8204_v7, 0.0  ;;  %v14512_v57 = vld [vmem:[%s14690_s22 + $0x3a4] ss:$16 sps:$4 sm:$0xff]  }
 0xe54   : > { %v8413_v61 = vmax.f32 %v8215_v50, 0.0 }
 0xe55   : > { %v8411_v41 = vmax.f32 %v8207_v28, 0.0  ;;  %v14511_v28 = vld [vmem:[%s14690_s22 + $0x380] ss:$16 sps:$4 sm:$0xff]  }
 0xe56   : > { %v8467_v26 = vpack.c.bf16 %v8413_v61, %v8412_v37 }
 0xe57   : > { %v8466_v33 = vpack.c.bf16 %v8411_v41, %v8410_v11 }
 0xe59   : > { %11991 = vmatprep.mubr.bf16.mxu1 %v8466_v33 }
 0xe5a   : > { %11992 = vmatmul.mubr.bf16.gmra.mrb[152].mxu1 %v8467_v26  ;;  %9060 = vmatmul.mubr.bf16.gmra.mrb[80].mxu0 %v14499_v63 }
 0xe5b   : > { %9067 = vmatprep.mubr.bf16.mxu0 %v14500_v12  ;;  %v14513_v12 = vld [vmem:[%s14690_s22 + $0x3a0] ss:$16 sps:$4 sm:$0xff]  }
 0xe5f   : > { %v11917_v60 = vpop.f32.mrb[28].mxu1 }
 0xe60   : > { %v8228_v46 = vadd.f32 %v17777_v1, %v11917_v60  ;;  %v8219_v34 = vpop.f32.mrb[29].mxu1 }
 0xe61   : > { %v8220_v51 = vadd.f32 %v17777_v1, %v8219_v34  ;;  %v11918_v45 = vpop.f32.mrb[30].mxu1 }
 0xe62   : > { %v8231_v38 = vadd.f32 %v17777_v1, %v11918_v45  ;;  %v8222_v58 = vpop.f32.mrb[31].mxu1  ;;  %9068 = vmatmul.mubr.bf16.gmra.mrb[84].mxu0 %v14501_v5  ;;  %v8416_v4 = vmax.f32 %v8228_v46, 0.0  ;;  %v14514_v46 = vld [vmem:[%s14690_s22 + $0x3c4] ss:$16 sps:$4 sm:$0xff]  }
 0xe63   : > { %v8223_v32 = vadd.f32 %v17777_v1, %v8222_v58  ;;  %9075 = vmatprep.mubr.bf16.mxu0 %v14502_v29  ;;  %v8414_v48 = vmax.f32 %v8220_v51, 0.0  ;;  %v14516_v29 = vld [vmem:[%s14690_s22 + $0x3e4] ss:$16 sps:$4 sm:$0xff]  }
 0xe64   : > { %v8417_v22 = vmax.f32 %v8231_v38, 0.0 }
 0xe65   : > { %v8415_v39 = vmax.f32 %v8223_v32, 0.0  ;;  %v14515_v32 = vld [vmem:[%s14690_s22 + $0x3c0] ss:$16 sps:$4 sm:$0xff]  }
 0xe66   : > { %v8469_v0 = vpack.c.bf16 %v8417_v22, %v8416_v4 }
 0xe67   : > { %v8468_v62 = vpack.c.bf16 %v8415_v39, %v8414_v48 }
 0xe69   : > { %11995 = vmatprep.mubr.bf16.mxu1 %v8468_v62 }
 0xe6a   : > { %11996 = vmatmul.mubr.bf16.gmra.mrb[156].mxu1 %v8469_v0  ;;  %9076 = vmatmul.mubr.bf16.gmra.mrb[88].mxu0 %v14503_v52 }
 0xe6b   : > { %9083 = vmatprep.mubr.bf16.mxu0 %v14504_v16  ;;  %v14517_v16 = vld [vmem:[%s14690_s22 + $0x3e0] ss:$16 sps:$4 sm:$0xff]  }
 0xe6f   : > { %v11921_v30 = vpop.f32.mrb[32].mxu1 }
 0xe70   : > { %v8244_v3 = vadd.f32 %v17777_v1, %v11921_v30  ;;  %v8235_v25 = vpop.f32.mrb[33].mxu1 }
 0xe71   : > { %v8236_v13 = vadd.f32 %v17777_v1, %v8235_v25  ;;  %v11922_v6 = vpop.f32.mrb[34].mxu1 }
 0xe72   : > { %v8247_v56 = vadd.f32 %v17777_v1, %v11922_v6  ;;  %v8238_v24 = vpop.f32.mrb[35].mxu1  ;;  %9084 = vmatmul.mubr.bf16.gmra.mrb[92].mxu0 %v14505_v20  ;;  %v8420_v27 = vmax.f32 %v8244_v3, 0.0  ;;  %v14518_v3 = vld [vmem:[%s14690_s22 + $0xc] ss:$16 sps:$4 sm:$0xff]  }
 0xe73   : > { %v8239_v14 = vadd.f32 %v17777_v1, %v8238_v24  ;;  %9091 = vmatprep.mubr.bf16.mxu0 %v14506_v36  ;;  %v8418_v15 = vmax.f32 %v8236_v13, 0.0  ;;  %v14520_v36 = vld [vmem:[%s14690_s22 + $0x2c] ss:$16 sps:$4 sm:$0xff]  }
 0xe74   : > { %v8421_v43 = vmax.f32 %v8247_v56, 0.0 }
 0xe75   : > { %v8419_v40 = vmax.f32 %v8239_v14, 0.0  ;;  %v14519_v14 = vld [vmem:[%s14690_s22 + $0x8] ss:$16 sps:$4 sm:$0xff]  }
 0xe76   : > { %v8471_v21 = vpack.c.bf16 %v8421_v43, %v8420_v27 }
 0xe77   : > { %v8470_v44 = vpack.c.bf16 %v8419_v40, %v8418_v15 }
 0xe79   : > { %11999 = vmatprep.mubr.bf16.mxu1 %v8470_v44 }
 0xe7a   : > { %12000 = vmatmul.mubr.bf16.gmra.mrb[160].mxu1 %v8471_v21  ;;  %9092 = vmatmul.mubr.bf16.gmra.mrb[96].mxu0 %v14507_v49 }
 0xe7b   : > { %9099 = vmatprep.mubr.bf16.mxu0 %v14508_v35  ;;  %v14521_v35 = vld [vmem:[%s14690_s22 + $0x28] ss:$16 sps:$4 sm:$0xff]  }
 0xe7f   : > { %v11925_v19 = vpop.f32.mrb[36].mxu1 }
 0xe80   : > { %v8260_v53 = vadd.f32 %v17777_v1, %v11925_v19  ;;  %v8251_v9 = vpop.f32.mrb[37].mxu1 }
 0xe81   : > { %v8252_v17 = vadd.f32 %v17777_v1, %v8251_v9  ;;  %v11926_v47 = vpop.f32.mrb[38].mxu1 }
 0xe82   : > { %v8263_v42 = vadd.f32 %v17777_v1, %v11926_v47  ;;  %v8254_v8 = vpop.f32.mrb[39].mxu1  ;;  %9100 = vmatmul.mubr.bf16.gmra.mrb[100].mxu0 %v14509_v23  ;;  %v8424_v2 = vmax.f32 %v8260_v53, 0.0  ;;  %v14522_v53 = vld [vmem:[%s14690_s22 + $0x4c] ss:$16 sps:$4 sm:$0xff]  }
 0xe83   : > { %v8255_v18 = vadd.f32 %v17777_v1, %v8254_v8  ;;  %9107 = vmatprep.mubr.bf16.mxu0 %v14510_v31  ;;  %v8422_v59 = vmax.f32 %v8252_v17, 0.0  ;;  %v14524_v31 = vld [vmem:[%s14690_s22 + $0x6c] ss:$16 sps:$4 sm:$0xff]  }
 0xe84   : > { %v8425_v7 = vmax.f32 %v8263_v42, 0.0 }
 0xe85   : > { %v8423_v50 = vmax.f32 %v8255_v18, 0.0  ;;  %v14523_v18 = vld [vmem:[%s14690_s22 + $0x48] ss:$16 sps:$4 sm:$0xff]  }
 0xe86   : > { %v8473_v55 = vpack.c.bf16 %v8425_v7, %v8424_v2 }
 0xe87   : > { %v8472_v10 = vpack.c.bf16 %v8423_v50, %v8422_v59 }
 0xe89   : > { %12003 = vmatprep.mubr.bf16.mxu1 %v8472_v10 }
 0xe8a   : > { %12004 = vmatmul.mubr.bf16.gmra.mrb[164].mxu1 %v8473_v55  ;;  %9108 = vmatmul.mubr.bf16.gmra.mrb[104].mxu0 %v14511_v28 }
 0xe8b   : > { %9115 = vmatprep.mubr.bf16.mxu0 %v14512_v57  ;;  %v14525_v57 = vld [vmem:[%s14690_s22 + $0x68] ss:$16 sps:$4 sm:$0xff]  }
 0xe8f   : > { %v11929_v37 = vpop.f32.mrb[40].mxu1 }
 0xe90   : > { %v8276_v61 = vadd.f32 %v17777_v1, %v11929_v37  ;;  %v8267_v11 = vpop.f32.mrb[41].mxu1 }
 0xe91   : > { %v8268_v41 = vadd.f32 %v17777_v1, %v8267_v11  ;;  %v11930_v26 = vpop.f32.mrb[42].mxu1 }
 0xe92   : > { %v8279_v33 = vadd.f32 %v17777_v1, %v11930_v26  ;;  %v8270_v63 = vpop.f32.mrb[43].mxu1  ;;  %9116 = vmatmul.mubr.bf16.gmra.mrb[108].mxu0 %v14513_v12  ;;  %v8428_v34 = vmax.f32 %v8276_v61, 0.0  ;;  %v14526_v61 = vld [vmem:[%s14690_s22 + $0x8c] ss:$16 sps:$4 sm:$0xff]  }
 0xe93   : > { %v8271_v60 = vadd.f32 %v17777_v1, %v8270_v63  ;;  %9123 = vmatprep.mubr.bf16.mxu0 %v14514_v46  ;;  %v8426_v45 = vmax.f32 %v8268_v41, 0.0  ;;  %v14528_v46 = vld [vmem:[%s14690_s22 + $0xac] ss:$16 sps:$4 sm:$0xff]  }
 0xe94   : > { %v8429_v51 = vmax.f32 %v8279_v33, 0.0 }
 0xe95   : > { %v8427_v38 = vmax.f32 %v8271_v60, 0.0  ;;  %v14527_v60 = vld [vmem:[%s14690_s22 + $0x88] ss:$16 sps:$4 sm:$0xff]  }
 0xe96   : > { %v8475_v58 = vpack.c.bf16 %v8429_v51, %v8428_v34 }
 0xe97   : > { %v8474_v5 = vpack.c.bf16 %v8427_v38, %v8426_v45 }
 0xe99   : > { %12007 = vmatprep.mubr.bf16.mxu1 %v8474_v5 }
 0xe9a   : > { %12008 = vmatmul.mubr.bf16.gmra.mrb[168].mxu1 %v8475_v58  ;;  %9124 = vmatmul.mubr.bf16.gmra.mrb[112].mxu0 %v14515_v32 }
 0xe9b   : > { %9131 = vmatprep.mubr.bf16.mxu0 %v14516_v29  ;;  %v14529_v29 = vld [vmem:[%s14690_s22 + $0xa8] ss:$16 sps:$4 sm:$0xff]  }
 0xe9f   : > { %v11933_v4 = vpop.f32.mrb[44].mxu1 }
 0xea0   : > { %v8292_v22 = vadd.f32 %v17777_v1, %v11933_v4  ;;  %v8283_v48 = vpop.f32.mrb[45].mxu1 }
 0xea1   : > { %v8284_v39 = vadd.f32 %v17777_v1, %v8283_v48  ;;  %v11934_v0 = vpop.f32.mrb[46].mxu1 }
 0xea2   : > { %v8295_v62 = vadd.f32 %v17777_v1, %v11934_v0  ;;  %v8286_v52 = vpop.f32.mrb[47].mxu1  ;;  %9132 = vmatmul.mubr.bf16.gmra.mrb[116].mxu0 %v14517_v16  ;;  %v8432_v25 = vmax.f32 %v8292_v22, 0.0  ;;  %v14530_v22 = vld [vmem:[%s14690_s22 + $0xcc] ss:$16 sps:$4 sm:$0xff]  }
 0xea3   : > { %v8287_v30 = vadd.f32 %v17777_v1, %v8286_v52  ;;  %9172 = vmatprep.mubr.bf16.mxu0 %v14518_v3  ;;  %v8430_v6 = vmax.f32 %v8284_v39, 0.0  ;;  %v14532_v3 = vld [vmem:[%s14690_s22 + $0xec] ss:$16 sps:$4 sm:$0xff]  }
 0xea4   : > { %v8433_v13 = vmax.f32 %v8295_v62, 0.0 }
 0xea5   : > { %v8431_v56 = vmax.f32 %v8287_v30, 0.0  ;;  %v14531_v30 = vld [vmem:[%s14690_s22 + $0xc8] ss:$16 sps:$4 sm:$0xff]  }
 0xea6   : > { %v8477_v24 = vpack.c.bf16 %v8433_v13, %v8432_v25 }
 0xea7   : > { %v8476_v20 = vpack.c.bf16 %v8431_v56, %v8430_v6 }
 0xea9   : > { %12011 = vmatprep.mubr.bf16.mxu1 %v8476_v20 }
 0xeaa   : > { %12012 = vmatmul.mubr.bf16.gmra.mrb[172].mxu1 %v8477_v24  ;;  %9173 = vmatmul.mubr.bf16.vlgmr.msra.gmra.mrb[248].mxu0 %v14519_v14 }
 0xeab   : > { %9180 = vmatprep.mubr.bf16.mxu0 %v14520_v36  ;;  %v14533_v36 = vld [vmem:[%s14690_s22 + $0xe8] ss:$16 sps:$4 sm:$0xff]  }
 0xeaf   : > { %v11937_v27 = vpop.f32.mrb[48].mxu1 }
 0xeb0   : > { %v8308_v43 = vadd.f32 %v17777_v1, %v11937_v27  ;;  %v8299_v15 = vpop.f32.mrb[49].mxu1  ;;  %v13752_v27 = vld [vmem:[%s18427_s2 + $0x180] ss:$8 sps:$4 sm:$0xff]  }
 0xeb1   : > { %v8300_v40 = vadd.f32 %v17777_v1, %v8299_v15  ;;  %v11938_v21 = vpop.f32.mrb[50].mxu1 }
 0xeb2   : > { %v8311_v44 = vadd.f32 %v17777_v1, %v11938_v21  ;;  %v8302_v49 = vpop.f32.mrb[51].mxu1  ;;  %9181 = vmatmul.mubr.bf16.gmra.mrb[252].mxu0 %v14521_v35  ;;  %v8436_v9 = vmax.f32 %v8308_v43, 0.0  ;;  %v13754_v43 = vld [vmem:[%s18427_s2 + $0x184] ss:$8 sps:$4 sm:$0xff]  }
 0xeb3   : > { %v8303_v19 = vadd.f32 %v17777_v1, %v8302_v49  ;;  %9188 = vmatprep.mubr.bf16.mxu0 %v14522_v53  ;;  %v8434_v47 = vmax.f32 %v8300_v40, 0.0  ;;  %v14534_v40 = vld [vmem:[%s14690_s22 + $0x10c] ss:$16 sps:$4 sm:$0xff]   ;;  %9622 = vmatprep.subr.bf16.mxu1 %v13754_v43 }
 0xeb4   : > { %v8437_v17 = vmax.f32 %v8311_v44, 0.0  ;;  %9623 = vmatpush1.bf16.msra.mxu1 %v13752_v27  ;;  %v14546_v27 = vld [vmem:[%s14690_s22 + $0x1a8] ss:$16 sps:$4 sm:$0xff]   ;;  %v14547_v43 = vld [vmem:[%s14690_s22 + $0x1cc] ss:$16 sps:$4 sm:$0xff]  }
 0xeb5   : > { %v8435_v42 = vmax.f32 %v8303_v19, 0.0 }
 0xeb6   : > { %v8479_v8 = vpack.c.bf16 %v8437_v17, %v8436_v9  ;;  %v13757_v9 = vld [vmem:[%s18427_s2 + $0x194] ss:$8 sps:$4 sm:$0xff]   ;;  %v14535_v17 = vld [vmem:[%s14690_s22 + $0x108] ss:$16 sps:$4 sm:$0xff]  }
 0xeb7   : > { %v8478_v23 = vpack.c.bf16 %v8435_v42, %v8434_v47  ;;  %v13755_v47 = vld [vmem:[%s18427_s2 + $0x190] ss:$8 sps:$4 sm:$0xff]   ;;  %v13760_v42 = vld [vmem:[%s18427_s2 + $0x1a4] ss:$8 sps:$4 sm:$0xff]   ;;  %9624 = vmatprep.subr.bf16.mxu1 %v13757_v9 }
 0xeb8   : > { %9625 = vmatpush1.bf16.msra.mxu1 %v13755_v47  ;;  %v14556_v9 = vld [vmem:[%s14690_s22 + $0x248] ss:$16 sps:$4 sm:$0xff]  }
 0xeb9   : > { %12015 = vmatprep.mubr.bf16.mxu1 %v8478_v23  ;;  %v13758_v23 = vld [vmem:[%s18427_s2 + $0x1a0] ss:$8 sps:$4 sm:$0xff]   ;;  %9626 = vmatprep.subr.bf16.mxu1 %v13760_v42  ;;  %v14559_v42 = vld [vmem:[%s14690_s22 + $0x28c] ss:$16 sps:$4 sm:$0xff]  }
 0xeba   : > { %12016 = vmatmul.mubr.bf16.gmra.mrb[176].mxu1 %v8479_v8  ;;  %9189 = vmatmul.mubr.bf16.gmra.mrb[0].mxu0 %v14523_v18  ;;  %v14536_v8 = vld [vmem:[%s14690_s22 + $0x12c] ss:$16 sps:$4 sm:$0xff]   ;;  %v14558_v47 = vld [vmem:[%s14690_s22 + $0x268] ss:$16 sps:$4 sm:$0xff]  }
 0xebb   : > { %9196 = vmatprep.mubr.bf16.mxu0 %v14524_v31 }
 0xebc   : > { %9627 = vmatpush1.bf16.msra.mxu1 %v13758_v23  ;;  %v14561_v23 = vld [vmem:[%s14690_s22 + $0x2ac] ss:$16 sps:$4 sm:$0xff]  }
 0xebf   : > { %v11941_v2 = vpop.f32.mrb[52].mxu1 }
 0xec0   : > { %v8324_v7 = vadd.f32 %v17777_v1, %v11941_v2  ;;  %v8315_v59 = vpop.f32.mrb[53].mxu1 }
 0xec1   : > { %v8316_v50 = vadd.f32 %v17777_v1, %v8315_v59  ;;  %v11942_v55 = vpop.f32.mrb[54].mxu1 }
 0xec2   : > { %v8327_v10 = vadd.f32 %v17777_v1, %v11942_v55  ;;  %v8318_v28 = vpop.f32.mrb[55].mxu1  ;;  %9197 = vmatmul.mubr.bf16.gmra.mrb[4].mxu0 %v14525_v57  ;;  %v8440_v11 = vmax.f32 %v8324_v7, 0.0  ;;  %v13761_v57 = vld [vmem:[%s18427_s2 + $0x1b0] ss:$8 sps:$4 sm:$0xff]  }
 0xec3   : > { %v8319_v37 = vadd.f32 %v17777_v1, %v8318_v28  ;;  %9204 = vmatprep.mubr.bf16.mxu0 %v14526_v61  ;;  %v8438_v26 = vmax.f32 %v8316_v50, 0.0  ;;  %v13763_v50 = vld [vmem:[%s18427_s2 + $0x1b4] ss:$8 sps:$4 sm:$0xff]   ;;  %v14537_v28 = vld [vmem:[%s14690_s22 + $0x128] ss:$16 sps:$4 sm:$0xff]  }
 0xec4   : > { %v8441_v41 = vmax.f32 %v8327_v10, 0.0  ;;  %v14538_v61 = vld [vmem:[%s14690_s22 + $0x14c] ss:$16 sps:$4 sm:$0xff]   ;;  %9628 = vmatprep.subr.bf16.mxu1 %v13763_v50 }
 0xec5   : > { %v8439_v33 = vmax.f32 %v8319_v37, 0.0  ;;  %9629 = vmatpush1.bf16.msra.mxu1 %v13761_v57  ;;  %v14567_v50 = vld [vmem:[%s14690_s22 + $0x30c] ss:$16 sps:$4 sm:$0xff]  }
 0xec6   : > { %v8481_v63 = vpack.c.bf16 %v8441_v41, %v8440_v11  ;;  %v13766_v11 = vld [vmem:[%s18427_s2 + $0x1c4] ss:$8 sps:$4 sm:$0xff]  }
 0xec7   : > { %v8480_v12 = vpack.c.bf16 %v8439_v33, %v8438_v26  ;;  %v13764_v33 = vld [vmem:[%s18427_s2 + $0x1c0] ss:$8 sps:$4 sm:$0xff]   ;;  %9630 = vmatprep.subr.bf16.mxu1 %v13766_v11  ;;  %v14571_v57 = vld [vmem:[%s14690_s22 + $0x34c] ss:$16 sps:$4 sm:$0xff]  }
 0xec8   : > { %v14573_v11 = vld [vmem:[%s14690_s22 + $0x36c] ss:$16 sps:$4 sm:$0xff]  }
 0xec9   : > { %12019 = vmatprep.mubr.bf16.mxu1 %v8480_v12  ;;  %9631 = vmatpush1.bf16.msra.mxu1 %v13764_v33 }
 0xeca   : > { %12020 = vmatmul.mubr.bf16.gmra.mrb[180].mxu1 %v8481_v63  ;;  %9205 = vmatmul.mubr.bf16.gmra.mrb[8].mxu0 %v14527_v60 }
 0xecb   : > { %9212 = vmatprep.mubr.bf16.mxu0 %v14528_v46 }
 0xecf   : > { %v11945_v34 = vpop.f32.mrb[56].mxu1 }
 0xed0   : > { %v8340_v51 = vadd.f32 %v17777_v1, %v11945_v34  ;;  %v8331_v45 = vpop.f32.mrb[57].mxu1  ;;  %v13769_v34 = vld [vmem:[%s18427_s2 + $0x1d4] ss:$8 sps:$4 sm:$0xff]  }
 0xed1   : > { %v8332_v38 = vadd.f32 %v17777_v1, %v8331_v45  ;;  %v11946_v58 = vpop.f32.mrb[58].mxu1  ;;  %v13767_v45 = vld [vmem:[%s18427_s2 + $0x1d0] ss:$8 sps:$4 sm:$0xff]   ;;  %9632 = vmatprep.subr.bf16.mxu1 %v13769_v34 }
 0xed2   : > { %v8343_v5 = vadd.f32 %v17777_v1, %v11946_v58  ;;  %v8334_v32 = vpop.f32.mrb[59].mxu1  ;;  %9213 = vmatmul.mubr.bf16.gmra.mrb[12].mxu0 %v14529_v29  ;;  %v8444_v48 = vmax.f32 %v8340_v51, 0.0  ;;  %v14539_v51 = vld [vmem:[%s14690_s22 + $0x148] ss:$16 sps:$4 sm:$0xff]   ;;  %9633 = vmatpush1.bf16.msra.mxu1 %v13767_v45  ;;  %v13772_v58 = vld [vmem:[%s18427_s2 + $0x1e4] ss:$8 sps:$4 sm:$0xff]  }
 0xed3   : > { %v8335_v4 = vadd.f32 %v17777_v1, %v8334_v32  ;;  %9220 = vmatprep.mubr.bf16.mxu0 %v14530_v22  ;;  %v8442_v0 = vmax.f32 %v8332_v38, 0.0  ;;  %v14540_v38 = vld [vmem:[%s14690_s22 + $0x16c] ss:$16 sps:$4 sm:$0xff]   ;;  %9634 = vmatprep.subr.bf16.mxu1 %v13772_v58 }
 0xed4   : > { %v8445_v39 = vmax.f32 %v8343_v5, 0.0  ;;  %v13770_v5 = vld [vmem:[%s18427_s2 + $0x1e0] ss:$8 sps:$4 sm:$0xff]   ;;  %v14575_v45 = vld [vmem:[%s14690_s22 + $0x38c] ss:$16 sps:$4 sm:$0xff]  }
 0xed5   : > { %v8443_v62 = vmax.f32 %v8335_v4, 0.0 }
 0xed6   : > { %v8483_v52 = vpack.c.bf16 %v8445_v39, %v8444_v48  ;;  %9635 = vmatpush1.bf16.msra.mxu1 %v13770_v5  ;;  %v13775_v39 = vld [vmem:[%s18427_s2 + $0x1f4] ss:$8 sps:$4 sm:$0xff]  }
 0xed7   : > { %v8482_v16 = vpack.c.bf16 %v8443_v62, %v8442_v0  ;;  %9636 = vmatprep.subr.bf16.mxu1 %v13775_v39 }
 0xed9   : > { %12023 = vmatprep.mubr.bf16.mxu1 %v8482_v16  ;;  %v13773_v16 = vld [vmem:[%s18427_s2 + $0x1f0] ss:$8 sps:$4 sm:$0xff]  }
 0xeda   : > { %12024 = vmatmul.mubr.bf16.gmra.mrb[184].mxu1 %v8483_v52  ;;  %9221 = vmatmul.mubr.bf16.gmra.mrb[16].mxu0 %v14531_v30  ;;  %v14541_v52 = vld [vmem:[%s14690_s22 + $0x168] ss:$16 sps:$4 sm:$0xff]  }
 0xedb   : > { %9228 = vmatprep.mubr.bf16.mxu0 %v14532_v3  ;;  %v14542_v3 = vld [vmem:[%s14690_s22 + $0x18c] ss:$16 sps:$4 sm:$0xff]   ;;  %9637 = vmatpush1.bf16.msra.mxu1 %v13773_v16 }
 0xedf   : > { %v11949_v25 = vpop.f32.mrb[60].mxu1 }
 0xee0   : > { %v8356_v13 = vadd.f32 %v17777_v1, %v11949_v25  ;;  %v8347_v6 = vpop.f32.mrb[61].mxu1 }
 0xee1   : > { %v8348_v56 = vadd.f32 %v17777_v1, %v8347_v6  ;;  %v11950_v24 = vpop.f32.mrb[62].mxu1 }
 0xee2   : > { %v8359_v20 = vadd.f32 %v17777_v1, %v11950_v24  ;;  %v8350_v14 = vpop.f32.mrb[63].mxu1  ;;  %9229 = vmatmul.mubr.bf16.gmra.mrb[20].mxu0 %v14533_v36  ;;  %v8448_v21 = vmax.f32 %v8356_v13, 0.0  ;;  %v17949_v24 = vld [vmem:[%s18430_s5] sm:$0xff]   ;;  %v14545_v36 = vld [vmem:[%s14690_s22 + $0x1ac] ss:$16 sps:$4 sm:$0xff]  }
 0xee3   : > { %v8351_v15 = vadd.f32 %v17777_v1, %v8350_v14  ;;  %9236 = vmatprep.mubr.bf16.mxu0 %v14534_v40  ;;  %v8446_v49 = vmax.f32 %v8348_v56, 0.0  ;;  %12039 = vmatprep.subr.bf16.mxu1 %v17949_v24  ;;  %v14544_v14 = vld [vmem:[%s14690_s22 + $0x188] ss:$16 sps:$4 sm:$0xff]   ;;  %v14549_v40 = vld [vmem:[%s14690_s22 + $0x1ec] ss:$16 sps:$4 sm:$0xff]  }
 0xee4   : > { %v8449_v44 = vmax.f32 %v8359_v20, 0.0 }
 0xee5   : > { %v8447_v35 = vmax.f32 %v8351_v15, 0.0  ;;  %v14548_v15 = vld [vmem:[%s14690_s22 + $0x1c8] ss:$16 sps:$4 sm:$0xff]  }
 0xee6   : > { %v8485_v19 = vpack.c.bf16 %v8449_v44, %v8448_v21  ;;  %v14550_v21 = vld [vmem:[%s14690_s22 + $0x1e8] ss:$16 sps:$4 sm:$0xff]   ;;  %v14551_v44 = vld [vmem:[%s14690_s22 + $0x20c] ss:$16 sps:$4 sm:$0xff]  }
 0xee7   : > { %v8484_v53 = vpack.c.bf16 %v8447_v35, %v8446_v49  ;;  %v14552_v49 = vld [vmem:[%s14690_s22 + $0x208] ss:$16 sps:$4 sm:$0xff]   ;;  %v14553_v35 = vld [vmem:[%s14690_s22 + $0x22c] ss:$16 sps:$4 sm:$0xff]  }
 0xee9   : > { %12027 = vmatprep.mubr.bf16.mxu1 %v8484_v53  ;;  %v14555_v53 = vld [vmem:[%s14690_s22 + $0x24c] ss:$16 sps:$4 sm:$0xff]  }
 0xeea   : > { %12028 = vmatmul.mubr.bf16.gmra.mrb[188].mxu1 %v8485_v19  ;;  %9237 = vmatmul.mubr.bf16.gmra.mrb[24].mxu0 %v14535_v17  ;;  %v14554_v19 = vld [vmem:[%s14690_s22 + $0x228] ss:$16 sps:$4 sm:$0xff]   ;;  %v14557_v17 = vld [vmem:[%s14690_s22 + $0x26c] ss:$16 sps:$4 sm:$0xff]  }
 0xeeb   : > { %9244 = vmatprep.mubr.bf16.mxu0 %v14536_v8  ;;  %v14560_v8 = vld [vmem:[%s14690_s22 + $0x288] ss:$16 sps:$4 sm:$0xff]  }
 0xeef   : > { %v11953_v18 = vpop.f32.mrb[64].mxu1 }
 0xef0   : > { %v8372_v31 = vadd.f32 %v17777_v1, %v11953_v18  ;;  %v8363_v2 = vpop.f32.mrb[65].mxu1  ;;  %v14562_v18 = vld [vmem:[%s14690_s22 + $0x2a8] ss:$16 sps:$4 sm:$0xff]  }
 0xef1   : > { %v8364_v7 = vadd.f32 %v17777_v1, %v8363_v2  ;;  %v11954_v59 = vpop.f32.mrb[66].mxu1  ;;  %v14564_v2 = vld [vmem:[%s14690_s22 + $0x2c8] ss:$16 sps:$4 sm:$0xff]  }
 0xef2   : > { %v8375_v55 = vadd.f32 %v17777_v1, %v11954_v59  ;;  %v8366_v10 = vpop.f32.mrb[67].mxu1  ;;  %9245 = vmatmul.mubr.bf16.gmra.mrb[28].mxu0 %v14537_v28  ;;  %v8452_v41 = vmax.f32 %v8372_v31, 0.0  ;;  %v14563_v31 = vld [vmem:[%s14690_s22 + $0x2cc] ss:$16 sps:$4 sm:$0xff]   ;;  %v14566_v59 = vld [vmem:[%s14690_s22 + $0x2e8] ss:$16 sps:$4 sm:$0xff]  }
 0xef3   : > { %v8367_v37 = vadd.f32 %v17777_v1, %v8366_v10  ;;  %9252 = vmatprep.mubr.bf16.mxu0 %v14538_v61  ;;  %v8450_v63 = vmax.f32 %v8364_v7, 0.0  ;;  %v14565_v7 = vld [vmem:[%s14690_s22 + $0x2ec] ss:$16 sps:$4 sm:$0xff]   ;;  %v14570_v28 = vld [vmem:[%s14690_s22 + $0x328] ss:$16 sps:$4 sm:$0xff]  }
 0xef4   : > { %v8453_v26 = vmax.f32 %v8375_v55, 0.0  ;;  %v14568_v55 = vld [vmem:[%s14690_s22 + $0x308] ss:$16 sps:$4 sm:$0xff]   ;;  %v14569_v10 = vld [vmem:[%s14690_s22 + $0x32c] ss:$16 sps:$4 sm:$0xff]  }
 0xef5   : > { %v8451_v12 = vmax.f32 %v8367_v37, 0.0  ;;  %v14572_v37 = vld [vmem:[%s14690_s22 + $0x348] ss:$16 sps:$4 sm:$0xff]   ;;  %v17985_v61 = vld [vmem:[%s18428_s3 + $0x3] ss:$0 sm:$0xff] }
 0xef6   : > { %v8487_v60 = vpack.c.bf16 %v8453_v26, %v8452_v41 }
 0xef7   : > { %v8486_v46 = vpack.c.bf16 %v8451_v12, %v8450_v63 }
 0xef9   : > { %12031 = vmatprep.mubr.bf16.mxu1 %v8486_v46 }
 0xefa   : > { %12032 = vmatmul.mubr.bf16.gmra.mrb[192].mxu1 %v8487_v60  ;;  %9253 = vmatmul.mubr.bf16.gmra.mrb[32].mxu0 %v14539_v51  ;;  %v14574_v51 = vld [vmem:[%s14690_s22 + $0x368] ss:$16 sps:$4 sm:$0xff]  }
 0xefb   : > { %9260 = vmatprep.mubr.bf16.mxu0 %v14540_v38 }
 0xeff   : > { %v11957_v32 = vpop.f32.mrb[68].mxu1 }
 0xf00   : > { %v8388_v29 = vadd.f32 %v17777_v1, %v11957_v32  ;;  %v8379_v4 = vpop.f32.mrb[69].mxu1 }
 0xf01   : > { %v8380_v22 = vadd.f32 %v17777_v1, %v8379_v4  ;;  %v11958_v48 = vpop.f32.mrb[70].mxu1 }
 0xf02   : > { %v8391_v0 = vadd.f32 %v17777_v1, %v11958_v48  ;;  %v8382_v62 = vpop.f32.mrb[71].mxu1  ;;  %9261 = vmatmul.mubr.bf16.gmra.mrb[36].mxu0 %v14541_v52  ;;  %v8456_v25 = vmax.f32 %v8388_v29, 0.0  ;;  %v14576_v48 = vld [vmem:[%s18430_s5 + $0x8] sm:$0xff]  }
 0xf03   : > { %v8383_v30 = vadd.f32 %v17777_v1, %v8382_v62  ;;  %9268 = vmatprep.mubr.bf16.mxu0 %v14542_v3  ;;  %v8454_v6 = vmax.f32 %v8380_v22, 0.0  ;;  %v14577_v62 = vld [vmem:[%s14690_s22 + $0x388] ss:$16 sps:$4 sm:$0xff]   ;;  %v14578_v52 = vld [vmem:[%s14690_s22 + $0x3ac] ss:$16 sps:$4 sm:$0xff]  }
 0xf04   : > { %v8457_v13 = vmax.f32 %v8391_v0, 0.0 }
 0xf05   : > { %v8455_v56 = vmax.f32 %v8383_v30, 0.0  ;;  %v14579_v30 = vld [vmem:[%s18430_s5 + $0x10] sm:$0xff]  }
 0xf06   : > { %v8489_v1 = vpack.c.bf16 %v8457_v13, %v8456_v25 }
 0xf07   : > { %v8488_v20 = vpack.c.bf16 %v8455_v56, %v8454_v6 }
 0xf09   : > { %12035 = vmatprep.mubr.bf16.mxu1 %v8488_v20 }
 0xf0a   : > { %12036 = vmatmul.mubr.bf16.gmra.mrb[196].mxu1 %v8489_v1  ;;  %9269 = vmatmul.mubr.bf16.gmra.mrb[40].mxu0 %v14544_v14  ;;  %v14580_v1 = vld [vmem:[%s18430_s5 + $0x18] sm:$0xff]  }
 0xf0b   : > { %9276 = vmatprep.mubr.bf16.mxu0 %v14545_v36  ;;  %9654 = vmatprep.mubr.bf16.mxu1 %v18467_v54  ;;  %v14581_v36 = vld [vmem:[%s14690_s22 + $0x3a8] ss:$16 sps:$4 sm:$0xff]  }
 0xf12   : > { %9277 = vmatmul.mubr.bf16.gmra.mrb[44].mxu0 %v14546_v27  ;;  %v14582_v27 = vld [vmem:[%s14690_s22 + $0x3cc] ss:$16 sps:$4 sm:$0xff]  }
 0xf13   : > { %9284 = vmatprep.mubr.bf16.mxu0 %v14547_v43 }
 0xf1a   : > { %9285 = vmatmul.mubr.bf16.gmra.mrb[48].mxu0 %v14548_v15  ;;  %v14583_v15 = vld [vmem:[%s18430_s5 + $0x20] sm:$0xff]  }
 0xf1b   : > { %9292 = vmatprep.mubr.bf16.mxu0 %v14549_v40 }
 0xf22   : > { %9293 = vmatmul.mubr.bf16.gmra.mrb[52].mxu0 %v14550_v21 }
 0xf23   : > { %9300 = vmatprep.mubr.bf16.mxu0 %v14551_v44 }
 0xf2a   : > { %9301 = vmatmul.mubr.bf16.gmra.mrb[56].mxu0 %v14552_v49 }
 0xf2b   : > { %9308 = vmatprep.mubr.bf16.mxu0 %v14553_v35 }
 0xf32   : > { %9309 = vmatmul.mubr.bf16.gmra.mrb[60].mxu0 %v14554_v19 }
 0xf33   : > { %9316 = vmatprep.mubr.bf16.mxu0 %v14555_v53  ;;  %v14584_v53 = vld [vmem:[%s18430_s5 + $0x28] sm:$0xff]  }
 0xf3a   : > { %9317 = vmatmul.mubr.bf16.gmra.mrb[64].mxu0 %v14556_v9 }
 0xf3b   : > { %9324 = vmatprep.mubr.bf16.mxu0 %v14557_v17 }
 0xf42   : > { %9325 = vmatmul.mubr.bf16.gmra.mrb[68].mxu0 %v14558_v47  ;;  %v14585_v47 = vld [vmem:[%s14690_s22 + $0x3c8] ss:$16 sps:$4 sm:$0xff]  }
 0xf43   : > { %9332 = vmatprep.mubr.bf16.mxu0 %v14559_v42  ;;  %v14586_v42 = vld [vmem:[%s14690_s22 + $0x3ec] ss:$16 sps:$4 sm:$0xff]  }
 0xf4a   : > { %9333 = vmatmul.mubr.bf16.gmra.mrb[72].mxu0 %v14560_v8 }
 0xf4b   : > { %9340 = vmatprep.mubr.bf16.mxu0 %v14561_v23  ;;  %v14587_v23 = vld [vmem:[%s18430_s5 + $0x30] sm:$0xff]  }
 0xf52   : > { %9341 = vmatmul.mubr.bf16.gmra.mrb[76].mxu0 %v14562_v18 }
 0xf53   : > { %9348 = vmatprep.mubr.bf16.mxu0 %v14563_v31 }
 0xf5a   : > { %9349 = vmatmul.mubr.bf16.gmra.mrb[80].mxu0 %v14564_v2 }
 0xf5b   : > { %9356 = vmatprep.mubr.bf16.mxu0 %v14565_v7 }
 0xf62   : > { %9357 = vmatmul.mubr.bf16.gmra.mrb[84].mxu0 %v14566_v59 }
 0xf63   : > { %9364 = vmatprep.mubr.bf16.mxu0 %v14567_v50 }
 0xf6a   : > { %9365 = vmatmul.mubr.bf16.gmra.mrb[88].mxu0 %v14568_v55  ;;  %v14588_v55 = vld [vmem:[%s18430_s5 + $0x38] sm:$0xff]  }
 0xf6b   : > { %9372 = vmatprep.mubr.bf16.mxu0 %v14569_v10 }
 0xf72   : > { %9373 = vmatmul.mubr.bf16.gmra.mrb[92].mxu0 %v14570_v28 }
 0xf73   : > { %9380 = vmatprep.mubr.bf16.mxu0 %v14571_v57  ;;  %v14589_v57 = vld [vmem:[%s14690_s22 + $0x3e8] ss:$16 sps:$4 sm:$0xff]  }
 0xf7a   : > { %9381 = vmatmul.mubr.bf16.gmra.mrb[96].mxu0 %v14572_v37 }
 0xf7b   : > { %9388 = vmatprep.mubr.bf16.mxu0 %v14573_v11  ;;  %v18036_v11 = vld [vmem:[%s18432_s7] sm:$0xff]  }
 0xf7d   : > { %v9174_v41 = vpop.f32.mrb[248].mxu0 }
 0xf7e   : > { %v12663_v26 = vadd.f32 %v17985_v61, %v9174_v41  ;;  %v9176_v33 = vpop.f32.mrb[249].mxu0 }
 0xf7f   : > { %v9177_v63 = vpop.f32.mrb[250].mxu0 }
 0xf80   : > { %v12664_v12 = vadd.f32 %v17985_v61, %v9177_v63  ;;  %v9179_v60 = vpop.f32.mrb[251].mxu0  ;;  %v9429_v46 = vmax.f32 %v12663_v26, 0.0 }
 0xf82   : > { %v9430_v34 = vmax.f32 %v12664_v12, 0.0  ;;  %9389 = vmatmul.mubr.bf16.gmra.mrb[100].mxu0 %v14574_v51 }
 0xf83   : > { %9396 = vmatprep.mubr.bf16.mxu0 %v14575_v45 }
 0xf84   : > { %v9493_v38 = vpack.c.bf16 %v9430_v34, %v9429_v46 }
 0xf85   : > { %v9182_v58 = vpop.f32.mrb[252].mxu0 }
 0xf86   : > { %v12665_v5 = vadd.f32 %v17985_v61, %v9182_v58  ;;  %v9184_v32 = vpop.f32.mrb[253].mxu0  ;;  %9655 = vmatmul.mubr.bf16.vlgmr.msra.gmra.mrb[72].mxu1 %v9493_v38 }
 0xf87   : > { %v9185_v29 = vpop.f32.mrb[254].mxu0  ;;  %9662 = vmatprep.mubr.bf16.mxu1 %v18467_v54  ;;  %12040 = vmatpush3.bf16.msra.mxu1 %v17949_v24 }
 0xf88   : > { %v12666_v4 = vadd.f32 %v17985_v61, %v9185_v29  ;;  %v9187_v22 = vpop.f32.mrb[255].mxu0  ;;  %12041 = vmatprep.subr.bf16.mxu1 %v14576_v48  ;;  %v9431_v39 = vmax.f32 %v12665_v5, 0.0 }
 0xf8a   : > { %v9432_v0 = vmax.f32 %v12666_v4, 0.0  ;;  %9397 = vmatmul.mubr.bf16.gmra.mrb[104].mxu0 %v14577_v62 }
 0xf8b   : > { %9404 = vmatprep.mubr.bf16.mxu0 %v14578_v52  ;;  %12042 = vmatpush3.bf16.msra.mxu1 %v14576_v48 }
 0xf8c   : > { %v9494_v16 = vpack.c.bf16 %v9432_v0, %v9431_v39  ;;  %12043 = vmatprep.subr.bf16.mxu1 %v14579_v30 }
 0xf8d   : > { %v9190_v3 = vpop.f32.mrb[0].mxu0 }
 0xf8e   : > { %v12667_v25 = vadd.f32 %v17985_v61, %v9190_v3  ;;  %v9192_v13 = vpop.f32.mrb[1].mxu0  ;;  %9663 = vmatmul.mubr.bf16.gmra.mrb[76].mxu1 %v9494_v16 }
 0xf8f   : > { %v9193_v6 = vpop.f32.mrb[2].mxu0  ;;  %9670 = vmatprep.mubr.bf16.mxu1 %v18467_v54  ;;  %12044 = vmatpush3.bf16.msra.mxu1 %v14579_v30 }
 0xf90   : > { %v12668_v56 = vadd.f32 %v17985_v61, %v9193_v6  ;;  %v9195_v24 = vpop.f32.mrb[3].mxu0  ;;  %12045 = vmatprep.subr.bf16.mxu1 %v14580_v1  ;;  %v9433_v20 = vmax.f32 %v12667_v25, 0.0 }
 0xf92   : > { %v9434_v14 = vmax.f32 %v12668_v56, 0.0  ;;  %9405 = vmatmul.mubr.bf16.gmra.mrb[108].mxu0 %v14581_v36 }
 0xf93   : > { %9412 = vmatprep.mubr.bf16.mxu0 %v14582_v27  ;;  %12046 = vmatpush3.bf16.msra.mxu1 %v14580_v1 }
 0xf94   : > { %v9495_v43 = vpack.c.bf16 %v9434_v14, %v9433_v20  ;;  %12047 = vmatprep.subr.bf16.mxu1 %v14583_v15 }
 0xf95   : > { %v9198_v40 = vpop.f32.mrb[4].mxu0 }
 0xf96   : > { %v12669_v21 = vadd.f32 %v17985_v61, %v9198_v40  ;;  %v9200_v44 = vpop.f32.mrb[5].mxu0  ;;  %9671 = vmatmul.mubr.bf16.gmra.mrb[80].mxu1 %v9495_v43 }
 0xf97   : > { %v9201_v49 = vpop.f32.mrb[6].mxu0  ;;  %9678 = vmatprep.mubr.bf16.mxu1 %v18467_v54  ;;  %12048 = vmatpush3.bf16.msra.mxu1 %v14583_v15 }
 0xf98   : > { %v12670_v35 = vadd.f32 %v17985_v61, %v9201_v49  ;;  %v9203_v19 = vpop.f32.mrb[7].mxu0  ;;  %12049 = vmatprep.subr.bf16.mxu1 %v14584_v53  ;;  %v9435_v9 = vmax.f32 %v12669_v21, 0.0 }
 0xf9a   : > { %v9436_v17 = vmax.f32 %v12670_v35, 0.0  ;;  %9413 = vmatmul.mubr.bf16.gmra.mrb[112].mxu0 %v14585_v47 }
 0xf9b   : > { %9420 = vmatprep.mubr.bf16.mxu0 %v14586_v42  ;;  %12050 = vmatpush3.bf16.msra.mxu1 %v14584_v53 }
 0xf9c   : > { %v9496_v8 = vpack.c.bf16 %v9436_v17, %v9435_v9  ;;  %12051 = vmatprep.subr.bf16.mxu1 %v14587_v23 }
 0xf9d   : > { %v9206_v18 = vpop.f32.mrb[8].mxu0 }
 0xf9e   : > { %v12671_v31 = vadd.f32 %v17985_v61, %v9206_v18  ;;  %v9208_v2 = vpop.f32.mrb[9].mxu0  ;;  %9679 = vmatmul.mubr.bf16.gmra.mrb[84].mxu1 %v9496_v8 }
 0xf9f   : > { %v9209_v7 = vpop.f32.mrb[10].mxu0  ;;  %9686 = vmatprep.mubr.bf16.mxu1 %v18467_v54  ;;  %12052 = vmatpush3.bf16.msra.mxu1 %v14587_v23 }
 0xfa0   : > { %v12672_v59 = vadd.f32 %v17985_v61, %v9209_v7  ;;  %v9211_v50 = vpop.f32.mrb[11].mxu0  ;;  %12053 = vmatprep.subr.bf16.mxu1 %v14588_v55  ;;  %v9437_v10 = vmax.f32 %v12671_v31, 0.0 }
 0xfa2   : > { %v9438_v28 = vmax.f32 %v12672_v59, 0.0  ;;  %9421 = vmatmul.mubr.bf16.gmra.mrb[116].mxu0 %v14589_v57 }
 0xfa3   : > { %12054 = vmatpush3.bf16.msra.mxu1 %v14588_v55 }
 0xfa4   : > { %v9497_v37 = vpack.c.bf16 %v9438_v28, %v9437_v10  ;;  %12119 = vmatprep.subr.bf16.mxu1 %v18036_v11 }
 0xfa5   : > { %v9214_v41 = vpop.f32.mrb[12].mxu0 }
 0xfa6   : > { %v12673_v26 = vadd.f32 %v17985_v61, %v9214_v41  ;;  %v9216_v33 = vpop.f32.mrb[13].mxu0  ;;  %9687 = vmatmul.mubr.bf16.gmra.mrb[88].mxu1 %v9497_v37 }
 0xfa7   : > { %v9217_v63 = vpop.f32.mrb[14].mxu0  ;;  %9694 = vmatprep.mubr.bf16.mxu1 %v18467_v54 }
 0xfa8   : > { %v12674_v12 = vadd.f32 %v17985_v61, %v9217_v63  ;;  %v9219_v60 = vpop.f32.mrb[15].mxu0  ;;  %v9439_v46 = vmax.f32 %v12673_v26, 0.0 }
 0xfaa   : > { %v9440_v34 = vmax.f32 %v12674_v12, 0.0 }
 0xfac   : > { %v9498_v51 = vpack.c.bf16 %v9440_v34, %v9439_v46 }
 0xfad   : > { %v9222_v45 = vpop.f32.mrb[16].mxu0 }
 0xfae   : > { %v12675_v38 = vadd.f32 %v17985_v61, %v9222_v45  ;;  %v9224_v58 = vpop.f32.mrb[17].mxu0  ;;  %9695 = vmatmul.mubr.bf16.gmra.mrb[92].mxu1 %v9498_v51 }
 0xfaf   : > { %v9225_v5 = vpop.f32.mrb[18].mxu0  ;;  %9702 = vmatprep.mubr.bf16.mxu1 %v18467_v54 }
 0xfb0   : > { %v12676_v32 = vadd.f32 %v17985_v61, %v9225_v5  ;;  %v9227_v29 = vpop.f32.mrb[19].mxu0  ;;  %v9441_v4 = vmax.f32 %v12675_v38, 0.0 }
 0xfb2   : > { %v9442_v22 = vmax.f32 %v12676_v32, 0.0 }
 0xfb4   : > { %v9499_v48 = vpack.c.bf16 %v9442_v22, %v9441_v4 }
 0xfb5   : > { %v9230_v39 = vpop.f32.mrb[20].mxu0 }
 0xfb6   : > { %v12677_v0 = vadd.f32 %v17985_v61, %v9230_v39  ;;  %v9232_v62 = vpop.f32.mrb[21].mxu0  ;;  %9703 = vmatmul.mubr.bf16.gmra.mrb[96].mxu1 %v9499_v48 }
 0xfb7   : > { %v9233_v52 = vpop.f32.mrb[22].mxu0  ;;  %9710 = vmatprep.mubr.bf16.mxu1 %v18467_v54 }
 0xfb8   : > { %v12678_v16 = vadd.f32 %v17985_v61, %v9233_v52  ;;  %v9235_v30 = vpop.f32.mrb[23].mxu0  ;;  %v9443_v3 = vmax.f32 %v12677_v0, 0.0 }
 0xfba   : > { %v9444_v25 = vmax.f32 %v12678_v16, 0.0 }
 0xfbc   : > { %v9500_v13 = vpack.c.bf16 %v9444_v25, %v9443_v3 }
 0xfbd   : > { %v9238_v6 = vpop.f32.mrb[24].mxu0 }
 0xfbe   : > { %v12679_v56 = vadd.f32 %v17985_v61, %v9238_v6  ;;  %v9240_v24 = vpop.f32.mrb[25].mxu0  ;;  %9711 = vmatmul.mubr.bf16.gmra.mrb[100].mxu1 %v9500_v13 }
 0xfbf   : > { %v9241_v1 = vpop.f32.mrb[26].mxu0  ;;  %9718 = vmatprep.mubr.bf16.mxu1 %v18467_v54 }
 0xfc0   : > { %v12680_v20 = vadd.f32 %v17985_v61, %v9241_v1  ;;  %v9243_v14 = vpop.f32.mrb[27].mxu0  ;;  %v9445_v36 = vmax.f32 %v12679_v56, 0.0 }
 0xfc2   : > { %v9446_v27 = vmax.f32 %v12680_v20, 0.0 }
 0xfc4   : > { %v9501_v43 = vpack.c.bf16 %v9446_v27, %v9445_v36 }
 0xfc5   : > { %v9246_v15 = vpop.f32.mrb[28].mxu0 }
 0xfc6   : > { %v12681_v40 = vadd.f32 %v17985_v61, %v9246_v15  ;;  %v9248_v21 = vpop.f32.mrb[29].mxu0  ;;  %9719 = vmatmul.mubr.bf16.gmra.mrb[104].mxu1 %v9501_v43 }
 0xfc7   : > { %v9249_v44 = vpop.f32.mrb[30].mxu0  ;;  %9726 = vmatprep.mubr.bf16.mxu1 %v18467_v54 }
 0xfc8   : > { %v12682_v49 = vadd.f32 %v17985_v61, %v9249_v44  ;;  %v9251_v35 = vpop.f32.mrb[31].mxu0  ;;  %v9447_v19 = vmax.f32 %v12681_v40, 0.0 }
 0xfca   : > { %v9448_v53 = vmax.f32 %v12682_v49, 0.0 }
 0xfcc   : > { %v9502_v9 = vpack.c.bf16 %v9448_v53, %v9447_v19 }
 0xfcd   : > { %v9254_v17 = vpop.f32.mrb[32].mxu0 }
 0xfce   : > { %v12683_v47 = vadd.f32 %v17985_v61, %v9254_v17  ;;  %v9256_v42 = vpop.f32.mrb[33].mxu0  ;;  %9727 = vmatmul.mubr.bf16.gmra.mrb[108].mxu1 %v9502_v9 }
 0xfcf   : > { %v9257_v8 = vpop.f32.mrb[34].mxu0  ;;  %9734 = vmatprep.mubr.bf16.mxu1 %v18467_v54 }
 0xfd0   : > { %v12684_v23 = vadd.f32 %v17985_v61, %v9257_v8  ;;  %v9259_v18 = vpop.f32.mrb[35].mxu0  ;;  %v9449_v31 = vmax.f32 %v12683_v47, 0.0 }
 0xfd2   : > { %v9450_v2 = vmax.f32 %v12684_v23, 0.0 }
 0xfd4   : > { %v9503_v7 = vpack.c.bf16 %v9450_v2, %v9449_v31 }
 0xfd5   : > { %v9262_v59 = vpop.f32.mrb[36].mxu0 }
 0xfd6   : > { %v12685_v50 = vadd.f32 %v17985_v61, %v9262_v59  ;;  %v9264_v55 = vpop.f32.mrb[37].mxu0  ;;  %9735 = vmatmul.mubr.bf16.gmra.mrb[112].mxu1 %v9503_v7 }
 0xfd7   : > { %v9265_v10 = vpop.f32.mrb[38].mxu0  ;;  %9742 = vmatprep.mubr.bf16.mxu1 %v18467_v54 }
 0xfd8   : > { %v12686_v28 = vadd.f32 %v17985_v61, %v9265_v10  ;;  %v9267_v57 = vpop.f32.mrb[39].mxu0  ;;  %v9451_v37 = vmax.f32 %v12685_v50, 0.0 }
 0xfda   : > { %v9452_v41 = vmax.f32 %v12686_v28, 0.0 }
 0xfdc   : > { %v9504_v26 = vpack.c.bf16 %v9452_v41, %v9451_v37 }
 0xfdd   : > { %v9270_v33 = vpop.f32.mrb[40].mxu0 }
 0xfde   : > { %v12687_v63 = vadd.f32 %v17985_v61, %v9270_v33  ;;  %v9272_v12 = vpop.f32.mrb[41].mxu0  ;;  %9743 = vmatmul.mubr.bf16.gmra.mrb[116].mxu1 %v9504_v26 }
 0xfdf   : > { %v9273_v60 = vpop.f32.mrb[42].mxu0  ;;  %9750 = vmatprep.mubr.bf16.mxu1 %v18467_v54 }
 0xfe0   : > { %v12688_v46 = vadd.f32 %v17985_v61, %v9273_v60  ;;  %v9275_v34 = vpop.f32.mrb[43].mxu0  ;;  %v9453_v51 = vmax.f32 %v12687_v63, 0.0 }
 0xfe2   : > { %v9454_v45 = vmax.f32 %v12688_v46, 0.0 }
 0xfe4   : > { %v9505_v38 = vpack.c.bf16 %v9454_v45, %v9453_v51 }
 0xfe5   : > { %v9278_v58 = vpop.f32.mrb[44].mxu0 }
 0xfe6   : > { %v12689_v5 = vadd.f32 %v17985_v61, %v9278_v58  ;;  %v9280_v32 = vpop.f32.mrb[45].mxu0  ;;  %9751 = vmatmul.mubr.bf16.gmra.mrb[120].mxu1 %v9505_v38 }
 0xfe7   : > { %v9281_v29 = vpop.f32.mrb[46].mxu0  ;;  %9758 = vmatprep.mubr.bf16.mxu1 %v18467_v54 }
 0xfe8   : > { %v12690_v4 = vadd.f32 %v17985_v61, %v9281_v29  ;;  %v9283_v22 = vpop.f32.mrb[47].mxu0  ;;  %v9455_v48 = vmax.f32 %v12689_v5, 0.0 }
 0xfea   : > { %v9456_v39 = vmax.f32 %v12690_v4, 0.0 }
 0xfec   : > { %v9506_v0 = vpack.c.bf16 %v9456_v39, %v9455_v48 }
 0xfed   : > { %v9286_v62 = vpop.f32.mrb[48].mxu0 }
 0xfee   : > { %v12691_v52 = vadd.f32 %v17985_v61, %v9286_v62  ;;  %v9288_v16 = vpop.f32.mrb[49].mxu0  ;;  %9759 = vmatmul.mubr.bf16.gmra.mrb[124].mxu1 %v9506_v0 }
 0xfef   : > { %v9289_v30 = vpop.f32.mrb[50].mxu0  ;;  %9766 = vmatprep.mubr.bf16.mxu1 %v18467_v54 }
 0xff0   : > { %v12692_v3 = vadd.f32 %v17985_v61, %v9289_v30  ;;  %v9291_v25 = vpop.f32.mrb[51].mxu0  ;;  %v9457_v13 = vmax.f32 %v12691_v52, 0.0 }
 0xff2   : > { %v9458_v6 = vmax.f32 %v12692_v3, 0.0 }
 0xff4   : > { %v9507_v56 = vpack.c.bf16 %v9458_v6, %v9457_v13 }
 0xff5   : > { %v9294_v24 = vpop.f32.mrb[52].mxu0 }
 0xff6   : > { %v12693_v1 = vadd.f32 %v17985_v61, %v9294_v24  ;;  %v9296_v20 = vpop.f32.mrb[53].mxu0  ;;  %9767 = vmatmul.mubr.bf16.gmra.mrb[128].mxu1 %v9507_v56 }
 0xff7   : > { %v9297_v14 = vpop.f32.mrb[54].mxu0  ;;  %9774 = vmatprep.mubr.bf16.mxu1 %v18467_v54 }
 0xff8   : > { %v12694_v36 = vadd.f32 %v17985_v61, %v9297_v14  ;;  %v9299_v27 = vpop.f32.mrb[55].mxu0  ;;  %v9459_v43 = vmax.f32 %v12693_v1, 0.0 }
 0xffa   : > { %v9460_v15 = vmax.f32 %v12694_v36, 0.0 }
 0xffc   : > { %v9508_v40 = vpack.c.bf16 %v9460_v15, %v9459_v43 }
 0xffd   : > { %v9302_v21 = vpop.f32.mrb[56].mxu0 }
 0xffe   : > { %v12695_v44 = vadd.f32 %v17985_v61, %v9302_v21  ;;  %v9304_v49 = vpop.f32.mrb[57].mxu0  ;;  %9775 = vmatmul.mubr.bf16.gmra.mrb[132].mxu1 %v9508_v40 }
 0xfff   : > { %v9305_v35 = vpop.f32.mrb[58].mxu0  ;;  %9782 = vmatprep.mubr.bf16.mxu1 %v18467_v54 }
0x1000   : > { %v12696_v19 = vadd.f32 %v17985_v61, %v9305_v35  ;;  %v9307_v53 = vpop.f32.mrb[59].mxu0  ;;  %v9461_v9 = vmax.f32 %v12695_v44, 0.0 }
0x1002   : > { %v9462_v17 = vmax.f32 %v12696_v19, 0.0 }
0x1004   : > { %v9509_v47 = vpack.c.bf16 %v9462_v17, %v9461_v9 }
0x1005   : > { %v9310_v42 = vpop.f32.mrb[60].mxu0 }
0x1006   : > { %v12697_v8 = vadd.f32 %v17985_v61, %v9310_v42  ;;  %v9312_v23 = vpop.f32.mrb[61].mxu0  ;;  %9783 = vmatmul.mubr.bf16.gmra.mrb[200].mxu1 %v9509_v47 }
0x1007   : > { %v9313_v18 = vpop.f32.mrb[62].mxu0  ;;  %9790 = vmatprep.mubr.bf16.mxu1 %v18467_v54 }
0x1008   : > { %v12698_v31 = vadd.f32 %v17985_v61, %v9313_v18  ;;  %v9315_v2 = vpop.f32.mrb[63].mxu0  ;;  %v9463_v7 = vmax.f32 %v12697_v8, 0.0 }
0x100a   : > { %v9464_v59 = vmax.f32 %v12698_v31, 0.0 }
0x100c   : > { %v9510_v50 = vpack.c.bf16 %v9464_v59, %v9463_v7 }
0x100d   : > { %v9318_v55 = vpop.f32.mrb[64].mxu0 }
0x100e   : > { %v12699_v10 = vadd.f32 %v17985_v61, %v9318_v55  ;;  %v9320_v28 = vpop.f32.mrb[65].mxu0  ;;  %9791 = vmatmul.mubr.bf16.gmra.mrb[204].mxu1 %v9510_v50 }
0x100f   : > { %v9321_v57 = vpop.f32.mrb[66].mxu0  ;;  %9798 = vmatprep.mubr.bf16.mxu1 %v18467_v54 }
0x1010   : > { %v12700_v37 = vadd.f32 %v17985_v61, %v9321_v57  ;;  %v9323_v41 = vpop.f32.mrb[67].mxu0  ;;  %v9465_v26 = vmax.f32 %v12699_v10, 0.0 }
0x1012   : > { %v9466_v33 = vmax.f32 %v12700_v37, 0.0 }
0x1014   : > { %v9511_v63 = vpack.c.bf16 %v9466_v33, %v9465_v26 }
0x1015   : > { %v9326_v12 = vpop.f32.mrb[68].mxu0 }
0x1016   : > { %v12701_v60 = vadd.f32 %v17985_v61, %v9326_v12  ;;  %v9328_v46 = vpop.f32.mrb[69].mxu0  ;;  %9799 = vmatmul.mubr.bf16.gmra.mrb[208].mxu1 %v9511_v63 }
0x1017   : > { %v9329_v34 = vpop.f32.mrb[70].mxu0  ;;  %9806 = vmatprep.mubr.bf16.mxu1 %v18467_v54 }
0x1018   : > { %v12702_v51 = vadd.f32 %v17985_v61, %v9329_v34  ;;  %v9331_v45 = vpop.f32.mrb[71].mxu0  ;;  %v9467_v38 = vmax.f32 %v12701_v60, 0.0 }
0x101a   : > { %v9468_v58 = vmax.f32 %v12702_v51, 0.0 }
0x101c   : > { %v9512_v5 = vpack.c.bf16 %v9468_v58, %v9467_v38 }
0x101d   : > { %v9334_v32 = vpop.f32.mrb[72].mxu0 }
0x101e   : > { %v12703_v29 = vadd.f32 %v17985_v61, %v9334_v32  ;;  %v9336_v4 = vpop.f32.mrb[73].mxu0  ;;  %9807 = vmatmul.mubr.bf16.gmra.mrb[212].mxu1 %v9512_v5 }
0x101f   : > { %v9337_v22 = vpop.f32.mrb[74].mxu0  ;;  %9814 = vmatprep.mubr.bf16.mxu1 %v18467_v54 }
0x1020   : > { %v12704_v48 = vadd.f32 %v17985_v61, %v9337_v22  ;;  %v9339_v39 = vpop.f32.mrb[75].mxu0  ;;  %v9469_v0 = vmax.f32 %v12703_v29, 0.0 }
0x1022   : > { %v9470_v62 = vmax.f32 %v12704_v48, 0.0 }
0x1024   : > { %v9513_v52 = vpack.c.bf16 %v9470_v62, %v9469_v0 }
0x1025   : > { %v9342_v16 = vpop.f32.mrb[76].mxu0 }
0x1026   : > { %v12705_v30 = vadd.f32 %v17985_v61, %v9342_v16  ;;  %v9344_v3 = vpop.f32.mrb[77].mxu0  ;;  %9815 = vmatmul.mubr.bf16.gmra.mrb[216].mxu1 %v9513_v52 }
0x1027   : > { %v9345_v25 = vpop.f32.mrb[78].mxu0  ;;  %9822 = vmatprep.mubr.bf16.mxu1 %v18467_v54 }
0x1028   : > { %v12706_v13 = vadd.f32 %v17985_v61, %v9345_v25  ;;  %v9347_v6 = vpop.f32.mrb[79].mxu0  ;;  %v9471_v56 = vmax.f32 %v12705_v30, 0.0  ;;  %v18111_v25 = vld [vmem:[%s18429_s4] ss:$0 sm:$0xff] }
0x102a   : > { %v9472_v24 = vmax.f32 %v12706_v13, 0.0 }
0x102c   : > { %v9514_v1 = vpack.c.bf16 %v9472_v24, %v9471_v56 }
0x102d   : > { %v9350_v20 = vpop.f32.mrb[80].mxu0 }
0x102e   : > { %v12707_v14 = vadd.f32 %v17985_v61, %v9350_v20  ;;  %v9352_v36 = vpop.f32.mrb[81].mxu0  ;;  %9823 = vmatmul.mubr.bf16.gmra.mrb[220].mxu1 %v9514_v1 }
0x102f   : > { %v9353_v27 = vpop.f32.mrb[82].mxu0  ;;  %9830 = vmatprep.mubr.bf16.mxu1 %v18467_v54 }
0x1030   : > { %v12708_v43 = vadd.f32 %v17985_v61, %v9353_v27  ;;  %v9355_v15 = vpop.f32.mrb[83].mxu0  ;;  %v9473_v40 = vmax.f32 %v12707_v14, 0.0 }
0x1032   : > { %v9474_v21 = vmax.f32 %v12708_v43, 0.0 }
0x1034   : > { %v9515_v44 = vpack.c.bf16 %v9474_v21, %v9473_v40 }
0x1035   : > { %v9358_v49 = vpop.f32.mrb[84].mxu0 }
0x1036   : > { %v12709_v35 = vadd.f32 %v17985_v61, %v9358_v49  ;;  %v9360_v19 = vpop.f32.mrb[85].mxu0  ;;  %9831 = vmatmul.mubr.bf16.gmra.mrb[224].mxu1 %v9515_v44 }
0x1037   : > { %v9361_v53 = vpop.f32.mrb[86].mxu0  ;;  %9838 = vmatprep.mubr.bf16.mxu1 %v18467_v54 }
0x1038   : > { %v12710_v9 = vadd.f32 %v17985_v61, %v9361_v53  ;;  %v9363_v17 = vpop.f32.mrb[87].mxu0  ;;  %v9475_v47 = vmax.f32 %v12709_v35, 0.0 }
0x103a   : > { %v9476_v42 = vmax.f32 %v12710_v9, 0.0 }
0x103c   : > { %v9516_v8 = vpack.c.bf16 %v9476_v42, %v9475_v47 }
0x103d   : > { %v9366_v23 = vpop.f32.mrb[88].mxu0 }
0x103e   : > { %v12711_v18 = vadd.f32 %v17985_v61, %v9366_v23  ;;  %v9368_v31 = vpop.f32.mrb[89].mxu0  ;;  %9839 = vmatmul.mubr.bf16.gmra.mrb[228].mxu1 %v9516_v8 }
0x103f   : > { %v9369_v2 = vpop.f32.mrb[90].mxu0  ;;  %9846 = vmatprep.mubr.bf16.mxu1 %v18467_v54 }
0x1040   : > { %v12712_v7 = vadd.f32 %v17985_v61, %v9369_v2  ;;  %v9371_v59 = vpop.f32.mrb[91].mxu0  ;;  %v9477_v50 = vmax.f32 %v12711_v18, 0.0 }
0x1042   : > { %v9478_v55 = vmax.f32 %v12712_v7, 0.0 }
0x1044   : > { %v9517_v10 = vpack.c.bf16 %v9478_v55, %v9477_v50 }
0x1045   : > { %v9374_v28 = vpop.f32.mrb[92].mxu0 }
0x1046   : > { %v12713_v57 = vadd.f32 %v17985_v61, %v9374_v28  ;;  %v9376_v37 = vpop.f32.mrb[93].mxu0  ;;  %9847 = vmatmul.mubr.bf16.gmra.mrb[232].mxu1 %v9517_v10 }
0x1047   : > { %v9377_v41 = vpop.f32.mrb[94].mxu0  ;;  %9854 = vmatprep.mubr.bf16.mxu1 %v18467_v54 }
0x1048   : > { %v12714_v26 = vadd.f32 %v17985_v61, %v9377_v41  ;;  %v9379_v33 = vpop.f32.mrb[95].mxu0  ;;  %v9479_v63 = vmax.f32 %v12713_v57, 0.0 }
0x104a   : > { %v9480_v12 = vmax.f32 %v12714_v26, 0.0 }
0x104c   : > { %v9518_v60 = vpack.c.bf16 %v9480_v12, %v9479_v63 }
0x104d   : > { %v9382_v46 = vpop.f32.mrb[96].mxu0 }
0x104e   : > { %v12715_v34 = vadd.f32 %v17985_v61, %v9382_v46  ;;  %v9384_v51 = vpop.f32.mrb[97].mxu0  ;;  %9855 = vmatmul.mubr.bf16.gmra.mrb[236].mxu1 %v9518_v60 }
0x104f   : > { %v9385_v45 = vpop.f32.mrb[98].mxu0  ;;  %9862 = vmatprep.mubr.bf16.mxu1 %v18467_v54 }
0x1050   : > { %v12716_v38 = vadd.f32 %v17985_v61, %v9385_v45  ;;  %v9387_v58 = vpop.f32.mrb[99].mxu0  ;;  %v9481_v5 = vmax.f32 %v12715_v34, 0.0 }
0x1052   : > { %v9482_v32 = vmax.f32 %v12716_v38, 0.0 }
0x1054   : > { %v9519_v29 = vpack.c.bf16 %v9482_v32, %v9481_v5 }
0x1055   : > { %v9390_v4 = vpop.f32.mrb[100].mxu0 }
0x1056   : > { %v12717_v22 = vadd.f32 %v17985_v61, %v9390_v4  ;;  %v9392_v48 = vpop.f32.mrb[101].mxu0  ;;  %9863 = vmatmul.mubr.bf16.gmra.mrb[240].mxu1 %v9519_v29 }
0x1057   : > { %v9393_v39 = vpop.f32.mrb[102].mxu0  ;;  %9870 = vmatprep.mubr.bf16.mxu1 %v18467_v54 }
0x1058   : > { %v12718_v0 = vadd.f32 %v17985_v61, %v9393_v39  ;;  %v9395_v62 = vpop.f32.mrb[103].mxu0  ;;  %v9483_v16 = vmax.f32 %v12717_v22, 0.0 }
0x1059   : > { %v9656_v52 = vpop.f32.mrb[72].mxu1 }
0x105a   : > { %v9484_v30 = vmax.f32 %v12718_v0, 0.0  ;;  %v9657_v3 = vpop.f32.mrb[73].mxu1 }
0x105b   : > { %v9911_v13 = vadd.f32 %v18111_v25, %v9657_v3  ;;  %v9659_v6 = vpop.f32.mrb[74].mxu1 }
0x105c   : > { %v9520_v56 = vpack.c.bf16 %v9484_v30, %v9483_v16  ;;  %v9660_v24 = vpop.f32.mrb[75].mxu1 }
0x105d   : > { %v9912_v1 = vadd.f32 %v18111_v25, %v9660_v24  ;;  %v9398_v20 = vpop.f32.mrb[104].mxu0  ;;  %v9975_v27 = vmax.f32 %v9911_v13, 0.0 }
0x105e   : > { %v12719_v14 = vadd.f32 %v17985_v61, %v9398_v20  ;;  %v9400_v36 = vpop.f32.mrb[105].mxu0  ;;  %9871 = vmatmul.mubr.bf16.gmra.mrb[244].mxu1 %v9520_v56 }
0x105f   : > { %v9976_v43 = vmax.f32 %v9912_v1, 0.0  ;;  %v9401_v15 = vpop.f32.mrb[106].mxu0  ;;  %9878 = vmatprep.mubr.bf16.mxu1 %v18467_v54 }
0x1060   : > { %v12720_v40 = vadd.f32 %v17985_v61, %v9401_v15  ;;  %v9403_v21 = vpop.f32.mrb[107].mxu0  ;;  %v9485_v35 = vmax.f32 %v12719_v14, 0.0 }
0x1061   : > { %v18118_v44 = vpack.c.bf16 %v9976_v43, %v9975_v27  ;;  %v9664_v49 = vpop.f32.mrb[76].mxu1 }
0x1062   : > { %v9486_v19 = vmax.f32 %v12720_v40, 0.0  ;;  %v9665_v53 = vpop.f32.mrb[77].mxu1 }
0x1063   : > { %v9913_v9 = vadd.f32 %v18111_v25, %v9665_v53  ;;  %v9667_v17 = vpop.f32.mrb[78].mxu1 }
0x1064   : > { %v9521_v47 = vpack.c.bf16 %v9486_v19, %v9485_v35  ;;  %v9668_v42 = vpop.f32.mrb[79].mxu1 }
0x1065   : > { %v9914_v8 = vadd.f32 %v18111_v25, %v9668_v42  ;;  %v9406_v23 = vpop.f32.mrb[108].mxu0  ;;  %v9977_v2 = vmax.f32 %v9913_v9, 0.0 }
0x1066   : > { %v12721_v18 = vadd.f32 %v17985_v61, %v9406_v23  ;;  %v9408_v31 = vpop.f32.mrb[109].mxu0  ;;  %9879 = vmatmul.mubr.bf16.gmra.mrb[248].mxu1 %v9521_v47 }
0x1067   : > { %v9978_v7 = vmax.f32 %v9914_v8, 0.0  ;;  %v9409_v59 = vpop.f32.mrb[110].mxu0  ;;  %9886 = vmatprep.mubr.bf16.mxu1 %v18467_v54 }
0x1068   : > { %v12722_v50 = vadd.f32 %v17985_v61, %v9409_v59  ;;  %v9411_v55 = vpop.f32.mrb[111].mxu0  ;;  %v9487_v57 = vmax.f32 %v12721_v18, 0.0 }
0x1069   : > { %v10040_v10 = vpack.c.bf16 %v9978_v7, %v9977_v2  ;;  %v9672_v28 = vpop.f32.mrb[80].mxu1  ;;  %v14592_v7 = vld [vmem:[%s18432_s7 + $0x8] sm:$0xff]  }
0x106a   : > { %v9488_v37 = vmax.f32 %v12722_v50, 0.0  ;;  %v9673_v41 = vpop.f32.mrb[81].mxu1 }
0x106b   : > { %v9915_v26 = vadd.f32 %v18111_v25, %v9673_v41  ;;  %v9675_v33 = vpop.f32.mrb[82].mxu1 }
0x106c   : > { %v9522_v63 = vpack.c.bf16 %v9488_v37, %v9487_v57  ;;  %v9676_v12 = vpop.f32.mrb[83].mxu1 }
0x106d   : > { %v9916_v60 = vadd.f32 %v18111_v25, %v9676_v12  ;;  %v9414_v46 = vpop.f32.mrb[112].mxu0  ;;  %v9979_v45 = vmax.f32 %v9915_v26, 0.0  ;;  %v14594_v26 = vld [vmem:[%s18432_s7 + $0x18] sm:$0xff]  }
0x106e   : > { %v12723_v34 = vadd.f32 %v17985_v61, %v9414_v46  ;;  %v9416_v51 = vpop.f32.mrb[113].mxu0  ;;  %9887 = vmatmul.mubr.bf16.gmra.mrb[252].mxu1 %v9522_v63 }
0x106f   : > { %v9980_v38 = vmax.f32 %v9916_v60, 0.0  ;;  %v9417_v58 = vpop.f32.mrb[114].mxu0  ;;  %9894 = vmatprep.mubr.bf16.mxu1 %v18467_v54  ;;  %v14595_v51 = vld [vmem:[%s18432_s7 + $0x20] sm:$0xff]  }
0x1070   : > { %v12724_v5 = vadd.f32 %v17985_v61, %v9417_v58  ;;  %v9419_v32 = vpop.f32.mrb[115].mxu0  ;;  %v9489_v22 = vmax.f32 %v12723_v34, 0.0 }
0x1071   : > { %v10041_v29 = vpack.c.bf16 %v9980_v38, %v9979_v45  ;;  %v9680_v4 = vpop.f32.mrb[84].mxu1 }
0x1072   : > { %v9490_v48 = vmax.f32 %v12724_v5, 0.0  ;;  %v9681_v39 = vpop.f32.mrb[85].mxu1  ;;  %v14596_v5 = vld [vmem:[%s18432_s7 + $0x28] sm:$0xff]  }
0x1073   : > { %v9917_v0 = vadd.f32 %v18111_v25, %v9681_v39  ;;  %v9683_v62 = vpop.f32.mrb[86].mxu1 }
0x1074   : > { %v9523_v52 = vpack.c.bf16 %v9490_v48, %v9489_v22  ;;  %v9684_v16 = vpop.f32.mrb[87].mxu1 }
0x1075   : > { %v9918_v30 = vadd.f32 %v18111_v25, %v9684_v16  ;;  %v9422_v3 = vpop.f32.mrb[116].mxu0  ;;  %v9981_v56 = vmax.f32 %v9917_v0, 0.0  ;;  %v14597_v0 = vld [vmem:[%s18432_s7 + $0x30] sm:$0xff]  }
0x1076   : > { %v12725_v13 = vadd.f32 %v17985_v61, %v9422_v3  ;;  %v9424_v6 = vpop.f32.mrb[117].mxu0  ;;  %9895 = vmatmul.mubr.bf16.gmra.mrb[0].mxu1 %v9523_v52 }
0x1077   : > { %v9982_v24 = vmax.f32 %v9918_v30, 0.0  ;;  %v9425_v1 = vpop.f32.mrb[118].mxu0  ;;  %9902 = vmatprep.mubr.bf16.mxu1 %v18467_v54  ;;  %v14598_v30 = vld [vmem:[%s18432_s7 + $0x38] sm:$0xff]  }
0x1078   : > { %v12726_v20 = vadd.f32 %v17985_v61, %v9425_v1  ;;  %v9427_v14 = vpop.f32.mrb[119].mxu0  ;;  %v9491_v43 = vmax.f32 %v12725_v13, 0.0 }
0x1079   : > { %v10042_v36 = vpack.c.bf16 %v9982_v24, %v9981_v56  ;;  %v9688_v27 = vpop.f32.mrb[88].mxu1 }
0x107a   : > { %v9492_v15 = vmax.f32 %v12726_v20, 0.0  ;;  %v9689_v40 = vpop.f32.mrb[89].mxu1 }
0x107b   : > { %v9919_v21 = vadd.f32 %v18111_v25, %v9689_v40  ;;  %v9691_v49 = vpop.f32.mrb[90].mxu1 }
0x107c   : > { %v9524_v35 = vpack.c.bf16 %v9492_v15, %v9491_v43  ;;  %v9692_v19 = vpop.f32.mrb[91].mxu1 }
0x107d   : > { %v9920_v53 = vadd.f32 %v18111_v25, %v9692_v19  ;;  %v9983_v9 = vmax.f32 %v9919_v21, 0.0 }
0x107e   : > { %9903 = vmatmul.mubr.bf16.gmra.mrb[4].mxu1 %v9524_v35 }
0x107f   : > { %v9984_v17 = vmax.f32 %v9920_v53, 0.0  ;;  %12055 = vmatprep.mubr.bf16.mxu1 %v18118_v44 }
0x1081   : > { %v10043_v54 = vpack.c.bf16 %v9984_v17, %v9983_v9  ;;  %v9696_v61 = vpop.f32.mrb[92].mxu1 }
0x1082   : > { %v9697_v47 = vpop.f32.mrb[93].mxu1 }
0x1083   : > { %v9921_v42 = vadd.f32 %v18111_v25, %v9697_v47  ;;  %v9699_v8 = vpop.f32.mrb[94].mxu1 }
0x1084   : > { %v9700_v23 = vpop.f32.mrb[95].mxu1 }
0x1085   : > { %v9922_v18 = vadd.f32 %v18111_v25, %v9700_v23  ;;  %v9985_v31 = vmax.f32 %v9921_v42, 0.0 }
0x1086   : > { %12056 = vmatmul.mubr.bf16.vlgmr.msra.gmra.mrb[8].mxu1 %v10040_v10  ;;  %v14593_v10 = vld [vmem:[%s18432_s7 + $0x10] sm:$0xff]  }
0x1087   : > { %v9986_v2 = vmax.f32 %v9922_v18, 0.0  ;;  %12059 = vmatprep.mubr.bf16.mxu1 %v10041_v29  ;;  %12120 = vmatpush3.bf16.msra.mxu1 %v18036_v11 }
0x1088   : > { %12121 = vmatprep.subr.bf16.mxu1 %v14592_v7 }
0x1089   : > { %v10044_v44 = vpack.c.bf16 %v9986_v2, %v9985_v31  ;;  %v9704_v59 = vpop.f32.mrb[96].mxu1 }
0x108a   : > { %v9705_v50 = vpop.f32.mrb[97].mxu1 }
0x108b   : > { %v9923_v55 = vadd.f32 %v18111_v25, %v9705_v50  ;;  %v9707_v28 = vpop.f32.mrb[98].mxu1  ;;  %12122 = vmatpush3.bf16.msra.mxu1 %v14592_v7 }
0x108c   : > { %v9708_v57 = vpop.f32.mrb[99].mxu1  ;;  %12123 = vmatprep.subr.bf16.mxu1 %v14593_v10 }
0x108d   : > { %v9924_v11 = vadd.f32 %v18111_v25, %v9708_v57  ;;  %v9987_v37 = vmax.f32 %v9923_v55, 0.0 }
0x108e   : > { %12060 = vmatmul.mubr.bf16.gmra.mrb[12].mxu1 %v10042_v36 }
0x108f   : > { %v9988_v41 = vmax.f32 %v9924_v11, 0.0  ;;  %12063 = vmatprep.mubr.bf16.mxu1 %v10043_v54  ;;  %12124 = vmatpush3.bf16.msra.mxu1 %v14593_v10 }
0x1090   : > { %12125 = vmatprep.subr.bf16.mxu1 %v14594_v26 }
0x1091   : > { %v10045_v33 = vpack.c.bf16 %v9988_v41, %v9987_v37  ;;  %v9712_v63 = vpop.f32.mrb[100].mxu1 }
0x1092   : > { %v9713_v12 = vpop.f32.mrb[101].mxu1 }
0x1093   : > { %v9925_v60 = vadd.f32 %v18111_v25, %v9713_v12  ;;  %v9715_v46 = vpop.f32.mrb[102].mxu1  ;;  %12126 = vmatpush3.bf16.msra.mxu1 %v14594_v26 }
0x1094   : > { %v9716_v34 = vpop.f32.mrb[103].mxu1  ;;  %12127 = vmatprep.subr.bf16.mxu1 %v14595_v51 }
0x1095   : > { %v9926_v45 = vadd.f32 %v18111_v25, %v9716_v34  ;;  %v9989_v38 = vmax.f32 %v9925_v60, 0.0 }
0x1096   : > { %12064 = vmatmul.mubr.bf16.gmra.mrb[16].mxu1 %v10044_v44 }
0x1097   : > { %v9990_v58 = vmax.f32 %v9926_v45, 0.0  ;;  %12067 = vmatprep.mubr.bf16.mxu1 %v10045_v33  ;;  %12128 = vmatpush3.bf16.msra.mxu1 %v14595_v51 }
0x1098   : > { %12129 = vmatprep.subr.bf16.mxu1 %v14596_v5 }
0x1099   : > { %v10046_v32 = vpack.c.bf16 %v9990_v58, %v9989_v38  ;;  %v9720_v29 = vpop.f32.mrb[104].mxu1 }
0x109a   : > { %v9721_v4 = vpop.f32.mrb[105].mxu1 }
0x109b   : > { %v9927_v22 = vadd.f32 %v18111_v25, %v9721_v4  ;;  %v9723_v48 = vpop.f32.mrb[106].mxu1  ;;  %12130 = vmatpush3.bf16.msra.mxu1 %v14596_v5 }
0x109c   : > { %v9724_v39 = vpop.f32.mrb[107].mxu1  ;;  %12131 = vmatprep.subr.bf16.mxu1 %v14597_v0 }
0x109d   : > { %v9928_v62 = vadd.f32 %v18111_v25, %v9724_v39  ;;  %v9991_v52 = vmax.f32 %v9927_v22, 0.0 }
0x109e   : > { %12068 = vmatmul.mubr.bf16.gmra.mrb[20].mxu1 %v10046_v32 }
0x109f   : > { %v9992_v16 = vmax.f32 %v9928_v62, 0.0  ;;  %12132 = vmatpush3.bf16.msra.mxu1 %v14597_v0 }
0x10a0   : > { %12133 = vmatprep.subr.bf16.mxu1 %v14598_v30 }
0x10a1   : > { %v10047_v3 = vpack.c.bf16 %v9992_v16, %v9991_v52  ;;  %v9728_v13 = vpop.f32.mrb[108].mxu1 }
0x10a2   : > { %v9729_v6 = vpop.f32.mrb[109].mxu1 }
0x10a3   : > { %v9929_v56 = vadd.f32 %v18111_v25, %v9729_v6  ;;  %v9731_v24 = vpop.f32.mrb[110].mxu1  ;;  %12071 = vmatprep.mubr.bf16.mxu1 %v10047_v3  ;;  %12134 = vmatpush3.bf16.msra.mxu1 %v14598_v30 }
0x10a4   : > { %v9732_v1 = vpop.f32.mrb[111].mxu1 }
0x10a5   : > { %v9930_v20 = vadd.f32 %v18111_v25, %v9732_v1  ;;  %v9993_v14 = vmax.f32 %v9929_v56, 0.0 }
0x10a7   : > { %v9994_v36 = vmax.f32 %v9930_v20, 0.0 }
0x10a9   : > { %v10048_v27 = vpack.c.bf16 %v9994_v36, %v9993_v14  ;;  %v9736_v43 = vpop.f32.mrb[112].mxu1 }
0x10aa   : > { %v9737_v15 = vpop.f32.mrb[113].mxu1 }
0x10ab   : > { %v9931_v40 = vadd.f32 %v18111_v25, %v9737_v15  ;;  %v9739_v21 = vpop.f32.mrb[114].mxu1  ;;  %12072 = vmatmul.mubr.bf16.gmra.mrb[24].mxu1 %v10048_v27 }
0x10ac   : > { %v9740_v49 = vpop.f32.mrb[115].mxu1 }
0x10ad   : > { %v9932_v35 = vadd.f32 %v18111_v25, %v9740_v49  ;;  %v9995_v19 = vmax.f32 %v9931_v40, 0.0 }
0x10af   : > { %v9996_v53 = vmax.f32 %v9932_v35, 0.0 }
0x10b1   : > { %v10049_v9 = vpack.c.bf16 %v9996_v53, %v9995_v19  ;;  %v9744_v17 = vpop.f32.mrb[116].mxu1 }
0x10b2   : > { %v9745_v54 = vpop.f32.mrb[117].mxu1 }
0x10b3   : > { %v9933_v61 = vadd.f32 %v18111_v25, %v9745_v54  ;;  %v9747_v47 = vpop.f32.mrb[118].mxu1  ;;  %12075 = vmatprep.mubr.bf16.mxu1 %v10049_v9 }
0x10b4   : > { %v9748_v42 = vpop.f32.mrb[119].mxu1 }
0x10b5   : > { %v9934_v8 = vadd.f32 %v18111_v25, %v9748_v42  ;;  %v9997_v23 = vmax.f32 %v9933_v61, 0.0 }
0x10b7   : > { %v9998_v18 = vmax.f32 %v9934_v8, 0.0 }
0x10b9   : > { %v10050_v31 = vpack.c.bf16 %v9998_v18, %v9997_v23  ;;  %v9752_v2 = vpop.f32.mrb[120].mxu1 }
0x10ba   : > { %v9753_v7 = vpop.f32.mrb[121].mxu1 }
0x10bb   : > { %v9935_v44 = vadd.f32 %v18111_v25, %v9753_v7  ;;  %v9755_v59 = vpop.f32.mrb[122].mxu1  ;;  %12076 = vmatmul.mubr.bf16.gmra.mrb[28].mxu1 %v10050_v31 }
0x10bc   : > { %v9756_v50 = vpop.f32.mrb[123].mxu1 }
0x10bd   : > { %v9936_v55 = vadd.f32 %v18111_v25, %v9756_v50  ;;  %v9999_v28 = vmax.f32 %v9935_v44, 0.0 }
0x10bf   : > { %v10000_v57 = vmax.f32 %v9936_v55, 0.0 }
0x10c1   : > { %v10051_v10 = vpack.c.bf16 %v10000_v57, %v9999_v28  ;;  %v9760_v11 = vpop.f32.mrb[124].mxu1 }
0x10c2   : > { %v9761_v37 = vpop.f32.mrb[125].mxu1 }
0x10c3   : > { %v9937_v41 = vadd.f32 %v18111_v25, %v9761_v37  ;;  %v9763_v26 = vpop.f32.mrb[126].mxu1  ;;  %12079 = vmatprep.mubr.bf16.mxu1 %v10051_v10 }
0x10c4   : > { %v9764_v33 = vpop.f32.mrb[127].mxu1 }
0x10c5   : > { %v9938_v63 = vadd.f32 %v18111_v25, %v9764_v33  ;;  %v10001_v12 = vmax.f32 %v9937_v41, 0.0 }
0x10c7   : > { %v10002_v60 = vmax.f32 %v9938_v63, 0.0 }
0x10c9   : > { %v10052_v46 = vpack.c.bf16 %v10002_v60, %v10001_v12  ;;  %v9768_v34 = vpop.f32.mrb[128].mxu1 }
0x10ca   : > { %v9769_v51 = vpop.f32.mrb[129].mxu1 }
0x10cb   : > { %v9939_v45 = vadd.f32 %v18111_v25, %v9769_v51  ;;  %v9771_v38 = vpop.f32.mrb[130].mxu1  ;;  %12080 = vmatmul.mubr.bf16.gmra.mrb[32].mxu1 %v10052_v46 }
0x10cc   : > { %v9772_v58 = vpop.f32.mrb[131].mxu1 }
0x10cd   : > { %v9940_v5 = vadd.f32 %v18111_v25, %v9772_v58  ;;  %v10003_v32 = vmax.f32 %v9939_v45, 0.0 }
0x10cf   : > { %v10004_v29 = vmax.f32 %v9940_v5, 0.0 }
0x10d1   : > { %v10053_v4 = vpack.c.bf16 %v10004_v29, %v10003_v32  ;;  %v9776_v22 = vpop.f32.mrb[132].mxu1 }
0x10d2   : > { %v9777_v48 = vpop.f32.mrb[133].mxu1 }
0x10d3   : > { %v9941_v39 = vadd.f32 %v18111_v25, %v9777_v48  ;;  %v9779_v0 = vpop.f32.mrb[134].mxu1  ;;  %12083 = vmatprep.mubr.bf16.mxu1 %v10053_v4 }
0x10d4   : > { %v9780_v62 = vpop.f32.mrb[135].mxu1 }
0x10d5   : > { %v9942_v52 = vadd.f32 %v18111_v25, %v9780_v62  ;;  %v10005_v16 = vmax.f32 %v9941_v39, 0.0 }
0x10d7   : > { %v10006_v30 = vmax.f32 %v9942_v52, 0.0 }
0x10d9   : > { %v10054_v3 = vpack.c.bf16 %v10006_v30, %v10005_v16  ;;  %v9784_v13 = vpop.f32.mrb[200].mxu1 }
0x10da   : > { %v9785_v6 = vpop.f32.mrb[201].mxu1 }
0x10db   : > { %v9943_v56 = vadd.f32 %v18111_v25, %v9785_v6  ;;  %v9787_v24 = vpop.f32.mrb[202].mxu1  ;;  %12084 = vmatmul.mubr.bf16.gmra.mrb[36].mxu1 %v10054_v3 }
0x10dc   : > { %v9788_v1 = vpop.f32.mrb[203].mxu1 }
0x10dd   : > { %v9944_v20 = vadd.f32 %v18111_v25, %v9788_v1  ;;  %v10007_v14 = vmax.f32 %v9943_v56, 0.0 }
0x10df   : > { %v10008_v36 = vmax.f32 %v9944_v20, 0.0 }
0x10e1   : > { %v10055_v27 = vpack.c.bf16 %v10008_v36, %v10007_v14  ;;  %v9792_v43 = vpop.f32.mrb[204].mxu1 }
0x10e2   : > { %v9793_v15 = vpop.f32.mrb[205].mxu1 }
0x10e3   : > { %v9945_v40 = vadd.f32 %v18111_v25, %v9793_v15  ;;  %v9795_v21 = vpop.f32.mrb[206].mxu1  ;;  %12087 = vmatprep.mubr.bf16.mxu1 %v10055_v27 }
0x10e4   : > { %v9796_v49 = vpop.f32.mrb[207].mxu1 }
0x10e5   : > { %v9946_v35 = vadd.f32 %v18111_v25, %v9796_v49  ;;  %v10009_v19 = vmax.f32 %v9945_v40, 0.0 }
0x10e7   : > { %v10010_v53 = vmax.f32 %v9946_v35, 0.0 }
0x10e9   : > { %v10056_v9 = vpack.c.bf16 %v10010_v53, %v10009_v19  ;;  %v9800_v17 = vpop.f32.mrb[208].mxu1 }
0x10ea   : > { %v9801_v54 = vpop.f32.mrb[209].mxu1 }
0x10eb   : > { %v9947_v61 = vadd.f32 %v18111_v25, %v9801_v54  ;;  %v9803_v47 = vpop.f32.mrb[210].mxu1  ;;  %12088 = vmatmul.mubr.bf16.gmra.mrb[40].mxu1 %v10056_v9 }
0x10ec   : > { %v9804_v42 = vpop.f32.mrb[211].mxu1 }
0x10ed   : > { %v9948_v8 = vadd.f32 %v18111_v25, %v9804_v42  ;;  %v10011_v23 = vmax.f32 %v9947_v61, 0.0 }
0x10ef   : > { %v10012_v18 = vmax.f32 %v9948_v8, 0.0 }
0x10f1   : > { %v10057_v31 = vpack.c.bf16 %v10012_v18, %v10011_v23  ;;  %v9808_v2 = vpop.f32.mrb[212].mxu1 }
0x10f2   : > { %v9809_v7 = vpop.f32.mrb[213].mxu1 }
0x10f3   : > { %v9949_v44 = vadd.f32 %v18111_v25, %v9809_v7  ;;  %v9811_v59 = vpop.f32.mrb[214].mxu1  ;;  %12091 = vmatprep.mubr.bf16.mxu1 %v10057_v31 }
0x10f4   : > { %v9812_v50 = vpop.f32.mrb[215].mxu1 }
0x10f5   : > { %v9950_v55 = vadd.f32 %v18111_v25, %v9812_v50  ;;  %v10013_v28 = vmax.f32 %v9949_v44, 0.0 }
0x10f7   : > { %v10014_v57 = vmax.f32 %v9950_v55, 0.0 }
0x10f9   : > { %v10058_v10 = vpack.c.bf16 %v10014_v57, %v10013_v28  ;;  %v9816_v11 = vpop.f32.mrb[216].mxu1 }
0x10fa   : > { %v9817_v37 = vpop.f32.mrb[217].mxu1 }
0x10fb   : > { %v9951_v41 = vadd.f32 %v18111_v25, %v9817_v37  ;;  %v9819_v26 = vpop.f32.mrb[218].mxu1  ;;  %12092 = vmatmul.mubr.bf16.gmra.mrb[44].mxu1 %v10058_v10 }
0x10fc   : > { %v9820_v33 = vpop.f32.mrb[219].mxu1 }
0x10fd   : > { %v9952_v63 = vadd.f32 %v18111_v25, %v9820_v33  ;;  %v10015_v12 = vmax.f32 %v9951_v41, 0.0 }
0x10ff   : > { %v10016_v60 = vmax.f32 %v9952_v63, 0.0 }
0x1101   : > { %v10059_v46 = vpack.c.bf16 %v10016_v60, %v10015_v12  ;;  %v9824_v34 = vpop.f32.mrb[220].mxu1 }
0x1102   : > { %v9825_v51 = vpop.f32.mrb[221].mxu1 }
0x1103   : > { %v9953_v45 = vadd.f32 %v18111_v25, %v9825_v51  ;;  %v9827_v38 = vpop.f32.mrb[222].mxu1  ;;  %12095 = vmatprep.mubr.bf16.mxu1 %v10059_v46 }
0x1104   : > { %v9828_v58 = vpop.f32.mrb[223].mxu1 }
0x1105   : > { %v9954_v5 = vadd.f32 %v18111_v25, %v9828_v58  ;;  %v10017_v32 = vmax.f32 %v9953_v45, 0.0 }
0x1107   : > { %v10018_v29 = vmax.f32 %v9954_v5, 0.0 }
0x1109   : > { %v10060_v4 = vpack.c.bf16 %v10018_v29, %v10017_v32  ;;  %v9832_v22 = vpop.f32.mrb[224].mxu1 }
0x110a   : > { %v9833_v48 = vpop.f32.mrb[225].mxu1 }
0x110b   : > { %v9955_v39 = vadd.f32 %v18111_v25, %v9833_v48  ;;  %v9835_v0 = vpop.f32.mrb[226].mxu1  ;;  %12096 = vmatmul.mubr.bf16.gmra.mrb[48].mxu1 %v10060_v4 }
0x110c   : > { %v9836_v62 = vpop.f32.mrb[227].mxu1 }
0x110d   : > { %v9956_v52 = vadd.f32 %v18111_v25, %v9836_v62  ;;  %v10019_v16 = vmax.f32 %v9955_v39, 0.0 }
0x110f   : > { %v10020_v30 = vmax.f32 %v9956_v52, 0.0 }
0x1111   : > { %v10061_v3 = vpack.c.bf16 %v10020_v30, %v10019_v16  ;;  %v9840_v13 = vpop.f32.mrb[228].mxu1 }
0x1112   : > { %v9841_v6 = vpop.f32.mrb[229].mxu1 }
0x1113   : > { %v9957_v56 = vadd.f32 %v18111_v25, %v9841_v6  ;;  %v9843_v24 = vpop.f32.mrb[230].mxu1  ;;  %12099 = vmatprep.mubr.bf16.mxu1 %v10061_v3 }
0x1114   : > { %v9844_v1 = vpop.f32.mrb[231].mxu1 }
0x1115   : > { %v9958_v20 = vadd.f32 %v18111_v25, %v9844_v1  ;;  %v10021_v14 = vmax.f32 %v9957_v56, 0.0 }
0x1117   : > { %v10022_v36 = vmax.f32 %v9958_v20, 0.0 }
0x1119   : > { %v10062_v27 = vpack.c.bf16 %v10022_v36, %v10021_v14  ;;  %v9848_v43 = vpop.f32.mrb[232].mxu1 }
0x111a   : > { %v9849_v15 = vpop.f32.mrb[233].mxu1 }
0x111b   : > { %v9959_v40 = vadd.f32 %v18111_v25, %v9849_v15  ;;  %v9851_v21 = vpop.f32.mrb[234].mxu1  ;;  %12100 = vmatmul.mubr.bf16.gmra.mrb[52].mxu1 %v10062_v27 }
0x111c   : > { %v9852_v49 = vpop.f32.mrb[235].mxu1 }
0x111d   : > { %v9960_v35 = vadd.f32 %v18111_v25, %v9852_v49  ;;  %v10023_v19 = vmax.f32 %v9959_v40, 0.0 }
0x111f   : > { %v10024_v53 = vmax.f32 %v9960_v35, 0.0 }
0x1121   : > { %v10063_v9 = vpack.c.bf16 %v10024_v53, %v10023_v19  ;;  %v9856_v17 = vpop.f32.mrb[236].mxu1 }
0x1122   : > { %v9857_v54 = vpop.f32.mrb[237].mxu1 }
0x1123   : > { %v9961_v61 = vadd.f32 %v18111_v25, %v9857_v54  ;;  %v9859_v47 = vpop.f32.mrb[238].mxu1  ;;  %12103 = vmatprep.mubr.bf16.mxu1 %v10063_v9  ;;  %v18217_v54 = vld [vmem:[%s18431_s6] ss:$0 sm:$0xff] }
0x1124   : > { %v9860_v42 = vpop.f32.mrb[239].mxu1 }
0x1125   : > { %v9962_v8 = vadd.f32 %v18111_v25, %v9860_v42  ;;  %v10025_v23 = vmax.f32 %v9961_v61, 0.0 }
0x1127   : > { %v10026_v18 = vmax.f32 %v9962_v8, 0.0 }
0x1129   : > { %v10064_v31 = vpack.c.bf16 %v10026_v18, %v10025_v23  ;;  %v9864_v2 = vpop.f32.mrb[240].mxu1 }
0x112a   : > { %v9865_v7 = vpop.f32.mrb[241].mxu1 }
0x112b   : > { %v9963_v44 = vadd.f32 %v18111_v25, %v9865_v7  ;;  %v9867_v59 = vpop.f32.mrb[242].mxu1  ;;  %12104 = vmatmul.mubr.bf16.gmra.mrb[56].mxu1 %v10064_v31 }
0x112c   : > { %v9868_v50 = vpop.f32.mrb[243].mxu1 }
0x112d   : > { %v9964_v55 = vadd.f32 %v18111_v25, %v9868_v50  ;;  %v10027_v28 = vmax.f32 %v9963_v44, 0.0 }
0x112f   : > { %v10028_v57 = vmax.f32 %v9964_v55, 0.0 }
0x1131   : > { %v10065_v10 = vpack.c.bf16 %v10028_v57, %v10027_v28  ;;  %v9872_v11 = vpop.f32.mrb[244].mxu1 }
0x1132   : > { %v9873_v37 = vpop.f32.mrb[245].mxu1 }
0x1133   : > { %v9965_v41 = vadd.f32 %v18111_v25, %v9873_v37  ;;  %v9875_v26 = vpop.f32.mrb[246].mxu1  ;;  %12107 = vmatprep.mubr.bf16.mxu1 %v10065_v10 }
0x1134   : > { %v9876_v33 = vpop.f32.mrb[247].mxu1 }
0x1135   : > { %v9966_v63 = vadd.f32 %v18111_v25, %v9876_v33  ;;  %v10029_v12 = vmax.f32 %v9965_v41, 0.0 }
0x1137   : > { %v10030_v60 = vmax.f32 %v9966_v63, 0.0 }
0x1139   : > { %v10066_v46 = vpack.c.bf16 %v10030_v60, %v10029_v12  ;;  %v9880_v34 = vpop.f32.mrb[248].mxu1 }
0x113a   : > { %v9881_v51 = vpop.f32.mrb[249].mxu1 }
0x113b   : > { %v9967_v45 = vadd.f32 %v18111_v25, %v9881_v51  ;;  %v9883_v38 = vpop.f32.mrb[250].mxu1  ;;  %12108 = vmatmul.mubr.bf16.gmra.mrb[60].mxu1 %v10066_v46 }
0x113c   : > { %v9884_v58 = vpop.f32.mrb[251].mxu1 }
0x113d   : > { %v9968_v5 = vadd.f32 %v18111_v25, %v9884_v58  ;;  %v10031_v32 = vmax.f32 %v9967_v45, 0.0 }
0x113f   : > { %v10032_v29 = vmax.f32 %v9968_v5, 0.0 }
0x1141   : > { %v10067_v4 = vpack.c.bf16 %v10032_v29, %v10031_v32  ;;  %v9888_v22 = vpop.f32.mrb[252].mxu1 }
0x1142   : > { %v9889_v48 = vpop.f32.mrb[253].mxu1 }
0x1143   : > { %v9969_v39 = vadd.f32 %v18111_v25, %v9889_v48  ;;  %v9891_v0 = vpop.f32.mrb[254].mxu1  ;;  %12111 = vmatprep.mubr.bf16.mxu1 %v10067_v4 }
0x1144   : > { %v9892_v62 = vpop.f32.mrb[255].mxu1 }
0x1145   : > { %v9970_v52 = vadd.f32 %v18111_v25, %v9892_v62  ;;  %v10033_v16 = vmax.f32 %v9969_v39, 0.0 }
0x1147   : > { %v10034_v30 = vmax.f32 %v9970_v52, 0.0 }
0x1149   : > { %v10068_v3 = vpack.c.bf16 %v10034_v30, %v10033_v16  ;;  %v9896_v13 = vpop.f32.mrb[0].mxu1 }
0x114a   : > { %v9897_v6 = vpop.f32.mrb[1].mxu1 }
0x114b   : > { %v9971_v56 = vadd.f32 %v18111_v25, %v9897_v6  ;;  %v9899_v24 = vpop.f32.mrb[2].mxu1  ;;  %12112 = vmatmul.mubr.bf16.gmra.mrb[64].mxu1 %v10068_v3 }
0x114c   : > { %v9900_v1 = vpop.f32.mrb[3].mxu1 }
0x114d   : > { %v9972_v20 = vadd.f32 %v18111_v25, %v9900_v1  ;;  %v10035_v14 = vmax.f32 %v9971_v56, 0.0 }
0x114f   : > { %v10036_v36 = vmax.f32 %v9972_v20, 0.0 }
0x1151   : > { %v10069_v27 = vpack.c.bf16 %v10036_v36, %v10035_v14  ;;  %v9904_v43 = vpop.f32.mrb[4].mxu1 }
0x1152   : > { %v9905_v15 = vpop.f32.mrb[5].mxu1 }
0x1153   : > { %v9973_v40 = vadd.f32 %v18111_v25, %v9905_v15  ;;  %v9907_v21 = vpop.f32.mrb[6].mxu1  ;;  %12115 = vmatprep.mubr.bf16.mxu1 %v10069_v27 }
0x1154   : > { %v9908_v49 = vpop.f32.mrb[7].mxu1 }
0x1155   : > { %v9974_v35 = vadd.f32 %v18111_v25, %v9908_v49  ;;  %v10037_v19 = vmax.f32 %v9973_v40, 0.0 }
0x1157   : > { %v10038_v53 = vmax.f32 %v9974_v35, 0.0 }
0x1159   : > { %v10070_v9 = vpack.c.bf16 %v10038_v53, %v10037_v19  ;;  %v12057_v17 = vpop.f32.mrb[8].mxu1 }
0x115a   : > { %v10114_v61 = vadd.f32 %v18217_v54, %v12057_v17  ;;  %v10105_v47 = vpop.f32.mrb[9].mxu1 }
0x115b   : > { %v10106_v42 = vadd.f32 %v18217_v54, %v10105_v47  ;;  %v12058_v8 = vpop.f32.mrb[10].mxu1  ;;  %12116 = vmatmul.mubr.bf16.gmra.mrb[68].mxu1 %v10070_v9 }
0x115c   : > { %v10117_v23 = vadd.f32 %v18217_v54, %v12058_v8  ;;  %v10108_v18 = vpop.f32.mrb[11].mxu1  ;;  %v10362_v31 = vmax.f32 %v10114_v61, 0.0 }
0x115d   : > { %v10109_v25 = vadd.f32 %v18217_v54, %v10108_v18  ;;  %v10360_v7 = vmax.f32 %v10106_v42, 0.0 }
0x115e   : > { %v10363_v2 = vmax.f32 %v10117_v23, 0.0 }
0x115f   : > { %v10361_v44 = vmax.f32 %v10109_v25, 0.0 }
0x1160   : > { %v10425_v59 = vpack.c.bf16 %v10363_v2, %v10362_v31 }
0x1161   : > { %v10424_v50 = vpack.c.bf16 %v10361_v44, %v10360_v7  ;;  %v12061_v55 = vpop.f32.mrb[12].mxu1 }
0x1162   : > { %v10130_v28 = vadd.f32 %v18217_v54, %v12061_v55  ;;  %v10121_v57 = vpop.f32.mrb[13].mxu1 }
0x1163   : > { %v10122_v10 = vadd.f32 %v18217_v54, %v10121_v57  ;;  %v12062_v11 = vpop.f32.mrb[14].mxu1  ;;  %12135 = vmatprep.mubr.bf16.mxu1 %v10424_v50 }
0x1164   : > { %v10133_v37 = vadd.f32 %v18217_v54, %v12062_v11  ;;  %v10124_v41 = vpop.f32.mrb[15].mxu1  ;;  %12136 = vmatmul.mubr.bf16.vlgmr.msra.gmra.mrb[136].mxu1 %v10425_v59  ;;  %v10366_v33 = vmax.f32 %v10130_v28, 0.0 }
0x1165   : > { %v10125_v26 = vadd.f32 %v18217_v54, %v10124_v41  ;;  %v10364_v12 = vmax.f32 %v10122_v10, 0.0 }
0x1166   : > { %v10367_v63 = vmax.f32 %v10133_v37, 0.0 }
0x1167   : > { %v10365_v60 = vmax.f32 %v10125_v26, 0.0 }
0x1168   : > { %v10427_v46 = vpack.c.bf16 %v10367_v63, %v10366_v33 }
0x1169   : > { %v10426_v34 = vpack.c.bf16 %v10365_v60, %v10364_v12  ;;  %v12065_v51 = vpop.f32.mrb[16].mxu1 }
0x116a   : > { %v10146_v45 = vadd.f32 %v18217_v54, %v12065_v51  ;;  %v10137_v38 = vpop.f32.mrb[17].mxu1 }
0x116b   : > { %v10138_v58 = vadd.f32 %v18217_v54, %v10137_v38  ;;  %v12066_v5 = vpop.f32.mrb[18].mxu1  ;;  %12139 = vmatprep.mubr.bf16.mxu1 %v10426_v34 }
0x116c   : > { %v10149_v32 = vadd.f32 %v18217_v54, %v12066_v5  ;;  %v10140_v29 = vpop.f32.mrb[19].mxu1  ;;  %12140 = vmatmul.mubr.bf16.gmra.mrb[140].mxu1 %v10427_v46  ;;  %v10370_v22 = vmax.f32 %v10146_v45, 0.0 }
0x116d   : > { %v10141_v4 = vadd.f32 %v18217_v54, %v10140_v29  ;;  %v10368_v39 = vmax.f32 %v10138_v58, 0.0 }
0x116e   : > { %v10371_v48 = vmax.f32 %v10149_v32, 0.0 }
0x116f   : > { %v10369_v0 = vmax.f32 %v10141_v4, 0.0 }
0x1170   : > { %v10429_v62 = vpack.c.bf16 %v10371_v48, %v10370_v22 }
0x1171   : > { %v10428_v52 = vpack.c.bf16 %v10369_v0, %v10368_v39  ;;  %v12069_v16 = vpop.f32.mrb[20].mxu1 }
0x1172   : > { %v10162_v30 = vadd.f32 %v18217_v54, %v12069_v16  ;;  %v10153_v3 = vpop.f32.mrb[21].mxu1 }
0x1173   : > { %v10154_v13 = vadd.f32 %v18217_v54, %v10153_v3  ;;  %v12070_v6 = vpop.f32.mrb[22].mxu1  ;;  %12143 = vmatprep.mubr.bf16.mxu1 %v10428_v52 }
0x1174   : > { %v10165_v56 = vadd.f32 %v18217_v54, %v12070_v6  ;;  %v10156_v24 = vpop.f32.mrb[23].mxu1  ;;  %12144 = vmatmul.mubr.bf16.gmra.mrb[144].mxu1 %v10429_v62  ;;  %v10374_v20 = vmax.f32 %v10162_v30, 0.0 }
0x1175   : > { %v10157_v1 = vadd.f32 %v18217_v54, %v10156_v24  ;;  %v10372_v36 = vmax.f32 %v10154_v13, 0.0 }
0x1176   : > { %v10375_v14 = vmax.f32 %v10165_v56, 0.0 }
0x1177   : > { %v10373_v27 = vmax.f32 %v10157_v1, 0.0 }
0x1178   : > { %v10431_v43 = vpack.c.bf16 %v10375_v14, %v10374_v20 }
0x1179   : > { %v10430_v15 = vpack.c.bf16 %v10373_v27, %v10372_v36 }
0x117b   : > { %12147 = vmatprep.mubr.bf16.mxu1 %v10430_v15 }
0x117c   : > { %12148 = vmatmul.mubr.bf16.gmra.mrb[148].mxu1 %v10431_v43 }
0x117e   : > { %v12073_v40 = vpop.f32.mrb[24].mxu1 }
0x117f   : > { %v10178_v21 = vadd.f32 %v18217_v54, %v12073_v40  ;;  %v10169_v49 = vpop.f32.mrb[25].mxu1 }
0x1180   : > { %v10170_v35 = vadd.f32 %v18217_v54, %v10169_v49  ;;  %v12074_v19 = vpop.f32.mrb[26].mxu1 }
0x1181   : > { %v10181_v53 = vadd.f32 %v18217_v54, %v12074_v19  ;;  %v10172_v9 = vpop.f32.mrb[27].mxu1  ;;  %v10378_v61 = vmax.f32 %v10178_v21, 0.0 }
0x1182   : > { %v10173_v17 = vadd.f32 %v18217_v54, %v10172_v9  ;;  %v10376_v42 = vmax.f32 %v10170_v35, 0.0 }
0x1183   : > { %v10379_v47 = vmax.f32 %v10181_v53, 0.0 }
0x1184   : > { %v10377_v8 = vmax.f32 %v10173_v17, 0.0 }
0x1185   : > { %v10433_v23 = vpack.c.bf16 %v10379_v47, %v10378_v61 }
0x1186   : > { %v10432_v18 = vpack.c.bf16 %v10377_v8, %v10376_v42 }
0x1188   : > { %12151 = vmatprep.mubr.bf16.mxu1 %v10432_v18 }
0x1189   : > { %12152 = vmatmul.mubr.bf16.gmra.mrb[152].mxu1 %v10433_v23 }
0x118e   : > { %v12077_v25 = vpop.f32.mrb[28].mxu1 }
0x118f   : > { %v10194_v31 = vadd.f32 %v18217_v54, %v12077_v25  ;;  %v10185_v2 = vpop.f32.mrb[29].mxu1 }
0x1190   : > { %v10186_v7 = vadd.f32 %v18217_v54, %v10185_v2  ;;  %v12078_v44 = vpop.f32.mrb[30].mxu1 }
0x1191   : > { %v10197_v59 = vadd.f32 %v18217_v54, %v12078_v44  ;;  %v10188_v50 = vpop.f32.mrb[31].mxu1  ;;  %v10382_v28 = vmax.f32 %v10194_v31, 0.0 }
0x1192   : > { %v10189_v55 = vadd.f32 %v18217_v54, %v10188_v50  ;;  %v10380_v10 = vmax.f32 %v10186_v7, 0.0 }
0x1193   : > { %v10383_v57 = vmax.f32 %v10197_v59, 0.0 }
0x1194   : > { %v10381_v11 = vmax.f32 %v10189_v55, 0.0 }
0x1195   : > { %v10435_v37 = vpack.c.bf16 %v10383_v57, %v10382_v28 }
0x1196   : > { %v10434_v41 = vpack.c.bf16 %v10381_v11, %v10380_v10 }
0x1198   : > { %12155 = vmatprep.mubr.bf16.mxu1 %v10434_v41 }
0x1199   : > { %12156 = vmatmul.mubr.bf16.gmra.mrb[156].mxu1 %v10435_v37 }
0x119e   : > { %v12081_v26 = vpop.f32.mrb[32].mxu1 }
0x119f   : > { %v10210_v33 = vadd.f32 %v18217_v54, %v12081_v26  ;;  %v10201_v63 = vpop.f32.mrb[33].mxu1 }
0x11a0   : > { %v10202_v12 = vadd.f32 %v18217_v54, %v10201_v63  ;;  %v12082_v60 = vpop.f32.mrb[34].mxu1 }
0x11a1   : > { %v10213_v46 = vadd.f32 %v18217_v54, %v12082_v60  ;;  %v10204_v34 = vpop.f32.mrb[35].mxu1  ;;  %v10386_v45 = vmax.f32 %v10210_v33, 0.0 }
0x11a2   : > { %v10205_v51 = vadd.f32 %v18217_v54, %v10204_v34  ;;  %v10384_v58 = vmax.f32 %v10202_v12, 0.0 }
0x11a3   : > { %v10387_v38 = vmax.f32 %v10213_v46, 0.0 }
0x11a4   : > { %v10385_v5 = vmax.f32 %v10205_v51, 0.0 }
0x11a5   : > { %v10437_v32 = vpack.c.bf16 %v10387_v38, %v10386_v45 }
0x11a6   : > { %v10436_v29 = vpack.c.bf16 %v10385_v5, %v10384_v58 }
0x11a8   : > { %12159 = vmatprep.mubr.bf16.mxu1 %v10436_v29 }
0x11a9   : > { %12160 = vmatmul.mubr.bf16.gmra.mrb[160].mxu1 %v10437_v32 }
0x11ae   : > { %v12085_v4 = vpop.f32.mrb[36].mxu1 }
0x11af   : > { %v10226_v22 = vadd.f32 %v18217_v54, %v12085_v4  ;;  %v10217_v48 = vpop.f32.mrb[37].mxu1 }
0x11b0   : > { %v10218_v39 = vadd.f32 %v18217_v54, %v10217_v48  ;;  %v12086_v0 = vpop.f32.mrb[38].mxu1 }
0x11b1   : > { %v10229_v62 = vadd.f32 %v18217_v54, %v12086_v0  ;;  %v10220_v52 = vpop.f32.mrb[39].mxu1  ;;  %v10390_v30 = vmax.f32 %v10226_v22, 0.0 }
0x11b2   : > { %v10221_v16 = vadd.f32 %v18217_v54, %v10220_v52  ;;  %v10388_v13 = vmax.f32 %v10218_v39, 0.0 }
0x11b3   : > { %v10391_v3 = vmax.f32 %v10229_v62, 0.0 }
0x11b4   : > { %v10389_v6 = vmax.f32 %v10221_v16, 0.0 }
0x11b5   : > { %v10439_v56 = vpack.c.bf16 %v10391_v3, %v10390_v30 }
0x11b6   : > { %v10438_v24 = vpack.c.bf16 %v10389_v6, %v10388_v13 }
0x11b8   : > { %12163 = vmatprep.mubr.bf16.mxu1 %v10438_v24 }
0x11b9   : > { %12164 = vmatmul.mubr.bf16.gmra.mrb[164].mxu1 %v10439_v56 }
0x11be   : > { %v12089_v1 = vpop.f32.mrb[40].mxu1 }
0x11bf   : > { %v10242_v20 = vadd.f32 %v18217_v54, %v12089_v1  ;;  %v10233_v14 = vpop.f32.mrb[41].mxu1 }
0x11c0   : > { %v10234_v36 = vadd.f32 %v18217_v54, %v10233_v14  ;;  %v12090_v27 = vpop.f32.mrb[42].mxu1 }
0x11c1   : > { %v10245_v43 = vadd.f32 %v18217_v54, %v12090_v27  ;;  %v10236_v15 = vpop.f32.mrb[43].mxu1  ;;  %v10394_v21 = vmax.f32 %v10242_v20, 0.0 }
0x11c2   : > { %v10237_v40 = vadd.f32 %v18217_v54, %v10236_v15  ;;  %v10392_v35 = vmax.f32 %v10234_v36, 0.0 }
0x11c3   : > { %v10395_v49 = vmax.f32 %v10245_v43, 0.0 }
0x11c4   : > { %v10393_v19 = vmax.f32 %v10237_v40, 0.0 }
0x11c5   : > { %v10441_v53 = vpack.c.bf16 %v10395_v49, %v10394_v21 }
0x11c6   : > { %v10440_v9 = vpack.c.bf16 %v10393_v19, %v10392_v35 }
0x11c8   : > { %12167 = vmatprep.mubr.bf16.mxu1 %v10440_v9 }
0x11c9   : > { %12168 = vmatmul.mubr.bf16.gmra.mrb[168].mxu1 %v10441_v53 }
0x11ce   : > { %v12093_v17 = vpop.f32.mrb[44].mxu1 }
0x11cf   : > { %v10258_v61 = vadd.f32 %v18217_v54, %v12093_v17  ;;  %v10249_v47 = vpop.f32.mrb[45].mxu1 }
0x11d0   : > { %v10250_v42 = vadd.f32 %v18217_v54, %v10249_v47  ;;  %v12094_v8 = vpop.f32.mrb[46].mxu1 }
0x11d1   : > { %v10261_v23 = vadd.f32 %v18217_v54, %v12094_v8  ;;  %v10252_v18 = vpop.f32.mrb[47].mxu1  ;;  %v10398_v31 = vmax.f32 %v10258_v61, 0.0 }
0x11d2   : > { %v10253_v25 = vadd.f32 %v18217_v54, %v10252_v18  ;;  %v10396_v7 = vmax.f32 %v10250_v42, 0.0 }
0x11d3   : > { %v10399_v2 = vmax.f32 %v10261_v23, 0.0 }
0x11d4   : > { %v10397_v44 = vmax.f32 %v10253_v25, 0.0 }
0x11d5   : > { %v10443_v59 = vpack.c.bf16 %v10399_v2, %v10398_v31 }
0x11d6   : > { %v10442_v50 = vpack.c.bf16 %v10397_v44, %v10396_v7 }
0x11d8   : > { %12171 = vmatprep.mubr.bf16.mxu1 %v10442_v50 }
0x11d9   : > { %12172 = vmatmul.mubr.bf16.gmra.mrb[172].mxu1 %v10443_v59 }
0x11de   : > { %v12097_v55 = vpop.f32.mrb[48].mxu1 }
0x11df   : > { %v10274_v28 = vadd.f32 %v18217_v54, %v12097_v55  ;;  %v10265_v57 = vpop.f32.mrb[49].mxu1 }
0x11e0   : > { %v10266_v10 = vadd.f32 %v18217_v54, %v10265_v57  ;;  %v12098_v11 = vpop.f32.mrb[50].mxu1 }
0x11e1   : > { %v10277_v37 = vadd.f32 %v18217_v54, %v12098_v11  ;;  %v10268_v41 = vpop.f32.mrb[51].mxu1  ;;  %v10402_v33 = vmax.f32 %v10274_v28, 0.0 }
0x11e2   : > { %v10269_v26 = vadd.f32 %v18217_v54, %v10268_v41  ;;  %v10400_v12 = vmax.f32 %v10266_v10, 0.0 }
0x11e3   : > { %v10403_v63 = vmax.f32 %v10277_v37, 0.0 }
0x11e4   : > { %v10401_v60 = vmax.f32 %v10269_v26, 0.0  ;;  %v11124_v26 = vld [vmem:[%s18433_s8] ss:$0 sm:$0xff] }
0x11e5   : > { %v10445_v46 = vpack.c.bf16 %v10403_v63, %v10402_v33  ;;  %v12283_v33 = vadd.f32 %v11124_v26, %v11124_v26 }
0x11e6   : > { %v10444_v34 = vpack.c.bf16 %v10401_v60, %v10400_v12 }
0x11e8   : > { %12175 = vmatprep.mubr.bf16.mxu1 %v10444_v34 }
0x11e9   : > { %12176 = vmatmul.mubr.bf16.gmra.mrb[176].mxu1 %v10445_v46 }
0x11ee   : > { %v12101_v51 = vpop.f32.mrb[52].mxu1 }
0x11ef   : > { %v10290_v45 = vadd.f32 %v18217_v54, %v12101_v51  ;;  %v10281_v38 = vpop.f32.mrb[53].mxu1  ;;  %v12284_v51 = vadd.f32 %v12283_v33, %v11124_v26 }
0x11f0   : > { %v10282_v58 = vadd.f32 %v18217_v54, %v10281_v38  ;;  %v12102_v5 = vpop.f32.mrb[54].mxu1 }
0x11f1   : > { %v10293_v32 = vadd.f32 %v18217_v54, %v12102_v5  ;;  %v10284_v29 = vpop.f32.mrb[55].mxu1  ;;  %v10406_v22 = vmax.f32 %v10290_v45, 0.0 }
0x11f2   : > { %v10285_v4 = vadd.f32 %v18217_v54, %v10284_v29  ;;  %v10404_v39 = vmax.f32 %v10282_v58, 0.0 }
0x11f3   : > { %v10407_v48 = vmax.f32 %v10293_v32, 0.0 }
0x11f4   : > { %v10405_v0 = vmax.f32 %v10285_v4, 0.0 }
0x11f5   : > { %v10447_v62 = vpack.c.bf16 %v10407_v48, %v10406_v22  ;;  %v18287_v22 = vadd.f32 %v12284_v51, %v11124_v26 }
0x11f6   : > { %v10446_v52 = vpack.c.bf16 %v10405_v0, %v10404_v39 }
0x11f8   : > { %12179 = vmatprep.mubr.bf16.mxu1 %v10446_v52 }
0x11f9   : > { %12180 = vmatmul.mubr.bf16.gmra.mrb[180].mxu1 %v10447_v62 }
0x11fe   : > { %v12105_v16 = vpop.f32.mrb[56].mxu1 }
0x11ff   : > { %v10306_v30 = vadd.f32 %v18217_v54, %v12105_v16  ;;  %v10297_v3 = vpop.f32.mrb[57].mxu1 }
0x1200   : > { %v10298_v13 = vadd.f32 %v18217_v54, %v10297_v3  ;;  %v12106_v6 = vpop.f32.mrb[58].mxu1 }
0x1201   : > { %v10309_v56 = vadd.f32 %v18217_v54, %v12106_v6  ;;  %v10300_v24 = vpop.f32.mrb[59].mxu1  ;;  %v10410_v20 = vmax.f32 %v10306_v30, 0.0 }
0x1202   : > { %v10301_v1 = vadd.f32 %v18217_v54, %v10300_v24  ;;  %v10408_v36 = vmax.f32 %v10298_v13, 0.0 }
0x1203   : > { %v10411_v14 = vmax.f32 %v10309_v56, 0.0 }
0x1204   : > { %v10409_v27 = vmax.f32 %v10301_v1, 0.0 }
0x1205   : > { %v10449_v43 = vpack.c.bf16 %v10411_v14, %v10410_v20 }
0x1206   : > { %v10448_v15 = vpack.c.bf16 %v10409_v27, %v10408_v36 }
0x1208   : > { %12183 = vmatprep.mubr.bf16.mxu1 %v10448_v15 }
0x1209   : > { %12184 = vmatmul.mubr.bf16.gmra.mrb[184].mxu1 %v10449_v43 }
0x120e   : > { %v12109_v40 = vpop.f32.mrb[60].mxu1 }
0x120f   : > { %v10322_v21 = vadd.f32 %v18217_v54, %v12109_v40  ;;  %v10313_v49 = vpop.f32.mrb[61].mxu1 }
0x1210   : > { %v10314_v35 = vadd.f32 %v18217_v54, %v10313_v49  ;;  %v12110_v19 = vpop.f32.mrb[62].mxu1 }
0x1211   : > { %v10325_v53 = vadd.f32 %v18217_v54, %v12110_v19  ;;  %v10316_v9 = vpop.f32.mrb[63].mxu1  ;;  %v10414_v61 = vmax.f32 %v10322_v21, 0.0 }
0x1212   : > { %v10317_v17 = vadd.f32 %v18217_v54, %v10316_v9  ;;  %v10412_v42 = vmax.f32 %v10314_v35, 0.0 }
0x1213   : > { %v10415_v47 = vmax.f32 %v10325_v53, 0.0 }
0x1214   : > { %v10413_v8 = vmax.f32 %v10317_v17, 0.0 }
0x1215   : > { %v10451_v23 = vpack.c.bf16 %v10415_v47, %v10414_v61 }
0x1216   : > { %v10450_v18 = vpack.c.bf16 %v10413_v8, %v10412_v42 }
0x1218   : > { %12187 = vmatprep.mubr.bf16.mxu1 %v10450_v18 }
0x1219   : > { %12188 = vmatmul.mubr.bf16.gmra.mrb[188].mxu1 %v10451_v23 }
0x121e   : > { %v12113_v25 = vpop.f32.mrb[64].mxu1 }
0x121f   : > { %v10338_v31 = vadd.f32 %v18217_v54, %v12113_v25  ;;  %v10329_v2 = vpop.f32.mrb[65].mxu1 }
0x1220   : > { %v10330_v7 = vadd.f32 %v18217_v54, %v10329_v2  ;;  %v12114_v44 = vpop.f32.mrb[66].mxu1 }
0x1221   : > { %v10341_v59 = vadd.f32 %v18217_v54, %v12114_v44  ;;  %v10332_v50 = vpop.f32.mrb[67].mxu1  ;;  %v10418_v28 = vmax.f32 %v10338_v31, 0.0 }
0x1222   : > { %v10333_v55 = vadd.f32 %v18217_v54, %v10332_v50  ;;  %v10416_v10 = vmax.f32 %v10330_v7, 0.0 }
0x1223   : > { %v10419_v57 = vmax.f32 %v10341_v59, 0.0 }
0x1224   : > { %v10417_v11 = vmax.f32 %v10333_v55, 0.0 }
0x1225   : > { %v10453_v37 = vpack.c.bf16 %v10419_v57, %v10418_v28 }
0x1226   : > { %v10452_v41 = vpack.c.bf16 %v10417_v11, %v10416_v10 }
0x1228   : > { %12191 = vmatprep.mubr.bf16.mxu1 %v10452_v41 }
0x1229   : > { %12192 = vmatmul.mubr.bf16.gmra.mrb[192].mxu1 %v10453_v37 }
0x122e   : > { %v12117_v63 = vpop.f32.mrb[68].mxu1 }
0x122f   : > { %v10354_v12 = vadd.f32 %v18217_v54, %v12117_v63  ;;  %v10345_v60 = vpop.f32.mrb[69].mxu1 }
0x1230   : > { %v10346_v46 = vadd.f32 %v18217_v54, %v10345_v60  ;;  %v12118_v34 = vpop.f32.mrb[70].mxu1 }
0x1231   : > { %v10357_v45 = vadd.f32 %v18217_v54, %v12118_v34  ;;  %v10348_v38 = vpop.f32.mrb[71].mxu1  ;;  %v10422_v5 = vmax.f32 %v10354_v12, 0.0 }
0x1232   : > { %v10349_v58 = vadd.f32 %v18217_v54, %v10348_v38  ;;  %v10420_v29 = vmax.f32 %v10346_v46, 0.0 }
0x1233   : > { %v10423_v32 = vmax.f32 %v10357_v45, 0.0 }
0x1234   : > { %v10421_v4 = vmax.f32 %v10349_v58, 0.0 }
0x1235   : > { %v10455_v48 = vpack.c.bf16 %v10423_v32, %v10422_v5 }
0x1236   : > { %v10454_v39 = vpack.c.bf16 %v10421_v4, %v10420_v29 }
0x1237   : > { %v12137_v0 = vpop.f32.mrb[136].mxu1 }
0x1238   : > { %v12282_v54 = vadd.f32 %v18287_v22, %v12137_v0  ;;  %v10490_v62 = vpop.f32.mrb[137].mxu1  ;;  %12195 = vmatprep.mubr.bf16.mxu1 %v10454_v39 }
0x1239   : > { %v12286_v52 = vadd.f32 %v18287_v22, %v10490_v62  ;;  %v12138_v16 = vpop.f32.mrb[138].mxu1  ;;  %12196 = vmatmul.mubr.bf16.gmra.mrb[196].mxu1 %v10455_v48 }
0x123a   : > { %10811 = vst [vmem:[%s18292_s26 + $0x10] sm:$0xff] %v12282_v54  ;;  %v12290_v30 = vadd.f32 %v18287_v22, %v12138_v16  ;;  %v10493_v3 = vpop.f32.mrb[139].mxu1 }
0x123b   : > { %10809 = vst [vmem:[%s18292_s26] sm:$0xff] %v12286_v52  ;;  %v12294_v13 = vadd.f32 %v18287_v22, %v10493_v3 }
0x123c   : > { %10812 = vst [vmem:[%s18292_s26 + $0x18] sm:$0xff] %v12290_v30 }
0x123d   : > { %10810 = vst [vmem:[%s18292_s26 + $0x8] sm:$0xff] %v12294_v13 }
0x123f   : > { %v12141_v6 = vpop.f32.mrb[140].mxu1 }
0x1240   : > { %v12298_v56 = vadd.f32 %v18287_v22, %v12141_v6  ;;  %v10506_v24 = vpop.f32.mrb[141].mxu1 }
0x1241   : > { %v12302_v1 = vadd.f32 %v18287_v22, %v10506_v24  ;;  %v12142_v20 = vpop.f32.mrb[142].mxu1 }
0x1242   : > { %10815 = vst [vmem:[%s18292_s26 + $0x30] sm:$0xff] %v12298_v56  ;;  %v12306_v14 = vadd.f32 %v18287_v22, %v12142_v20  ;;  %v10509_v36 = vpop.f32.mrb[143].mxu1 }
0x1243   : > { %10813 = vst [vmem:[%s18292_s26 + $0x20] sm:$0xff] %v12302_v1  ;;  %v12310_v27 = vadd.f32 %v18287_v22, %v10509_v36 }
0x1244   : > { %10816 = vst [vmem:[%s18292_s26 + $0x38] sm:$0xff] %v12306_v14 }
0x1245   : > { %10814 = vst [vmem:[%s18292_s26 + $0x28] sm:$0xff] %v12310_v27 }
0x1247   : > { %v12145_v43 = vpop.f32.mrb[144].mxu1 }
0x1248   : > { %v12314_v15 = vadd.f32 %v18287_v22, %v12145_v43  ;;  %v10522_v40 = vpop.f32.mrb[145].mxu1 }
0x1249   : > { %v12318_v21 = vadd.f32 %v18287_v22, %v10522_v40  ;;  %v12146_v49 = vpop.f32.mrb[146].mxu1 }
0x124a   : > { %10819 = vst [vmem:[%s18292_s26 + $0x50] sm:$0xff] %v12314_v15  ;;  %v12322_v35 = vadd.f32 %v18287_v22, %v12146_v49  ;;  %v10525_v19 = vpop.f32.mrb[147].mxu1 }
0x124b   : > { %10817 = vst [vmem:[%s18292_s26 + $0x40] sm:$0xff] %v12318_v21  ;;  %v12326_v53 = vadd.f32 %v18287_v22, %v10525_v19 }
0x124c   : > { %10820 = vst [vmem:[%s18292_s26 + $0x58] sm:$0xff] %v12322_v35 }
0x124d   : > { %10818 = vst [vmem:[%s18292_s26 + $0x48] sm:$0xff] %v12326_v53 }
0x124f   : > { %v12149_v9 = vpop.f32.mrb[148].mxu1 }
0x1250   : > { %v12330_v17 = vadd.f32 %v18287_v22, %v12149_v9  ;;  %v10538_v61 = vpop.f32.mrb[149].mxu1 }
0x1251   : > { %v12334_v47 = vadd.f32 %v18287_v22, %v10538_v61  ;;  %v12150_v42 = vpop.f32.mrb[150].mxu1 }
0x1252   : > { %10823 = vst [vmem:[%s18292_s26 + $0x70] sm:$0xff] %v12330_v17  ;;  %v12338_v8 = vadd.f32 %v18287_v22, %v12150_v42  ;;  %v10541_v23 = vpop.f32.mrb[151].mxu1 }
0x1253   : > { %10821 = vst [vmem:[%s18292_s26 + $0x60] sm:$0xff] %v12334_v47  ;;  %v12342_v18 = vadd.f32 %v18287_v22, %v10541_v23 }
0x1254   : > { %10824 = vst [vmem:[%s18292_s26 + $0x78] sm:$0xff] %v12338_v8 }
0x1255   : > { %10822 = vst [vmem:[%s18292_s26 + $0x68] sm:$0xff] %v12342_v18 }
0x125c   : > { %v12153_v25 = vpop.f32.mrb[152].mxu1 }
0x125d   : > { %v12346_v31 = vadd.f32 %v18287_v22, %v12153_v25  ;;  %v10554_v2 = vpop.f32.mrb[153].mxu1 }
0x125e   : > { %v12350_v7 = vadd.f32 %v18287_v22, %v10554_v2  ;;  %v12154_v44 = vpop.f32.mrb[154].mxu1 }
0x125f   : > { %10827 = vst [vmem:[%s18292_s26 + $0x90] sm:$0xff] %v12346_v31  ;;  %v12354_v59 = vadd.f32 %v18287_v22, %v12154_v44  ;;  %v10557_v50 = vpop.f32.mrb[155].mxu1 }
0x1260   : > { %10825 = vst [vmem:[%s18292_s26 + $0x80] sm:$0xff] %v12350_v7  ;;  %v12358_v55 = vadd.f32 %v18287_v22, %v10557_v50 }
0x1261   : > { %10828 = vst [vmem:[%s18292_s26 + $0x98] sm:$0xff] %v12354_v59 }
0x1262   : > { %10826 = vst [vmem:[%s18292_s26 + $0x88] sm:$0xff] %v12358_v55 }
0x126c   : > { %v12157_v28 = vpop.f32.mrb[156].mxu1 }
0x126d   : > { %v12362_v57 = vadd.f32 %v18287_v22, %v12157_v28  ;;  %v10570_v10 = vpop.f32.mrb[157].mxu1 }
0x126e   : > { %v12366_v11 = vadd.f32 %v18287_v22, %v10570_v10  ;;  %v12158_v37 = vpop.f32.mrb[158].mxu1 }
0x126f   : > { %10831 = vst [vmem:[%s18292_s26 + $0xb0] sm:$0xff] %v12362_v57  ;;  %v12370_v41 = vadd.f32 %v18287_v22, %v12158_v37  ;;  %v10573_v26 = vpop.f32.mrb[159].mxu1 }
0x1270   : > { %10829 = vst [vmem:[%s18292_s26 + $0xa0] sm:$0xff] %v12366_v11  ;;  %v12374_v33 = vadd.f32 %v18287_v22, %v10573_v26 }
0x1271   : > { %10832 = vst [vmem:[%s18292_s26 + $0xb8] sm:$0xff] %v12370_v41 }
0x1272   : > { %10830 = vst [vmem:[%s18292_s26 + $0xa8] sm:$0xff] %v12374_v33 }
0x127c   : > { %v12161_v63 = vpop.f32.mrb[160].mxu1 }
0x127d   : > { %v12378_v12 = vadd.f32 %v18287_v22, %v12161_v63  ;;  %v10586_v60 = vpop.f32.mrb[161].mxu1 }
0x127e   : > { %v12382_v46 = vadd.f32 %v18287_v22, %v10586_v60  ;;  %v12162_v34 = vpop.f32.mrb[162].mxu1 }
0x127f   : > { %10835 = vst [vmem:[%s18292_s26 + $0xd0] sm:$0xff] %v12378_v12  ;;  %v12386_v51 = vadd.f32 %v18287_v22, %v12162_v34  ;;  %v10589_v45 = vpop.f32.mrb[163].mxu1 }
0x1280   : > { %10833 = vst [vmem:[%s18292_s26 + $0xc0] sm:$0xff] %v12382_v46  ;;  %v12390_v38 = vadd.f32 %v18287_v22, %v10589_v45 }
0x1281   : > { %10836 = vst [vmem:[%s18292_s26 + $0xd8] sm:$0xff] %v12386_v51 }
0x1282   : > { %10834 = vst [vmem:[%s18292_s26 + $0xc8] sm:$0xff] %v12390_v38 }
0x128c   : > { %v12165_v58 = vpop.f32.mrb[164].mxu1 }
0x128d   : > { %v12394_v5 = vadd.f32 %v18287_v22, %v12165_v58  ;;  %v10602_v32 = vpop.f32.mrb[165].mxu1 }
0x128e   : > { %v12398_v29 = vadd.f32 %v18287_v22, %v10602_v32  ;;  %v12166_v4 = vpop.f32.mrb[166].mxu1 }
0x128f   : > { %10839 = vst [vmem:[%s18292_s26 + $0xf0] sm:$0xff] %v12394_v5  ;;  %v12402_v48 = vadd.f32 %v18287_v22, %v12166_v4  ;;  %v10605_v39 = vpop.f32.mrb[167].mxu1 }
0x1290   : > { %10837 = vst [vmem:[%s18292_s26 + $0xe0] sm:$0xff] %v12398_v29  ;;  %v12406_v0 = vadd.f32 %v18287_v22, %v10605_v39 }
0x1291   : > { %10840 = vst [vmem:[%s18292_s26 + $0xf8] sm:$0xff] %v12402_v48 }
0x1292   : > { %10838 = vst [vmem:[%s18292_s26 + $0xe8] sm:$0xff] %v12406_v0 }
0x129c   : > { %v12169_v54 = vpop.f32.mrb[168].mxu1 }
0x129d   : > { %v12410_v62 = vadd.f32 %v18287_v22, %v12169_v54  ;;  %v10618_v52 = vpop.f32.mrb[169].mxu1 }
0x129e   : > { %v12414_v16 = vadd.f32 %v18287_v22, %v10618_v52  ;;  %v12170_v30 = vpop.f32.mrb[170].mxu1 }
0x129f   : > { %10843 = vst [vmem:[%s18292_s26 + $0x110] sm:$0xff] %v12410_v62  ;;  %v12418_v3 = vadd.f32 %v18287_v22, %v12170_v30  ;;  %v10621_v13 = vpop.f32.mrb[171].mxu1 }
0x12a0   : > { %10841 = vst [vmem:[%s18292_s26 + $0x100] sm:$0xff] %v12414_v16  ;;  %v12422_v6 = vadd.f32 %v18287_v22, %v10621_v13 }
0x12a1   : > { %10844 = vst [vmem:[%s18292_s26 + $0x118] sm:$0xff] %v12418_v3 }
0x12a2   : > { %10842 = vst [vmem:[%s18292_s26 + $0x108] sm:$0xff] %v12422_v6 }
0x12ac   : > { %v12173_v56 = vpop.f32.mrb[172].mxu1 }
0x12ad   : > { %v12426_v24 = vadd.f32 %v18287_v22, %v12173_v56  ;;  %v10634_v1 = vpop.f32.mrb[173].mxu1 }
0x12ae   : > { %v12430_v20 = vadd.f32 %v18287_v22, %v10634_v1  ;;  %v12174_v14 = vpop.f32.mrb[174].mxu1 }
0x12af   : > { %10847 = vst [vmem:[%s18292_s26 + $0x130] sm:$0xff] %v12426_v24  ;;  %v12434_v36 = vadd.f32 %v18287_v22, %v12174_v14  ;;  %v10637_v27 = vpop.f32.mrb[175].mxu1 }
0x12b0   : > { %10845 = vst [vmem:[%s18292_s26 + $0x120] sm:$0xff] %v12430_v20  ;;  %v12438_v43 = vadd.f32 %v18287_v22, %v10637_v27 }
0x12b1   : > { %10848 = vst [vmem:[%s18292_s26 + $0x138] sm:$0xff] %v12434_v36 }
0x12b2   : > { %10846 = vst [vmem:[%s18292_s26 + $0x128] sm:$0xff] %v12438_v43 }
0x12bc   : > { %v12177_v15 = vpop.f32.mrb[176].mxu1 }
0x12bd   : > { %v12442_v40 = vadd.f32 %v18287_v22, %v12177_v15  ;;  %v10650_v21 = vpop.f32.mrb[177].mxu1 }
0x12be   : > { %v12446_v49 = vadd.f32 %v18287_v22, %v10650_v21  ;;  %v12178_v35 = vpop.f32.mrb[178].mxu1 }
0x12bf   : > { %10851 = vst [vmem:[%s18292_s26 + $0x150] sm:$0xff] %v12442_v40  ;;  %v12450_v19 = vadd.f32 %v18287_v22, %v12178_v35  ;;  %v10653_v53 = vpop.f32.mrb[179].mxu1 }
0x12c0   : > { %10849 = vst [vmem:[%s18292_s26 + $0x140] sm:$0xff] %v12446_v49  ;;  %v12454_v9 = vadd.f32 %v18287_v22, %v10653_v53 }
0x12c1   : > { %10852 = vst [vmem:[%s18292_s26 + $0x158] sm:$0xff] %v12450_v19 }
0x12c2   : > { %10850 = vst [vmem:[%s18292_s26 + $0x148] sm:$0xff] %v12454_v9 }
0x12cc   : > { %v12181_v17 = vpop.f32.mrb[180].mxu1 }
0x12cd   : > { %v12458_v61 = vadd.f32 %v18287_v22, %v12181_v17  ;;  %v10666_v47 = vpop.f32.mrb[181].mxu1 }
0x12ce   : > { %v12462_v42 = vadd.f32 %v18287_v22, %v10666_v47  ;;  %v12182_v8 = vpop.f32.mrb[182].mxu1 }
0x12cf   : > { %10855 = vst [vmem:[%s18292_s26 + $0x170] sm:$0xff] %v12458_v61  ;;  %v12466_v23 = vadd.f32 %v18287_v22, %v12182_v8  ;;  %v10669_v18 = vpop.f32.mrb[183].mxu1 }
0x12d0   : > { %10853 = vst [vmem:[%s18292_s26 + $0x160] sm:$0xff] %v12462_v42  ;;  %v12470_v25 = vadd.f32 %v18287_v22, %v10669_v18 }
0x12d1   : > { %10856 = vst [vmem:[%s18292_s26 + $0x178] sm:$0xff] %v12466_v23 }
0x12d2   : > { %10854 = vst [vmem:[%s18292_s26 + $0x168] sm:$0xff] %v12470_v25 }
0x12dc   : > { %v12185_v31 = vpop.f32.mrb[184].mxu1 }
0x12dd   : > { %v12474_v2 = vadd.f32 %v18287_v22, %v12185_v31  ;;  %v10682_v7 = vpop.f32.mrb[185].mxu1 }
0x12de   : > { %v12478_v44 = vadd.f32 %v18287_v22, %v10682_v7  ;;  %v12186_v59 = vpop.f32.mrb[186].mxu1 }
0x12df   : > { %10859 = vst [vmem:[%s18292_s26 + $0x190] sm:$0xff] %v12474_v2  ;;  %v12482_v50 = vadd.f32 %v18287_v22, %v12186_v59  ;;  %v10685_v55 = vpop.f32.mrb[187].mxu1 }
0x12e0   : > { %10857 = vst [vmem:[%s18292_s26 + $0x180] sm:$0xff] %v12478_v44  ;;  %v12486_v28 = vadd.f32 %v18287_v22, %v10685_v55 }
0x12e1   : > { %10860 = vst [vmem:[%s18292_s26 + $0x198] sm:$0xff] %v12482_v50 }
0x12e2   : > { %10858 = vst [vmem:[%s18292_s26 + $0x188] sm:$0xff] %v12486_v28 }
0x12ec   : > { %v12189_v57 = vpop.f32.mrb[188].mxu1 }
0x12ed   : > { %v12490_v10 = vadd.f32 %v18287_v22, %v12189_v57  ;;  %v10698_v11 = vpop.f32.mrb[189].mxu1 }
0x12ee   : > { %v12494_v37 = vadd.f32 %v18287_v22, %v10698_v11  ;;  %v12190_v41 = vpop.f32.mrb[190].mxu1 }
0x12ef   : > { %10863 = vst [vmem:[%s18292_s26 + $0x1b0] sm:$0xff] %v12490_v10  ;;  %v12498_v26 = vadd.f32 %v18287_v22, %v12190_v41  ;;  %v10701_v33 = vpop.f32.mrb[191].mxu1 }
0x12f0   : > { %10861 = vst [vmem:[%s18292_s26 + $0x1a0] sm:$0xff] %v12494_v37  ;;  %v12502_v63 = vadd.f32 %v18287_v22, %v10701_v33 }
0x12f1   : > { %10864 = vst [vmem:[%s18292_s26 + $0x1b8] sm:$0xff] %v12498_v26 }
0x12f2   : > { %10862 = vst [vmem:[%s18292_s26 + $0x1a8] sm:$0xff] %v12502_v63 }
0x12fc   : > { %v12193_v12 = vpop.f32.mrb[192].mxu1 }
0x12fd   : > { %v12506_v60 = vadd.f32 %v18287_v22, %v12193_v12  ;;  %v10714_v46 = vpop.f32.mrb[193].mxu1 }
0x12fe   : > { %v12510_v34 = vadd.f32 %v18287_v22, %v10714_v46  ;;  %v12194_v51 = vpop.f32.mrb[194].mxu1 }
0x12ff   : > { %10867 = vst [vmem:[%s18292_s26 + $0x1d0] sm:$0xff] %v12506_v60  ;;  %v12514_v45 = vadd.f32 %v18287_v22, %v12194_v51  ;;  %v10717_v38 = vpop.f32.mrb[195].mxu1 }
0x1300   : > { %10865 = vst [vmem:[%s18292_s26 + $0x1c0] sm:$0xff] %v12510_v34  ;;  %v12518_v58 = vadd.f32 %v18287_v22, %v10717_v38 }
0x1301   : > { %10868 = vst [vmem:[%s18292_s26 + $0x1d8] sm:$0xff] %v12514_v45 }
0x1302   : > { %10866 = vst [vmem:[%s18292_s26 + $0x1c8] sm:$0xff] %v12518_v58 }
0x130c   : > { %v12197_v5 = vpop.f32.mrb[196].mxu1 }
0x130d   : > { %v12522_v32 = vadd.f32 %v18287_v22, %v12197_v5  ;;  %v10730_v29 = vpop.f32.mrb[197].mxu1 }
0x130e   : > { %v12526_v4 = vadd.f32 %v18287_v22, %v10730_v29  ;;  %v12198_v48 = vpop.f32.mrb[198].mxu1 }
0x130f   : > { %10871 = vst [vmem:[%s18292_s26 + $0x1f0] sm:$0xff] %v12522_v32  ;;  %v12530_v39 = vadd.f32 %v18287_v22, %v12198_v48  ;;  %v10733_v0 = vpop.f32.mrb[199].mxu1 }
0x1310   : > { %10869 = vst [vmem:[%s18292_s26 + $0x1e0] sm:$0xff] %v12526_v4  ;;  %v12534_v54 = vadd.f32 %v18287_v22, %v10733_v0 }
0x1311   : > { %10872 = vst [vmem:[%s18292_s26 + $0x1f8] sm:$0xff] %v12530_v39 }
0x1312   : > { %10870 = vst [vmem:[%s18292_s26 + $0x1e8] sm:$0xff] %v12534_v54 }
0x1313 PF: > { %s19_s30 = sadd.s32 1, %s14606_s30  }
0x1314   : > { %p16_p4 = scmp.ge.s32.totalorder %s19_s30, 4  }
0x1316   :  { %18 = sbr.rel (!%p16_p4) target bundleno = 1 (0x1), region = 92 }

</bundles_post_ra>
